<compile_context>
chip_gen: v7x
topology: tpu7x:2x2x1
jax: 0.10.0
libtpu: 0.0.40
codegen_flags: <defaults>
</compile_context>

<pallas_src>
import functools

import jax
import jax.numpy as jnp
from jax.experimental import pallas as pl
from jax.experimental.pallas import tpu as pltpu


# ----------------------------- fused kernel ---------------------------------

def _res_block_skip_kernel(
    x_ref, skip_ref, wc_ref, rcat_ref, w2_ref, bc_ref, b1sc_ref, b2_ref,
    o_ref,
    xp_ref, pp_ref, sp_ref, *col_scratch,
    H, W, Cin, Cout, negative_slope, use_im2col):
  f32 = jnp.float32
  col_ref = col_scratch[0] if use_im2col else None
  mm_dtype = rcat_ref.dtype            # matmul operand dtype (weights define it)

  def zero_border(p_ref, C):
    # Only the 1-px border needs to be zero; interiors are fully overwritten.
    dt = p_ref.dtype
    p_ref[0:1, :, :] = jnp.zeros((1, W + 2, C), dt)
    p_ref[H + 1:H + 2, :, :] = jnp.zeros((1, W + 2, C), dt)
    p_ref[:, 0:1, :] = jnp.zeros((H + 2, 1, C), dt)
    p_ref[:, W + 1:W + 2, :] = jnp.zeros((H + 2, 1, C), dt)

  def tap(p_ref, kh, kw, C):
    # shifted (kh, kw) view of the padded image, flattened to (H*W, C)
    return p_ref[kh:kh + H, kw:kw + W, :].reshape(H * W, C)

  def conv(taps, w_ref):
    # taps: list of (padded_ref, C); the 3x3 taps of each source are laid out
    # along K in the same order as the packed RHS rows.
    if use_im2col:
      off = 0
      for p_ref, C in taps:
        for kh in range(3):
          for kw in range(3):
            col_ref[:, off:off + C] = tap(p_ref, kh, kw, C).astype(mm_dtype)
            off += C
      return jnp.dot(col_ref[:, :off], w_ref[...],
                     preferred_element_type=f32)
    # per-tap matmul variant (no im2col buffer): K = C per push.
    acc = None
    row = 0
    for p_ref, C in taps:
      for kh in range(3):
        for kw in range(3):
          part = jnp.dot(tap(p_ref, kh, kw, C).astype(mm_dtype),
                         w_ref[row:row + C, :],
                         preferred_element_type=f32)
          acc = part if acc is None else acc + part
          row += C
    return acc

  def lrelu(v):
    return jnp.where(v >= 0, v, negative_slope * v)

  # --- border-only zeroing of the halo scratches (per step: core-shard safe)
  zero_border(xp_ref, Cin)
  zero_border(pp_ref, Cout)
  zero_border(sp_ref, Cout)

  # --- stage x and skip into padded VMEM scratch (interiors only)
  xp_ref[1:H + 1, 1:W + 1, :] = x_ref[0].astype(xp_ref.dtype)
  sp_ref[1:H + 1, 1:W + 1, :] = skip_ref[0].astype(sp_ref.dtype)

  # --- self.conv : y = conv3x3(x) + b_conv -----------------------------------
  y = conv([(xp_ref, Cin)], wc_ref) + bc_ref[0].astype(f32)
  pp_ref[1:H + 1, 1:W + 1, :] = y.reshape(H, W, Cout).astype(pp_ref.dtype)

  # --- conv_1(cat) and shortcut(cat) in ONE matmul, concat never built -------
  # comb[:, :Cout] = conv3x3(cat, w1)    (pre-bias)
  # comb[:, Cout:] = conv1x1(cat, w_sc)  (pre-bias; shortcut on centre tap)
  comb = conv([(pp_ref, Cout), (sp_ref, Cout)], rcat_ref) + b1sc_ref[0].astype(f32)
  h1 = lrelu(comb[:, :Cout])
  identity = comb[:, Cout:]

  # --- conv_2(h1) + residual --------------------------------------------------
  pp_ref[1:H + 1, 1:W + 1, :] = h1.reshape(H, W, Cout).astype(pp_ref.dtype)
  h2 = conv([(pp_ref, Cout)], w2_ref) + b2_ref[0].astype(f32)
  h2 = lrelu(h2) + identity

  o_ref[...] = h2.reshape(1, H, W, Cout).astype(o_ref.dtype)


# ----------------------------- wrapper ---------------------------------------

def res_block_skip_forward(x_nchw, skip_nchw, params, *,
                           negative_slope=0.2,
                           matmul_dtype=jnp.bfloat16,
                           use_im2col=None):
  """ResBlockSkip forward. Inputs/outputs NCHW (PyTorch convention).

  matmul_dtype: bf16 (default) halves im2col stores and runs the MXU at
  native rate; None keeps exact f32 math. Epilogue/accumulation always f32.
  use_im2col: None -> auto (im2col for small C, per-tap matmuls for C >= 128).
  """
  N, Cin, H, W = x_nchw.shape
  Cout = params["w_conv"].shape[-1]
  c2 = 2 * Cout

  if use_im2col is None:
    use_im2col = Cout < 128       # per-tap matmuls for production channel counts
  mm_dtype = jnp.float32 if matmul_dtype is None else matmul_dtype

  # NCHW <-> NHWC only at the framework boundary.
  x = jnp.transpose(x_nchw, (0, 2, 3, 1))
  skip = jnp.transpose(skip_nchw, (0, 2, 3, 1))

  # ---- host-side weight packing (one-time, tiny) ----
  wc = params["w_conv"].reshape(9 * Cin, Cout)          # (3,3,Cin,Cout) HWIO
  w1 = params["w1"]                                     # (3,3,2*Cout,Cout)
  w1y = w1[:, :, :Cout, :].reshape(9 * Cout, Cout)      # y-half of cat
  w1s = w1[:, :, Cout:, :].reshape(9 * Cout, Cout)      # skip-half of cat
  wsc = params["w_sc"]                                  # (2*Cout, Cout)

  def augment(w3_flat, w1x1):
    # cols [:Cout] -> 3x3 conv weights; cols [Cout:] -> 1x1 shortcut weights
    # on the centre tap (kh=kw=1).
    r = jnp.zeros((9 * Cout, c2), w3_flat.dtype)
    r = r.at[:, :Cout].set(w3_flat)
    r = r.at[4 * Cout:5 * Cout, Cout:].set(w1x1)
    return r

  # single packed RHS for the cat conv: rows = [9 y-taps | 9 skip-taps]
  rcat = jnp.concatenate([augment(w1y, wsc[:Cout]),
                          augment(w1s, wsc[Cout:])], axis=0)
  w2 = params["w2"].reshape(9 * Cout, Cout)

  # pre-cast matmul operands host-side (no per-step casts in the kernel)
  wc = wc.astype(mm_dtype)
  rcat = rcat.astype(mm_dtype)
  w2 = w2.astype(mm_dtype)

  bc = params["b_conv"].reshape(1, Cout).astype(jnp.float32)
  b1sc = jnp.concatenate([params["b1"], params["b_sc"]]
                         ).reshape(1, c2).astype(jnp.float32)
  b2 = params["b2"].reshape(1, Cout).astype(jnp.float32)

  kern = functools.partial(
      _res_block_skip_kernel, H=H, W=W, Cin=Cin, Cout=Cout,
      negative_slope=negative_slope, use_im2col=use_im2col)

  # Halo scratches stay f32 (see TODO in header); im2col scratch in mm dtype.
  scratch = [
      pltpu.VMEM((H + 2, W + 2, Cin), jnp.float32),    # padded x
      pltpu.VMEM((H + 2, W + 2, Cout), jnp.float32),   # padded y / h1
      pltpu.VMEM((H + 2, W + 2, Cout), jnp.float32),   # padded skip
  ]
  if use_im2col:
    kmax = max(9 * Cin, 18 * Cout)
    scratch.append(pltpu.VMEM((H * W, kmax), mm_dtype))  # shared im2col slab

  out = pl.pallas_call(
      kern,
      out_shape=jax.ShapeDtypeStruct((N, H, W, Cout), x.dtype),
      grid_spec=pltpu.PrefetchScalarGridSpec(
          num_scalar_prefetch=0,
          grid=(N,),
          in_specs=[
              pl.BlockSpec((1, H, W, Cin), lambda n: (n, 0, 0, 0)),
              pl.BlockSpec((1, H, W, Cout), lambda n: (n, 0, 0, 0)),
              pl.BlockSpec((9 * Cin, Cout), lambda n: (0, 0)),
              pl.BlockSpec((18 * Cout, c2), lambda n: (0, 0)),
              pl.BlockSpec((9 * Cout, Cout), lambda n: (0, 0)),
              pl.BlockSpec((1, Cout), lambda n: (0, 0)),
              pl.BlockSpec((1, c2), lambda n: (0, 0)),
              pl.BlockSpec((1, Cout), lambda n: (0, 0)),
          ],
          out_specs=pl.BlockSpec((1, H, W, Cout), lambda n: (n, 0, 0, 0)),
          scratch_shapes=scratch,
      ),
      compiler_params=pltpu.CompilerParams(
          dimension_semantics=("parallel",),
          vmem_limit_bytes=48 * 1024 * 1024),
  )(x, skip, wc, rcat, w2, bc, b1sc, b2)

  return jnp.transpose(out, (0, 3, 1, 2))


# ----------------------------- reference & main -------------------------------

def _ref_conv(x_nhwc, w_hwio, b, *, pad):
  out = jax.lax.conv_general_dilated(
      x_nhwc, w_hwio, window_strides=(1, 1),
      padding=[(pad, pad), (pad, pad)],
      dimension_numbers=("NHWC", "HWIO", "NHWC"))
  return out + b


def _ref_forward(x_nchw, skip_nchw, p):
  x = jnp.transpose(x_nchw, (0, 2, 3, 1))
  skip = jnp.transpose(skip_nchw, (0, 2, 3, 1))
  lrelu = lambda v: jnp.where(v >= 0, v, 0.2 * v)
  y = _ref_conv(x, p["w_conv"], p["b_conv"], pad=1)
  cat = jnp.concatenate([y, skip], axis=-1)
  ident = _ref_conv(cat, p["w_sc"].reshape(1, 1, *p["w_sc"].shape),
                    p["b_sc"], pad=0)
  h = lrelu(_ref_conv(cat, p["w1"], p["b1"], pad=1))
  h = lrelu(_ref_conv(h, p["w2"], p["b2"], pad=1)) + ident
  return jnp.transpose(h, (0, 3, 1, 2))


def init_params(key, in_chl, out_chl, dtype=jnp.float32):
  ks = jax.random.split(key, 8)

  def winit(k, shape, fan_in):
    return (jax.random.normal(k, shape, dtype) / jnp.sqrt(fan_in)).astype(dtype)

  c2 = out_chl * 2
  return {
      # HWIO layout for 3x3 weights
      "w_conv": winit(ks[0], (3, 3, in_chl, out_chl), 9 * in_chl),
      "b_conv": winit(ks[1], (out_chl,), in_chl),
      "w1":     winit(ks[2], (3, 3, c2, out_chl), 9 * c2),
      "b1":     winit(ks[3], (out_chl,), c2),
      "w2":     winit(ks[4], (3, 3, out_chl, out_chl), 9 * out_chl),
      "b2":     winit(ks[5], (out_chl,), out_chl),
      "w_sc":   winit(ks[6], (c2, out_chl), c2),   # 1x1 conv as (Cin, Cout)
      "b_sc":   winit(ks[7], (out_chl,), c2),
  }


if __name__ == "__main__":
  in_chl, out_chl = 4, 8
  N, H, W = 2, 16, 16

  key = jax.random.PRNGKey(0)
  kx, ks, kp = jax.random.split(key, 3)
  x = jax.random.normal(kx, (N, in_chl, H, W), jnp.float32)
  skip = jax.random.normal(ks, (N, out_chl, H, W), jnp.float32)
  params = init_params(kp, in_chl, out_chl)

  ref = _ref_forward(x, skip, params)

  # 1) exact f32 path (im2col variant, auto-selected for small C)
  fwd_f32 = jax.jit(functools.partial(res_block_skip_forward, matmul_dtype=None))
  out = jax.block_until_ready(fwd_f32(x, skip, params))
  assert out.shape == (N, out_chl, H, W), out.shape
  assert jnp.allclose(out, ref, rtol=1e-4, atol=1e-4), float(
      jnp.max(jnp.abs(out - ref)))

  # 2) exact f32 path, per-tap matmul variant (production / no-im2col path)
  fwd_tap = jax.jit(functools.partial(res_block_skip_forward,
                                      matmul_dtype=None, use_im2col=False))
  out_tap = jax.block_until_ready(fwd_tap(x, skip, params))
  assert jnp.allclose(out_tap, ref, rtol=1e-4, atol=1e-4), float(
      jnp.max(jnp.abs(out_tap - ref)))

  # 3) default perf config (bf16 matmul operands) — widened tolerance
  fwd_bf16 = jax.jit(functools.partial(res_block_skip_forward,
                                       matmul_dtype=jnp.bfloat16))
  out_bf16 = jax.block_until_ready(fwd_bf16(x, skip, params))
  assert jnp.allclose(out_bf16, ref, rtol=1e-1, atol=1e-1), float(
      jnp.max(jnp.abs(out_bf16 - ref)))

  print("KERNEL_OK")
</pallas_src>

<mosaic_0001>
module attributes {stable_mosaic.version = 11 : i64} {
  func.func @_res_block_skip_kernel(%arg0: i32, %arg1: memref<1x16x16x4xf32, #tpu.memory_space<vmem>>, %arg2: memref<1x16x16x8xf32, #tpu.memory_space<vmem>>, %arg3: memref<36x8xf32, #tpu.memory_space<vmem>>, %arg4: memref<144x16xf32, #tpu.memory_space<vmem>>, %arg5: memref<72x8xf32, #tpu.memory_space<vmem>>, %arg6: memref<1x8xf32, #tpu.memory_space<vmem>>, %arg7: memref<1x16xf32, #tpu.memory_space<vmem>>, %arg8: memref<1x8xf32, #tpu.memory_space<vmem>>, %arg9: memref<1x16x16x8xf32, #tpu.memory_space<vmem>>, %arg10: memref<18x18x4xf32, #tpu.memory_space<vmem>>, %arg11: memref<18x18x8xf32, #tpu.memory_space<vmem>>, %arg12: memref<18x18x8xf32, #tpu.memory_space<vmem>>, %arg13: memref<256x144xf32, #tpu.memory_space<vmem>>) attributes {dimension_semantics = [#tpu.dimension_semantics<parallel>], iteration_bounds = array<i64: 2>, scalar_prefetch = 0 : i64, scratch_operands = 4 : i64, tpu.core_type = #tpu.core_type<tc>, window_params = [{transform_indices = @transform_0, window_bounds = array<i64: 1, 16, 16, 4>}, {transform_indices = @transform_1, window_bounds = array<i64: 1, 16, 16, 8>}, {pipeline_mode = #tpu.pipeline_mode<synchronous>, transform_indices = @transform_2, window_bounds = array<i64: 36, 8>}, {pipeline_mode = #tpu.pipeline_mode<synchronous>, transform_indices = @transform_3, window_bounds = array<i64: 144, 16>}, {pipeline_mode = #tpu.pipeline_mode<synchronous>, transform_indices = @transform_4, window_bounds = array<i64: 72, 8>}, {pipeline_mode = #tpu.pipeline_mode<synchronous>, transform_indices = @transform_5, window_bounds = array<i64: 1, 8>}, {pipeline_mode = #tpu.pipeline_mode<synchronous>, transform_indices = @transform_6, window_bounds = array<i64: 1, 16>}, {pipeline_mode = #tpu.pipeline_mode<synchronous>, transform_indices = @transform_7, window_bounds = array<i64: 1, 8>}, {transform_indices = @transform_8, window_bounds = array<i64: 1, 16, 16, 8>}]} {
    %cst = arith.constant 0.000000e+00 : f32
    %0 = vector.broadcast %cst : f32 to vector<1x18x4xf32>
    %c0 = arith.constant 0 : index
    %c0_0 = arith.constant 0 : index
    %c0_1 = arith.constant 0 : index
    %1 = vector.load %arg10[%c0, %c0_0, %c0_1] : memref<18x18x4xf32, #tpu.memory_space<vmem>>, vector<1x18x4xf32>
    tpu.vector_store %arg10[%c0, %c0_0, %c0_1], %0 {strides = array<i32>} : memref<18x18x4xf32, #tpu.memory_space<vmem>>, vector<1x18x4xf32>,
    %cst_2 = arith.constant 0.000000e+00 : f32
    %2 = vector.broadcast %cst_2 : f32 to vector<1x18x4xf32>
    %c17 = arith.constant 17 : index
    %c0_3 = arith.constant 0 : index
    %c0_4 = arith.constant 0 : index
    %3 = vector.load %arg10[%c17, %c0_3, %c0_4] : memref<18x18x4xf32, #tpu.memory_space<vmem>>, vector<1x18x4xf32>
    tpu.vector_store %arg10[%c17, %c0_3, %c0_4], %2 {strides = array<i32>} : memref<18x18x4xf32, #tpu.memory_space<vmem>>, vector<1x18x4xf32>,
    %cst_5 = arith.constant 0.000000e+00 : f32
    %4 = vector.broadcast %cst_5 : f32 to vector<18x1x4xf32>
    %c0_6 = arith.constant 0 : index
    %c0_7 = arith.constant 0 : index
    %c0_8 = arith.constant 0 : index
    %5 = vector.load %arg10[%c0_6, %c0_7, %c0_8] : memref<18x18x4xf32, #tpu.memory_space<vmem>>, vector<18x1x4xf32>
    tpu.vector_store %arg10[%c0_6, %c0_7, %c0_8], %4 {strides = array<i32>} : memref<18x18x4xf32, #tpu.memory_space<vmem>>, vector<18x1x4xf32>,
    %cst_9 = arith.constant 0.000000e+00 : f32
    %6 = vector.broadcast %cst_9 : f32 to vector<18x1x4xf32>
    %c0_10 = arith.constant 0 : index
    %c17_11 = arith.constant 17 : index
    %c0_12 = arith.constant 0 : index
    %7 = vector.load %arg10[%c0_10, %c17_11, %c0_12] : memref<18x18x4xf32, #tpu.memory_space<vmem>>, vector<18x1x4xf32>
    tpu.vector_store %arg10[%c0_10, %c17_11, %c0_12], %6 {strides = array<i32>} : memref<18x18x4xf32, #tpu.memory_space<vmem>>, vector<18x1x4xf32>,
    %cst_13 = arith.constant 0.000000e+00 : f32
    %8 = vector.broadcast %cst_13 : f32 to vector<1x18x8xf32>
    %c0_14 = arith.constant 0 : index
    %c0_15 = arith.constant 0 : index
    %c0_16 = arith.constant 0 : index
    %9 = vector.load %arg11[%c0_14, %c0_15, %c0_16] : memref<18x18x8xf32, #tpu.memory_space<vmem>>, vector<1x18x8xf32>
    tpu.vector_store %arg11[%c0_14, %c0_15, %c0_16], %8 {strides = array<i32>} : memref<18x18x8xf32, #tpu.memory_space<vmem>>, vector<1x18x8xf32>,
    %cst_17 = arith.constant 0.000000e+00 : f32
    %10 = vector.broadcast %cst_17 : f32 to vector<1x18x8xf32>
    %c17_18 = arith.constant 17 : index
    %c0_19 = arith.constant 0 : index
    %c0_20 = arith.constant 0 : index
    %11 = vector.load %arg11[%c17_18, %c0_19, %c0_20] : memref<18x18x8xf32, #tpu.memory_space<vmem>>, vector<1x18x8xf32>
    tpu.vector_store %arg11[%c17_18, %c0_19, %c0_20], %10 {strides = array<i32>} : memref<18x18x8xf32, #tpu.memory_space<vmem>>, vector<1x18x8xf32>,
    %cst_21 = arith.constant 0.000000e+00 : f32
    %12 = vector.broadcast %cst_21 : f32 to vector<18x1x8xf32>
    %c0_22 = arith.constant 0 : index
    %c0_23 = arith.constant 0 : index
    %c0_24 = arith.constant 0 : index
    %13 = vector.load %arg11[%c0_22, %c0_23, %c0_24] : memref<18x18x8xf32, #tpu.memory_space<vmem>>, vector<18x1x8xf32>
    tpu.vector_store %arg11[%c0_22, %c0_23, %c0_24], %12 {strides = array<i32>} : memref<18x18x8xf32, #tpu.memory_space<vmem>>, vector<18x1x8xf32>,
    %cst_25 = arith.constant 0.000000e+00 : f32
    %14 = vector.broadcast %cst_25 : f32 to vector<18x1x8xf32>
    %c0_26 = arith.constant 0 : index
    %c17_27 = arith.constant 17 : index
    %c0_28 = arith.constant 0 : index
    %15 = vector.load %arg11[%c0_26, %c17_27, %c0_28] : memref<18x18x8xf32, #tpu.memory_space<vmem>>, vector<18x1x8xf32>
    tpu.vector_store %arg11[%c0_26, %c17_27, %c0_28], %14 {strides = array<i32>} : memref<18x18x8xf32, #tpu.memory_space<vmem>>, vector<18x1x8xf32>,
    %cst_29 = arith.constant 0.000000e+00 : f32
    %16 = vector.broadcast %cst_29 : f32 to vector<1x18x8xf32>
    %c0_30 = arith.constant 0 : index
    %c0_31 = arith.constant 0 : index
    %c0_32 = arith.constant 0 : index
    %17 = vector.load %arg12[%c0_30, %c0_31, %c0_32] : memref<18x18x8xf32, #tpu.memory_space<vmem>>, vector<1x18x8xf32>
    tpu.vector_store %arg12[%c0_30, %c0_31, %c0_32], %16 {strides = array<i32>} : memref<18x18x8xf32, #tpu.memory_space<vmem>>, vector<1x18x8xf32>,
    %cst_33 = arith.constant 0.000000e+00 : f32
    %18 = vector.broadcast %cst_33 : f32 to vector<1x18x8xf32>
    %c17_34 = arith.constant 17 : index
    %c0_35 = arith.constant 0 : index
    %c0_36 = arith.constant 0 : index
    %19 = vector.load %arg12[%c17_34, %c0_35, %c0_36] : memref<18x18x8xf32, #tpu.memory_space<vmem>>, vector<1x18x8xf32>
    tpu.vector_store %arg12[%c17_34, %c0_35, %c0_36], %18 {strides = array<i32>} : memref<18x18x8xf32, #tpu.memory_space<vmem>>, vector<1x18x8xf32>,
    %cst_37 = arith.constant 0.000000e+00 : f32
    %20 = vector.broadcast %cst_37 : f32 to vector<18x1x8xf32>
    %c0_38 = arith.constant 0 : index
    %c0_39 = arith.constant 0 : index
    %c0_40 = arith.constant 0 : index
    %21 = vector.load %arg12[%c0_38, %c0_39, %c0_40] : memref<18x18x8xf32, #tpu.memory_space<vmem>>, vector<18x1x8xf32>
    tpu.vector_store %arg12[%c0_38, %c0_39, %c0_40], %20 {strides = array<i32>} : memref<18x18x8xf32, #tpu.memory_space<vmem>>, vector<18x1x8xf32>,
    %cst_41 = arith.constant 0.000000e+00 : f32
    %22 = vector.broadcast %cst_41 : f32 to vector<18x1x8xf32>
    %c0_42 = arith.constant 0 : index
    %c17_43 = arith.constant 17 : index
    %c0_44 = arith.constant 0 : index
    %23 = vector.load %arg12[%c0_42, %c17_43, %c0_44] : memref<18x18x8xf32, #tpu.memory_space<vmem>>, vector<18x1x8xf32>
    tpu.vector_store %arg12[%c0_42, %c17_43, %c0_44], %22 {strides = array<i32>} : memref<18x18x8xf32, #tpu.memory_space<vmem>>, vector<18x1x8xf32>,
    %c0_45 = arith.constant 0 : index
    %c0_46 = arith.constant 0 : index
    %c0_47 = arith.constant 0 : index
    %c0_48 = arith.constant 0 : index
    %24 = vector.load %arg1[%c0_45, %c0_46, %c0_47, %c0_48] : memref<1x16x16x4xf32, #tpu.memory_space<vmem>>, vector<1x16x16x4xf32>
    %25 = vector.shape_cast %24 : vector<1x16x16x4xf32> to vector<16x16x4xf32>
    %c1 = arith.constant 1 : index
    %c1_49 = arith.constant 1 : index
    %c0_50 = arith.constant 0 : index
    %26 = vector.load %arg10[%c1, %c1_49, %c0_50] : memref<18x18x4xf32, #tpu.memory_space<vmem>>, vector<16x16x4xf32>
    tpu.vector_store %arg10[%c1, %c1_49, %c0_50], %25 {strides = array<i32>} : memref<18x18x4xf32, #tpu.memory_space<vmem>>, vector<16x16x4xf32>,
    %c0_51 = arith.constant 0 : index
    %c0_52 = arith.constant 0 : index
    %c0_53 = arith.constant 0 : index
    %c0_54 = arith.constant 0 : index
    %27 = vector.load %arg2[%c0_51, %c0_52, %c0_53, %c0_54] : memref<1x16x16x8xf32, #tpu.memory_space<vmem>>, vector<1x16x16x8xf32>
    %28 = vector.shape_cast %27 : vector<1x16x16x8xf32> to vector<16x16x8xf32>
    %c1_55 = arith.constant 1 : index
    %c1_56 = arith.constant 1 : index
    %c0_57 = arith.constant 0 : index
    %29 = vector.load %arg12[%c1_55, %c1_56, %c0_57] : memref<18x18x8xf32, #tpu.memory_space<vmem>>, vector<16x16x8xf32>
    tpu.vector_store %arg12[%c1_55, %c1_56, %c0_57], %28 {strides = array<i32>} : memref<18x18x8xf32, #tpu.memory_space<vmem>>, vector<16x16x8xf32>,
    %c0_58 = arith.constant 0 : index
    %c0_59 = arith.constant 0 : index
    %c0_60 = arith.constant 0 : index
    %30 = vector.load %arg10[%c0_58, %c0_59, %c0_60] : memref<18x18x4xf32, #tpu.memory_space<vmem>>, vector<16x16x4xf32>
    %31 = vector.shape_cast %30 : vector<16x16x4xf32> to vector<256x4xf32>
    %c0_61 = arith.constant 0 : index
    %c0_62 = arith.constant 0 : index
    %32 = vector.load %arg13[%c0_61, %c0_62] : memref<256x144xf32, #tpu.memory_space<vmem>>, vector<256x4xf32>
    tpu.vector_store %arg13[%c0_61, %c0_62], %31 {strides = array<i32>} : memref<256x144xf32, #tpu.memory_space<vmem>>, vector<256x4xf32>,
    %c0_63 = arith.constant 0 : index
    %c1_64 = arith.constant 1 : index
    %c0_65 = arith.constant 0 : index
    %33 = vector.load %arg10[%c0_63, %c1_64, %c0_65] : memref<18x18x4xf32, #tpu.memory_space<vmem>>, vector<16x16x4xf32>
    %34 = vector.shape_cast %33 : vector<16x16x4xf32> to vector<256x4xf32>
    %c0_66 = arith.constant 0 : index
    %c4 = arith.constant 4 : index
    %35 = vector.load %arg13[%c0_66, %c4] : memref<256x144xf32, #tpu.memory_space<vmem>>, vector<256x4xf32>
    tpu.vector_store %arg13[%c0_66, %c4], %34 {strides = array<i32>} : memref<256x144xf32, #tpu.memory_space<vmem>>, vector<256x4xf32>,
    %c0_67 = arith.constant 0 : index
    %c2 = arith.constant 2 : index
    %c0_68 = arith.constant 0 : index
    %36 = vector.load %arg10[%c0_67, %c2, %c0_68] : memref<18x18x4xf32, #tpu.memory_space<vmem>>, vector<16x16x4xf32>
    %37 = vector.shape_cast %36 : vector<16x16x4xf32> to vector<256x4xf32>
    %c0_69 = arith.constant 0 : index
    %c8 = arith.constant 8 : index
    %38 = vector.load %arg13[%c0_69, %c8] : memref<256x144xf32, #tpu.memory_space<vmem>>, vector<256x4xf32>
    tpu.vector_store %arg13[%c0_69, %c8], %37 {strides = array<i32>} : memref<256x144xf32, #tpu.memory_space<vmem>>, vector<256x4xf32>,
    %c1_70 = arith.constant 1 : index
    %c0_71 = arith.constant 0 : index
    %c0_72 = arith.constant 0 : index
    %39 = vector.load %arg10[%c1_70, %c0_71, %c0_72] : memref<18x18x4xf32, #tpu.memory_space<vmem>>, vector<16x16x4xf32>
    %40 = vector.shape_cast %39 : vector<16x16x4xf32> to vector<256x4xf32>
    %c0_73 = arith.constant 0 : index
    %c12 = arith.constant 12 : index
    %41 = vector.load %arg13[%c0_73, %c12] : memref<256x144xf32, #tpu.memory_space<vmem>>, vector<256x4xf32>
    tpu.vector_store %arg13[%c0_73, %c12], %40 {strides = array<i32>} : memref<256x144xf32, #tpu.memory_space<vmem>>, vector<256x4xf32>,
    %c1_74 = arith.constant 1 : index
    %c1_75 = arith.constant 1 : index
    %c0_76 = arith.constant 0 : index
    %42 = vector.load %arg10[%c1_74, %c1_75, %c0_76] : memref<18x18x4xf32, #tpu.memory_space<vmem>>, vector<16x16x4xf32>
    %43 = vector.shape_cast %42 : vector<16x16x4xf32> to vector<256x4xf32>
    %c0_77 = arith.constant 0 : index
    %c16 = arith.constant 16 : index
    %44 = vector.load %arg13[%c0_77, %c16] : memref<256x144xf32, #tpu.memory_space<vmem>>, vector<256x4xf32>
    tpu.vector_store %arg13[%c0_77, %c16], %43 {strides = array<i32>} : memref<256x144xf32, #tpu.memory_space<vmem>>, vector<256x4xf32>,
    %c1_78 = arith.constant 1 : index
    %c2_79 = arith.constant 2 : index
    %c0_80 = arith.constant 0 : index
    %45 = vector.load %arg10[%c1_78, %c2_79, %c0_80] : memref<18x18x4xf32, #tpu.memory_space<vmem>>, vector<16x16x4xf32>
    %46 = vector.shape_cast %45 : vector<16x16x4xf32> to vector<256x4xf32>
    %c0_81 = arith.constant 0 : index
    %c20 = arith.constant 20 : index
    %47 = vector.load %arg13[%c0_81, %c20] : memref<256x144xf32, #tpu.memory_space<vmem>>, vector<256x4xf32>
    tpu.vector_store %arg13[%c0_81, %c20], %46 {strides = array<i32>} : memref<256x144xf32, #tpu.memory_space<vmem>>, vector<256x4xf32>,
    %c2_82 = arith.constant 2 : index
    %c0_83 = arith.constant 0 : index
    %c0_84 = arith.constant 0 : index
    %48 = vector.load %arg10[%c2_82, %c0_83, %c0_84] : memref<18x18x4xf32, #tpu.memory_space<vmem>>, vector<16x16x4xf32>
    %49 = vector.shape_cast %48 : vector<16x16x4xf32> to vector<256x4xf32>
    %c0_85 = arith.constant 0 : index
    %c24 = arith.constant 24 : index
    %50 = vector.load %arg13[%c0_85, %c24] : memref<256x144xf32, #tpu.memory_space<vmem>>, vector<256x4xf32>
    tpu.vector_store %arg13[%c0_85, %c24], %49 {strides = array<i32>} : memref<256x144xf32, #tpu.memory_space<vmem>>, vector<256x4xf32>,
    %c2_86 = arith.constant 2 : index
    %c1_87 = arith.constant 1 : index
    %c0_88 = arith.constant 0 : index
    %51 = vector.load %arg10[%c2_86, %c1_87, %c0_88] : memref<18x18x4xf32, #tpu.memory_space<vmem>>, vector<16x16x4xf32>
    %52 = vector.shape_cast %51 : vector<16x16x4xf32> to vector<256x4xf32>
    %c0_89 = arith.constant 0 : index
    %c28 = arith.constant 28 : index
    %53 = vector.load %arg13[%c0_89, %c28] : memref<256x144xf32, #tpu.memory_space<vmem>>, vector<256x4xf32>
    tpu.vector_store %arg13[%c0_89, %c28], %52 {strides = array<i32>} : memref<256x144xf32, #tpu.memory_space<vmem>>, vector<256x4xf32>,
    %c2_90 = arith.constant 2 : index
    %c2_91 = arith.constant 2 : index
    %c0_92 = arith.constant 0 : index
    %54 = vector.load %arg10[%c2_90, %c2_91, %c0_92] : memref<18x18x4xf32, #tpu.memory_space<vmem>>, vector<16x16x4xf32>
    %55 = vector.shape_cast %54 : vector<16x16x4xf32> to vector<256x4xf32>
    %c0_93 = arith.constant 0 : index
    %c32 = arith.constant 32 : index
    %56 = vector.load %arg13[%c0_93, %c32] : memref<256x144xf32, #tpu.memory_space<vmem>>, vector<256x4xf32>
    tpu.vector_store %arg13[%c0_93, %c32], %55 {strides = array<i32>} : memref<256x144xf32, #tpu.memory_space<vmem>>, vector<256x4xf32>,
    %c0_94 = arith.constant 0 : index
    %c0_95 = arith.constant 0 : index
    %57 = vector.load %arg13[%c0_94, %c0_95] : memref<256x144xf32, #tpu.memory_space<vmem>>, vector<256x36xf32>
    %c0_96 = arith.constant 0 : index
    %c0_97 = arith.constant 0 : index
    %58 = vector.load %arg3[%c0_96, %c0_97] : memref<36x8xf32, #tpu.memory_space<vmem>>, vector<36x8xf32>
    %cst_98 = arith.constant dense<0.000000e+00> : vector<256x8xf32>
    %59 = tpu.matmul %57, %58, %cst_98 {dimension_numbers = #tpu.dot_dimension_numbers<[1], [0], [0], [1], [0, 0, 1, 1], [], []>} : vector<256x36xf32>, vector<36x8xf32>, vector<256x8xf32> -> vector<256x8xf32>
    %c0_99 = arith.constant 0 : index
    %c0_100 = arith.constant 0 : index
    %60 = vector.load %arg6[%c0_99, %c0_100] : memref<1x8xf32, #tpu.memory_space<vmem>>, vector<1x8xf32>
    %61 = vector.shape_cast %60 : vector<1x8xf32> to vector<8xf32>
    %62 = vector.shape_cast %61 : vector<8xf32> to vector<1x8xf32>
    %63 = vector.broadcast %62 : vector<1x8xf32> to vector<256x8xf32>
    %64 = arith.addf %59, %63 : vector<256x8xf32>
    %65 = vector.shape_cast %64 : vector<256x8xf32> to vector<16x16x8xf32>
    %c1_101 = arith.constant 1 : index
    %c1_102 = arith.constant 1 : index
    %c0_103 = arith.constant 0 : index
    %66 = vector.load %arg11[%c1_101, %c1_102, %c0_103] : memref<18x18x8xf32, #tpu.memory_space<vmem>>, vector<16x16x8xf32>
    tpu.vector_store %arg11[%c1_101, %c1_102, %c0_103], %65 {strides = array<i32>} : memref<18x18x8xf32, #tpu.memory_space<vmem>>, vector<16x16x8xf32>,
    %c0_104 = arith.constant 0 : index
    %c0_105 = arith.constant 0 : index
    %c0_106 = arith.constant 0 : index
    %67 = vector.load %arg11[%c0_104, %c0_105, %c0_106] : memref<18x18x8xf32, #tpu.memory_space<vmem>>, vector<16x16x8xf32>
    %68 = vector.shape_cast %67 : vector<16x16x8xf32> to vector<256x8xf32>
    %c0_107 = arith.constant 0 : index
    %c0_108 = arith.constant 0 : index
    %69 = vector.load %arg13[%c0_107, %c0_108] : memref<256x144xf32, #tpu.memory_space<vmem>>, vector<256x8xf32>
    tpu.vector_store %arg13[%c0_107, %c0_108], %68 {strides = array<i32>} : memref<256x144xf32, #tpu.memory_space<vmem>>, vector<256x8xf32>,
    %c0_109 = arith.constant 0 : index
    %c1_110 = arith.constant 1 : index
    %c0_111 = arith.constant 0 : index
    %70 = vector.load %arg11[%c0_109, %c1_110, %c0_111] : memref<18x18x8xf32, #tpu.memory_space<vmem>>, vector<16x16x8xf32>
    %71 = vector.shape_cast %70 : vector<16x16x8xf32> to vector<256x8xf32>
    %c0_112 = arith.constant 0 : index
    %c8_113 = arith.constant 8 : index
    %72 = vector.load %arg13[%c0_112, %c8_113] : memref<256x144xf32, #tpu.memory_space<vmem>>, vector<256x8xf32>
    tpu.vector_store %arg13[%c0_112, %c8_113], %71 {strides = array<i32>} : memref<256x144xf32, #tpu.memory_space<vmem>>, vector<256x8xf32>,
    %c0_114 = arith.constant 0 : index
    %c2_115 = arith.constant 2 : index
    %c0_116 = arith.constant 0 : index
    %73 = vector.load %arg11[%c0_114, %c2_115, %c0_116] : memref<18x18x8xf32, #tpu.memory_space<vmem>>, vector<16x16x8xf32>
    %74 = vector.shape_cast %73 : vector<16x16x8xf32> to vector<256x8xf32>
    %c0_117 = arith.constant 0 : index
    %c16_118 = arith.constant 16 : index
    %75 = vector.load %arg13[%c0_117, %c16_118] : memref<256x144xf32, #tpu.memory_space<vmem>>, vector<256x8xf32>
    tpu.vector_store %arg13[%c0_117, %c16_118], %74 {strides = array<i32>} : memref<256x144xf32, #tpu.memory_space<vmem>>, vector<256x8xf32>,
    %c1_119 = arith.constant 1 : index
    %c0_120 = arith.constant 0 : index
    %c0_121 = arith.constant 0 : index
    %76 = vector.load %arg11[%c1_119, %c0_120, %c0_121] : memref<18x18x8xf32, #tpu.memory_space<vmem>>, vector<16x16x8xf32>
    %77 = vector.shape_cast %76 : vector<16x16x8xf32> to vector<256x8xf32>
    %c0_122 = arith.constant 0 : index
    %c24_123 = arith.constant 24 : index
    %78 = vector.load %arg13[%c0_122, %c24_123] : memref<256x144xf32, #tpu.memory_space<vmem>>, vector<256x8xf32>
    tpu.vector_store %arg13[%c0_122, %c24_123], %77 {strides = array<i32>} : memref<256x144xf32, #tpu.memory_space<vmem>>, vector<256x8xf32>,
    %c1_124 = arith.constant 1 : index
    %c1_125 = arith.constant 1 : index
    %c0_126 = arith.constant 0 : index
    %79 = vector.load %arg11[%c1_124, %c1_125, %c0_126] : memref<18x18x8xf32, #tpu.memory_space<vmem>>, vector<16x16x8xf32>
    %80 = vector.shape_cast %79 : vector<16x16x8xf32> to vector<256x8xf32>
    %c0_127 = arith.constant 0 : index
    %c32_128 = arith.constant 32 : index
    %81 = vector.load %arg13[%c0_127, %c32_128] : memref<256x144xf32, #tpu.memory_space<vmem>>, vector<256x8xf32>
    tpu.vector_store %arg13[%c0_127, %c32_128], %80 {strides = array<i32>} : memref<256x144xf32, #tpu.memory_space<vmem>>, vector<256x8xf32>,
    %c1_129 = arith.constant 1 : index
    %c2_130 = arith.constant 2 : index
    %c0_131 = arith.constant 0 : index
    %82 = vector.load %arg11[%c1_129, %c2_130, %c0_131] : memref<18x18x8xf32, #tpu.memory_space<vmem>>, vector<16x16x8xf32>
    %83 = vector.shape_cast %82 : vector<16x16x8xf32> to vector<256x8xf32>
    %c0_132 = arith.constant 0 : index
    %c40 = arith.constant 40 : index
    %84 = vector.load %arg13[%c0_132, %c40] : memref<256x144xf32, #tpu.memory_space<vmem>>, vector<256x8xf32>
    tpu.vector_store %arg13[%c0_132, %c40], %83 {strides = array<i32>} : memref<256x144xf32, #tpu.memory_space<vmem>>, vector<256x8xf32>,
    %c2_133 = arith.constant 2 : index
    %c0_134 = arith.constant 0 : index
    %c0_135 = arith.constant 0 : index
    %85 = vector.load %arg11[%c2_133, %c0_134, %c0_135] : memref<18x18x8xf32, #tpu.memory_space<vmem>>, vector<16x16x8xf32>
    %86 = vector.shape_cast %85 : vector<16x16x8xf32> to vector<256x8xf32>
    %c0_136 = arith.constant 0 : index
    %c48 = arith.constant 48 : index
    %87 = vector.load %arg13[%c0_136, %c48] : memref<256x144xf32, #tpu.memory_space<vmem>>, vector<256x8xf32>
    tpu.vector_store %arg13[%c0_136, %c48], %86 {strides = array<i32>} : memref<256x144xf32, #tpu.memory_space<vmem>>, vector<256x8xf32>,
    %c2_137 = arith.constant 2 : index
    %c1_138 = arith.constant 1 : index
    %c0_139 = arith.constant 0 : index
    %88 = vector.load %arg11[%c2_137, %c1_138, %c0_139] : memref<18x18x8xf32, #tpu.memory_space<vmem>>, vector<16x16x8xf32>
    %89 = vector.shape_cast %88 : vector<16x16x8xf32> to vector<256x8xf32>
    %c0_140 = arith.constant 0 : index
    %c56 = arith.constant 56 : index
    %90 = vector.load %arg13[%c0_140, %c56] : memref<256x144xf32, #tpu.memory_space<vmem>>, vector<256x8xf32>
    tpu.vector_store %arg13[%c0_140, %c56], %89 {strides = array<i32>} : memref<256x144xf32, #tpu.memory_space<vmem>>, vector<256x8xf32>,
    %c2_141 = arith.constant 2 : index
    %c2_142 = arith.constant 2 : index
    %c0_143 = arith.constant 0 : index
    %91 = vector.load %arg11[%c2_141, %c2_142, %c0_143] : memref<18x18x8xf32, #tpu.memory_space<vmem>>, vector<16x16x8xf32>
    %92 = vector.shape_cast %91 : vector<16x16x8xf32> to vector<256x8xf32>
    %c0_144 = arith.constant 0 : index
    %c64 = arith.constant 64 : index
    %93 = vector.load %arg13[%c0_144, %c64] : memref<256x144xf32, #tpu.memory_space<vmem>>, vector<256x8xf32>
    tpu.vector_store %arg13[%c0_144, %c64], %92 {strides = array<i32>} : memref<256x144xf32, #tpu.memory_space<vmem>>, vector<256x8xf32>,
    %c0_145 = arith.constant 0 : index
    %c0_146 = arith.constant 0 : index
    %c0_147 = arith.constant 0 : index
    %94 = vector.load %arg12[%c0_145, %c0_146, %c0_147] : memref<18x18x8xf32, #tpu.memory_space<vmem>>, vector<16x16x8xf32>
    %95 = vector.shape_cast %94 : vector<16x16x8xf32> to vector<256x8xf32>
    %c0_148 = arith.constant 0 : index
    %c72 = arith.constant 72 : index
    %96 = vector.load %arg13[%c0_148, %c72] : memref<256x144xf32, #tpu.memory_space<vmem>>, vector<256x8xf32>
    tpu.vector_store %arg13[%c0_148, %c72], %95 {strides = array<i32>} : memref<256x144xf32, #tpu.memory_space<vmem>>, vector<256x8xf32>,
    %c0_149 = arith.constant 0 : index
    %c1_150 = arith.constant 1 : index
    %c0_151 = arith.constant 0 : index
    %97 = vector.load %arg12[%c0_149, %c1_150, %c0_151] : memref<18x18x8xf32, #tpu.memory_space<vmem>>, vector<16x16x8xf32>
    %98 = vector.shape_cast %97 : vector<16x16x8xf32> to vector<256x8xf32>
    %c0_152 = arith.constant 0 : index
    %c80 = arith.constant 80 : index
    %99 = vector.load %arg13[%c0_152, %c80] : memref<256x144xf32, #tpu.memory_space<vmem>>, vector<256x8xf32>
    tpu.vector_store %arg13[%c0_152, %c80], %98 {strides = array<i32>} : memref<256x144xf32, #tpu.memory_space<vmem>>, vector<256x8xf32>,
    %c0_153 = arith.constant 0 : index
    %c2_154 = arith.constant 2 : index
    %c0_155 = arith.constant 0 : index
    %100 = vector.load %arg12[%c0_153, %c2_154, %c0_155] : memref<18x18x8xf32, #tpu.memory_space<vmem>>, vector<16x16x8xf32>
    %101 = vector.shape_cast %100 : vector<16x16x8xf32> to vector<256x8xf32>
    %c0_156 = arith.constant 0 : index
    %c88 = arith.constant 88 : index
    %102 = vector.load %arg13[%c0_156, %c88] : memref<256x144xf32, #tpu.memory_space<vmem>>, vector<256x8xf32>
    tpu.vector_store %arg13[%c0_156, %c88], %101 {strides = array<i32>} : memref<256x144xf32, #tpu.memory_space<vmem>>, vector<256x8xf32>,
    %c1_157 = arith.constant 1 : index
    %c0_158 = arith.constant 0 : index
    %c0_159 = arith.constant 0 : index
    %103 = vector.load %arg12[%c1_157, %c0_158, %c0_159] : memref<18x18x8xf32, #tpu.memory_space<vmem>>, vector<16x16x8xf32>
    %104 = vector.shape_cast %103 : vector<16x16x8xf32> to vector<256x8xf32>
    %c0_160 = arith.constant 0 : index
    %c96 = arith.constant 96 : index
    %105 = vector.load %arg13[%c0_160, %c96] : memref<256x144xf32, #tpu.memory_space<vmem>>, vector<256x8xf32>
    tpu.vector_store %arg13[%c0_160, %c96], %104 {strides = array<i32>} : memref<256x144xf32, #tpu.memory_space<vmem>>, vector<256x8xf32>,
    %c1_161 = arith.constant 1 : index
    %c1_162 = arith.constant 1 : index
    %c0_163 = arith.constant 0 : index
    %106 = vector.load %arg12[%c1_161, %c1_162, %c0_163] : memref<18x18x8xf32, #tpu.memory_space<vmem>>, vector<16x16x8xf32>
    %107 = vector.shape_cast %106 : vector<16x16x8xf32> to vector<256x8xf32>
    %c0_164 = arith.constant 0 : index
    %c104 = arith.constant 104 : index
    %108 = vector.load %arg13[%c0_164, %c104] : memref<256x144xf32, #tpu.memory_space<vmem>>, vector<256x8xf32>
    tpu.vector_store %arg13[%c0_164, %c104], %107 {strides = array<i32>} : memref<256x144xf32, #tpu.memory_space<vmem>>, vector<256x8xf32>,
    %c1_165 = arith.constant 1 : index
    %c2_166 = arith.constant 2 : index
    %c0_167 = arith.constant 0 : index
    %109 = vector.load %arg12[%c1_165, %c2_166, %c0_167] : memref<18x18x8xf32, #tpu.memory_space<vmem>>, vector<16x16x8xf32>
    %110 = vector.shape_cast %109 : vector<16x16x8xf32> to vector<256x8xf32>
    %c0_168 = arith.constant 0 : index
    %c112 = arith.constant 112 : index
    %111 = vector.load %arg13[%c0_168, %c112] : memref<256x144xf32, #tpu.memory_space<vmem>>, vector<256x8xf32>
    tpu.vector_store %arg13[%c0_168, %c112], %110 {strides = array<i32>} : memref<256x144xf32, #tpu.memory_space<vmem>>, vector<256x8xf32>,
    %c2_169 = arith.constant 2 : index
    %c0_170 = arith.constant 0 : index
    %c0_171 = arith.constant 0 : index
    %112 = vector.load %arg12[%c2_169, %c0_170, %c0_171] : memref<18x18x8xf32, #tpu.memory_space<vmem>>, vector<16x16x8xf32>
    %113 = vector.shape_cast %112 : vector<16x16x8xf32> to vector<256x8xf32>
    %c0_172 = arith.constant 0 : index
    %c120 = arith.constant 120 : index
    %114 = vector.load %arg13[%c0_172, %c120] : memref<256x144xf32, #tpu.memory_space<vmem>>, vector<256x8xf32>
    tpu.vector_store %arg13[%c0_172, %c120], %113 {strides = array<i32>} : memref<256x144xf32, #tpu.memory_space<vmem>>, vector<256x8xf32>,
    %c2_173 = arith.constant 2 : index
    %c1_174 = arith.constant 1 : index
    %c0_175 = arith.constant 0 : index
    %115 = vector.load %arg12[%c2_173, %c1_174, %c0_175] : memref<18x18x8xf32, #tpu.memory_space<vmem>>, vector<16x16x8xf32>
    %116 = vector.shape_cast %115 : vector<16x16x8xf32> to vector<256x8xf32>
    %c0_176 = arith.constant 0 : index
    %c128 = arith.constant 128 : index
    %117 = vector.load %arg13[%c0_176, %c128] : memref<256x144xf32, #tpu.memory_space<vmem>>, vector<256x8xf32>
    tpu.vector_store %arg13[%c0_176, %c128], %116 {strides = array<i32>} : memref<256x144xf32, #tpu.memory_space<vmem>>, vector<256x8xf32>,
    %c2_177 = arith.constant 2 : index
    %c2_178 = arith.constant 2 : index
    %c0_179 = arith.constant 0 : index
    %118 = vector.load %arg12[%c2_177, %c2_178, %c0_179] : memref<18x18x8xf32, #tpu.memory_space<vmem>>, vector<16x16x8xf32>
    %119 = vector.shape_cast %118 : vector<16x16x8xf32> to vector<256x8xf32>
    %c0_180 = arith.constant 0 : index
    %c136 = arith.constant 136 : index
    %120 = vector.load %arg13[%c0_180, %c136] : memref<256x144xf32, #tpu.memory_space<vmem>>, vector<256x8xf32>
    tpu.vector_store %arg13[%c0_180, %c136], %119 {strides = array<i32>} : memref<256x144xf32, #tpu.memory_space<vmem>>, vector<256x8xf32>,
    %c0_181 = arith.constant 0 : index
    %c0_182 = arith.constant 0 : index
    %121 = vector.load %arg13[%c0_181, %c0_182] : memref<256x144xf32, #tpu.memory_space<vmem>>, vector<256x144xf32>
    %c0_183 = arith.constant 0 : index
    %c0_184 = arith.constant 0 : index
    %122 = vector.load %arg4[%c0_183, %c0_184] : memref<144x16xf32, #tpu.memory_space<vmem>>, vector<144x16xf32>
    %cst_185 = arith.constant dense<0.000000e+00> : vector<256x16xf32>
    %123 = tpu.matmul %121, %122, %cst_185 {dimension_numbers = #tpu.dot_dimension_numbers<[1], [0], [0], [1], [0, 0, 1, 1], [], []>} : vector<256x144xf32>, vector<144x16xf32>, vector<256x16xf32> -> vector<256x16xf32>
    %c0_186 = arith.constant 0 : index
    %c0_187 = arith.constant 0 : index
    %124 = vector.load %arg7[%c0_186, %c0_187] : memref<1x16xf32, #tpu.memory_space<vmem>>, vector<1x16xf32>
    %125 = vector.shape_cast %124 : vector<1x16xf32> to vector<16xf32>
    %126 = vector.shape_cast %125 : vector<16xf32> to vector<1x16xf32>
    %127 = vector.broadcast %126 : vector<1x16xf32> to vector<256x16xf32>
    %128 = arith.addf %123, %127 : vector<256x16xf32>
    %129 = vector.extract_strided_slice %128 {offsets = [0, 0], sizes = [256, 8], strides = [1, 1]} : vector<256x16xf32> to vector<256x8xf32>
    %cst_188 = arith.constant 0.000000e+00 : f32
    %130 = vector.broadcast %cst_188 : f32 to vector<256x8xf32>
    %131 = arith.cmpf oge, %129, %130 : vector<256x8xf32>
    %cst_189 = arith.constant 2.000000e-01 : f32
    %132 = vector.broadcast %cst_189 : f32 to vector<256x8xf32>
    %133 = arith.mulf %132, %129 : vector<256x8xf32>
    %134 = arith.select %131, %129, %133 : vector<256x8xi1>, vector<256x8xf32>
    %135 = vector.extract_strided_slice %128 {offsets = [0, 8], sizes = [256, 8], strides = [1, 1]} : vector<256x16xf32> to vector<256x8xf32>
    %136 = vector.shape_cast %134 : vector<256x8xf32> to vector<16x16x8xf32>
    %c1_190 = arith.constant 1 : index
    %c1_191 = arith.constant 1 : index
    %c0_192 = arith.constant 0 : index
    %137 = vector.load %arg11[%c1_190, %c1_191, %c0_192] : memref<18x18x8xf32, #tpu.memory_space<vmem>>, vector<16x16x8xf32>
    tpu.vector_store %arg11[%c1_190, %c1_191, %c0_192], %136 {strides = array<i32>} : memref<18x18x8xf32, #tpu.memory_space<vmem>>, vector<16x16x8xf32>,
    %c0_193 = arith.constant 0 : index
    %c0_194 = arith.constant 0 : index
    %c0_195 = arith.constant 0 : index
    %138 = vector.load %arg11[%c0_193, %c0_194, %c0_195] : memref<18x18x8xf32, #tpu.memory_space<vmem>>, vector<16x16x8xf32>
    %139 = vector.shape_cast %138 : vector<16x16x8xf32> to vector<256x8xf32>
    %c0_196 = arith.constant 0 : index
    %c0_197 = arith.constant 0 : index
    %140 = vector.load %arg13[%c0_196, %c0_197] : memref<256x144xf32, #tpu.memory_space<vmem>>, vector<256x8xf32>
    tpu.vector_store %arg13[%c0_196, %c0_197], %139 {strides = array<i32>} : memref<256x144xf32, #tpu.memory_space<vmem>>, vector<256x8xf32>,
    %c0_198 = arith.constant 0 : index
    %c1_199 = arith.constant 1 : index
    %c0_200 = arith.constant 0 : index
    %141 = vector.load %arg11[%c0_198, %c1_199, %c0_200] : memref<18x18x8xf32, #tpu.memory_space<vmem>>, vector<16x16x8xf32>
    %142 = vector.shape_cast %141 : vector<16x16x8xf32> to vector<256x8xf32>
    %c0_201 = arith.constant 0 : index
    %c8_202 = arith.constant 8 : index
    %143 = vector.load %arg13[%c0_201, %c8_202] : memref<256x144xf32, #tpu.memory_space<vmem>>, vector<256x8xf32>
    tpu.vector_store %arg13[%c0_201, %c8_202], %142 {strides = array<i32>} : memref<256x144xf32, #tpu.memory_space<vmem>>, vector<256x8xf32>,
    %c0_203 = arith.constant 0 : index
    %c2_204 = arith.constant 2 : index
    %c0_205 = arith.constant 0 : index
    %144 = vector.load %arg11[%c0_203, %c2_204, %c0_205] : memref<18x18x8xf32, #tpu.memory_space<vmem>>, vector<16x16x8xf32>
    %145 = vector.shape_cast %144 : vector<16x16x8xf32> to vector<256x8xf32>
    %c0_206 = arith.constant 0 : index
    %c16_207 = arith.constant 16 : index
    %146 = vector.load %arg13[%c0_206, %c16_207] : memref<256x144xf32, #tpu.memory_space<vmem>>, vector<256x8xf32>
    tpu.vector_store %arg13[%c0_206, %c16_207], %145 {strides = array<i32>} : memref<256x144xf32, #tpu.memory_space<vmem>>, vector<256x8xf32>,
    %c1_208 = arith.constant 1 : index
    %c0_209 = arith.constant 0 : index
    %c0_210 = arith.constant 0 : index
    %147 = vector.load %arg11[%c1_208, %c0_209, %c0_210] : memref<18x18x8xf32, #tpu.memory_space<vmem>>, vector<16x16x8xf32>
    %148 = vector.shape_cast %147 : vector<16x16x8xf32> to vector<256x8xf32>
    %c0_211 = arith.constant 0 : index
    %c24_212 = arith.constant 24 : index
    %149 = vector.load %arg13[%c0_211, %c24_212] : memref<256x144xf32, #tpu.memory_space<vmem>>, vector<256x8xf32>
    tpu.vector_store %arg13[%c0_211, %c24_212], %148 {strides = array<i32>} : memref<256x144xf32, #tpu.memory_space<vmem>>, vector<256x8xf32>,
    %c1_213 = arith.constant 1 : index
    %c1_214 = arith.constant 1 : index
    %c0_215 = arith.constant 0 : index
    %150 = vector.load %arg11[%c1_213, %c1_214, %c0_215] : memref<18x18x8xf32, #tpu.memory_space<vmem>>, vector<16x16x8xf32>
    %151 = vector.shape_cast %150 : vector<16x16x8xf32> to vector<256x8xf32>
    %c0_216 = arith.constant 0 : index
    %c32_217 = arith.constant 32 : index
    %152 = vector.load %arg13[%c0_216, %c32_217] : memref<256x144xf32, #tpu.memory_space<vmem>>, vector<256x8xf32>
    tpu.vector_store %arg13[%c0_216, %c32_217], %151 {strides = array<i32>} : memref<256x144xf32, #tpu.memory_space<vmem>>, vector<256x8xf32>,
    %c1_218 = arith.constant 1 : index
    %c2_219 = arith.constant 2 : index
    %c0_220 = arith.constant 0 : index
    %153 = vector.load %arg11[%c1_218, %c2_219, %c0_220] : memref<18x18x8xf32, #tpu.memory_space<vmem>>, vector<16x16x8xf32>
    %154 = vector.shape_cast %153 : vector<16x16x8xf32> to vector<256x8xf32>
    %c0_221 = arith.constant 0 : index
    %c40_222 = arith.constant 40 : index
    %155 = vector.load %arg13[%c0_221, %c40_222] : memref<256x144xf32, #tpu.memory_space<vmem>>, vector<256x8xf32>
    tpu.vector_store %arg13[%c0_221, %c40_222], %154 {strides = array<i32>} : memref<256x144xf32, #tpu.memory_space<vmem>>, vector<256x8xf32>,
    %c2_223 = arith.constant 2 : index
    %c0_224 = arith.constant 0 : index
    %c0_225 = arith.constant 0 : index
    %156 = vector.load %arg11[%c2_223, %c0_224, %c0_225] : memref<18x18x8xf32, #tpu.memory_space<vmem>>, vector<16x16x8xf32>
    %157 = vector.shape_cast %156 : vector<16x16x8xf32> to vector<256x8xf32>
    %c0_226 = arith.constant 0 : index
    %c48_227 = arith.constant 48 : index
    %158 = vector.load %arg13[%c0_226, %c48_227] : memref<256x144xf32, #tpu.memory_space<vmem>>, vector<256x8xf32>
    tpu.vector_store %arg13[%c0_226, %c48_227], %157 {strides = array<i32>} : memref<256x144xf32, #tpu.memory_space<vmem>>, vector<256x8xf32>,
    %c2_228 = arith.constant 2 : index
    %c1_229 = arith.constant 1 : index
    %c0_230 = arith.constant 0 : index
    %159 = vector.load %arg11[%c2_228, %c1_229, %c0_230] : memref<18x18x8xf32, #tpu.memory_space<vmem>>, vector<16x16x8xf32>
    %160 = vector.shape_cast %159 : vector<16x16x8xf32> to vector<256x8xf32>
    %c0_231 = arith.constant 0 : index
    %c56_232 = arith.constant 56 : index
    %161 = vector.load %arg13[%c0_231, %c56_232] : memref<256x144xf32, #tpu.memory_space<vmem>>, vector<256x8xf32>
    tpu.vector_store %arg13[%c0_231, %c56_232], %160 {strides = array<i32>} : memref<256x144xf32, #tpu.memory_space<vmem>>, vector<256x8xf32>,
    %c2_233 = arith.constant 2 : index
    %c2_234 = arith.constant 2 : index
    %c0_235 = arith.constant 0 : index
    %162 = vector.load %arg11[%c2_233, %c2_234, %c0_235] : memref<18x18x8xf32, #tpu.memory_space<vmem>>, vector<16x16x8xf32>
    %163 = vector.shape_cast %162 : vector<16x16x8xf32> to vector<256x8xf32>
    %c0_236 = arith.constant 0 : index
    %c64_237 = arith.constant 64 : index
    %164 = vector.load %arg13[%c0_236, %c64_237] : memref<256x144xf32, #tpu.memory_space<vmem>>, vector<256x8xf32>
    tpu.vector_store %arg13[%c0_236, %c64_237], %163 {strides = array<i32>} : memref<256x144xf32, #tpu.memory_space<vmem>>, vector<256x8xf32>,
    %c0_238 = arith.constant 0 : index
    %c0_239 = arith.constant 0 : index
    %165 = vector.load %arg13[%c0_238, %c0_239] : memref<256x144xf32, #tpu.memory_space<vmem>>, vector<256x72xf32>
    %c0_240 = arith.constant 0 : index
    %c0_241 = arith.constant 0 : index
    %166 = vector.load %arg5[%c0_240, %c0_241] : memref<72x8xf32, #tpu.memory_space<vmem>>, vector<72x8xf32>
    %cst_242 = arith.constant dense<0.000000e+00> : vector<256x8xf32>
    %167 = tpu.matmul %165, %166, %cst_242 {dimension_numbers = #tpu.dot_dimension_numbers<[1], [0], [0], [1], [0, 0, 1, 1], [], []>} : vector<256x72xf32>, vector<72x8xf32>, vector<256x8xf32> -> vector<256x8xf32>
    %c0_243 = arith.constant 0 : index
    %c0_244 = arith.constant 0 : index
    %168 = vector.load %arg8[%c0_243, %c0_244] : memref<1x8xf32, #tpu.memory_space<vmem>>, vector<1x8xf32>
    %169 = vector.shape_cast %168 : vector<1x8xf32> to vector<8xf32>
    %170 = vector.shape_cast %169 : vector<8xf32> to vector<1x8xf32>
    %171 = vector.broadcast %170 : vector<1x8xf32> to vector<256x8xf32>
    %172 = arith.addf %167, %171 : vector<256x8xf32>
    %cst_245 = arith.constant 0.000000e+00 : f32
    %173 = vector.broadcast %cst_245 : f32 to vector<256x8xf32>
    %174 = arith.cmpf oge, %172, %173 : vector<256x8xf32>
    %cst_246 = arith.constant 2.000000e-01 : f32
    %175 = vector.broadcast %cst_246 : f32 to vector<256x8xf32>
    %176 = arith.mulf %175, %172 : vector<256x8xf32>
    %177 = arith.select %174, %172, %176 : vector<256x8xi1>, vector<256x8xf32>
    %178 = arith.addf %177, %135 : vector<256x8xf32>
    %179 = vector.shape_cast %178 : vector<256x8xf32> to vector<1x16x16x8xf32>
    %c0_247 = arith.constant 0 : index
    %c0_248 = arith.constant 0 : index
    %c0_249 = arith.constant 0 : index
    %c0_250 = arith.constant 0 : index
    %180 = vector.load %arg9[%c0_247, %c0_248, %c0_249, %c0_250] : memref<1x16x16x8xf32, #tpu.memory_space<vmem>>, vector<1x16x16x8xf32>
    tpu.vector_store %arg9[%c0_247, %c0_248, %c0_249, %c0_250], %179 {strides = array<i32>} : memref<1x16x16x8xf32, #tpu.memory_space<vmem>>, vector<1x16x16x8xf32>,
    return
  }
  func.func @transform_0(%arg0: i32) -> (i32, i32, i32, i32) {
    %c0_i32 = arith.constant 0 : i32
    %c0_i32_0 = arith.constant 0 : i32
    %c0_i32_1 = arith.constant 0 : i32
    %c0_i32_2 = arith.constant 0 : i32
    return %arg0, %c0_i32, %c0_i32_0, %c0_i32_1 : i32, i32, i32, i32
  }
  func.func @transform_1(%arg0: i32) -> (i32, i32, i32, i32) {
    %c0_i32 = arith.constant 0 : i32
    %c0_i32_0 = arith.constant 0 : i32
    %c0_i32_1 = arith.constant 0 : i32
    %c0_i32_2 = arith.constant 0 : i32
    return %arg0, %c0_i32, %c0_i32_0, %c0_i32_1 : i32, i32, i32, i32
  }
  func.func @transform_2(%arg0: i32) -> (i32, i32) {
    %c0_i32 = arith.constant 0 : i32
    %c0_i32_0 = arith.constant 0 : i32
    %c0_i32_1 = arith.constant 0 : i32
    return %c0_i32, %c0_i32_0 : i32, i32
  }
  func.func @transform_3(%arg0: i32) -> (i32, i32) {
    %c0_i32 = arith.constant 0 : i32
    %c0_i32_0 = arith.constant 0 : i32
    %c0_i32_1 = arith.constant 0 : i32
    return %c0_i32, %c0_i32_0 : i32, i32
  }
  func.func @transform_4(%arg0: i32) -> (i32, i32) {
    %c0_i32 = arith.constant 0 : i32
    %c0_i32_0 = arith.constant 0 : i32
    %c0_i32_1 = arith.constant 0 : i32
    return %c0_i32, %c0_i32_0 : i32, i32
  }
  func.func @transform_5(%arg0: i32) -> (i32, i32) {
    %c0_i32 = arith.constant 0 : i32
    %c0_i32_0 = arith.constant 0 : i32
    %c0_i32_1 = arith.constant 0 : i32
    return %c0_i32, %c0_i32_0 : i32, i32
  }
  func.func @transform_6(%arg0: i32) -> (i32, i32) {
    %c0_i32 = arith.constant 0 : i32
    %c0_i32_0 = arith.constant 0 : i32
    %c0_i32_1 = arith.constant 0 : i32
    return %c0_i32, %c0_i32_0 : i32, i32
  }
  func.func @transform_7(%arg0: i32) -> (i32, i32) {
    %c0_i32 = arith.constant 0 : i32
    %c0_i32_0 = arith.constant 0 : i32
    %c0_i32_1 = arith.constant 0 : i32
    return %c0_i32, %c0_i32_0 : i32, i32
  }
  func.func @transform_8(%arg0: i32) -> (i32, i32, i32, i32) {
    %c0_i32 = arith.constant 0 : i32
    %c0_i32_0 = arith.constant 0 : i32
    %c0_i32_1 = arith.constant 0 : i32
    %c0_i32_2 = arith.constant 0 : i32
    return %arg0, %c0_i32, %c0_i32_0, %c0_i32_1 : i32, i32, i32, i32
  }
}

</mosaic_0001>

<bundles_post_ra>
// kernel: res_block_skip_forward.1
= control target key start
LH: loop header
LB: loop body
LE: loop exit
PB: predicated region body
PF: predicated region fallthrough
CT: control target
= control target key end

     0   :  { %s9156_s27 = smov 0   ;;  %s13876_s0 = inlined_call_operand.vmem [shape: f32[2,16,16,4], index: 0, kind: input, shape index: {}]   ;;  %s13877_s1 = inlined_call_operand.vmem [shape: f32[2,16,16,8], index: 1, kind: input, shape index: {}]   ;;  %s13878_s2 = inlined_call_operand.vmem [shape: f32[36,8], index: 2, kind: input, shape index: {}]   ;;  %s13879_s3 = inlined_call_operand.vmem [shape: f32[144,16], index: 3, kind: input, shape index: {}]   ;;  %s13880_s4 = inlined_call_operand.vmem [shape: f32[72,8], index: 4, kind: input, shape index: {}]   ;;  %s13881_s5 = inlined_call_operand.vmem [shape: f32[1,8], index: 5, kind: input, shape index: {}]   ;;  %s13882_s6 = inlined_call_operand.vmem [shape: f32[1,16], index: 6, kind: input, shape index: {}]   ;;  %s13883_s7 = inlined_call_operand.vmem [shape: f32[1,8], index: 7, kind: input, shape index: {}]   ;;  %s13884_s8 = inlined_call_operand.vmem [shape: f32[2,16,16,8], index: 8, kind: output, shape index: {}]  }
   0x1 LB: > { %s8684_s28 = sadd.s32 4294967295, %s9088_s27   ;;  %p8688_p0 = scmp.ge.s32.totalorder %s9088_s27, 1  ;;  %s9088_s27 = sphi %s9156_s27, %s18_s27  }
   0x2   : > { %p272_p1 = scmp.lt.s32.totalorder %s9088_s27, 3 }
   0x4   : > { %p273_p2 = pnand %p8688_p0, %p272_p1 }
   0x6   : > { %276 = sbr.rel (%p273_p2) target bundleno = 2982 (0xba6), region = 52 }
   0xd   : > { %vm326_vm0 = vcmask 31744   ;;  %vm335_vm1 = vcmask 24576   ;;  %p9166_p3 = scmp.lt.s32.totalorder %s8684_s28, 1  ;;  %vm329_vm2 = vcmask 25600   ;;  %v13885_v0 = vmov 0.0   ;;  %s9091_s12 = smov 4  }
   0xe   : > { %327 = vst.msk [vmem:[#allocation2] sm:$0xff] %vm326_vm0, %v13885_v0  ;;  %328 = vst.msk [vmem:[#allocation2 + $0x8] sm:$0xff] %vm326_vm0, %v13885_v0  ;;  %s9092_s13 = smov 8   ;;  %vm815_vm3 = vcmask 64544   ;;  %s9093_s14 = smov 12   ;;  %vm1008_vm4 = vcmask 97344  }
   0xf   : > { %332 = vst.msk [vmem:[#allocation2 + $0x198] sm:$0xff] %vm326_vm0, %v13885_v0  ;;  %333 = vst.msk [vmem:[#allocation2 + $0x1a0] sm:$0xff] %vm326_vm0, %v13885_v0  ;;  %s14271_s28 = smov (!%p9166_p3, %s8684_s28), 1  ;;  %s9094_s15 = smov 16   ;;  %vm1201_vm5 = vcmask 130144   ;;  %vm1394_vm6 = vcmask 162944  }
  0x10   : > { %337 = vst.msk [vmem:[#allocation2 + $0x18] sm:$0x1] %vm335_vm1, %v13885_v0  ;;  %338 = vst.msk [vmem:[#allocation2 + $0x30] sm:$0x1] %vm335_vm1, %v13885_v0  ;;  %s9258_s30 = sshll.u32 %s14271_s28, 8  ;;  %s9095_s16 = smov 20  }
  0x11   : > { %339 = vst.msk [vmem:[#allocation2 + $0x48] sm:$0x1] %vm335_vm1, %v13885_v0  ;;  %340 = vst.msk [vmem:[#allocation2 + $0x60] sm:$0x1] %vm335_vm1, %v13885_v0  ;;  %s9264_s11 = scalar_lea.vmem %s13876_s0, %s9258_s30  ;;  %s9096_s17 = smov 24   ;;  %vm1587_vm7 = vcmask 195744  }
  0x12   : > { %341 = vst.msk [vmem:[#allocation2 + $0x78] sm:$0x1] %vm335_vm1, %v13885_v0  ;;  %342 = vst.msk [vmem:[#allocation2 + $0x90] sm:$0x1] %vm335_vm1, %v13885_v0  ;;  %v461_v1 = vld [vmem:[%s9264_s11] sm:$0xff]  ;;  %v462_v2 = vld [vmem:[%s9264_s11 + $0x8] sm:$0xff]  ;;  %s11336_s19 = scalar_lea.vmem %s13877_s1, %s9258_s30 }
  0x13   : > { %343 = vst.msk [vmem:[#allocation2 + $0xa8] sm:$0x1] %vm335_vm1, %v13885_v0  ;;  %344 = vst.msk [vmem:[#allocation2 + $0xc0] sm:$0x1] %vm335_vm1, %v13885_v0  ;;  %v463_v3 = vld [vmem:[%s9264_s11 + $0x10] sm:$0xff]  ;;  %v464_v4 = vld [vmem:[%s9264_s11 + $0x18] sm:$0xff] }
  0x14   : > { %345 = vst.msk [vmem:[#allocation2 + $0xd8] sm:$0x1] %vm335_vm1, %v13885_v0  ;;  %346 = vst.msk [vmem:[#allocation2 + $0xf0] sm:$0x1] %vm335_vm1, %v13885_v0  ;;  %v465_v5 = vld [vmem:[%s9264_s11 + $0x20] sm:$0xff]  ;;  %v466_v6 = vld [vmem:[%s9264_s11 + $0x28] sm:$0xff] }
  0x15   : > { %347 = vst.msk [vmem:[#allocation2 + $0x108] sm:$0x1] %vm335_vm1, %v13885_v0  ;;  %348 = vst.msk [vmem:[#allocation2 + $0x120] sm:$0x1] %vm335_vm1, %v13885_v0  ;;  %v655_v7 = vld [vmem:[#allocation2 + $0x1] sm:$0xff]  ;;  %v467_v9 = vld [vmem:[%s9264_s11 + $0x30] sm:$0xff] }
  0x16   : > { %349 = vst.msk [vmem:[#allocation2 + $0x138] sm:$0x1] %vm335_vm1, %v13885_v0  ;;  %350 = vst.msk [vmem:[#allocation2 + $0x150] sm:$0x1] %vm335_vm1, %v13885_v0  ;;  %719 = vrot.lane.b32.xlu0 %v655_v7, %s9091_s12  ;;  %v468_v10 = vld [vmem:[%s9264_s11 + $0x38] sm:$0xff]  ;;  %v469_v11 = vld [vmem:[%s9264_s11 + $0x40] sm:$0xff] }
  0x17   : > { %351 = vst.msk [vmem:[#allocation2 + $0x168] sm:$0x1] %vm335_vm1, %v13885_v0  ;;  %352 = vst.msk [vmem:[#allocation2 + $0x180] sm:$0x1] %vm335_vm1, %v13885_v0  ;;  %v470_v12 = vld [vmem:[%s9264_s11 + $0x48] sm:$0xff]  ;;  %v471_v13 = vld [vmem:[%s9264_s11 + $0x50] sm:$0xff] }
  0x18   : > { %355 = vst.msk [vmem:[#allocation2 + $0x29] sm:$0x1] %vm335_vm1, %v13885_v0  ;;  %356 = vst.msk [vmem:[#allocation2 + $0x41] sm:$0x1] %vm335_vm1, %v13885_v0  ;;  %v472_v14 = vld [vmem:[%s9264_s11 + $0x58] sm:$0xff]  ;;  %v473_v15 = vld [vmem:[%s9264_s11 + $0x60] sm:$0xff] }
  0x19   : > { %357 = vst.msk [vmem:[#allocation2 + $0x59] sm:$0x1] %vm335_vm1, %v13885_v0  ;;  %358 = vst.msk [vmem:[#allocation2 + $0x71] sm:$0x1] %vm335_vm1, %v13885_v0  ;;  %v474_v16 = vld [vmem:[%s9264_s11 + $0x68] sm:$0xff]  ;;  %v475_v17 = vld [vmem:[%s9264_s11 + $0x70] sm:$0xff] }
  0x1a   : > { %359 = vst.msk [vmem:[#allocation2 + $0x89] sm:$0x1] %vm335_vm1, %v13885_v0  ;;  %360 = vst.msk [vmem:[#allocation2 + $0xa1] sm:$0x1] %vm335_vm1, %v13885_v0  ;;  %v476_v18 = vld [vmem:[%s9264_s11 + $0x78] sm:$0xff]  ;;  %v477_v19 = vld [vmem:[%s9264_s11 + $0x80] sm:$0xff] }
  0x1b   : > { %361 = vst.msk [vmem:[#allocation2 + $0xb9] sm:$0x1] %vm335_vm1, %v13885_v0  ;;  %362 = vst.msk [vmem:[#allocation2 + $0xd1] sm:$0x1] %vm335_vm1, %v13885_v0  ;;  %v478_v20 = vld [vmem:[%s9264_s11 + $0x88] sm:$0xff]  ;;  %v479_v21 = vld [vmem:[%s9264_s11 + $0x90] sm:$0xff] }
  0x1c   : > { %363 = vst.msk [vmem:[#allocation2 + $0xe9] sm:$0x1] %vm335_vm1, %v13885_v0  ;;  %364 = vst.msk [vmem:[#allocation2 + $0x101] sm:$0x1] %vm335_vm1, %v13885_v0  ;;  %v480_v22 = vld [vmem:[%s9264_s11 + $0x98] sm:$0xff]  ;;  %v481_v23 = vld [vmem:[%s9264_s11 + $0xa0] sm:$0xff] }
  0x1d   : > { %365 = vst.msk [vmem:[#allocation2 + $0x119] sm:$0x1] %vm335_vm1, %v13885_v0  ;;  %366 = vst.msk [vmem:[#allocation2 + $0x131] sm:$0x1] %vm335_vm1, %v13885_v0  ;;  %v482_v24 = vld [vmem:[%s9264_s11 + $0xa8] sm:$0xff]  ;;  %v483_v28 = vld [vmem:[%s9264_s11 + $0xb0] sm:$0xff] }
  0x1e   : > { %367 = vst.msk [vmem:[#allocation2 + $0x149] sm:$0x1] %vm335_vm1, %v13885_v0  ;;  %368 = vst.msk [vmem:[#allocation2 + $0x161] sm:$0x1] %vm335_vm1, %v13885_v0  ;;  %v484_v29 = vld [vmem:[%s9264_s11 + $0xb8] sm:$0xff]  ;;  %v485_v33 = vld [vmem:[%s9264_s11 + $0xc0] sm:$0xff] }
  0x1f   : > { %369 = vst.msk [vmem:[#allocation2 + $0x179] sm:$0x1] %vm335_vm1, %v13885_v0  ;;  %370 = vst.msk [vmem:[#allocation2 + $0x191] sm:$0x1] %vm335_vm1, %v13885_v0  ;;  %v486_v34 = vld [vmem:[%s9264_s11 + $0xc8] sm:$0xff]  ;;  %v487_v35 = vld [vmem:[%s9264_s11 + $0xd0] sm:$0xff] }
  0x20   : > { %330 = vst.msk [vmem:[#allocation2 + $0x10] sm:$0x3] %vm329_vm2, %v13885_v0  ;;  %334 = vst.msk [vmem:[#allocation2 + $0x1a8] sm:$0x3] %vm329_vm2, %v13885_v0  ;;  %v488_v36 = vld [vmem:[%s9264_s11 + $0xd8] sm:$0xff]  ;;  %v489_v37 = vld [vmem:[%s9264_s11 + $0xe0] sm:$0xff] }
  0x21   : > { %336 = vst.msk [vmem:[#allocation2] sm:$0x1] %vm335_vm1, %v13885_v0  ;;  %353 = vst.msk [vmem:[#allocation2 + $0x198] sm:$0x1] %vm335_vm1, %v13885_v0  ;;  %v490_v38 = vld [vmem:[%s9264_s11 + $0xe8] sm:$0xff]  ;;  %s9097_s18 = smov 28  }
  0x22   : > { %354 = vst.msk [vmem:[#allocation2 + $0x11] sm:$0x1] %vm335_vm1, %v13885_v0  ;;  %371 = vst.msk [vmem:[#allocation2 + $0x1a9] sm:$0x1] %vm335_vm1, %v13885_v0  ;;  %v592_v48 = vld [vmem:[#allocation2 + $0x8] sm:$0xff]  ;;  %vm1781_vm8 = vcmask 228544  }
  0x23   : > { %494 = vst.msk [vmem:[#allocation2 + $0x19] sm:$0xff] %vm326_vm0, %v461_v1  ;;  %495 = vst.msk [vmem:[#allocation2 + $0x21] sm:$0xff] %vm326_vm0, %v462_v2  ;;  %vm2341_vm9 = vcmask 1043456   ;;  %s9098_s9 = smov 32   ;;  %vm1974_vm10 = vcmask 261344   ;;  %vm372_vm11 = vcmask 64512  }
  0x24   : > { %496 = vst.msk [vmem:[#allocation2 + $0x31] sm:$0xff] %vm326_vm0, %v463_v3  ;;  %497 = vst.msk [vmem:[#allocation2 + $0x39] sm:$0xff] %vm326_vm0, %v464_v4  ;;  %vm2167_vm12 = vcmask 294144   ;;  %vm2244_vm13 = vcmask 293888   ;;  %vm375_vm14 = vcmask 58368   ;;  %vm381_vm15 = vcmask 57344  }
  0x25   : > { %498 = vst.msk [vmem:[#allocation2 + $0x49] sm:$0xff] %vm326_vm0, %v465_v5  ;;  %499 = vst.msk [vmem:[#allocation2 + $0x51] sm:$0xff] %vm326_vm0, %v466_v6  ;;  %vm3020_vm1 = vcmask 195712   ;;  %vm3213_vm2 = vcmask 261312   ;;  %s9101_s20 = smov 56   ;;  %s9102_s21 = smov 64  }
  0x26   : > { %500 = vst.msk [vmem:[#allocation2 + $0x61] sm:$0xff] %vm326_vm0, %v467_v9  ;;  %501 = vst.msk [vmem:[#allocation2 + $0x69] sm:$0xff] %vm326_vm0, %v468_v10  ;;  %s9103_s22 = smov 72   ;;  %s9104_s23 = smov 80  }
  0x27   : > { %v656_v8 = vld [vmem:[#allocation2 + $0x9] sm:$0xff]  ;;  %502 = vst.msk [vmem:[#allocation2 + $0x79] sm:$0xff] %vm326_vm0, %v469_v11  ;;  %503 = vst.msk [vmem:[#allocation2 + $0x81] sm:$0xff] %vm326_vm0, %v470_v12  ;;  %s9105_s24 = smov 88   ;;  %s9106_s25 = smov 96  }
  0x28   : > { %504 = vst.msk [vmem:[#allocation2 + $0x91] sm:$0xff] %vm326_vm0, %v471_v13  ;;  %505 = vst.msk [vmem:[#allocation2 + $0x99] sm:$0xff] %vm326_vm0, %v472_v14  ;;  %721 = vrot.lane.b32.xlu0 %v656_v8, %s9091_s12  ;;  %v591_v45 = vld [vmem:[#allocation2] sm:$0xff]  ;;  %s9107_s26 = smov 104   ;;  %s9108_s28 = smov 112  }
  0x29   : > { %506 = vst.msk [vmem:[#allocation2 + $0xa9] sm:$0xff] %vm326_vm0, %v473_v15  ;;  %507 = vst.msk [vmem:[#allocation2 + $0xb1] sm:$0xff] %vm326_vm0, %v474_v16 }
  0x2a   : > { %508 = vst.msk [vmem:[#allocation2 + $0xc1] sm:$0xff] %vm326_vm0, %v475_v17  ;;  %509 = vst.msk [vmem:[#allocation2 + $0xc9] sm:$0xff] %vm326_vm0, %v476_v18  ;;  %v9309_v25 = vld [vmem:[#allocation2 + $0x19] sm:$0xff]  ;;  %v9318_v27 = vld [vmem:[#allocation2 + $0x21] sm:$0xff] }
  0x2b   : > { %510 = vst.msk [vmem:[#allocation2 + $0xd9] sm:$0xff] %vm326_vm0, %v477_v19  ;;  %511 = vst.msk [vmem:[#allocation2 + $0xe1] sm:$0xff] %vm326_vm0, %v478_v20  ;;  %v9311_v26 = vld [vmem:[#allocation2 + $0x31] sm:$0xff]  ;;  %723 = vrot.lane.b32.xlu1 %v9309_v25, %s9091_s12  ;;  %v9330_v31 = vld [vmem:[#allocation2 + $0x39] sm:$0xff] }
  0x2c   : > { %512 = vst.msk [vmem:[#allocation2 + $0xf1] sm:$0xff] %vm326_vm0, %v479_v21  ;;  %513 = vst.msk [vmem:[#allocation2 + $0xf9] sm:$0xff] %vm326_vm0, %v480_v22  ;;  %727 = vrot.lane.b32.xlu0 %v9311_v26, %s9091_s12  ;;  %v9326_v30 = vld [vmem:[#allocation2 + $0x49] sm:$0xff]  ;;  %v9347_v39 = vld [vmem:[#allocation2 + $0x51] sm:$0xff] }
  0x2d   : > { %514 = vst.msk [vmem:[#allocation2 + $0x109] sm:$0xff] %vm326_vm0, %v481_v23  ;;  %515 = vst.msk [vmem:[#allocation2 + $0x111] sm:$0xff] %vm326_vm0, %v482_v24  ;;  %v9334_v32 = vld [vmem:[#allocation2 + $0x61] sm:$0xff]  ;;  %v9358_v41 = vld [vmem:[#allocation2 + $0x69] sm:$0xff] }
  0x2e   : > { %516 = vst.msk [vmem:[#allocation2 + $0x121] sm:$0xff] %vm326_vm0, %v483_v28  ;;  %517 = vst.msk [vmem:[#allocation2 + $0x129] sm:$0xff] %vm326_vm0, %v484_v29  ;;  %v9354_v40 = vld [vmem:[#allocation2 + $0x79] sm:$0xff]  ;;  %v9366_v43 = vld [vmem:[#allocation2 + $0x81] sm:$0xff] }
  0x2f   : > { %725 = vrot.lane.b32.xlu1 %v9318_v27, %s9091_s12  ;;  %518 = vst.msk [vmem:[#allocation2 + $0x139] sm:$0xff] %vm326_vm0, %v485_v33  ;;  %519 = vst.msk [vmem:[#allocation2 + $0x141] sm:$0xff] %vm326_vm0, %v486_v34  ;;  %v9362_v42 = vld [vmem:[#allocation2 + $0x91] sm:$0xff]  ;;  %v9376_v47 = vld [vmem:[#allocation2 + $0x99] sm:$0xff] }
  0x30   : > { %731 = vrot.lane.b32.xlu0 %v9326_v30, %s9091_s12  ;;  %520 = vst.msk [vmem:[#allocation2 + $0x151] sm:$0xff] %vm326_vm0, %v487_v35  ;;  %521 = vst.msk [vmem:[#allocation2 + $0x159] sm:$0xff] %vm326_vm0, %v488_v36  ;;  %v9370_v44 = vld [vmem:[#allocation2 + $0xa9] sm:$0xff]  ;;  %v9374_v46 = vld [vmem:[#allocation2 + $0x18] sm:$0xff] }
  0x31   : > { %522 = vst.msk [vmem:[#allocation2 + $0x169] sm:$0xff] %vm326_vm0, %v489_v37  ;;  %523 = vst.msk [vmem:[#allocation2 + $0x171] sm:$0xff] %vm326_vm0, %v490_v38  ;;  %v9384_v49 = vld [vmem:[#allocation2 + $0x20] sm:$0xff]  ;;  %v9390_v51 = vld [vmem:[#allocation2 + $0x30] sm:$0xff] }
  0x32   : > { %623 = vst.msk [vmem:[#allocation5] sm:$0xff] %vm326_vm0, %v591_v45  ;;  %625 = vst.msk [vmem:[#allocation5 + $0x20] sm:$0xff] %vm326_vm0, %v9374_v46  ;;  %v9386_v50 = vld [vmem:[#allocation2 + $0xc1] sm:$0xff]  ;;  %v9392_v52 = vld [vmem:[#allocation2 + $0x38] sm:$0xff] }
  0x33   : > { %729 = vrot.lane.b32.xlu1 %v9330_v31, %s9091_s12  ;;  %624 = vst.msk [vmem:[#allocation5 + $0x10] sm:$0xff] %vm326_vm0, %v592_v48  ;;  %626 = vst.msk [vmem:[#allocation5 + $0x30] sm:$0xff] %vm326_vm0, %v9384_v49  ;;  %v9396_v53 = vld [vmem:[#allocation2 + $0xb1] sm:$0xff]  ;;  %v9402_v54 = vld [vmem:[#allocation2 + $0x48] sm:$0xff] }
  0x34   : > { %735 = vrot.lane.b32.xlu0 %v9334_v32, %s9091_s12  ;;  %627 = vst.msk [vmem:[#allocation5 + $0x40] sm:$0xff] %vm326_vm0, %v9390_v51  ;;  %628 = vst.msk [vmem:[#allocation5 + $0x50] sm:$0xff] %vm326_vm0, %v9392_v52  ;;  %v9404_v55 = vld [vmem:[#allocation2 + $0x50] sm:$0xff]  ;;  %v9406_v56 = vld [vmem:[#allocation2 + $0xd9] sm:$0xff] }
  0x35   : > { %629 = vst.msk [vmem:[#allocation5 + $0x60] sm:$0xff] %vm326_vm0, %v9402_v54  ;;  %630 = vst.msk [vmem:[#allocation5 + $0x70] sm:$0xff] %vm326_vm0, %v9404_v55  ;;  %v9412_v57 = vld [vmem:[#allocation2 + $0x60] sm:$0xff]  ;;  %v9414_v58 = vld [vmem:[#allocation2 + $0x68] sm:$0xff] }
  0x36   : > { %v9416_v59 = vld [vmem:[#allocation2 + $0x78] sm:$0xff]  ;;  %631 = vst.msk [vmem:[#allocation5 + $0x80] sm:$0xff] %vm326_vm0, %v9412_v57  ;;  %632 = vst.msk [vmem:[#allocation5 + $0x90] sm:$0xff] %vm326_vm0, %v9414_v58  ;;  %v9426_v60 = vld [vmem:[#allocation2 + $0x80] sm:$0xff] }
  0x37   : > { %733 = vrot.lane.b32.xlu1 %v9347_v39, %s9091_s12  ;;  %633 = vst.msk [vmem:[#allocation5 + $0xa0] sm:$0xff] %vm326_vm0, %v9416_v59  ;;  %v9428_v61 = vld [vmem:[#allocation2 + $0x90] sm:$0xff]  ;;  %v9430_v62 = vld [vmem:[#allocation2 + $0x98] sm:$0xff]  ;;  %634 = vst.msk [vmem:[#allocation5 + $0xb0] sm:$0xff] %vm326_vm0, %v9426_v60 }
  0x38   : > { %739 = vrot.lane.b32.xlu0 %v9354_v40, %s9091_s12  ;;  %v9432_v63 = vld [vmem:[#allocation2 + $0xc9] sm:$0xff]  ;;  %635 = vst.msk [vmem:[#allocation5 + $0xc0] sm:$0xff] %vm326_vm0, %v9428_v61  ;;  %636 = vst.msk [vmem:[#allocation5 + $0xd0] sm:$0xff] %vm326_vm0, %v9430_v62  ;;  %v9444_v3 = vld [vmem:[#allocation2 + $0xc0] sm:$0xff] }
  0x39   : > { %v9440_v1 = vld [vmem:[#allocation2 + $0xa8] sm:$0xff]  ;;  %v9442_v2 = vld [vmem:[#allocation2 + $0xb0] sm:$0xff]  ;;  %639 = vst.msk [vmem:[#allocation5 + $0x100] sm:$0xff] %vm326_vm0, %v9444_v3  ;;  %v9456_v5 = vld [vmem:[#allocation2 + $0xd8] sm:$0xff] }
  0x3a   : > { %637 = vst.msk [vmem:[#allocation5 + $0xe0] sm:$0xff] %vm326_vm0, %v9440_v1  ;;  %638 = vst.msk [vmem:[#allocation5 + $0xf0] sm:$0xff] %vm326_vm0, %v9442_v2  ;;  %v9454_v4 = vld [vmem:[#allocation2 + $0xc8] sm:$0xff]  ;;  %v9458_v6 = vld [vmem:[#allocation2 + $0xe0] sm:$0xff] }
  0x3b   : > { %737 = vrot.lane.b32.xlu1 %v9358_v41, %s9091_s12  ;;  %640 = vst.msk [vmem:[#allocation5 + $0x110] sm:$0xff] %vm326_vm0, %v9454_v4  ;;  %641 = vst.msk [vmem:[#allocation5 + $0x120] sm:$0xff] %vm326_vm0, %v9456_v5  ;;  %v9466_v7 = vld [vmem:[#allocation2 + $0xf0] sm:$0xff]  ;;  %v9468_v8 = vld [vmem:[#allocation2 + $0xf8] sm:$0xff] }
  0x3c   : > { %743 = vrot.lane.b32.xlu0 %v9362_v42, %s9091_s12  ;;  %642 = vst.msk [vmem:[#allocation5 + $0x130] sm:$0xff] %vm326_vm0, %v9458_v6  ;;  %v9470_v9 = vld [vmem:[#allocation2 + $0x108] sm:$0xff]  ;;  %643 = vst.msk [vmem:[#allocation5 + $0x140] sm:$0xff] %vm326_vm0, %v9466_v7  ;;  %v9480_v10 = vld [vmem:[#allocation2 + $0x110] sm:$0xff] }
  0x3d   : > { %644 = vst.msk [vmem:[#allocation5 + $0x150] sm:$0xff] %vm326_vm0, %v9468_v8  ;;  %645 = vst.msk [vmem:[#allocation5 + $0x160] sm:$0xff] %vm326_vm0, %v9470_v9  ;;  %v9482_v11 = vld [vmem:[#allocation2 + $0xf1] sm:$0xff]  ;;  %v9488_v12 = vld [vmem:[#allocation2 + $0x120] sm:$0xff] }
  0x3e   : > { %646 = vst.msk [vmem:[#allocation5 + $0x170] sm:$0xff] %vm326_vm0, %v9480_v10  ;;  %v9490_v13 = vld [vmem:[#allocation2 + $0x128] sm:$0xff]  ;;  %647 = vst.msk [vmem:[#allocation5 + $0x180] sm:$0xff] %vm326_vm0, %v9488_v12  ;;  %v9504_v16 = vld [vmem:[#allocation2 + $0x138] sm:$0xff] }
  0x3f   : > { %741 = vrot.lane.b32.xlu1 %v9366_v43, %s9091_s12  ;;  %v9492_v14 = vld [vmem:[#allocation2 + $0xe1] sm:$0xff]  ;;  %648 = vst.msk [vmem:[#allocation5 + $0x190] sm:$0xff] %vm326_vm0, %v9490_v13  ;;  %v9500_v15 = vld [vmem:[#allocation2 + $0x109] sm:$0xff]  ;;  %v9508_v18 = vld [vmem:[#allocation2 + $0xf9] sm:$0xff] }
  0x40   : > { %747 = vrot.lane.b32.xlu0 %v9370_v44, %s9091_s12  ;;  %v9506_v17 = vld [vmem:[#allocation2 + $0x140] sm:$0xff]  ;;  %649 = vst.msk [vmem:[#allocation5 + $0x1a0] sm:$0xff] %vm326_vm0, %v9504_v16  ;;  %v9520_v20 = vld [vmem:[#allocation2 + $0x150] sm:$0xff]  ;;  %v9522_v21 = vld [vmem:[#allocation2 + $0x158] sm:$0xff] }
  0x41   : > { %650 = vst.msk [vmem:[#allocation5 + $0x1b0] sm:$0xff] %vm326_vm0, %v9506_v17  ;;  %v9516_v19 = vld [vmem:[#allocation2 + $0x121] sm:$0xff]  ;;  %v9524_v22 = vld [vmem:[#allocation2 + $0x111] sm:$0xff]  ;;  %651 = vst.msk [vmem:[#allocation5 + $0x1c0] sm:$0xff] %vm326_vm0, %v9520_v20 }
  0x42   : > { %652 = vst.msk [vmem:[#allocation5 + $0x1d0] sm:$0xff] %vm326_vm0, %v9522_v21  ;;  %v9532_v23 = vld [vmem:[#allocation2 + $0x139] sm:$0xff]  ;;  %v9536_v24 = vld [vmem:[#allocation2 + $0x168] sm:$0xff]  ;;  %v9538_v28 = vld [vmem:[#allocation2 + $0x170] sm:$0xff] }
  0x43   : > { %745 = vrot.lane.b32.xlu1 %v9376_v47, %s9091_s12  ;;  %v9540_v29 = vld [vmem:[#allocation2 + $0x129] sm:$0xff]  ;;  %653 = vst.msk [vmem:[#allocation5 + $0x1e0] sm:$0xff] %vm326_vm0, %v9536_v24  ;;  %654 = vst.msk [vmem:[#allocation5 + $0x1f0] sm:$0xff] %vm326_vm0, %v9538_v28  ;;  %v9548_v33 = vld [vmem:[#allocation2 + $0x151] sm:$0xff] }
  0x44   : > { %751 = vrot.lane.b32.xlu0 %v9386_v50, %s9091_s12  ;;  %v9552_v34 = vld [vmem:[#allocation2 + $0x141] sm:$0xff]  ;;  %v491_v35 = vld [vmem:[%s9264_s11 + $0xf0] sm:$0xff]  ;;  %v492_v37 = vld [vmem:[%s9264_s11 + $0xf8] sm:$0xff] }
  0x45   : > { %14019 = vst [vmem:[#allocation6_spill] sm:$0xff] %v9552_v34  ;;  %v9557_v36 = vld [vmem:[#allocation2 + $0x169] sm:$0xff]  ;;  %524 = vst.msk [vmem:[#allocation2 + $0x181] sm:$0xff] %vm326_vm0, %v491_v35  ;;  %v9564_v38 = vld [vmem:[#allocation2 + $0x159] sm:$0xff] }
  0x46   : > { %14020 = vst [vmem:[#allocation7_spill] sm:$0xff] %v9557_v36  ;;  %525 = vst.msk [vmem:[#allocation2 + $0x189] sm:$0xff] %vm326_vm0, %v492_v37  ;;  %v848_v45 = vld [vmem:[#allocation2 + $0x2] sm:$0xff]  ;;  %v9570_v48 = vld [vmem:[#allocation2 + $0x171] sm:$0xff]  ;;  %vm2827_vm0 = vcmask 130112  }
  0x47   : > { %749 = vrot.lane.b32.xlu1 %v9396_v53, %s9091_s12  ;;  %14021 = vst [vmem:[#allocation8_spill] sm:$0xff] %v9564_v38  ;;  %14022 = vst [vmem:[#allocation9_spill] sm:$0xff] %v9570_v48  ;;  %v9573_v35 = vld [vmem:[#allocation2 + $0x1a] sm:$0xff]  ;;  %v849_v37 = vld [vmem:[#allocation2 + $0xa] sm:$0xff] }
  0x48   : > { %755 = vrot.lane.b32.xlu0 %v9406_v56, %s9091_s12  ;;  %14023 = vst [vmem:[#allocation10_spill] sm:$0xff] %v9573_v35  ;;  %v9579_v0 = vld [vmem:[#allocation2 + $0x32] sm:$0xff] }
  0x49   : > { %14024 = vst [vmem:[#allocation11_spill] sm:$0xff] %v9579_v0 }
  0x4b   : > { %753 = vrot.lane.b32.xlu1 %v9432_v63, %s9091_s12 }
  0x4c   : > { %759 = vrot.lane.b32.xlu0 %v9482_v11, %s9091_s12 }
  0x4f   : > { %757 = vrot.lane.b32.xlu1 %v9492_v14, %s9091_s12 }
  0x50   : > { %763 = vrot.lane.b32.xlu0 %v9500_v15, %s9091_s12 }
  0x53   : > { %761 = vrot.lane.b32.xlu1 %v9508_v18, %s9091_s12 }
  0x54   : > { %767 = vrot.lane.b32.xlu0 %v9516_v19, %s9091_s12 }
  0x57   : > { %765 = vrot.lane.b32.xlu1 %v9524_v22, %s9091_s12 }
  0x58   : > { %771 = vrot.lane.b32.xlu0 %v9532_v23, %s9091_s12 }
  0x5b   : > { %769 = vrot.lane.b32.xlu1 %v9540_v29, %s9091_s12 }
  0x5c   : > { %775 = vrot.lane.b32.xlu0 %v9548_v33, %s9091_s12 }
  0x5f   : > { %773 = vrot.lane.b32.xlu1 %v9552_v34, %s9091_s12 }
  0x60   : > { %779 = vrot.lane.b32.xlu0 %v9557_v36, %s9091_s12  ;;  %v9582_v36 = vld [vmem:[#allocation2 + $0x22] sm:$0xff] }
  0x61   : > { %14025 = vst [vmem:[#allocation12_spill] sm:$0xff] %v9582_v36 }
  0x63   : > { %777 = vrot.lane.b32.xlu1 %v9564_v38, %s9091_s12  ;;  %v9586_v38 = vld [vmem:[#allocation2 + $0x4a] sm:$0xff] }
  0x64   : > { %912 = vrot.lane.b32.xlu0 %v848_v45, %s9092_s13  ;;  %14026 = vst [vmem:[#allocation13_spill] sm:$0xff] %v9586_v38  ;;  %v9590_v45 = vld [vmem:[#allocation2 + $0x3a] sm:$0xff] }
  0x65   : > { %14027 = vst [vmem:[#allocation14_spill] sm:$0xff] %v9590_v45 }
  0x67   : > { %781 = vrot.lane.b32.xlu1 %v9570_v48, %s9091_s12  ;;  %v9670_v48 = vld [vmem:[#allocation2 + $0x12a] sm:$0xff]  ;;  %s9099_s12 = smov 40  }
  0x68   : > { %916 = vrot.lane.b32.xlu0 %v9573_v35, %s9092_s13  ;;  %v9594_v35 = vld [vmem:[#allocation2 + $0x62] sm:$0xff]  ;;  %14047 = vst [vmem:[#allocation34_spill] sm:$0xff] %v9670_v48 }
  0x69   : > { %14028 = vst [vmem:[#allocation15_spill] sm:$0xff] %v9594_v35 }
  0x6b   : > { %914 = vrot.lane.b32.xlu1 %v849_v37, %s9092_s13  ;;  %v9598_v37 = vld [vmem:[#allocation2 + $0x52] sm:$0xff] }
  0x6c   : > { %920 = vrot.lane.b32.xlu0 %v9579_v0, %s9092_s13  ;;  %14029 = vst [vmem:[#allocation16_spill] sm:$0xff] %v9598_v37  ;;  %v9602_v0 = vld [vmem:[#allocation2 + $0x7a] sm:$0xff] }
  0x6d   : > { %14030 = vst [vmem:[#allocation17_spill] sm:$0xff] %v9602_v0 }
  0x6f   : > { %918 = vrot.lane.b32.xlu1 %v9582_v36, %s9092_s13  ;;  %v9606_v36 = vld [vmem:[#allocation2 + $0x6a] sm:$0xff] }
  0x70   : > { %924 = vrot.lane.b32.xlu0 %v9586_v38, %s9092_s13  ;;  %14031 = vst [vmem:[#allocation18_spill] sm:$0xff] %v9606_v36  ;;  %v9610_v38 = vld [vmem:[#allocation2 + $0x92] sm:$0xff] }
  0x71   : > { %14032 = vst [vmem:[#allocation19_spill] sm:$0xff] %v9610_v38 }
  0x73   : > { %922 = vrot.lane.b32.xlu1 %v9590_v45, %s9092_s13  ;;  %v9614_v45 = vld [vmem:[#allocation2 + $0x82] sm:$0xff] }
  0x74   : > { %928 = vrot.lane.b32.xlu0 %v9594_v35, %s9092_s13  ;;  %14033 = vst [vmem:[#allocation20_spill] sm:$0xff] %v9614_v45  ;;  %v9618_v35 = vld [vmem:[#allocation2 + $0xaa] sm:$0xff] }
  0x75   : > { %14034 = vst [vmem:[#allocation21_spill] sm:$0xff] %v9618_v35 }
  0x77   : > { %926 = vrot.lane.b32.xlu1 %v9598_v37, %s9092_s13  ;;  %v9622_v37 = vld [vmem:[#allocation2 + $0x9a] sm:$0xff] }
  0x78   : > { %932 = vrot.lane.b32.xlu0 %v9602_v0, %s9092_s13  ;;  %14035 = vst [vmem:[#allocation22_spill] sm:$0xff] %v9622_v37  ;;  %v9626_v0 = vld [vmem:[#allocation2 + $0xc2] sm:$0xff] }
  0x79   : > { %14036 = vst [vmem:[#allocation23_spill] sm:$0xff] %v9626_v0 }
  0x7b   : > { %930 = vrot.lane.b32.xlu1 %v9606_v36, %s9092_s13  ;;  %v9630_v36 = vld [vmem:[#allocation2 + $0xb2] sm:$0xff] }
  0x7c   : > { %936 = vrot.lane.b32.xlu0 %v9610_v38, %s9092_s13  ;;  %14037 = vst [vmem:[#allocation24_spill] sm:$0xff] %v9630_v36  ;;  %v9634_v38 = vld [vmem:[#allocation2 + $0xda] sm:$0xff] }
  0x7d   : > { %14038 = vst [vmem:[#allocation25_spill] sm:$0xff] %v9634_v38 }
  0x7f   : > { %934 = vrot.lane.b32.xlu1 %v9614_v45, %s9092_s13  ;;  %v9638_v45 = vld [vmem:[#allocation2 + $0xca] sm:$0xff] }
  0x80   : > { %940 = vrot.lane.b32.xlu0 %v9618_v35, %s9092_s13  ;;  %14039 = vst [vmem:[#allocation26_spill] sm:$0xff] %v9638_v45  ;;  %v9642_v35 = vld [vmem:[#allocation2 + $0xf2] sm:$0xff] }
  0x81   : > { %14040 = vst [vmem:[#allocation27_spill] sm:$0xff] %v9642_v35 }
  0x83   : > { %938 = vrot.lane.b32.xlu1 %v9622_v37, %s9092_s13  ;;  %v9646_v37 = vld [vmem:[#allocation2 + $0xe2] sm:$0xff] }
  0x84   : > { %944 = vrot.lane.b32.xlu0 %v9626_v0, %s9092_s13  ;;  %14041 = vst [vmem:[#allocation28_spill] sm:$0xff] %v9646_v37  ;;  %v9650_v0 = vld [vmem:[#allocation2 + $0x10a] sm:$0xff] }
  0x85   : > { %14042 = vst [vmem:[#allocation29_spill] sm:$0xff] %v9650_v0 }
  0x87   : > { %942 = vrot.lane.b32.xlu1 %v9630_v36, %s9092_s13  ;;  %v9654_v36 = vld [vmem:[#allocation2 + $0xfa] sm:$0xff] }
  0x88   : > { %948 = vrot.lane.b32.xlu0 %v9634_v38, %s9092_s13  ;;  %14043 = vst [vmem:[#allocation30_spill] sm:$0xff] %v9654_v36  ;;  %v9658_v38 = vld [vmem:[#allocation2 + $0x122] sm:$0xff] }
  0x89   : > { %14044 = vst [vmem:[#allocation31_spill] sm:$0xff] %v9658_v38 }
  0x8b   : > { %946 = vrot.lane.b32.xlu1 %v9638_v45, %s9092_s13  ;;  %v9662_v45 = vld [vmem:[#allocation2 + $0x112] sm:$0xff] }
  0x8c   : > { %952 = vrot.lane.b32.xlu0 %v9642_v35, %s9092_s13  ;;  %14045 = vst [vmem:[#allocation32_spill] sm:$0xff] %v9662_v45  ;;  %v9666_v35 = vld [vmem:[#allocation2 + $0x13a] sm:$0xff] }
  0x8d   : > { %14046 = vst [vmem:[#allocation33_spill] sm:$0xff] %v9666_v35 }
  0x8f   : > { %950 = vrot.lane.b32.xlu1 %v9646_v37, %s9092_s13  ;;  %v720_v37 = vpop.permute.xlu0 %719 }
  0x90   : > { %956 = vrot.lane.b32.xlu0 %v9650_v0, %s9092_s13  ;;  %816 = vst.msk [vmem:[#allocation5] sm:$0xff] %vm815_vm3, %v720_v37  ;;  %v9679_v0 = vld [vmem:[#allocation2 + $0x142] sm:$0xff]  ;;  %v9685_v37 = vld [vmem:[#allocation2 + $0x16a] sm:$0xff] }
  0x91   : > { %14048 = vst [vmem:[#allocation35_spill] sm:$0xff] %v9679_v0 }
  0x93   : > { %954 = vrot.lane.b32.xlu1 %v9654_v36, %s9092_s13  ;;  %v9675_v36 = vld [vmem:[#allocation2 + $0x152] sm:$0xff] }
  0x94   : > { %960 = vrot.lane.b32.xlu0 %v9658_v38, %s9092_s13 }
  0x97   : > { %958 = vrot.lane.b32.xlu1 %v9662_v45, %s9092_s13  ;;  %v9689_v45 = vld [vmem:[#allocation2 + $0x15a] sm:$0xff] }
  0x98   : > { %964 = vrot.lane.b32.xlu0 %v9666_v35, %s9092_s13 }
  0x9a   : > { %v722_v38 = vpop.permute.xlu0 %721 }
  0x9b   : > { %962 = vrot.lane.b32.xlu1 %v9670_v48, %s9092_s13  ;;  %817 = vst.msk [vmem:[#allocation5 + $0x10] sm:$0xff] %vm815_vm3, %v722_v38  ;;  %v9697_v38 = vld [vmem:[#allocation2 + $0x172] sm:$0xff] }
  0x9c   : > { %968 = vrot.lane.b32.xlu0 %v9675_v36, %s9092_s13 }
  0x9d   : > { %v724_v34 = vpop.permute.xlu1 %723 }
  0x9e   : > { %818 = vst.msk [vmem:[#allocation5 + $0x20] sm:$0xff] %vm815_vm3, %v724_v34  ;;  %v728_v35 = vpop.permute.xlu0 %727 }
  0x9f   : > { %966 = vrot.lane.b32.xlu1 %v9679_v0, %s9092_s13  ;;  %820 = vst.msk [vmem:[#allocation5 + $0x40] sm:$0xff] %vm815_vm3, %v728_v35 }
  0xa0   : > { %972 = vrot.lane.b32.xlu0 %v9685_v37, %s9092_s13 }
  0xa1   : > { %v726_v48 = vpop.permute.xlu1 %725 }
  0xa2   : > { %819 = vst.msk [vmem:[#allocation5 + $0x30] sm:$0xff] %vm815_vm3, %v726_v48  ;;  %v732_v34 = vpop.permute.xlu0 %731 }
  0xa3   : > { %970 = vrot.lane.b32.xlu1 %v9689_v45, %s9092_s13  ;;  %822 = vst.msk [vmem:[#allocation5 + $0x60] sm:$0xff] %vm815_vm3, %v732_v34 }
  0xa4   : > { %1105 = vrot.lane.b32.xlu0 %v9374_v46, %s9093_s14 }
  0xa5   : > { %v730_v0 = vpop.permute.xlu1 %729 }
  0xa6   : > { %821 = vst.msk [vmem:[#allocation5 + $0x50] sm:$0xff] %vm815_vm3, %v730_v0  ;;  %v736_v35 = vpop.permute.xlu0 %735 }
  0xa7   : > { %974 = vrot.lane.b32.xlu1 %v9697_v38, %s9092_s13  ;;  %824 = vst.msk [vmem:[#allocation5 + $0x80] sm:$0xff] %vm815_vm3, %v736_v35 }
  0xa8   : > { %1109 = vrot.lane.b32.xlu0 %v9390_v51, %s9093_s14 }
  0xa9   : > { %v734_v48 = vpop.permute.xlu1 %733 }
  0xaa   : > { %823 = vst.msk [vmem:[#allocation5 + $0x70] sm:$0xff] %vm815_vm3, %v734_v48  ;;  %v740_v34 = vpop.permute.xlu0 %739 }
  0xab   : > { %1107 = vrot.lane.b32.xlu1 %v9384_v49, %s9093_s14  ;;  %826 = vst.msk [vmem:[#allocation5 + $0xa0] sm:$0xff] %vm815_vm3, %v740_v34 }
  0xac   : > { %1113 = vrot.lane.b32.xlu0 %v9402_v54, %s9093_s14 }
  0xad   : > { %v738_v46 = vpop.permute.xlu1 %737 }
  0xae   : > { %825 = vst.msk [vmem:[#allocation5 + $0x90] sm:$0xff] %vm815_vm3, %v738_v46  ;;  %v744_v0 = vpop.permute.xlu0 %743 }
  0xaf   : > { %1111 = vrot.lane.b32.xlu1 %v9392_v52, %s9093_s14  ;;  %828 = vst.msk [vmem:[#allocation5 + $0xc0] sm:$0xff] %vm815_vm3, %v744_v0 }
  0xb0   : > { %1117 = vrot.lane.b32.xlu0 %v9412_v57, %s9093_s14 }
  0xb1   : > { %v742_v35 = vpop.permute.xlu1 %741 }
  0xb2   : > { %827 = vst.msk [vmem:[#allocation5 + $0xb0] sm:$0xff] %vm815_vm3, %v742_v35  ;;  %v748_v49 = vpop.permute.xlu0 %747 }
  0xb3   : > { %1115 = vrot.lane.b32.xlu1 %v9404_v55, %s9093_s14  ;;  %830 = vst.msk [vmem:[#allocation5 + $0xe0] sm:$0xff] %vm815_vm3, %v748_v49 }
  0xb4   : > { %1121 = vrot.lane.b32.xlu0 %v9416_v59, %s9093_s14 }
  0xb5   : > { %v746_v48 = vpop.permute.xlu1 %745 }
  0xb6   : > { %829 = vst.msk [vmem:[#allocation5 + $0xd0] sm:$0xff] %vm815_vm3, %v746_v48  ;;  %v752_v34 = vpop.permute.xlu0 %751 }
  0xb7   : > { %1119 = vrot.lane.b32.xlu1 %v9414_v58, %s9093_s14  ;;  %832 = vst.msk [vmem:[#allocation5 + $0x100] sm:$0xff] %vm815_vm3, %v752_v34 }
  0xb8   : > { %1125 = vrot.lane.b32.xlu0 %v9428_v61, %s9093_s14 }
  0xb9   : > { %v750_v46 = vpop.permute.xlu1 %749 }
  0xba   : > { %831 = vst.msk [vmem:[#allocation5 + $0xf0] sm:$0xff] %vm815_vm3, %v750_v46  ;;  %v756_v0 = vpop.permute.xlu0 %755 }
  0xbb   : > { %1123 = vrot.lane.b32.xlu1 %v9426_v60, %s9093_s14  ;;  %834 = vst.msk [vmem:[#allocation5 + $0x120] sm:$0xff] %vm815_vm3, %v756_v0 }
  0xbc   : > { %1129 = vrot.lane.b32.xlu0 %v9440_v1, %s9093_s14 }
  0xbd   : > { %v754_v35 = vpop.permute.xlu1 %753 }
  0xbe   : > { %833 = vst.msk [vmem:[#allocation5 + $0x110] sm:$0xff] %vm815_vm3, %v754_v35  ;;  %v760_v49 = vpop.permute.xlu0 %759 }
  0xbf   : > { %1127 = vrot.lane.b32.xlu1 %v9430_v62, %s9093_s14  ;;  %836 = vst.msk [vmem:[#allocation5 + $0x140] sm:$0xff] %vm815_vm3, %v760_v49 }
  0xc0   : > { %1133 = vrot.lane.b32.xlu0 %v9444_v3, %s9093_s14 }
  0xc1   : > { %v758_v48 = vpop.permute.xlu1 %757 }
  0xc2   : > { %835 = vst.msk [vmem:[#allocation5 + $0x130] sm:$0xff] %vm815_vm3, %v758_v48  ;;  %v764_v34 = vpop.permute.xlu0 %763 }
  0xc3   : > { %1131 = vrot.lane.b32.xlu1 %v9442_v2, %s9093_s14  ;;  %838 = vst.msk [vmem:[#allocation5 + $0x160] sm:$0xff] %vm815_vm3, %v764_v34 }
  0xc4   : > { %1137 = vrot.lane.b32.xlu0 %v9456_v5, %s9093_s14 }
  0xc5   : > { %v762_v46 = vpop.permute.xlu1 %761 }
  0xc6   : > { %837 = vst.msk [vmem:[#allocation5 + $0x150] sm:$0xff] %vm815_vm3, %v762_v46  ;;  %v768_v0 = vpop.permute.xlu0 %767 }
  0xc7   : > { %1135 = vrot.lane.b32.xlu1 %v9454_v4, %s9093_s14  ;;  %840 = vst.msk [vmem:[#allocation5 + $0x180] sm:$0xff] %vm815_vm3, %v768_v0 }
  0xc8   : > { %1141 = vrot.lane.b32.xlu0 %v9466_v7, %s9093_s14 }
  0xc9   : > { %v766_v35 = vpop.permute.xlu1 %765 }
  0xca   : > { %839 = vst.msk [vmem:[#allocation5 + $0x170] sm:$0xff] %vm815_vm3, %v766_v35  ;;  %v772_v49 = vpop.permute.xlu0 %771 }
  0xcb   : > { %1139 = vrot.lane.b32.xlu1 %v9458_v6, %s9093_s14  ;;  %842 = vst.msk [vmem:[#allocation5 + $0x1a0] sm:$0xff] %vm815_vm3, %v772_v49 }
  0xcc   : > { %1145 = vrot.lane.b32.xlu0 %v9470_v9, %s9093_s14 }
  0xcd   : > { %v770_v48 = vpop.permute.xlu1 %769 }
  0xce   : > { %841 = vst.msk [vmem:[#allocation5 + $0x190] sm:$0xff] %vm815_vm3, %v770_v48  ;;  %v776_v34 = vpop.permute.xlu0 %775 }
  0xcf   : > { %1143 = vrot.lane.b32.xlu1 %v9468_v8, %s9093_s14  ;;  %844 = vst.msk [vmem:[#allocation5 + $0x1c0] sm:$0xff] %vm815_vm3, %v776_v34 }
  0xd0   : > { %1149 = vrot.lane.b32.xlu0 %v9488_v12, %s9093_s14 }
  0xd1   : > { %v774_v46 = vpop.permute.xlu1 %773 }
  0xd2   : > { %843 = vst.msk [vmem:[#allocation5 + $0x1b0] sm:$0xff] %vm815_vm3, %v774_v46  ;;  %v780_v0 = vpop.permute.xlu0 %779 }
  0xd3   : > { %1147 = vrot.lane.b32.xlu1 %v9480_v10, %s9093_s14  ;;  %846 = vst.msk [vmem:[#allocation5 + $0x1e0] sm:$0xff] %vm815_vm3, %v780_v0  ;;  %v9787_v0 = vld [vmem:[#allocation2 + $0x180] sm:$0xff] }
  0xd4   : > { %1153 = vrot.lane.b32.xlu0 %v9504_v16, %s9093_s14 }
  0xd5   : > { %v778_v35 = vpop.permute.xlu1 %777 }
  0xd6   : > { %845 = vst.msk [vmem:[#allocation5 + $0x1d0] sm:$0xff] %vm815_vm3, %v778_v35  ;;  %v913_v49 = vpop.permute.xlu0 %912 }
  0xd7   : > { %1151 = vrot.lane.b32.xlu1 %v9490_v13, %s9093_s14  ;;  %1009 = vst.msk [vmem:[#allocation5] sm:$0xff] %vm1008_vm4, %v913_v49 }
  0xd8   : > { %1157 = vrot.lane.b32.xlu0 %v9520_v20, %s9093_s14 }
  0xd9   : > { %v782_v48 = vpop.permute.xlu1 %781 }
  0xda   : > { %847 = vst.msk [vmem:[#allocation5 + $0x1f0] sm:$0xff] %vm815_vm3, %v782_v48  ;;  %v917_v34 = vpop.permute.xlu0 %916  ;;  %vm3406_vm3 = vcmask 326912  }
  0xdb   : > { %1155 = vrot.lane.b32.xlu1 %v9506_v17, %s9093_s14  ;;  %1011 = vst.msk [vmem:[#allocation5 + $0x20] sm:$0xff] %vm1008_vm4, %v917_v34  ;;  %v9797_v34 = vld [vmem:[#allocation2 + $0x188] sm:$0xff] }
  0xdc   : > { %1161 = vrot.lane.b32.xlu0 %v9536_v24, %s9093_s14 }
  0xdd   : > { %v915_v46 = vpop.permute.xlu1 %914 }
  0xde   : > { %1010 = vst.msk [vmem:[#allocation5 + $0x10] sm:$0xff] %vm1008_vm4, %v915_v46  ;;  %v921_v35 = vpop.permute.xlu0 %920 }
  0xdf   : > { %1159 = vrot.lane.b32.xlu1 %v9522_v21, %s9093_s14  ;;  %1013 = vst.msk [vmem:[#allocation5 + $0x40] sm:$0xff] %vm1008_vm4, %v921_v35 }
  0xe0   : > { %1165 = vrot.lane.b32.xlu0 %v9787_v0, %s9093_s14 }
  0xe1   : > { %v919_v49 = vpop.permute.xlu1 %918 }
  0xe2   : > { %1012 = vst.msk [vmem:[#allocation5 + $0x30] sm:$0xff] %vm1008_vm4, %v919_v49  ;;  %v925_v48 = vpop.permute.xlu0 %924 }
  0xe3   : > { %1163 = vrot.lane.b32.xlu1 %v9538_v28, %s9093_s14  ;;  %1015 = vst.msk [vmem:[#allocation5 + $0x60] sm:$0xff] %vm1008_vm4, %v925_v48 }
  0xe4   : > { %1298 = vrot.lane.b32.xlu0 %v9309_v25, %s9094_s15 }
  0xe5   : > { %v923_v46 = vpop.permute.xlu1 %922 }
  0xe6   : > { %1014 = vst.msk [vmem:[#allocation5 + $0x50] sm:$0xff] %vm1008_vm4, %v923_v46  ;;  %v929_v35 = vpop.permute.xlu0 %928 }
  0xe7   : > { %1167 = vrot.lane.b32.xlu1 %v9797_v34, %s9093_s14  ;;  %1017 = vst.msk [vmem:[#allocation5 + $0x80] sm:$0xff] %vm1008_vm4, %v929_v35  ;;  %s9100_s14 = smov 48  }
  0xe8   : > { %1302 = vrot.lane.b32.xlu0 %v9311_v26, %s9094_s15 }
  0xe9   : > { %v927_v49 = vpop.permute.xlu1 %926 }
  0xea   : > { %1016 = vst.msk [vmem:[#allocation5 + $0x70] sm:$0xff] %vm1008_vm4, %v927_v49  ;;  %v933_v48 = vpop.permute.xlu0 %932  ;;  %v14050_v49 = vld [vmem:[#allocation7_spill] sm:$0xff] }
  0xeb   : > { %1300 = vrot.lane.b32.xlu1 %v9318_v27, %s9094_s15  ;;  %1019 = vst.msk [vmem:[#allocation5 + $0xa0] sm:$0xff] %vm1008_vm4, %v933_v48  ;;  %v14051_v48 = vld [vmem:[#allocation8_spill] sm:$0xff] }
  0xec   : > { %1306 = vrot.lane.b32.xlu0 %v9326_v30, %s9094_s15 }
  0xed   : > { %v931_v25 = vpop.permute.xlu1 %930 }
  0xee   : > { %1018 = vst.msk [vmem:[#allocation5 + $0x90] sm:$0xff] %vm1008_vm4, %v931_v25  ;;  %v937_v46 = vpop.permute.xlu0 %936 }
  0xef   : > { %1304 = vrot.lane.b32.xlu1 %v9330_v31, %s9094_s15  ;;  %1021 = vst.msk [vmem:[#allocation5 + $0xc0] sm:$0xff] %vm1008_vm4, %v937_v46  ;;  %v14052_v46 = vld [vmem:[#allocation9_spill] sm:$0xff] }
  0xf0   : > { %1310 = vrot.lane.b32.xlu0 %v9334_v32, %s9094_s15 }
  0xf1   : > { %v935_v26 = vpop.permute.xlu1 %934 }
  0xf2   : > { %1020 = vst.msk [vmem:[#allocation5 + $0xb0] sm:$0xff] %vm1008_vm4, %v935_v26  ;;  %v941_v27 = vpop.permute.xlu0 %940 }
  0xf3   : > { %1308 = vrot.lane.b32.xlu1 %v9347_v39, %s9094_s15  ;;  %1023 = vst.msk [vmem:[#allocation5 + $0xe0] sm:$0xff] %vm1008_vm4, %v941_v27  ;;  %v9897_v27 = vld [vmem:[#allocation2 + $0x189] sm:$0xff] }
  0xf4   : > { %1314 = vrot.lane.b32.xlu0 %v9354_v40, %s9094_s15 }
  0xf5   : > { %v939_v30 = vpop.permute.xlu1 %938 }
  0xf6   : > { %1022 = vst.msk [vmem:[#allocation5 + $0xd0] sm:$0xff] %vm1008_vm4, %v939_v30  ;;  %v945_v31 = vpop.permute.xlu0 %944 }
  0xf7   : > { %1312 = vrot.lane.b32.xlu1 %v9358_v41, %s9094_s15  ;;  %1025 = vst.msk [vmem:[#allocation5 + $0x100] sm:$0xff] %vm1008_vm4, %v945_v31  ;;  %v14053_v31 = vld [vmem:[#allocation10_spill] sm:$0xff] }
  0xf8   : > { %1318 = vrot.lane.b32.xlu0 %v9362_v42, %s9094_s15 }
  0xf9   : > { %v943_v32 = vpop.permute.xlu1 %942 }
  0xfa   : > { %1024 = vst.msk [vmem:[#allocation5 + $0xf0] sm:$0xff] %vm1008_vm4, %v943_v32  ;;  %v949_v39 = vpop.permute.xlu0 %948 }
  0xfb   : > { %1316 = vrot.lane.b32.xlu1 %v9366_v43, %s9094_s15  ;;  %1027 = vst.msk [vmem:[#allocation5 + $0x120] sm:$0xff] %vm1008_vm4, %v949_v39 }
  0xfc   : > { %1322 = vrot.lane.b32.xlu0 %v9370_v44, %s9094_s15 }
  0xfd   : > { %v947_v40 = vpop.permute.xlu1 %946 }
  0xfe   : > { %1026 = vst.msk [vmem:[#allocation5 + $0x110] sm:$0xff] %vm1008_vm4, %v947_v40  ;;  %v953_v41 = vpop.permute.xlu0 %952  ;;  %v14054_v40 = vld [vmem:[#allocation11_spill] sm:$0xff] }
  0xff   : > { %1320 = vrot.lane.b32.xlu1 %v9376_v47, %s9094_s15  ;;  %1029 = vst.msk [vmem:[#allocation5 + $0x140] sm:$0xff] %vm1008_vm4, %v953_v41  ;;  %v14055_v41 = vld [vmem:[#allocation12_spill] sm:$0xff] }
 0x100   : > { %1326 = vrot.lane.b32.xlu0 %v9386_v50, %s9094_s15 }
 0x101   : > { %v951_v42 = vpop.permute.xlu1 %950 }
 0x102   : > { %1028 = vst.msk [vmem:[#allocation5 + $0x130] sm:$0xff] %vm1008_vm4, %v951_v42  ;;  %v957_v43 = vpop.permute.xlu0 %956 }
 0x103   : > { %1324 = vrot.lane.b32.xlu1 %v9396_v53, %s9094_s15  ;;  %1031 = vst.msk [vmem:[#allocation5 + $0x160] sm:$0xff] %vm1008_vm4, %v957_v43 }
 0x104   : > { %1330 = vrot.lane.b32.xlu0 %v9406_v56, %s9094_s15 }
 0x105   : > { %v955_v44 = vpop.permute.xlu1 %954 }
 0x106   : > { %1030 = vst.msk [vmem:[#allocation5 + $0x150] sm:$0xff] %vm1008_vm4, %v955_v44  ;;  %v961_v47 = vpop.permute.xlu0 %960  ;;  %v14056_v44 = vld [vmem:[#allocation13_spill] sm:$0xff] }
 0x107   : > { %1328 = vrot.lane.b32.xlu1 %v9432_v63, %s9094_s15  ;;  %1033 = vst.msk [vmem:[#allocation5 + $0x180] sm:$0xff] %vm1008_vm4, %v961_v47  ;;  %v14057_v47 = vld [vmem:[#allocation14_spill] sm:$0xff] }
 0x108   : > { %1334 = vrot.lane.b32.xlu0 %v9482_v11, %s9094_s15 }
 0x109   : > { %v959_v50 = vpop.permute.xlu1 %958 }
 0x10a   : > { %1032 = vst.msk [vmem:[#allocation5 + $0x170] sm:$0xff] %vm1008_vm4, %v959_v50  ;;  %v965_v53 = vpop.permute.xlu0 %964 }
 0x10b   : > { %1332 = vrot.lane.b32.xlu1 %v9492_v14, %s9094_s15  ;;  %1035 = vst.msk [vmem:[#allocation5 + $0x1a0] sm:$0xff] %vm1008_vm4, %v965_v53 }
 0x10c   : > { %1338 = vrot.lane.b32.xlu0 %v9500_v15, %s9094_s15 }
 0x10d   : > { %v963_v56 = vpop.permute.xlu1 %962 }
 0x10e   : > { %1034 = vst.msk [vmem:[#allocation5 + $0x190] sm:$0xff] %vm1008_vm4, %v963_v56  ;;  %v969_v63 = vpop.permute.xlu0 %968  ;;  %v14058_v56 = vld [vmem:[#allocation15_spill] sm:$0xff] }
 0x10f   : > { %1336 = vrot.lane.b32.xlu1 %v9508_v18, %s9094_s15  ;;  %1037 = vst.msk [vmem:[#allocation5 + $0x1c0] sm:$0xff] %vm1008_vm4, %v969_v63  ;;  %v14059_v63 = vld [vmem:[#allocation16_spill] sm:$0xff] }
 0x110   : > { %1342 = vrot.lane.b32.xlu0 %v9516_v19, %s9094_s15 }
 0x111   : > { %v967_v11 = vpop.permute.xlu1 %966 }
 0x112   : > { %1036 = vst.msk [vmem:[#allocation5 + $0x1b0] sm:$0xff] %vm1008_vm4, %v967_v11  ;;  %v973_v14 = vpop.permute.xlu0 %972 }
 0x113   : > { %1340 = vrot.lane.b32.xlu1 %v9524_v22, %s9094_s15  ;;  %1039 = vst.msk [vmem:[#allocation5 + $0x1e0] sm:$0xff] %vm1008_vm4, %v973_v14  ;;  %v14049_v22 = vld [vmem:[#allocation6_spill] sm:$0xff] }
 0x114   : > { %1346 = vrot.lane.b32.xlu0 %v9532_v23, %s9094_s15 }
 0x115   : > { %v971_v15 = vpop.permute.xlu1 %970 }
 0x116   : > { %1038 = vst.msk [vmem:[#allocation5 + $0x1d0] sm:$0xff] %vm1008_vm4, %v971_v15  ;;  %v1106_v18 = vpop.permute.xlu0 %1105  ;;  %v14060_v15 = vld [vmem:[#allocation17_spill] sm:$0xff] }
 0x117   : > { %1344 = vrot.lane.b32.xlu1 %v9540_v29, %s9094_s15  ;;  %1202 = vst.msk [vmem:[#allocation5] sm:$0xff] %vm1201_vm5, %v1106_v18  ;;  %v9887_v29 = vld [vmem:[#allocation2 + $0x181] sm:$0xff]  ;;  %v14061_v18 = vld [vmem:[#allocation18_spill] sm:$0xff] }
 0x118   : > { %1350 = vrot.lane.b32.xlu0 %v9548_v33, %s9094_s15 }
 0x119   : > { %v975_v19 = vpop.permute.xlu1 %974 }
 0x11a   : > { %1040 = vst.msk [vmem:[#allocation5 + $0x1f0] sm:$0xff] %vm1008_vm4, %v975_v19  ;;  %v1110_v35 = vpop.permute.xlu0 %1109  ;;  %vm3599_vm4 = vcmask 392512  }
 0x11b   : > { %1348 = vrot.lane.b32.xlu1 %v14049_v22, %s9094_s15  ;;  %1204 = vst.msk [vmem:[#allocation5 + $0x20] sm:$0xff] %vm1201_vm5, %v1110_v35  ;;  %v14062_v35 = vld [vmem:[#allocation19_spill] sm:$0xff] }
 0x11c   : > { %1354 = vrot.lane.b32.xlu0 %v14050_v49, %s9094_s15 }
 0x11d   : > { %v1108_v23 = vpop.permute.xlu1 %1107 }
 0x11e   : > { %1203 = vst.msk [vmem:[#allocation5 + $0x10] sm:$0xff] %vm1201_vm5, %v1108_v23  ;;  %v1114_v33 = vpop.permute.xlu0 %1113  ;;  %v14063_v23 = vld [vmem:[#allocation20_spill] sm:$0xff] }
 0x11f   : > { %1352 = vrot.lane.b32.xlu1 %v14051_v48, %s9094_s15  ;;  %1206 = vst.msk [vmem:[#allocation5 + $0x40] sm:$0xff] %vm1201_vm5, %v1114_v33  ;;  %v14064_v33 = vld [vmem:[#allocation21_spill] sm:$0xff] }
 0x120   : > { %1358 = vrot.lane.b32.xlu0 %v9887_v29, %s9094_s15 }
 0x121   : > { %v1112_v25 = vpop.permute.xlu1 %1111 }
 0x122   : > { %1205 = vst.msk [vmem:[#allocation5 + $0x30] sm:$0xff] %vm1201_vm5, %v1112_v25  ;;  %v1118_v26 = vpop.permute.xlu0 %1117  ;;  %v14065_v25 = vld [vmem:[#allocation22_spill] sm:$0xff] }
 0x123   : > { %1356 = vrot.lane.b32.xlu1 %v14052_v46, %s9094_s15  ;;  %1208 = vst.msk [vmem:[#allocation5 + $0x60] sm:$0xff] %vm1201_vm5, %v1118_v26 }
 0x124   : > { %1491 = vrot.lane.b32.xlu0 %v14053_v31, %s9095_s16  ;;  %v14067_v31 = vld [vmem:[#allocation24_spill] sm:$0xff] }
 0x125   : > { %v1116_v30 = vpop.permute.xlu1 %1115 }
 0x126   : > { %1207 = vst.msk [vmem:[#allocation5 + $0x50] sm:$0xff] %vm1201_vm5, %v1116_v30  ;;  %v1122_v32 = vpop.permute.xlu0 %1121  ;;  %v14066_v30 = vld [vmem:[#allocation23_spill] sm:$0xff] }
 0x127   : > { %1360 = vrot.lane.b32.xlu1 %v9897_v27, %s9094_s15  ;;  %1210 = vst.msk [vmem:[#allocation5 + $0x80] sm:$0xff] %vm1201_vm5, %v1122_v32 }
 0x128   : > { %1495 = vrot.lane.b32.xlu0 %v14054_v40, %s9095_s16  ;;  %v14068_v40 = vld [vmem:[#allocation25_spill] sm:$0xff] }
 0x129   : > { %v1120_v39 = vpop.permute.xlu1 %1119 }
 0x12a   : > { %1209 = vst.msk [vmem:[#allocation5 + $0x70] sm:$0xff] %vm1201_vm5, %v1120_v39  ;;  %v1126_v42 = vpop.permute.xlu0 %1125 }
 0x12b   : > { %1493 = vrot.lane.b32.xlu1 %v14055_v41, %s9095_s16  ;;  %1212 = vst.msk [vmem:[#allocation5 + $0xa0] sm:$0xff] %vm1201_vm5, %v1126_v42  ;;  %v14069_v41 = vld [vmem:[#allocation26_spill] sm:$0xff] }
 0x12c   : > { %1499 = vrot.lane.b32.xlu0 %v14056_v44, %s9095_s16  ;;  %v14070_v44 = vld [vmem:[#allocation27_spill] sm:$0xff] }
 0x12d   : > { %v1124_v43 = vpop.permute.xlu1 %1123 }
 0x12e   : > { %1211 = vst.msk [vmem:[#allocation5 + $0x90] sm:$0xff] %vm1201_vm5, %v1124_v43  ;;  %v1130_v50 = vpop.permute.xlu0 %1129 }
 0x12f   : > { %1497 = vrot.lane.b32.xlu1 %v14057_v47, %s9095_s16  ;;  %1214 = vst.msk [vmem:[#allocation5 + $0xc0] sm:$0xff] %vm1201_vm5, %v1130_v50  ;;  %v14071_v47 = vld [vmem:[#allocation28_spill] sm:$0xff] }
 0x130   : > { %1503 = vrot.lane.b32.xlu0 %v14058_v56, %s9095_s16  ;;  %v14072_v56 = vld [vmem:[#allocation29_spill] sm:$0xff] }
 0x131   : > { %v1128_v53 = vpop.permute.xlu1 %1127 }
 0x132   : > { %1213 = vst.msk [vmem:[#allocation5 + $0xb0] sm:$0xff] %vm1201_vm5, %v1128_v53  ;;  %v1134_v11 = vpop.permute.xlu0 %1133 }
 0x133   : > { %1501 = vrot.lane.b32.xlu1 %v14059_v63, %s9095_s16  ;;  %1216 = vst.msk [vmem:[#allocation5 + $0xe0] sm:$0xff] %vm1201_vm5, %v1134_v11  ;;  %v14073_v63 = vld [vmem:[#allocation30_spill] sm:$0xff] }
 0x134   : > { %1507 = vrot.lane.b32.xlu0 %v14060_v15, %s9095_s16  ;;  %v14074_v15 = vld [vmem:[#allocation31_spill] sm:$0xff] }
 0x135   : > { %v1132_v14 = vpop.permute.xlu1 %1131 }
 0x136   : > { %1215 = vst.msk [vmem:[#allocation5 + $0xd0] sm:$0xff] %vm1201_vm5, %v1132_v14  ;;  %v1138_v19 = vpop.permute.xlu0 %1137 }
 0x137   : > { %1505 = vrot.lane.b32.xlu1 %v14061_v18, %s9095_s16  ;;  %1218 = vst.msk [vmem:[#allocation5 + $0x100] sm:$0xff] %vm1201_vm5, %v1138_v19  ;;  %v14075_v18 = vld [vmem:[#allocation32_spill] sm:$0xff] }
 0x138   : > { %1511 = vrot.lane.b32.xlu0 %v14062_v35, %s9095_s16  ;;  %v14076_v35 = vld [vmem:[#allocation33_spill] sm:$0xff] }
 0x139   : > { %v1136_v22 = vpop.permute.xlu1 %1135 }
 0x13a   : > { %1217 = vst.msk [vmem:[#allocation5 + $0xf0] sm:$0xff] %vm1201_vm5, %v1136_v22  ;;  %v1142_v49 = vpop.permute.xlu0 %1141 }
 0x13b   : > { %1509 = vrot.lane.b32.xlu1 %v14063_v23, %s9095_s16  ;;  %1220 = vst.msk [vmem:[#allocation5 + $0x120] sm:$0xff] %vm1201_vm5, %v1142_v49  ;;  %v14077_v23 = vld [vmem:[#allocation34_spill] sm:$0xff] }
 0x13c   : > { %1515 = vrot.lane.b32.xlu0 %v14064_v33, %s9095_s16  ;;  %v14078_v33 = vld [vmem:[#allocation35_spill] sm:$0xff] }
 0x13d   : > { %v1140_v48 = vpop.permute.xlu1 %1139 }
 0x13e   : > { %1219 = vst.msk [vmem:[#allocation5 + $0x110] sm:$0xff] %vm1201_vm5, %v1140_v48  ;;  %v1146_v46 = vpop.permute.xlu0 %1145 }
 0x13f   : > { %1513 = vrot.lane.b32.xlu1 %v14065_v25, %s9095_s16  ;;  %1222 = vst.msk [vmem:[#allocation5 + $0x140] sm:$0xff] %vm1201_vm5, %v1146_v46 }
 0x140   : > { %1519 = vrot.lane.b32.xlu0 %v14066_v30, %s9095_s16 }
 0x141   : > { %v1144_v26 = vpop.permute.xlu1 %1143 }
 0x142   : > { %1221 = vst.msk [vmem:[#allocation5 + $0x130] sm:$0xff] %vm1201_vm5, %v1144_v26  ;;  %v1150_v32 = vpop.permute.xlu0 %1149  ;;  %v9987_v26 = vld [vmem:[#allocation2 + $0x182] sm:$0xff] }
 0x143   : > { %1517 = vrot.lane.b32.xlu1 %v14067_v31, %s9095_s16  ;;  %1224 = vst.msk [vmem:[#allocation5 + $0x160] sm:$0xff] %vm1201_vm5, %v1150_v32  ;;  %v9997_v31 = vld [vmem:[#allocation2 + $0x18a] sm:$0xff] }
 0x144   : > { %1523 = vrot.lane.b32.xlu0 %v14068_v40, %s9095_s16 }
 0x145   : > { %v1148_v39 = vpop.permute.xlu1 %1147 }
 0x146   : > { %1223 = vst.msk [vmem:[#allocation5 + $0x150] sm:$0xff] %vm1201_vm5, %v1148_v39  ;;  %v1154_v42 = vpop.permute.xlu0 %1153 }
 0x147   : > { %1521 = vrot.lane.b32.xlu1 %v14069_v41, %s9095_s16  ;;  %1226 = vst.msk [vmem:[#allocation5 + $0x180] sm:$0xff] %vm1201_vm5, %v1154_v42 }
 0x148   : > { %1527 = vrot.lane.b32.xlu0 %v14070_v44, %s9095_s16 }
 0x149   : > { %v1152_v43 = vpop.permute.xlu1 %1151 }
 0x14a   : > { %1225 = vst.msk [vmem:[#allocation5 + $0x170] sm:$0xff] %vm1201_vm5, %v1152_v43  ;;  %v1158_v50 = vpop.permute.xlu0 %1157 }
 0x14b   : > { %1525 = vrot.lane.b32.xlu1 %v14071_v47, %s9095_s16  ;;  %1228 = vst.msk [vmem:[#allocation5 + $0x1a0] sm:$0xff] %vm1201_vm5, %v1158_v50  ;;  %v1815_v47 = vld [vmem:[#allocation2 + $0x39] sm:$0xff] }
 0x14c   : > { %1531 = vrot.lane.b32.xlu0 %v14072_v56, %s9095_s16  ;;  %v1817_v56 = vld [vmem:[#allocation2 + $0x51] sm:$0xff] }
 0x14d   : > { %v1156_v53 = vpop.permute.xlu1 %1155 }
 0x14e   : > { %1227 = vst.msk [vmem:[#allocation5 + $0x190] sm:$0xff] %vm1201_vm5, %v1156_v53  ;;  %v1162_v11 = vpop.permute.xlu0 %1161 }
 0x14f   : > { %1529 = vrot.lane.b32.xlu1 %v14073_v63, %s9095_s16  ;;  %1230 = vst.msk [vmem:[#allocation5 + $0x1c0] sm:$0xff] %vm1201_vm5, %v1162_v11  ;;  %v1820_v11 = vld [vmem:[#allocation2 + $0x79] sm:$0xff] }
 0x150   : > { %1535 = vrot.lane.b32.xlu0 %v14074_v15, %s9095_s16  ;;  %v1819_v15 = vld [vmem:[#allocation2 + $0x69] sm:$0xff] }
 0x151   : > { %v1160_v14 = vpop.permute.xlu1 %1159 }
 0x152   : > { %1229 = vst.msk [vmem:[#allocation5 + $0x1b0] sm:$0xff] %vm1201_vm5, %v1160_v14  ;;  %v1166_v19 = vpop.permute.xlu0 %1165 }
 0x153   : > { %1533 = vrot.lane.b32.xlu1 %v14075_v18, %s9095_s16  ;;  %1232 = vst.msk [vmem:[#allocation5 + $0x1e0] sm:$0xff] %vm1201_vm5, %v1166_v19  ;;  %v1822_v19 = vld [vmem:[#allocation2 + $0x91] sm:$0xff] }
 0x154   : > { %1539 = vrot.lane.b32.xlu0 %v14076_v35, %s9095_s16  ;;  %v1821_v35 = vld [vmem:[#allocation2 + $0x81] sm:$0xff] }
 0x155   : > { %v1164_v22 = vpop.permute.xlu1 %1163 }
 0x156   : > { %1231 = vst.msk [vmem:[#allocation5 + $0x1d0] sm:$0xff] %vm1201_vm5, %v1164_v22  ;;  %v1299_v49 = vpop.permute.xlu0 %1298 }
 0x157   : > { %1537 = vrot.lane.b32.xlu1 %v14077_v23, %s9095_s16  ;;  %1395 = vst.msk [vmem:[#allocation5] sm:$0xff] %vm1394_vm6, %v1299_v49  ;;  %v1824_v49 = vld [vmem:[#allocation2 + $0xa9] sm:$0xff] }
 0x158   : > { %1543 = vrot.lane.b32.xlu0 %v9675_v36, %s9095_s16 }
 0x159   : > { %v1168_v48 = vpop.permute.xlu1 %1167 }
 0x15a   : > { %1233 = vst.msk [vmem:[#allocation5 + $0x1f0] sm:$0xff] %vm1201_vm5, %v1168_v48  ;;  %v1303_v25 = vpop.permute.xlu0 %1302  ;;  %vm3793_vm5 = vcmask 458112  }
 0x15b   : > { %1541 = vrot.lane.b32.xlu1 %v14078_v33, %s9095_s16  ;;  %1397 = vst.msk [vmem:[#allocation5 + $0x20] sm:$0xff] %vm1394_vm6, %v1303_v25  ;;  %v1823_v33 = vld [vmem:[#allocation2 + $0x99] sm:$0xff] }
 0x15c   : > { %1547 = vrot.lane.b32.xlu0 %v9685_v37, %s9095_s16 }
 0x15d   : > { %v1301_v46 = vpop.permute.xlu1 %1300 }
 0x15e   : > { %1396 = vst.msk [vmem:[#allocation5 + $0x10] sm:$0xff] %vm1394_vm6, %v1301_v46  ;;  %v1307_v36 = vpop.permute.xlu0 %1306  ;;  %v1826_v46 = vld [vmem:[#allocation2 + $0xc1] sm:$0xff] }
 0x15f   : > { %1545 = vrot.lane.b32.xlu1 %v9689_v45, %s9095_s16  ;;  %1399 = vst.msk [vmem:[#allocation5 + $0x40] sm:$0xff] %vm1394_vm6, %v1307_v36 }
 0x160   : > { %1551 = vrot.lane.b32.xlu0 %v9987_v26, %s9095_s16 }
 0x161   : > { %v1305_v30 = vpop.permute.xlu1 %1304 }
 0x162   : > { %1398 = vst.msk [vmem:[#allocation5 + $0x30] sm:$0xff] %vm1394_vm6, %v1305_v30  ;;  %v1311_v37 = vpop.permute.xlu0 %1310  ;;  %v1825_v30 = vld [vmem:[#allocation2 + $0xb1] sm:$0xff] }
 0x163   : > { %1549 = vrot.lane.b32.xlu1 %v9697_v38, %s9095_s16  ;;  %1401 = vst.msk [vmem:[#allocation5 + $0x60] sm:$0xff] %vm1394_vm6, %v1311_v37 }
 0x164   : > { %1685 = vrot.lane.b32.xlu0 %v9390_v51, %s9096_s17 }
 0x165   : > { %v1309_v32 = vpop.permute.xlu1 %1308 }
 0x166   : > { %1400 = vst.msk [vmem:[#allocation5 + $0x50] sm:$0xff] %vm1394_vm6, %v1309_v32  ;;  %v1315_v45 = vpop.permute.xlu0 %1314  ;;  %v1828_v32 = vld [vmem:[#allocation2 + $0xd9] sm:$0xff] }
 0x167   : > { %1553 = vrot.lane.b32.xlu1 %v9997_v31, %s9095_s16  ;;  %1403 = vst.msk [vmem:[#allocation5 + $0x80] sm:$0xff] %vm1394_vm6, %v1315_v45  ;;  %s9110_s16 = smov 120  }
 0x168   : > { %1689 = vrot.lane.b32.xlu0 %v9402_v54, %s9096_s17 }
 0x169   : > { %v1313_v39 = vpop.permute.xlu1 %1312 }
 0x16a   : > { %1402 = vst.msk [vmem:[#allocation5 + $0x70] sm:$0xff] %vm1394_vm6, %v1313_v39  ;;  %v1319_v38 = vpop.permute.xlu0 %1318  ;;  %v1827_v39 = vld [vmem:[#allocation2 + $0xc9] sm:$0xff] }
 0x16b   : > { %1687 = vrot.lane.b32.xlu1 %v9392_v52, %s9096_s17  ;;  %1405 = vst.msk [vmem:[#allocation5 + $0xa0] sm:$0xff] %vm1394_vm6, %v1319_v38 }
 0x16c   : > { %1693 = vrot.lane.b32.xlu0 %v9412_v57, %s9096_s17 }
 0x16d   : > { %v1317_v51 = vpop.permute.xlu1 %1316 }
 0x16e   : > { %1404 = vst.msk [vmem:[#allocation5 + $0x90] sm:$0xff] %vm1394_vm6, %v1317_v51  ;;  %v1323_v40 = vpop.permute.xlu0 %1322  ;;  %v1830_v51 = vld [vmem:[#allocation2 + $0xf1] sm:$0xff] }
 0x16f   : > { %1691 = vrot.lane.b32.xlu1 %v9404_v55, %s9096_s17  ;;  %1407 = vst.msk [vmem:[#allocation5 + $0xc0] sm:$0xff] %vm1394_vm6, %v1323_v40 }
 0x170   : > { %1697 = vrot.lane.b32.xlu0 %v9416_v59, %s9096_s17 }
 0x171   : > { %v1321_v54 = vpop.permute.xlu1 %1320 }
 0x172   : > { %1406 = vst.msk [vmem:[#allocation5 + $0xb0] sm:$0xff] %vm1394_vm6, %v1321_v54  ;;  %v1327_v52 = vpop.permute.xlu0 %1326  ;;  %v1829_v54 = vld [vmem:[#allocation2 + $0xe1] sm:$0xff] }
 0x173   : > { %1695 = vrot.lane.b32.xlu1 %v9414_v58, %s9096_s17  ;;  %1409 = vst.msk [vmem:[#allocation5 + $0xe0] sm:$0xff] %vm1394_vm6, %v1327_v52 }
 0x174   : > { %1701 = vrot.lane.b32.xlu0 %v9428_v61, %s9096_s17 }
 0x175   : > { %v1325_v57 = vpop.permute.xlu1 %1324 }
 0x176   : > { %1408 = vst.msk [vmem:[#allocation5 + $0xd0] sm:$0xff] %vm1394_vm6, %v1325_v57  ;;  %v1331_v55 = vpop.permute.xlu0 %1330  ;;  %v1832_v57 = vld [vmem:[#allocation2 + $0x109] sm:$0xff] }
 0x177   : > { %1699 = vrot.lane.b32.xlu1 %v9426_v60, %s9096_s17  ;;  %1411 = vst.msk [vmem:[#allocation5 + $0x100] sm:$0xff] %vm1394_vm6, %v1331_v55 }
 0x178   : > { %1705 = vrot.lane.b32.xlu0 %v9440_v1, %s9096_s17 }
 0x179   : > { %v1329_v59 = vpop.permute.xlu1 %1328 }
 0x17a   : > { %1410 = vst.msk [vmem:[#allocation5 + $0xf0] sm:$0xff] %vm1394_vm6, %v1329_v59  ;;  %v1335_v58 = vpop.permute.xlu0 %1334  ;;  %v1831_v59 = vld [vmem:[#allocation2 + $0xf9] sm:$0xff] }
 0x17b   : > { %1703 = vrot.lane.b32.xlu1 %v9430_v62, %s9096_s17  ;;  %1413 = vst.msk [vmem:[#allocation5 + $0x120] sm:$0xff] %vm1394_vm6, %v1335_v58 }
 0x17c   : > { %1709 = vrot.lane.b32.xlu0 %v9444_v3, %s9096_s17 }
 0x17d   : > { %v1333_v61 = vpop.permute.xlu1 %1332 }
 0x17e   : > { %1412 = vst.msk [vmem:[#allocation5 + $0x110] sm:$0xff] %vm1394_vm6, %v1333_v61  ;;  %v1339_v60 = vpop.permute.xlu0 %1338  ;;  %v1834_v61 = vld [vmem:[#allocation2 + $0x121] sm:$0xff] }
 0x17f   : > { %1707 = vrot.lane.b32.xlu1 %v9442_v2, %s9096_s17  ;;  %1415 = vst.msk [vmem:[#allocation5 + $0x140] sm:$0xff] %vm1394_vm6, %v1339_v60 }
 0x180   : > { %1713 = vrot.lane.b32.xlu0 %v9456_v5, %s9096_s17 }
 0x181   : > { %v1337_v1 = vpop.permute.xlu1 %1336 }
 0x182   : > { %1414 = vst.msk [vmem:[#allocation5 + $0x130] sm:$0xff] %vm1394_vm6, %v1337_v1  ;;  %v1343_v62 = vpop.permute.xlu0 %1342  ;;  %v1833_v1 = vld [vmem:[#allocation2 + $0x111] sm:$0xff] }
 0x183   : > { %1711 = vrot.lane.b32.xlu1 %v9454_v4, %s9096_s17  ;;  %1417 = vst.msk [vmem:[#allocation5 + $0x160] sm:$0xff] %vm1394_vm6, %v1343_v62 }
 0x184   : > { %1717 = vrot.lane.b32.xlu0 %v9466_v7, %s9096_s17 }
 0x185   : > { %v1341_v3 = vpop.permute.xlu1 %1340 }
 0x186   : > { %1416 = vst.msk [vmem:[#allocation5 + $0x150] sm:$0xff] %vm1394_vm6, %v1341_v3  ;;  %v1347_v2 = vpop.permute.xlu0 %1346  ;;  %v1836_v3 = vld [vmem:[#allocation2 + $0x139] sm:$0xff] }
 0x187   : > { %1715 = vrot.lane.b32.xlu1 %v9458_v6, %s9096_s17  ;;  %1419 = vst.msk [vmem:[#allocation5 + $0x180] sm:$0xff] %vm1394_vm6, %v1347_v2 }
 0x188   : > { %1721 = vrot.lane.b32.xlu0 %v9470_v9, %s9096_s17 }
 0x189   : > { %v1345_v5 = vpop.permute.xlu1 %1344 }
 0x18a   : > { %1418 = vst.msk [vmem:[#allocation5 + $0x170] sm:$0xff] %vm1394_vm6, %v1345_v5  ;;  %v1351_v4 = vpop.permute.xlu0 %1350  ;;  %v1835_v5 = vld [vmem:[#allocation2 + $0x129] sm:$0xff] }
 0x18b   : > { %1719 = vrot.lane.b32.xlu1 %v9468_v8, %s9096_s17  ;;  %1421 = vst.msk [vmem:[#allocation5 + $0x1a0] sm:$0xff] %vm1394_vm6, %v1351_v4 }
 0x18c   : > { %1725 = vrot.lane.b32.xlu0 %v9488_v12, %s9096_s17 }
 0x18d   : > { %v1349_v7 = vpop.permute.xlu1 %1348 }
 0x18e   : > { %1420 = vst.msk [vmem:[#allocation5 + $0x190] sm:$0xff] %vm1394_vm6, %v1349_v7  ;;  %v1355_v6 = vpop.permute.xlu0 %1354  ;;  %v1838_v7 = vld [vmem:[#allocation2 + $0x151] sm:$0xff] }
 0x18f   : > { %1723 = vrot.lane.b32.xlu1 %v9480_v10, %s9096_s17  ;;  %1423 = vst.msk [vmem:[#allocation5 + $0x1c0] sm:$0xff] %vm1394_vm6, %v1355_v6 }
 0x190   : > { %1729 = vrot.lane.b32.xlu0 %v9504_v16, %s9096_s17 }
 0x191   : > { %v1353_v9 = vpop.permute.xlu1 %1352 }
 0x192   : > { %1422 = vst.msk [vmem:[#allocation5 + $0x1b0] sm:$0xff] %vm1394_vm6, %v1353_v9  ;;  %v1359_v8 = vpop.permute.xlu0 %1358  ;;  %v1837_v9 = vld [vmem:[#allocation2 + $0x141] sm:$0xff] }
 0x193   : > { %1727 = vrot.lane.b32.xlu1 %v9490_v13, %s9096_s17  ;;  %1425 = vst.msk [vmem:[#allocation5 + $0x1e0] sm:$0xff] %vm1394_vm6, %v1359_v8 }
 0x194   : > { %1733 = vrot.lane.b32.xlu0 %v9520_v20, %s9096_s17 }
 0x195   : > { %v1357_v12 = vpop.permute.xlu1 %1356 }
 0x196   : > { %1424 = vst.msk [vmem:[#allocation5 + $0x1d0] sm:$0xff] %vm1394_vm6, %v1357_v12  ;;  %v1492_v10 = vpop.permute.xlu0 %1491  ;;  %v1840_v12 = vld [vmem:[#allocation2 + $0x169] sm:$0xff] }
 0x197   : > { %1731 = vrot.lane.b32.xlu1 %v9506_v17, %s9096_s17  ;;  %1588 = vst.msk [vmem:[#allocation5] sm:$0xff] %vm1587_vm7, %v1492_v10  ;;  %v1651_v17 = vld [vmem:[#allocation2 + $0x198] sm:$0xff] }
 0x198   : > { %1737 = vrot.lane.b32.xlu0 %v9536_v24, %s9096_s17 }
 0x199   : > { %v1361_v16 = vpop.permute.xlu1 %1360 }
 0x19a   : > { %1426 = vst.msk [vmem:[#allocation5 + $0x1f0] sm:$0xff] %vm1394_vm6, %v1361_v16  ;;  %v1496_v13 = vpop.permute.xlu0 %1495  ;;  %v1839_v16 = vld [vmem:[#allocation2 + $0x159] sm:$0xff]  ;;  %vm3986_vm6 = vcmask 523712  }
 0x19b   : > { %1735 = vrot.lane.b32.xlu1 %v9522_v21, %s9096_s17  ;;  %1590 = vst.msk [vmem:[#allocation5 + $0x20] sm:$0xff] %vm1587_vm7, %v1496_v13  ;;  %v1814_v21 = vld [vmem:[#allocation2 + $0x31] sm:$0xff] }
 0x19c   : > { %1741 = vrot.lane.b32.xlu0 %v9787_v0, %s9096_s17  ;;  %v1652_v0 = vld [vmem:[#allocation2 + $0x1a0] sm:$0xff] }
 0x19d   : > { %v1494_v20 = vpop.permute.xlu1 %1493 }
 0x19e   : > { %1589 = vst.msk [vmem:[#allocation5 + $0x10] sm:$0xff] %vm1587_vm7, %v1494_v20  ;;  %v1500_v41 = vpop.permute.xlu0 %1499  ;;  %v2232_v20 = vld [vmem:[%s13878_s2] sm:$0xff] }
 0x19f   : > { %1739 = vrot.lane.b32.xlu1 %v9538_v28, %s9096_s17  ;;  %1592 = vst.msk [vmem:[#allocation5 + $0x40] sm:$0xff] %vm1587_vm7, %v1500_v41  ;;  %v1816_v28 = vld [vmem:[#allocation2 + $0x49] sm:$0xff] }
 0x1a0   : > { %1745 = vrot.lane.b32.xlu0 %v1651_v17, %s9096_s17  ;;  %v2233_v17 = vld [vmem:[%s13878_s2 + $0x8] sm:$0xff] }
 0x1a1   : > { %v1498_v24 = vpop.permute.xlu1 %1497  ;;  %v9002_v41 = vpack.c.bf16 %v2233_v17, %v2232_v20  ;;  %v2030_v17 = vld [vmem:[#allocation2 + $0x142] sm:$0xff] }
 0x1a2   : > { %1591 = vst.msk [vmem:[#allocation5 + $0x30] sm:$0xff] %vm1587_vm7, %v1498_v24  ;;  %v1504_v42 = vpop.permute.xlu0 %1503 }
 0x1a3   : > { %1743 = vrot.lane.b32.xlu1 %v9797_v34, %s9096_s17  ;;  %1594 = vst.msk [vmem:[#allocation5 + $0x60] sm:$0xff] %vm1587_vm7, %v1504_v42  ;;  %v1818_v34 = vld [vmem:[#allocation2 + $0x61] sm:$0xff]  ;;  %9003 = vmatprep.subr.bf16.mxu0 %v9002_v41 }
 0x1a4   : > { %1878 = vrot.lane.b32.xlu0 %v1814_v21, %s9097_s18  ;;  %v1841_v21 = vld [vmem:[#allocation2 + $0x171] sm:$0xff]  ;;  %9005 = vmatpush3.bf16.msra.mxu0 %v9002_v41 }
 0x1a5   : > { %v1502_v43 = vpop.permute.xlu1 %1501 }
 0x1a6   : > { %1593 = vst.msk [vmem:[#allocation5 + $0x50] sm:$0xff] %vm1587_vm7, %v1502_v43  ;;  %v1508_v44 = vpop.permute.xlu0 %1507  ;;  %v2235_v43 = vld [vmem:[%s13878_s2 + $0x18] sm:$0xff] }
 0x1a7   : > { %1747 = vrot.lane.b32.xlu1 %v1652_v0, %s9096_s17  ;;  %1596 = vst.msk [vmem:[#allocation5 + $0x80] sm:$0xff] %vm1587_vm7, %v1508_v44  ;;  %v2234_v0 = vld [vmem:[%s13878_s2 + $0x10] sm:$0xff] }
 0x1a8   : > { %1882 = vrot.lane.b32.xlu0 %v1816_v28, %s9097_s18  ;;  %v1844_v28 = vld [vmem:[#allocation2 + $0x199] sm:$0xff]  ;;  %v9006_v44 = vpack.c.bf16 %v2235_v43, %v2234_v0 }
 0x1a9   : > { %v1506_v50 = vpop.permute.xlu1 %1505 }
 0x1aa   : > { %1595 = vst.msk [vmem:[#allocation5 + $0x70] sm:$0xff] %vm1587_vm7, %v1506_v50  ;;  %v1512_v53 = vpop.permute.xlu0 %1511  ;;  %9007 = vmatprep.subr.bf16.mxu0 %v9006_v44  ;;  %v2007_v50 = vld [vmem:[#allocation2 + $0x32] sm:$0xff] }
 0x1ab   : > { %1880 = vrot.lane.b32.xlu1 %v1815_v47, %s9097_s18  ;;  %1598 = vst.msk [vmem:[#allocation5 + $0xa0] sm:$0xff] %vm1587_vm7, %v1512_v53  ;;  %9009 = vmatpush3.bf16.msra.mxu0 %v9006_v44 }
 0x1ac   : > { %1886 = vrot.lane.b32.xlu0 %v1818_v34, %s9097_s18  ;;  %v2236_v34 = vld [vmem:[%s13878_s2 + $0x20] sm:$0xf] }
 0x1ad   : > { %v1510_v63 = vpop.permute.xlu1 %1509  ;;  %8886 = vmatprep.subr.msk.mxu0 %vm2341_vm9, %v2236_v34 }
 0x1ae   : > { %1597 = vst.msk [vmem:[#allocation5 + $0x90] sm:$0xff] %vm1587_vm7, %v1510_v63  ;;  %v1516_v14 = vpop.permute.xlu0 %1515 }
 0x1af   : > { %1884 = vrot.lane.b32.xlu1 %v1817_v56, %s9097_s18  ;;  %1600 = vst.msk [vmem:[#allocation5 + $0xc0] sm:$0xff] %vm1587_vm7, %v1516_v14  ;;  %v1845_v56 = vld [vmem:[#allocation2 + $0x1a1] sm:$0xff]  ;;  %8887 = vmatpush3.msk.msra.mxu0 %vm2341_vm9, %v2236_v34  ;;  %vm4565_vm9 = vcmask 720512  }
 0x1b0   : > { %1890 = vrot.lane.b32.xlu0 %v1820_v11, %s9097_s18  ;;  %v2009_v11 = vld [vmem:[#allocation2 + $0x4a] sm:$0xff] }
 0x1b1   : > { %v1514_v18 = vpop.permute.xlu1 %1513 }
 0x1b2   : > { %1599 = vst.msk [vmem:[#allocation5 + $0xb0] sm:$0xff] %vm1587_vm7, %v1514_v18  ;;  %v1520_v22 = vpop.permute.xlu0 %1519  ;;  %v2011_v18 = vld [vmem:[#allocation2 + $0x62] sm:$0xff] }
 0x1b3   : > { %1888 = vrot.lane.b32.xlu1 %v1819_v15, %s9097_s18  ;;  %1602 = vst.msk [vmem:[#allocation5 + $0xe0] sm:$0xff] %vm1587_vm7, %v1520_v22  ;;  %v2008_v15 = vld [vmem:[#allocation2 + $0x3a] sm:$0xff]  ;;  %v2010_v22 = vld [vmem:[#allocation2 + $0x52] sm:$0xff] }
 0x1b4   : > { %1894 = vrot.lane.b32.xlu0 %v1822_v19, %s9097_s18 }
 0x1b5   : > { %v1518_v23 = vpop.permute.xlu1 %1517 }
 0x1b6   : > { %1601 = vst.msk [vmem:[#allocation5 + $0xd0] sm:$0xff] %vm1587_vm7, %v1518_v23  ;;  %v1524_v48 = vpop.permute.xlu0 %1523  ;;  %v2013_v23 = vld [vmem:[#allocation2 + $0x7a] sm:$0xff] }
 0x1b7   : > { %1892 = vrot.lane.b32.xlu1 %v1821_v35, %s9097_s18  ;;  %1604 = vst.msk [vmem:[#allocation5 + $0x100] sm:$0xff] %vm1587_vm7, %v1524_v48  ;;  %v2012_v48 = vld [vmem:[#allocation2 + $0x6a] sm:$0xff] }
 0x1b8   : > { %1898 = vrot.lane.b32.xlu0 %v1824_v49, %s9097_s18 }
 0x1b9   : > { %v1522_v25 = vpop.permute.xlu1 %1521 }
 0x1ba   : > { %1603 = vst.msk [vmem:[#allocation5 + $0xf0] sm:$0xff] %vm1587_vm7, %v1522_v25  ;;  %v1528_v36 = vpop.permute.xlu0 %1527  ;;  %v2015_v25 = vld [vmem:[#allocation2 + $0x92] sm:$0xff] }
 0x1bb   : > { %1896 = vrot.lane.b32.xlu1 %v1823_v33, %s9097_s18  ;;  %1606 = vst.msk [vmem:[#allocation5 + $0x120] sm:$0xff] %vm1587_vm7, %v1528_v36  ;;  %v2014_v36 = vld [vmem:[#allocation2 + $0x82] sm:$0xff] }
 0x1bc   : > { %1902 = vrot.lane.b32.xlu0 %v1826_v46, %s9097_s18 }
 0x1bd   : > { %v1526_v37 = vpop.permute.xlu1 %1525 }
 0x1be   : > { %1605 = vst.msk [vmem:[#allocation5 + $0x110] sm:$0xff] %vm1587_vm7, %v1526_v37  ;;  %v1532_v45 = vpop.permute.xlu0 %1531  ;;  %v2017_v37 = vld [vmem:[#allocation2 + $0xaa] sm:$0xff] }
 0x1bf   : > { %1900 = vrot.lane.b32.xlu1 %v1825_v30, %s9097_s18  ;;  %1608 = vst.msk [vmem:[#allocation5 + $0x140] sm:$0xff] %vm1587_vm7, %v1532_v45  ;;  %v2016_v45 = vld [vmem:[#allocation2 + $0x9a] sm:$0xff] }
 0x1c0   : > { %1906 = vrot.lane.b32.xlu0 %v1828_v32, %s9097_s18 }
 0x1c1   : > { %v1530_v38 = vpop.permute.xlu1 %1529 }
 0x1c2   : > { %1607 = vst.msk [vmem:[#allocation5 + $0x130] sm:$0xff] %vm1587_vm7, %v1530_v38  ;;  %v1536_v40 = vpop.permute.xlu0 %1535  ;;  %v2019_v38 = vld [vmem:[#allocation2 + $0xc2] sm:$0xff] }
 0x1c3   : > { %1904 = vrot.lane.b32.xlu1 %v1827_v39, %s9097_s18  ;;  %1610 = vst.msk [vmem:[#allocation5 + $0x160] sm:$0xff] %vm1587_vm7, %v1536_v40  ;;  %v2018_v40 = vld [vmem:[#allocation2 + $0xb2] sm:$0xff] }
 0x1c4   : > { %1910 = vrot.lane.b32.xlu0 %v1830_v51, %s9097_s18 }
 0x1c5   : > { %v1534_v52 = vpop.permute.xlu1 %1533 }
 0x1c6   : > { %1609 = vst.msk [vmem:[#allocation5 + $0x150] sm:$0xff] %vm1587_vm7, %v1534_v52  ;;  %v1540_v55 = vpop.permute.xlu0 %1539  ;;  %v2021_v52 = vld [vmem:[#allocation2 + $0xda] sm:$0xff] }
 0x1c7   : > { %1908 = vrot.lane.b32.xlu1 %v1829_v54, %s9097_s18  ;;  %1612 = vst.msk [vmem:[#allocation5 + $0x180] sm:$0xff] %vm1587_vm7, %v1540_v55  ;;  %v2020_v55 = vld [vmem:[#allocation2 + $0xca] sm:$0xff] }
 0x1c8   : > { %1914 = vrot.lane.b32.xlu0 %v1832_v57, %s9097_s18 }
 0x1c9   : > { %v1538_v58 = vpop.permute.xlu1 %1537 }
 0x1ca   : > { %1611 = vst.msk [vmem:[#allocation5 + $0x170] sm:$0xff] %vm1587_vm7, %v1538_v58  ;;  %v1544_v60 = vpop.permute.xlu0 %1543  ;;  %v2023_v58 = vld [vmem:[#allocation2 + $0xf2] sm:$0xff] }
 0x1cb   : > { %1912 = vrot.lane.b32.xlu1 %v1831_v59, %s9097_s18  ;;  %1614 = vst.msk [vmem:[#allocation5 + $0x1a0] sm:$0xff] %vm1587_vm7, %v1544_v60  ;;  %v2022_v60 = vld [vmem:[#allocation2 + $0xe2] sm:$0xff] }
 0x1cc   : > { %1918 = vrot.lane.b32.xlu0 %v1834_v61, %s9097_s18 }
 0x1cd   : > { %v1542_v62 = vpop.permute.xlu1 %1541 }
 0x1ce   : > { %1613 = vst.msk [vmem:[#allocation5 + $0x190] sm:$0xff] %vm1587_vm7, %v1542_v62  ;;  %v1548_v2 = vpop.permute.xlu0 %1547  ;;  %v2025_v62 = vld [vmem:[#allocation2 + $0x10a] sm:$0xff] }
 0x1cf   : > { %1916 = vrot.lane.b32.xlu1 %v1833_v1, %s9097_s18  ;;  %1616 = vst.msk [vmem:[#allocation5 + $0x1c0] sm:$0xff] %vm1587_vm7, %v1548_v2  ;;  %v2024_v2 = vld [vmem:[#allocation2 + $0xfa] sm:$0xff] }
 0x1d0   : > { %1922 = vrot.lane.b32.xlu0 %v1836_v3, %s9097_s18 }
 0x1d1   : > { %v1546_v4 = vpop.permute.xlu1 %1545 }
 0x1d2   : > { %1615 = vst.msk [vmem:[#allocation5 + $0x1b0] sm:$0xff] %vm1587_vm7, %v1546_v4  ;;  %v1552_v6 = vpop.permute.xlu0 %1551  ;;  %v2027_v4 = vld [vmem:[#allocation2 + $0x122] sm:$0xff] }
 0x1d3   : > { %1920 = vrot.lane.b32.xlu1 %v1835_v5, %s9097_s18  ;;  %1618 = vst.msk [vmem:[#allocation5 + $0x1e0] sm:$0xff] %vm1587_vm7, %v1552_v6  ;;  %v2026_v6 = vld [vmem:[#allocation2 + $0x112] sm:$0xff] }
 0x1d4   : > { %1926 = vrot.lane.b32.xlu0 %v1838_v7, %s9097_s18 }
 0x1d5   : > { %v1550_v8 = vpop.permute.xlu1 %1549 }
 0x1d6   : > { %1617 = vst.msk [vmem:[#allocation5 + $0x1d0] sm:$0xff] %vm1587_vm7, %v1550_v8  ;;  %v1686_v10 = vpop.permute.xlu0 %1685  ;;  %v2029_v8 = vld [vmem:[#allocation2 + $0x13a] sm:$0xff] }
 0x1d7   : > { %1924 = vrot.lane.b32.xlu1 %v1837_v9, %s9097_s18  ;;  %1782 = vst.msk [vmem:[#allocation5] sm:$0xff] %vm1781_vm8, %v1686_v10  ;;  %v2028_v10 = vld [vmem:[#allocation2 + $0x12a] sm:$0xff] }
 0x1d8   : > { %1930 = vrot.lane.b32.xlu0 %v1840_v12, %s9097_s18 }
 0x1d9   : > { %v1554_v13 = vpop.permute.xlu1 %1553 }
 0x1da   : > { %1619 = vst.msk [vmem:[#allocation5 + $0x1f0] sm:$0xff] %vm1587_vm7, %v1554_v13  ;;  %v1690_v24 = vpop.permute.xlu0 %1689  ;;  %v2031_v13 = vld [vmem:[#allocation2 + $0x152] sm:$0xff]  ;;  %vm4179_vm7 = vcmask 589312  }
 0x1db   : > { %1928 = vrot.lane.b32.xlu1 %v1839_v16, %s9097_s18  ;;  %1784 = vst.msk [vmem:[#allocation5 + $0x20] sm:$0xff] %vm1781_vm8, %v1690_v24  ;;  %v2033_v24 = vld [vmem:[#allocation2 + $0x16a] sm:$0xff] }
 0x1dc   : > { %1934 = vrot.lane.b32.xlu0 %v9887_v29, %s9097_s18 }
 0x1dd   : > { %v1688_v42 = vpop.permute.xlu1 %1687 }
 0x1de   : > { %1783 = vst.msk [vmem:[#allocation5 + $0x10] sm:$0xff] %vm1781_vm8, %v1688_v42  ;;  %v1694_v47 = vpop.permute.xlu0 %1693  ;;  %v2032_v42 = vld [vmem:[#allocation2 + $0x15a] sm:$0xff] }
 0x1df   : > { %1932 = vrot.lane.b32.xlu1 %v1841_v21, %s9097_s18  ;;  %1786 = vst.msk [vmem:[#allocation5 + $0x40] sm:$0xff] %vm1781_vm8, %v1694_v47  ;;  %v2037_v47 = vld [vmem:[#allocation2 + $0x19a] sm:$0xff] }
 0x1e0   : > { %1938 = vrot.lane.b32.xlu0 %v1844_v28, %s9097_s18  ;;  %v2034_v28 = vld [vmem:[#allocation2 + $0x172] sm:$0xff] }
 0x1e1   : > { %v1692_v29 = vpop.permute.xlu1 %1691 }
 0x1e2   : > { %1785 = vst.msk [vmem:[#allocation5 + $0x30] sm:$0xff] %vm1781_vm8, %v1692_v29  ;;  %v1698_v53 = vpop.permute.xlu0 %1697 }
 0x1e3   : > { %1936 = vrot.lane.b32.xlu1 %v9897_v27, %s9097_s18  ;;  %1788 = vst.msk [vmem:[#allocation5 + $0x60] sm:$0xff] %vm1781_vm8, %v1698_v53  ;;  %v14079_v53 = vmov 0.0  }
 0x1e4   : > { %2071 = vrot.lane.b32.xlu0 %v2007_v50, %s9098_s9  ;;  %373 = vst.msk [vmem:[#allocation3] sm:$0xff] %vm372_vm11, %v14079_v53  ;;  %374 = vst.msk [vmem:[#allocation3 + $0x8] sm:$0xff] %vm372_vm11, %v14079_v53 }
 0x1e5   : > { %v1696_v63 = vpop.permute.xlu1 %1695  ;;  %378 = vst.msk [vmem:[#allocation3 + $0x198] sm:$0xff] %vm372_vm11, %v14079_v53  ;;  %379 = vst.msk [vmem:[#allocation3 + $0x1a0] sm:$0xff] %vm372_vm11, %v14079_v53 }
 0x1e6   : > { %1787 = vst.msk [vmem:[#allocation5 + $0x50] sm:$0xff] %vm1781_vm8, %v1696_v63  ;;  %v1702_v14 = vpop.permute.xlu0 %1701 }
 0x1e7   : > { %1940 = vrot.lane.b32.xlu1 %v1845_v56, %s9097_s18  ;;  %1790 = vst.msk [vmem:[#allocation5 + $0x80] sm:$0xff] %vm1781_vm8, %v1702_v14 }
 0x1e8   : > { %2075 = vrot.lane.b32.xlu0 %v2009_v11, %s9098_s9  ;;  %418 = vst.msk [vmem:[#allocation4] sm:$0xff] %vm372_vm11, %v14079_v53  ;;  %419 = vst.msk [vmem:[#allocation4 + $0x8] sm:$0xff] %vm372_vm11, %v14079_v53 }
 0x1e9   : > { %v1700_v27 = vpop.permute.xlu1 %1699  ;;  %422 = vst.msk [vmem:[#allocation4 + $0x198] sm:$0xff] %vm372_vm11, %v14079_v53  ;;  %423 = vst.msk [vmem:[#allocation4 + $0x1a0] sm:$0xff] %vm372_vm11, %v14079_v53 }
 0x1ea   : > { %1789 = vst.msk [vmem:[#allocation5 + $0x70] sm:$0xff] %vm1781_vm8, %v1700_v27  ;;  %v1706_v19 = vpop.permute.xlu0 %1705 }
 0x1eb   : > { %2073 = vrot.lane.b32.xlu1 %v2008_v15, %s9098_s9  ;;  %1792 = vst.msk [vmem:[#allocation5 + $0xa0] sm:$0xff] %vm1781_vm8, %v1706_v19 }
 0x1ec   : > { %2079 = vrot.lane.b32.xlu0 %v2011_v18, %s9098_s9  ;;  %376 = vst.msk [vmem:[#allocation3 + $0x10] sm:$0x3] %vm375_vm14, %v14079_v53  ;;  %380 = vst.msk [vmem:[#allocation3 + $0x1a8] sm:$0x3] %vm375_vm14, %v14079_v53 }
 0x1ed   : > { %v1704_v35 = vpop.permute.xlu1 %1703  ;;  %420 = vst.msk [vmem:[#allocation4 + $0x10] sm:$0x3] %vm375_vm14, %v14079_v53  ;;  %424 = vst.msk [vmem:[#allocation4 + $0x1a8] sm:$0x3] %vm375_vm14, %v14079_v53  ;;  %vm5337_vm14 = vcmask 982912  }
 0x1ee   : > { %1791 = vst.msk [vmem:[#allocation5 + $0x90] sm:$0xff] %vm1781_vm8, %v1704_v35  ;;  %v1710_v49 = vpop.permute.xlu0 %1709 }
 0x1ef   : > { %2077 = vrot.lane.b32.xlu1 %v2010_v22, %s9098_s9  ;;  %1794 = vst.msk [vmem:[#allocation5 + $0xc0] sm:$0xff] %vm1781_vm8, %v1710_v49 }
 0x1f0   : > { %2083 = vrot.lane.b32.xlu0 %v2013_v23, %s9098_s9  ;;  %400 = vst.msk [vmem:[#allocation3 + $0x11] sm:$0x1] %vm381_vm15, %v14079_v53  ;;  %382 = vst.msk [vmem:[#allocation3] sm:$0x1] %vm381_vm15, %v14079_v53 }
 0x1f1   : > { %v1708_v33 = vpop.permute.xlu1 %1707  ;;  %383 = vst.msk [vmem:[#allocation3 + $0x18] sm:$0x1] %vm381_vm15, %v14079_v53  ;;  %384 = vst.msk [vmem:[#allocation3 + $0x30] sm:$0x1] %vm381_vm15, %v14079_v53 }
 0x1f2   : > { %1793 = vst.msk [vmem:[#allocation5 + $0xb0] sm:$0xff] %vm1781_vm8, %v1708_v33  ;;  %v1714_v46 = vpop.permute.xlu0 %1713 }
 0x1f3   : > { %2081 = vrot.lane.b32.xlu1 %v2012_v48, %s9098_s9  ;;  %1796 = vst.msk [vmem:[#allocation5 + $0xe0] sm:$0xff] %vm1781_vm8, %v1714_v46 }
 0x1f4   : > { %2087 = vrot.lane.b32.xlu0 %v2015_v25, %s9098_s9  ;;  %385 = vst.msk [vmem:[#allocation3 + $0x48] sm:$0x1] %vm381_vm15, %v14079_v53  ;;  %386 = vst.msk [vmem:[#allocation3 + $0x60] sm:$0x1] %vm381_vm15, %v14079_v53 }
 0x1f5   : > { %v1712_v30 = vpop.permute.xlu1 %1711  ;;  %387 = vst.msk [vmem:[#allocation3 + $0x78] sm:$0x1] %vm381_vm15, %v14079_v53  ;;  %388 = vst.msk [vmem:[#allocation3 + $0x90] sm:$0x1] %vm381_vm15, %v14079_v53 }
 0x1f6   : > { %1795 = vst.msk [vmem:[#allocation5 + $0xd0] sm:$0xff] %vm1781_vm8, %v1712_v30  ;;  %v1718_v32 = vpop.permute.xlu0 %1717 }
 0x1f7   : > { %2085 = vrot.lane.b32.xlu1 %v2014_v36, %s9098_s9  ;;  %1798 = vst.msk [vmem:[#allocation5 + $0x100] sm:$0xff] %vm1781_vm8, %v1718_v32 }
 0x1f8   : > { %2091 = vrot.lane.b32.xlu0 %v2017_v37, %s9098_s9  ;;  %389 = vst.msk [vmem:[#allocation3 + $0xa8] sm:$0x1] %vm381_vm15, %v14079_v53  ;;  %390 = vst.msk [vmem:[#allocation3 + $0xc0] sm:$0x1] %vm381_vm15, %v14079_v53 }
 0x1f9   : > { %v1716_v39 = vpop.permute.xlu1 %1715  ;;  %391 = vst.msk [vmem:[#allocation3 + $0xd8] sm:$0x1] %vm381_vm15, %v14079_v53  ;;  %392 = vst.msk [vmem:[#allocation3 + $0xf0] sm:$0x1] %vm381_vm15, %v14079_v53 }
 0x1fa   : > { %1797 = vst.msk [vmem:[#allocation5 + $0xf0] sm:$0xff] %vm1781_vm8, %v1716_v39  ;;  %v1722_v51 = vpop.permute.xlu0 %1721 }
 0x1fb   : > { %2089 = vrot.lane.b32.xlu1 %v2016_v45, %s9098_s9  ;;  %1800 = vst.msk [vmem:[#allocation5 + $0x120] sm:$0xff] %vm1781_vm8, %v1722_v51 }
 0x1fc   : > { %2095 = vrot.lane.b32.xlu0 %v2019_v38, %s9098_s9  ;;  %393 = vst.msk [vmem:[#allocation3 + $0x108] sm:$0x1] %vm381_vm15, %v14079_v53  ;;  %394 = vst.msk [vmem:[#allocation3 + $0x120] sm:$0x1] %vm381_vm15, %v14079_v53 }
 0x1fd   : > { %v1720_v54 = vpop.permute.xlu1 %1719  ;;  %395 = vst.msk [vmem:[#allocation3 + $0x138] sm:$0x1] %vm381_vm15, %v14079_v53  ;;  %396 = vst.msk [vmem:[#allocation3 + $0x150] sm:$0x1] %vm381_vm15, %v14079_v53 }
 0x1fe   : > { %1799 = vst.msk [vmem:[#allocation5 + $0x110] sm:$0xff] %vm1781_vm8, %v1720_v54  ;;  %v1726_v57 = vpop.permute.xlu0 %1725 }
 0x1ff   : > { %2093 = vrot.lane.b32.xlu1 %v2018_v40, %s9098_s9  ;;  %1802 = vst.msk [vmem:[#allocation5 + $0x140] sm:$0xff] %vm1781_vm8, %v1726_v57 }
 0x200   : > { %2099 = vrot.lane.b32.xlu0 %v2021_v52, %s9098_s9  ;;  %397 = vst.msk [vmem:[#allocation3 + $0x168] sm:$0x1] %vm381_vm15, %v14079_v53  ;;  %398 = vst.msk [vmem:[#allocation3 + $0x180] sm:$0x1] %vm381_vm15, %v14079_v53 }
 0x201   : > { %v1724_v59 = vpop.permute.xlu1 %1723  ;;  %399 = vst.msk [vmem:[#allocation3 + $0x198] sm:$0x1] %vm381_vm15, %v14079_v53  ;;  %401 = vst.msk [vmem:[#allocation3 + $0x29] sm:$0x1] %vm381_vm15, %v14079_v53 }
 0x202   : > { %1801 = vst.msk [vmem:[#allocation5 + $0x130] sm:$0xff] %vm1781_vm8, %v1724_v59  ;;  %v1730_v61 = vpop.permute.xlu0 %1729 }
 0x203   : > { %2097 = vrot.lane.b32.xlu1 %v2020_v55, %s9098_s9  ;;  %1804 = vst.msk [vmem:[#allocation5 + $0x160] sm:$0xff] %vm1781_vm8, %v1730_v61 }
 0x204   : > { %2103 = vrot.lane.b32.xlu0 %v2023_v58, %s9098_s9  ;;  %402 = vst.msk [vmem:[#allocation3 + $0x41] sm:$0x1] %vm381_vm15, %v14079_v53  ;;  %403 = vst.msk [vmem:[#allocation3 + $0x59] sm:$0x1] %vm381_vm15, %v14079_v53 }
 0x205   : > { %v1728_v1 = vpop.permute.xlu1 %1727  ;;  %404 = vst.msk [vmem:[#allocation3 + $0x71] sm:$0x1] %vm381_vm15, %v14079_v53  ;;  %405 = vst.msk [vmem:[#allocation3 + $0x89] sm:$0x1] %vm381_vm15, %v14079_v53 }
 0x206   : > { %1803 = vst.msk [vmem:[#allocation5 + $0x150] sm:$0xff] %vm1781_vm8, %v1728_v1  ;;  %v1734_v3 = vpop.permute.xlu0 %1733 }
 0x207   : > { %2101 = vrot.lane.b32.xlu1 %v2022_v60, %s9098_s9  ;;  %1806 = vst.msk [vmem:[#allocation5 + $0x180] sm:$0xff] %vm1781_vm8, %v1734_v3 }
 0x208   : > { %2107 = vrot.lane.b32.xlu0 %v2025_v62, %s9098_s9  ;;  %406 = vst.msk [vmem:[#allocation3 + $0xa1] sm:$0x1] %vm381_vm15, %v14079_v53  ;;  %407 = vst.msk [vmem:[#allocation3 + $0xb9] sm:$0x1] %vm381_vm15, %v14079_v53 }
 0x209   : > { %v1732_v5 = vpop.permute.xlu1 %1731  ;;  %408 = vst.msk [vmem:[#allocation3 + $0xd1] sm:$0x1] %vm381_vm15, %v14079_v53  ;;  %409 = vst.msk [vmem:[#allocation3 + $0xe9] sm:$0x1] %vm381_vm15, %v14079_v53 }
 0x20a   : > { %1805 = vst.msk [vmem:[#allocation5 + $0x170] sm:$0xff] %vm1781_vm8, %v1732_v5  ;;  %v1738_v7 = vpop.permute.xlu0 %1737 }
 0x20b   : > { %2105 = vrot.lane.b32.xlu1 %v2024_v2, %s9098_s9  ;;  %1808 = vst.msk [vmem:[#allocation5 + $0x1a0] sm:$0xff] %vm1781_vm8, %v1738_v7 }
 0x20c   : > { %2111 = vrot.lane.b32.xlu0 %v2027_v4, %s9098_s9  ;;  %410 = vst.msk [vmem:[#allocation3 + $0x101] sm:$0x1] %vm381_vm15, %v14079_v53  ;;  %411 = vst.msk [vmem:[#allocation3 + $0x119] sm:$0x1] %vm381_vm15, %v14079_v53 }
 0x20d   : > { %v1736_v9 = vpop.permute.xlu1 %1735  ;;  %412 = vst.msk [vmem:[#allocation3 + $0x131] sm:$0x1] %vm381_vm15, %v14079_v53  ;;  %413 = vst.msk [vmem:[#allocation3 + $0x149] sm:$0x1] %vm381_vm15, %v14079_v53 }
 0x20e   : > { %1807 = vst.msk [vmem:[#allocation5 + $0x190] sm:$0xff] %vm1781_vm8, %v1736_v9  ;;  %v1742_v12 = vpop.permute.xlu0 %1741 }
 0x20f   : > { %2109 = vrot.lane.b32.xlu1 %v2026_v6, %s9098_s9  ;;  %1810 = vst.msk [vmem:[#allocation5 + $0x1c0] sm:$0xff] %vm1781_vm8, %v1742_v12 }
 0x210   : > { %2115 = vrot.lane.b32.xlu0 %v2029_v8, %s9098_s9  ;;  %414 = vst.msk [vmem:[#allocation3 + $0x161] sm:$0x1] %vm381_vm15, %v14079_v53  ;;  %415 = vst.msk [vmem:[#allocation3 + $0x179] sm:$0x1] %vm381_vm15, %v14079_v53 }
 0x211   : > { %v1740_v16 = vpop.permute.xlu1 %1739  ;;  %416 = vst.msk [vmem:[#allocation3 + $0x191] sm:$0x1] %vm381_vm15, %v14079_v53  ;;  %417 = vst.msk [vmem:[#allocation3 + $0x1a9] sm:$0x1] %vm381_vm15, %v14079_v53 }
 0x212   : > { %1809 = vst.msk [vmem:[#allocation5 + $0x1b0] sm:$0xff] %vm1781_vm8, %v1740_v16  ;;  %v1746_v20 = vpop.permute.xlu0 %1745 }
 0x213   : > { %2113 = vrot.lane.b32.xlu1 %v2028_v10, %s9098_s9  ;;  %1812 = vst.msk [vmem:[#allocation5 + $0x1e0] sm:$0xff] %vm1781_vm8, %v1746_v20 }
 0x214   : > { %2119 = vrot.lane.b32.xlu0 %v2031_v13, %s9098_s9  ;;  %425 = vst.msk [vmem:[#allocation4] sm:$0x1] %vm381_vm15, %v14079_v53  ;;  %426 = vst.msk [vmem:[#allocation4 + $0x18] sm:$0x1] %vm381_vm15, %v14079_v53 }
 0x215   : > { %v1744_v41 = vpop.permute.xlu1 %1743  ;;  %427 = vst.msk [vmem:[#allocation4 + $0x30] sm:$0x1] %vm381_vm15, %v14079_v53  ;;  %428 = vst.msk [vmem:[#allocation4 + $0x48] sm:$0x1] %vm381_vm15, %v14079_v53 }
 0x216   : > { %1811 = vst.msk [vmem:[#allocation5 + $0x1d0] sm:$0xff] %vm1781_vm8, %v1744_v41  ;;  %v1879_v21 = vpop.permute.xlu0 %1878 }
 0x217   : > { %2117 = vrot.lane.b32.xlu1 %v2030_v17, %s9098_s9  ;;  %1975 = vst.msk [vmem:[#allocation5] sm:$0xff] %vm1974_vm10, %v1879_v21 }
 0x218   : > { %2123 = vrot.lane.b32.xlu0 %v2033_v24, %s9098_s9  ;;  %429 = vst.msk [vmem:[#allocation4 + $0x60] sm:$0x1] %vm381_vm15, %v14079_v53  ;;  %430 = vst.msk [vmem:[#allocation4 + $0x78] sm:$0x1] %vm381_vm15, %v14079_v53 }
 0x219   : > { %v1748_v0 = vpop.permute.xlu1 %1747  ;;  %431 = vst.msk [vmem:[#allocation4 + $0x90] sm:$0x1] %vm381_vm15, %v14079_v53  ;;  %432 = vst.msk [vmem:[#allocation4 + $0xa8] sm:$0x1] %vm381_vm15, %v14079_v53 }
 0x21a   : > { %1813 = vst.msk [vmem:[#allocation5 + $0x1f0] sm:$0xff] %vm1781_vm8, %v1748_v0  ;;  %v1883_v43 = vpop.permute.xlu0 %1882  ;;  %vm4372_vm8 = vcmask 654912  }
 0x21b   : > { %2121 = vrot.lane.b32.xlu1 %v2032_v42, %s9098_s9  ;;  %1977 = vst.msk [vmem:[#allocation5 + $0x20] sm:$0xff] %vm1974_vm10, %v1883_v43 }
 0x21c   : > { %2127 = vrot.lane.b32.xlu0 %v9987_v26, %s9098_s9  ;;  %v2038_v26 = vld [vmem:[#allocation2 + $0x1a2] sm:$0xff]  ;;  %433 = vst.msk [vmem:[#allocation4 + $0xc0] sm:$0x1] %vm381_vm15, %v14079_v53  ;;  %434 = vst.msk [vmem:[#allocation4 + $0xd8] sm:$0x1] %vm381_vm15, %v14079_v53 }
 0x21d   : > { %v1881_v44 = vpop.permute.xlu1 %1880  ;;  %435 = vst.msk [vmem:[#allocation4 + $0xf0] sm:$0x1] %vm381_vm15, %v14079_v53  ;;  %436 = vst.msk [vmem:[#allocation4 + $0x108] sm:$0x1] %vm381_vm15, %v14079_v53 }
 0x21e   : > { %1976 = vst.msk [vmem:[#allocation5 + $0x10] sm:$0xff] %vm1974_vm10, %v1881_v44  ;;  %v1887_v29 = vpop.permute.xlu0 %1886 }
 0x21f   : > { %2125 = vrot.lane.b32.xlu1 %v2034_v28, %s9098_s9  ;;  %1979 = vst.msk [vmem:[#allocation5 + $0x40] sm:$0xff] %vm1974_vm10, %v1887_v29 }
 0x220   : > { %2131 = vrot.lane.b32.xlu0 %v2037_v47, %s9098_s9  ;;  %437 = vst.msk [vmem:[#allocation4 + $0x120] sm:$0x1] %vm381_vm15, %v14079_v53  ;;  %438 = vst.msk [vmem:[#allocation4 + $0x138] sm:$0x1] %vm381_vm15, %v14079_v53 }
 0x221   : > { %v1885_v50 = vpop.permute.xlu1 %1884  ;;  %439 = vst.msk [vmem:[#allocation4 + $0x150] sm:$0x1] %vm381_vm15, %v14079_v53  ;;  %440 = vst.msk [vmem:[#allocation4 + $0x168] sm:$0x1] %vm381_vm15, %v14079_v53 }
 0x222   : > { %1978 = vst.msk [vmem:[#allocation5 + $0x30] sm:$0xff] %vm1974_vm10, %v1885_v50  ;;  %v1891_v34 = vpop.permute.xlu0 %1890 }
 0x223   : > { %2129 = vrot.lane.b32.xlu1 %v9997_v31, %s9098_s9  ;;  %1981 = vst.msk [vmem:[#allocation5 + $0x60] sm:$0xff] %vm1974_vm10, %v1891_v34 }
 0x224   : > { %441 = vst.msk [vmem:[#allocation4 + $0x180] sm:$0x1] %vm381_vm15, %v14079_v53  ;;  %442 = vst.msk [vmem:[#allocation4 + $0x198] sm:$0x1] %vm381_vm15, %v14079_v53 }
 0x225   : > { %v1889_v31 = vpop.permute.xlu1 %1888  ;;  %443 = vst.msk [vmem:[#allocation4 + $0x11] sm:$0x1] %vm381_vm15, %v14079_v53  ;;  %444 = vst.msk [vmem:[#allocation4 + $0x29] sm:$0x1] %vm381_vm15, %v14079_v53 }
 0x226   : > { %1980 = vst.msk [vmem:[#allocation5 + $0x50] sm:$0xff] %vm1974_vm10, %v1889_v31  ;;  %v1895_v56 = vpop.permute.xlu0 %1894 }
 0x227   : > { %2133 = vrot.lane.b32.xlu1 %v2038_v26, %s9098_s9  ;;  %1983 = vst.msk [vmem:[#allocation5 + $0x80] sm:$0xff] %vm1974_vm10, %v1895_v56 }
 0x228   : > { %445 = vst.msk [vmem:[#allocation4 + $0x41] sm:$0x1] %vm381_vm15, %v14079_v53  ;;  %446 = vst.msk [vmem:[#allocation4 + $0x59] sm:$0x1] %vm381_vm15, %v14079_v53 }
 0x229   : > { %v1893_v63 = vpop.permute.xlu1 %1892  ;;  %447 = vst.msk [vmem:[#allocation4 + $0x71] sm:$0x1] %vm381_vm15, %v14079_v53  ;;  %448 = vst.msk [vmem:[#allocation4 + $0x89] sm:$0x1] %vm381_vm15, %v14079_v53 }
 0x22a   : > { %1982 = vst.msk [vmem:[#allocation5 + $0x70] sm:$0xff] %vm1974_vm10, %v1893_v63  ;;  %v1899_v11 = vpop.permute.xlu0 %1898 }
 0x22b   : > { %1985 = vst.msk [vmem:[#allocation5 + $0xa0] sm:$0xff] %vm1974_vm10, %v1899_v11 }
 0x22c   : > { %449 = vst.msk [vmem:[#allocation4 + $0xa1] sm:$0x1] %vm381_vm15, %v14079_v53  ;;  %450 = vst.msk [vmem:[#allocation4 + $0xb9] sm:$0x1] %vm381_vm15, %v14079_v53 }
 0x22d   : > { %v1897_v14 = vpop.permute.xlu1 %1896  ;;  %451 = vst.msk [vmem:[#allocation4 + $0xd1] sm:$0x1] %vm381_vm15, %v14079_v53  ;;  %452 = vst.msk [vmem:[#allocation4 + $0xe9] sm:$0x1] %vm381_vm15, %v14079_v53 }
 0x22e   : > { %1984 = vst.msk [vmem:[#allocation5 + $0x90] sm:$0xff] %vm1974_vm10, %v1897_v14  ;;  %v1903_v15 = vpop.permute.xlu0 %1902 }
 0x22f   : > { %1987 = vst.msk [vmem:[#allocation5 + $0xc0] sm:$0xff] %vm1974_vm10, %v1903_v15 }
 0x230   : > { %453 = vst.msk [vmem:[#allocation4 + $0x101] sm:$0x1] %vm381_vm15, %v14079_v53  ;;  %454 = vst.msk [vmem:[#allocation4 + $0x119] sm:$0x1] %vm381_vm15, %v14079_v53 }
 0x231   : > { %v1901_v27 = vpop.permute.xlu1 %1900  ;;  %455 = vst.msk [vmem:[#allocation4 + $0x131] sm:$0x1] %vm381_vm15, %v14079_v53  ;;  %456 = vst.msk [vmem:[#allocation4 + $0x149] sm:$0x1] %vm381_vm15, %v14079_v53 }
 0x232   : > { %1986 = vst.msk [vmem:[#allocation5 + $0xb0] sm:$0xff] %vm1974_vm10, %v1901_v27  ;;  %v1907_v18 = vpop.permute.xlu0 %1906 }
 0x233   : > { %1989 = vst.msk [vmem:[#allocation5 + $0xe0] sm:$0xff] %vm1974_vm10, %v1907_v18 }
 0x234   : > { %457 = vst.msk [vmem:[#allocation4 + $0x161] sm:$0x1] %vm381_vm15, %v14079_v53  ;;  %458 = vst.msk [vmem:[#allocation4 + $0x179] sm:$0x1] %vm381_vm15, %v14079_v53 }
 0x235   : > { %v1905_v19 = vpop.permute.xlu1 %1904  ;;  %459 = vst.msk [vmem:[#allocation4 + $0x191] sm:$0x1] %vm381_vm15, %v14079_v53  ;;  %460 = vst.msk [vmem:[#allocation4 + $0x1a9] sm:$0x1] %vm381_vm15, %v14079_v53  ;;  %v10506_v53 = vld [vmem:[%s13881_s5] ss:$0 sm:$0xff] }
 0x236   : > { %1988 = vst.msk [vmem:[#allocation5 + $0xd0] sm:$0xff] %vm1974_vm10, %v1905_v19  ;;  %v1911_v22 = vpop.permute.xlu0 %1910  ;;  %vm5531_vm15 = vcmask 1048512  }
 0x237   : > { %1991 = vst.msk [vmem:[#allocation5 + $0x100] sm:$0xff] %vm1974_vm10, %v1911_v22 }
 0x239   : > { %v1909_v35 = vpop.permute.xlu1 %1908 }
 0x23a   : > { %1990 = vst.msk [vmem:[#allocation5 + $0xf0] sm:$0xff] %vm1974_vm10, %v1909_v35  ;;  %v1915_v23 = vpop.permute.xlu0 %1914 }
 0x23b   : > { %1993 = vst.msk [vmem:[#allocation5 + $0x120] sm:$0xff] %vm1974_vm10, %v1915_v23 }
 0x23d   : > { %v1913_v49 = vpop.permute.xlu1 %1912 }
 0x23e   : > { %1992 = vst.msk [vmem:[#allocation5 + $0x110] sm:$0xff] %vm1974_vm10, %v1913_v49  ;;  %v1919_v48 = vpop.permute.xlu0 %1918 }
 0x23f   : > { %1995 = vst.msk [vmem:[#allocation5 + $0x140] sm:$0xff] %vm1974_vm10, %v1919_v48 }
 0x241   : > { %v1917_v33 = vpop.permute.xlu1 %1916 }
 0x242   : > { %1994 = vst.msk [vmem:[#allocation5 + $0x130] sm:$0xff] %vm1974_vm10, %v1917_v33  ;;  %v1923_v25 = vpop.permute.xlu0 %1922 }
 0x243   : > { %1997 = vst.msk [vmem:[#allocation5 + $0x160] sm:$0xff] %vm1974_vm10, %v1923_v25 }
 0x245   : > { %v1921_v46 = vpop.permute.xlu1 %1920 }
 0x246   : > { %1996 = vst.msk [vmem:[#allocation5 + $0x150] sm:$0xff] %vm1974_vm10, %v1921_v46  ;;  %v1927_v36 = vpop.permute.xlu0 %1926 }
 0x247   : > { %1999 = vst.msk [vmem:[#allocation5 + $0x180] sm:$0xff] %vm1974_vm10, %v1927_v36 }
 0x249   : > { %v1925_v30 = vpop.permute.xlu1 %1924 }
 0x24a   : > { %1998 = vst.msk [vmem:[#allocation5 + $0x170] sm:$0xff] %vm1974_vm10, %v1925_v30  ;;  %v1931_v37 = vpop.permute.xlu0 %1930 }
 0x24b   : > { %2001 = vst.msk [vmem:[#allocation5 + $0x1a0] sm:$0xff] %vm1974_vm10, %v1931_v37 }
 0x24d   : > { %v1929_v32 = vpop.permute.xlu1 %1928 }
 0x24e   : > { %2000 = vst.msk [vmem:[#allocation5 + $0x190] sm:$0xff] %vm1974_vm10, %v1929_v32  ;;  %v1935_v45 = vpop.permute.xlu0 %1934 }
 0x24f   : > { %2003 = vst.msk [vmem:[#allocation5 + $0x1c0] sm:$0xff] %vm1974_vm10, %v1935_v45 }
 0x251   : > { %v1933_v39 = vpop.permute.xlu1 %1932 }
 0x252   : > { %2002 = vst.msk [vmem:[#allocation5 + $0x1b0] sm:$0xff] %vm1974_vm10, %v1933_v39  ;;  %v1939_v38 = vpop.permute.xlu0 %1938 }
 0x253   : > { %2005 = vst.msk [vmem:[#allocation5 + $0x1e0] sm:$0xff] %vm1974_vm10, %v1939_v38 }
 0x255   : > { %v1937_v51 = vpop.permute.xlu1 %1936 }
 0x256   : > { %2004 = vst.msk [vmem:[#allocation5 + $0x1d0] sm:$0xff] %vm1974_vm10, %v1937_v51  ;;  %v2072_v40 = vpop.permute.xlu0 %2071 }
 0x257   : > { %2168 = vst.msk [vmem:[#allocation5] sm:$0xff] %vm2167_vm12, %v2072_v40 }
 0x259   : > { %v1941_v54 = vpop.permute.xlu1 %1940 }
 0x25a   : > { %2006 = vst.msk [vmem:[#allocation5 + $0x1f0] sm:$0xff] %vm1974_vm10, %v1941_v54  ;;  %v2076_v52 = vpop.permute.xlu0 %2075  ;;  %vm4758_vm10 = vcmask 786112  }
 0x25b   : > { %2170 = vst.msk [vmem:[#allocation5 + $0x20] sm:$0xff] %vm2167_vm12, %v2076_v52  ;;  %v2668_v52 = vld [vmem:[#allocation3 + $0x9] sm:$0xff] }
 0x25c   : > { %2733 = vrot.lane.b32.xlu1 %v2668_v52, %s9092_s13 }
 0x25d   : > { %v2074_v57 = vpop.permute.xlu1 %2073 }
 0x25e   : > { %2169 = vst.msk [vmem:[#allocation5 + $0x10] sm:$0xff] %vm2167_vm12, %v2074_v57  ;;  %v2080_v55 = vpop.permute.xlu0 %2079  ;;  %v2200_v59 = vld [vmem:[#allocation5] sm:$0xff] }
 0x25f   : > { %2172 = vst.msk [vmem:[#allocation5 + $0x40] sm:$0xff] %vm2167_vm12, %v2080_v55  ;;  %8888 = vmatprep.mubr.msk.f32.mxu0 %vm2244_vm13, %v2200_v59  ;;  %v2667_v57 = vld [vmem:[#allocation3 + $0x1] sm:$0xff] }
 0x260   : > { %2731 = vrot.lane.b32.xlu0 %v2667_v57, %s9092_s13  ;;  %v2604_v55 = vld [vmem:[#allocation3 + $0x8] sm:$0xff]  ;;  %v2603_v59 = vld [vmem:[#allocation3] sm:$0xff] }
 0x261   : > { %v2078_v58 = vpop.permute.xlu1 %2077  ;;  %2635 = vst.msk [vmem:[#allocation5] sm:$0xff] %vm372_vm11, %v2603_v59 }
 0x262   : > { %2171 = vst.msk [vmem:[#allocation5 + $0x30] sm:$0xff] %vm2167_vm12, %v2078_v58  ;;  %v2084_v61 = vpop.permute.xlu0 %2083  ;;  %v2202_v60 = vld [vmem:[#allocation5 + $0x20] sm:$0xff] }
 0x263   : > { %2174 = vst.msk [vmem:[#allocation5 + $0x60] sm:$0xff] %vm2167_vm12, %v2084_v61 }
 0x265   : > { %v2082_v1 = vpop.permute.xlu1 %2081  ;;  %v2201_v62 = vld [vmem:[#allocation5 + $0x10] sm:$0xff] }
 0x266   : > { %2173 = vst.msk [vmem:[#allocation5 + $0x50] sm:$0xff] %vm2167_vm12, %v2082_v1  ;;  %8889 = vmatmul.mubr.msk.f32.vlgmr.msra.gmra.mrb[0].mxu0 %vm2244_vm13, %v2201_v62  ;;  %v2088_v3 = vpop.permute.xlu0 %2087  ;;  %v2204_v2 = vld [vmem:[#allocation5 + $0x40] sm:$0xff] }
 0x267   : > { %8891 = vmatprep.mubr.msk.f32.mxu0 %vm2244_vm13, %v2202_v60  ;;  %2176 = vst.msk [vmem:[#allocation5 + $0x80] sm:$0xff] %vm2167_vm12, %v2088_v3 }
 0x268   : > { %2636 = vst.msk [vmem:[#allocation5 + $0x10] sm:$0xff] %vm372_vm11, %v2604_v55 }
 0x269   : > { %v2086_v5 = vpop.permute.xlu1 %2085  ;;  %v2203_v4 = vld [vmem:[#allocation5 + $0x30] sm:$0xff] }
 0x26a   : > { %2175 = vst.msk [vmem:[#allocation5 + $0x70] sm:$0xff] %vm2167_vm12, %v2086_v5  ;;  %8892 = vmatmul.mubr.msk.f32.gmra.mrb[2].mxu0 %vm2244_vm13, %v2203_v4  ;;  %v2092_v7 = vpop.permute.xlu0 %2091  ;;  %v2206_v6 = vld [vmem:[#allocation5 + $0x60] sm:$0xff] }
 0x26b   : > { %8894 = vmatprep.mubr.msk.f32.mxu0 %vm2244_vm13, %v2204_v2  ;;  %2178 = vst.msk [vmem:[#allocation5 + $0xa0] sm:$0xff] %vm2167_vm12, %v2092_v7 }
 0x26d   : > { %v2090_v9 = vpop.permute.xlu1 %2089  ;;  %v2205_v8 = vld [vmem:[#allocation5 + $0x50] sm:$0xff] }
 0x26e   : > { %2177 = vst.msk [vmem:[#allocation5 + $0x90] sm:$0xff] %vm2167_vm12, %v2090_v9  ;;  %8895 = vmatmul.mubr.msk.f32.gmra.mrb[4].mxu0 %vm2244_vm13, %v2205_v8  ;;  %v2096_v12 = vpop.permute.xlu0 %2095  ;;  %v2208_v10 = vld [vmem:[#allocation5 + $0x80] sm:$0xff] }
 0x26f   : > { %8897 = vmatprep.mubr.msk.f32.mxu0 %vm2244_vm13, %v2206_v6  ;;  %2180 = vst.msk [vmem:[#allocation5 + $0xc0] sm:$0xff] %vm2167_vm12, %v2096_v12 }
 0x271   : > { %v2094_v16 = vpop.permute.xlu1 %2093  ;;  %v2207_v13 = vld [vmem:[#allocation5 + $0x70] sm:$0xff] }
 0x272   : > { %2179 = vst.msk [vmem:[#allocation5 + $0xb0] sm:$0xff] %vm2167_vm12, %v2094_v16  ;;  %8898 = vmatmul.mubr.msk.f32.gmra.mrb[6].mxu0 %vm2244_vm13, %v2207_v13  ;;  %v2100_v20 = vpop.permute.xlu0 %2099  ;;  %v2210_v17 = vld [vmem:[#allocation5 + $0xa0] sm:$0xff] }
 0x273   : > { %8900 = vmatprep.mubr.msk.f32.mxu0 %vm2244_vm13, %v2208_v10  ;;  %2182 = vst.msk [vmem:[#allocation5 + $0xe0] sm:$0xff] %vm2167_vm12, %v2100_v20 }
 0x275   : > { %v2098_v41 = vpop.permute.xlu1 %2097  ;;  %v2209_v24 = vld [vmem:[#allocation5 + $0x90] sm:$0xff] }
 0x276   : > { %2181 = vst.msk [vmem:[#allocation5 + $0xd0] sm:$0xff] %vm2167_vm12, %v2098_v41  ;;  %8901 = vmatmul.mubr.msk.f32.gmra.mrb[8].mxu0 %vm2244_vm13, %v2209_v24  ;;  %v2104_v21 = vpop.permute.xlu0 %2103  ;;  %v2212_v42 = vld [vmem:[#allocation5 + $0xc0] sm:$0xff] }
 0x277   : > { %8903 = vmatprep.mubr.msk.f32.mxu0 %vm2244_vm13, %v2210_v17  ;;  %2184 = vst.msk [vmem:[#allocation5 + $0x100] sm:$0xff] %vm2167_vm12, %v2104_v21 }
 0x279   : > { %v2102_v0 = vpop.permute.xlu1 %2101  ;;  %v2211_v43 = vld [vmem:[#allocation5 + $0xb0] sm:$0xff] }
 0x27a   : > { %2183 = vst.msk [vmem:[#allocation5 + $0xf0] sm:$0xff] %vm2167_vm12, %v2102_v0  ;;  %8904 = vmatmul.mubr.msk.f32.gmra.mrb[10].mxu0 %vm2244_vm13, %v2211_v43  ;;  %v2108_v28 = vpop.permute.xlu0 %2107  ;;  %v2214_v44 = vld [vmem:[#allocation5 + $0xe0] sm:$0xff] }
 0x27b   : > { %8906 = vmatprep.mubr.msk.f32.mxu0 %vm2244_vm13, %v2212_v42  ;;  %2186 = vst.msk [vmem:[#allocation5 + $0x120] sm:$0xff] %vm2167_vm12, %v2108_v28 }
 0x27d   : > { %v2106_v47 = vpop.permute.xlu1 %2105  ;;  %v2213_v29 = vld [vmem:[#allocation5 + $0xd0] sm:$0xff] }
 0x27e   : > { %2185 = vst.msk [vmem:[#allocation5 + $0x110] sm:$0xff] %vm2167_vm12, %v2106_v47  ;;  %8907 = vmatmul.mubr.msk.f32.gmra.mrb[12].mxu0 %vm2244_vm13, %v2213_v29  ;;  %v2112_v50 = vpop.permute.xlu0 %2111  ;;  %v2216_v34 = vld [vmem:[#allocation5 + $0x100] sm:$0xff] }
 0x27f   : > { %8909 = vmatprep.mubr.msk.f32.mxu0 %vm2244_vm13, %v2214_v44  ;;  %2188 = vst.msk [vmem:[#allocation5 + $0x140] sm:$0xff] %vm2167_vm12, %v2112_v50 }
 0x281   : > { %v2110_v26 = vpop.permute.xlu1 %2109  ;;  %v2215_v31 = vld [vmem:[#allocation5 + $0xf0] sm:$0xff] }
 0x282   : > { %2187 = vst.msk [vmem:[#allocation5 + $0x130] sm:$0xff] %vm2167_vm12, %v2110_v26  ;;  %8910 = vmatmul.mubr.msk.f32.gmra.mrb[14].mxu0 %vm2244_vm13, %v2215_v31  ;;  %v2116_v56 = vpop.permute.xlu0 %2115  ;;  %v2218_v63 = vld [vmem:[#allocation5 + $0x120] sm:$0xff] }
 0x283   : > { %8912 = vmatprep.mubr.msk.f32.mxu0 %vm2244_vm13, %v2216_v34  ;;  %2190 = vst.msk [vmem:[#allocation5 + $0x160] sm:$0xff] %vm2167_vm12, %v2116_v56 }
 0x285   : > { %v2114_v11 = vpop.permute.xlu1 %2113  ;;  %v2217_v14 = vld [vmem:[#allocation5 + $0x110] sm:$0xff] }
 0x286   : > { %2189 = vst.msk [vmem:[#allocation5 + $0x150] sm:$0xff] %vm2167_vm12, %v2114_v11  ;;  %8913 = vmatmul.mubr.msk.f32.gmra.mrb[16].mxu0 %vm2244_vm13, %v2217_v14  ;;  %v2120_v15 = vpop.permute.xlu0 %2119  ;;  %v2220_v27 = vld [vmem:[#allocation5 + $0x140] sm:$0xff] }
 0x287   : > { %8915 = vmatprep.mubr.msk.f32.mxu0 %vm2244_vm13, %v2218_v63  ;;  %2192 = vst.msk [vmem:[#allocation5 + $0x180] sm:$0xff] %vm2167_vm12, %v2120_v15 }
 0x289   : > { %v2118_v18 = vpop.permute.xlu1 %2117  ;;  %v2219_v19 = vld [vmem:[#allocation5 + $0x130] sm:$0xff] }
 0x28a   : > { %2191 = vst.msk [vmem:[#allocation5 + $0x170] sm:$0xff] %vm2167_vm12, %v2118_v18  ;;  %8916 = vmatmul.mubr.msk.f32.gmra.mrb[18].mxu0 %vm2244_vm13, %v2219_v19  ;;  %v2124_v22 = vpop.permute.xlu0 %2123  ;;  %v2222_v35 = vld [vmem:[#allocation5 + $0x160] sm:$0xff] }
 0x28b   : > { %8918 = vmatprep.mubr.msk.f32.mxu0 %vm2244_vm13, %v2220_v27  ;;  %2194 = vst.msk [vmem:[#allocation5 + $0x1a0] sm:$0xff] %vm2167_vm12, %v2124_v22 }
 0x28d   : > { %v2122_v23 = vpop.permute.xlu1 %2121  ;;  %v2221_v49 = vld [vmem:[#allocation5 + $0x150] sm:$0xff] }
 0x28e   : > { %2193 = vst.msk [vmem:[#allocation5 + $0x190] sm:$0xff] %vm2167_vm12, %v2122_v23  ;;  %8919 = vmatmul.mubr.msk.f32.gmra.mrb[20].mxu0 %vm2244_vm13, %v2221_v49  ;;  %v2128_v48 = vpop.permute.xlu0 %2127  ;;  %v2224_v33 = vld [vmem:[#allocation5 + $0x180] sm:$0xff] }
 0x28f   : > { %8921 = vmatprep.mubr.msk.f32.mxu0 %vm2244_vm13, %v2222_v35  ;;  %2196 = vst.msk [vmem:[#allocation5 + $0x1c0] sm:$0xff] %vm2167_vm12, %v2128_v48 }
 0x291   : > { %v2126_v25 = vpop.permute.xlu1 %2125  ;;  %v2223_v46 = vld [vmem:[#allocation5 + $0x170] sm:$0xff] }
 0x292   : > { %2195 = vst.msk [vmem:[#allocation5 + $0x1b0] sm:$0xff] %vm2167_vm12, %v2126_v25  ;;  %8922 = vmatmul.mubr.msk.f32.gmra.mrb[22].mxu0 %vm2244_vm13, %v2223_v46  ;;  %v2132_v36 = vpop.permute.xlu0 %2131  ;;  %v2226_v30 = vld [vmem:[#allocation5 + $0x1a0] sm:$0xff] }
 0x293   : > { %8924 = vmatprep.mubr.msk.f32.mxu0 %vm2244_vm13, %v2224_v33  ;;  %2198 = vst.msk [vmem:[#allocation5 + $0x1e0] sm:$0xff] %vm2167_vm12, %v2132_v36 }
 0x295   : > { %v2130_v37 = vpop.permute.xlu1 %2129  ;;  %v2225_v32 = vld [vmem:[#allocation5 + $0x190] sm:$0xff] }
 0x296   : > { %2197 = vst.msk [vmem:[#allocation5 + $0x1d0] sm:$0xff] %vm2167_vm12, %v2130_v37  ;;  %8925 = vmatmul.mubr.msk.f32.gmra.mrb[24].mxu0 %vm2244_vm13, %v2225_v32  ;;  %v2228_v45 = vld [vmem:[#allocation5 + $0x1c0] sm:$0xff] }
 0x297   : > { %8927 = vmatprep.mubr.msk.f32.mxu0 %vm2244_vm13, %v2226_v30 }
 0x299   : > { %v2227_v39 = vld [vmem:[#allocation5 + $0x1b0] sm:$0xff]  ;;  %v2134_v38 = vpop.permute.xlu1 %2133 }
 0x29a   : > { %8928 = vmatmul.mubr.msk.f32.gmra.mrb[26].mxu0 %vm2244_vm13, %v2227_v39  ;;  %2199 = vst.msk [vmem:[#allocation5 + $0x1f0] sm:$0xff] %vm2167_vm12, %v2134_v38  ;;  %v2230_v51 = vld [vmem:[#allocation5 + $0x1e0] sm:$0xff]  ;;  %vm4951_vm12 = vcmask 851712  }
 0x29b   : > { %8930 = vmatprep.mubr.msk.f32.mxu0 %vm2244_vm13, %v2228_v45 }
 0x29d   : > { %v2229_v40 = vld [vmem:[#allocation5 + $0x1d0] sm:$0xff] }
 0x29e   : > { %8931 = vmatmul.mubr.msk.f32.gmra.mrb[28].mxu0 %vm2244_vm13, %v2229_v40 }
 0x29f   : > { %8933 = vmatprep.mubr.msk.f32.mxu0 %vm2244_vm13, %v2230_v51 }
 0x2a1   : > { %v2231_v54 = vld [vmem:[#allocation5 + $0x1f0] sm:$0xff] }
 0x2a2   : > { %8934 = vmatmul.mubr.msk.f32.gmra.mrb[30].mxu0 %vm2244_vm13, %v2231_v54  ;;  %vm5144_vm13 = vcmask 917312  }
 0x2ce   : > { %v2734_v58 = vpop.permute.xlu1 %2733 }
 0x2cf   : > { %2829 = vst.msk [vmem:[#allocation5 + $0x10] sm:$0xff] %vm2827_vm0, %v2734_v58 }
 0x2d2   : > { %v2732_v61 = vpop.permute.xlu0 %2731 }
 0x2d3   : > { %2828 = vst.msk [vmem:[#allocation5] sm:$0xff] %vm2827_vm0, %v2732_v61 }
 0x339   : > { %v8890_v60 = vpop.f32.mrb[0].mxu0 }
 0x33a   : > { %v2417_v1 = vadd.f32 %v8890_v60, %v10506_v53  ;;  %v2411_v62 = vpop.f32.mrb[1].mxu0 }
 0x33b   : > { %v2412_v3 = vadd.f32 %v10506_v53, %v2411_v62 }
 0x33c   : > { %2572 = vst.msk [vmem:[#allocation3 + $0x21] sm:$0xff] %vm372_vm11, %v2417_v1 }
 0x33d   : > { %2571 = vst.msk [vmem:[#allocation3 + $0x19] sm:$0xff] %vm372_vm11, %v2412_v3  ;;  %v8893_v2 = vpop.f32.mrb[2].mxu0 }
 0x33e   : > { %v2427_v5 = vadd.f32 %v8893_v2, %v10506_v53  ;;  %v2421_v4 = vpop.f32.mrb[3].mxu0 }
 0x33f   : > { %v2422_v7 = vadd.f32 %v10506_v53, %v2421_v4 }
 0x340   : > { %2574 = vst.msk [vmem:[#allocation3 + $0x39] sm:$0xff] %vm372_vm11, %v2427_v5 }
 0x341   : > { %2573 = vst.msk [vmem:[#allocation3 + $0x31] sm:$0xff] %vm372_vm11, %v2422_v7  ;;  %v8896_v6 = vpop.f32.mrb[4].mxu0 }
 0x342   : > { %v2437_v9 = vadd.f32 %v8896_v6, %v10506_v53  ;;  %v2431_v8 = vpop.f32.mrb[5].mxu0 }
 0x343   : > { %v2432_v12 = vadd.f32 %v10506_v53, %v2431_v8  ;;  %v10518_v10 = vld [vmem:[#allocation3 + $0x21] sm:$0xff] }
 0x344   : > { %2576 = vst.msk [vmem:[#allocation3 + $0x51] sm:$0xff] %vm372_vm11, %v2437_v9  ;;  %2737 = vrot.lane.b32.xlu1 %v10518_v10, %s9092_s13  ;;  %v10523_v16 = vld [vmem:[#allocation3 + $0x19] sm:$0xff] }
 0x345   : > { %v10525_v13 = vld [vmem:[#allocation3 + $0x20] sm:$0xff]  ;;  %2575 = vst.msk [vmem:[#allocation3 + $0x49] sm:$0xff] %vm372_vm11, %v2432_v12  ;;  %2735 = vrot.lane.b32.xlu0 %v10523_v16, %s9092_s13  ;;  %v8899_v20 = vpop.f32.mrb[6].mxu0  ;;  %v10532_v17 = vld [vmem:[#allocation3 + $0x18] sm:$0xff] }
 0x346   : > { %2638 = vst.msk [vmem:[#allocation5 + $0x30] sm:$0xff] %vm372_vm11, %v10525_v13  ;;  %v2447_v41 = vadd.f32 %v8899_v20, %v10506_v53  ;;  %v2441_v24 = vpop.f32.mrb[7].mxu0  ;;  %2637 = vst.msk [vmem:[#allocation5 + $0x20] sm:$0xff] %vm372_vm11, %v10532_v17 }
 0x347   : > { %v2442_v21 = vadd.f32 %v10506_v53, %v2441_v24  ;;  %v10538_v42 = vld [vmem:[#allocation3 + $0x39] sm:$0xff] }
 0x348   : > { %2578 = vst.msk [vmem:[#allocation3 + $0x69] sm:$0xff] %vm372_vm11, %v2447_v41  ;;  %2741 = vrot.lane.b32.xlu1 %v10538_v42, %s9092_s13  ;;  %v10543_v0 = vld [vmem:[#allocation3 + $0x31] sm:$0xff] }
 0x349   : > { %v10545_v43 = vld [vmem:[#allocation3 + $0x38] sm:$0xff]  ;;  %2577 = vst.msk [vmem:[#allocation3 + $0x61] sm:$0xff] %vm372_vm11, %v2442_v21  ;;  %v8902_v28 = vpop.f32.mrb[8].mxu0  ;;  %2739 = vrot.lane.b32.xlu0 %v10543_v0, %s9092_s13  ;;  %v10552_v44 = vld [vmem:[#allocation3 + $0x30] sm:$0xff] }
 0x34a   : > { %2640 = vst.msk [vmem:[#allocation5 + $0x50] sm:$0xff] %vm372_vm11, %v10545_v43  ;;  %v2457_v47 = vadd.f32 %v8902_v28, %v10506_v53  ;;  %v2451_v29 = vpop.f32.mrb[9].mxu0  ;;  %2639 = vst.msk [vmem:[#allocation5 + $0x40] sm:$0xff] %vm372_vm11, %v10552_v44 }
 0x34b   : > { %v2452_v50 = vadd.f32 %v10506_v53, %v2451_v29  ;;  %v10558_v34 = vld [vmem:[#allocation3 + $0x51] sm:$0xff] }
 0x34c   : > { %2580 = vst.msk [vmem:[#allocation3 + $0x81] sm:$0xff] %vm372_vm11, %v2457_v47  ;;  %2745 = vrot.lane.b32.xlu1 %v10558_v34, %s9092_s13  ;;  %v10563_v26 = vld [vmem:[#allocation3 + $0x49] sm:$0xff] }
 0x34d   : > { %v10565_v31 = vld [vmem:[#allocation3 + $0x50] sm:$0xff]  ;;  %2579 = vst.msk [vmem:[#allocation3 + $0x79] sm:$0xff] %vm372_vm11, %v2452_v50  ;;  %v8905_v56 = vpop.f32.mrb[10].mxu0  ;;  %2743 = vrot.lane.b32.xlu0 %v10563_v26, %s9092_s13  ;;  %v10572_v63 = vld [vmem:[#allocation3 + $0x48] sm:$0xff] }
 0x34e   : > { %2642 = vst.msk [vmem:[#allocation5 + $0x70] sm:$0xff] %vm372_vm11, %v10565_v31  ;;  %v2467_v11 = vadd.f32 %v8905_v56, %v10506_v53  ;;  %v2461_v14 = vpop.f32.mrb[11].mxu0  ;;  %2641 = vst.msk [vmem:[#allocation5 + $0x60] sm:$0xff] %vm372_vm11, %v10572_v63 }
 0x34f   : > { %v2462_v15 = vadd.f32 %v10506_v53, %v2461_v14  ;;  %v10578_v27 = vld [vmem:[#allocation3 + $0x69] sm:$0xff] }
 0x350   : > { %2582 = vst.msk [vmem:[#allocation3 + $0x99] sm:$0xff] %vm372_vm11, %v2467_v11  ;;  %2749 = vrot.lane.b32.xlu1 %v10578_v27, %s9092_s13  ;;  %v10583_v18 = vld [vmem:[#allocation3 + $0x61] sm:$0xff] }
 0x351   : > { %v10585_v19 = vld [vmem:[#allocation3 + $0x68] sm:$0xff]  ;;  %2581 = vst.msk [vmem:[#allocation3 + $0x91] sm:$0xff] %vm372_vm11, %v2462_v15  ;;  %v8908_v22 = vpop.f32.mrb[12].mxu0  ;;  %2747 = vrot.lane.b32.xlu0 %v10583_v18, %s9092_s13  ;;  %v10592_v35 = vld [vmem:[#allocation3 + $0x60] sm:$0xff] }
 0x352   : > { %2644 = vst.msk [vmem:[#allocation5 + $0x90] sm:$0xff] %vm372_vm11, %v10585_v19  ;;  %v2477_v23 = vadd.f32 %v8908_v22, %v10506_v53  ;;  %v2471_v49 = vpop.f32.mrb[13].mxu0  ;;  %2643 = vst.msk [vmem:[#allocation5 + $0x80] sm:$0xff] %vm372_vm11, %v10592_v35 }
 0x353   : > { %v2472_v48 = vadd.f32 %v10506_v53, %v2471_v49  ;;  %v10598_v33 = vld [vmem:[#allocation3 + $0x81] sm:$0xff] }
 0x354   : > { %2584 = vst.msk [vmem:[#allocation3 + $0xb1] sm:$0xff] %vm372_vm11, %v2477_v23  ;;  %2753 = vrot.lane.b32.xlu1 %v10598_v33, %s9092_s13  ;;  %v10603_v25 = vld [vmem:[#allocation3 + $0x79] sm:$0xff] }
 0x355   : > { %v10605_v46 = vld [vmem:[#allocation3 + $0x80] sm:$0xff]  ;;  %2583 = vst.msk [vmem:[#allocation3 + $0xa9] sm:$0xff] %vm372_vm11, %v2472_v48  ;;  %v8911_v36 = vpop.f32.mrb[14].mxu0  ;;  %2751 = vrot.lane.b32.xlu0 %v10603_v25, %s9092_s13  ;;  %v10612_v30 = vld [vmem:[#allocation3 + $0x78] sm:$0xff] }
 0x356   : > { %2646 = vst.msk [vmem:[#allocation5 + $0xb0] sm:$0xff] %vm372_vm11, %v10605_v46  ;;  %v2487_v37 = vadd.f32 %v8911_v36, %v10506_v53  ;;  %v2481_v32 = vpop.f32.mrb[15].mxu0  ;;  %2645 = vst.msk [vmem:[#allocation5 + $0xa0] sm:$0xff] %vm372_vm11, %v10612_v30 }
 0x357   : > { %v2482_v45 = vadd.f32 %v10506_v53, %v2481_v32  ;;  %v10618_v39 = vld [vmem:[#allocation3 + $0x99] sm:$0xff] }
 0x358   : > { %2586 = vst.msk [vmem:[#allocation3 + $0xc9] sm:$0xff] %vm372_vm11, %v2487_v37  ;;  %2757 = vrot.lane.b32.xlu1 %v10618_v39, %s9092_s13  ;;  %v10623_v38 = vld [vmem:[#allocation3 + $0x91] sm:$0xff] }
 0x359   : > { %v10625_v51 = vld [vmem:[#allocation3 + $0x98] sm:$0xff]  ;;  %2585 = vst.msk [vmem:[#allocation3 + $0xc1] sm:$0xff] %vm372_vm11, %v2482_v45  ;;  %v8914_v40 = vpop.f32.mrb[16].mxu0  ;;  %2755 = vrot.lane.b32.xlu0 %v10623_v38, %s9092_s13  ;;  %v10632_v54 = vld [vmem:[#allocation3 + $0x90] sm:$0xff] }
 0x35a   : > { %2648 = vst.msk [vmem:[#allocation5 + $0xd0] sm:$0xff] %vm372_vm11, %v10625_v51  ;;  %v2497_v52 = vadd.f32 %v8914_v40, %v10506_v53  ;;  %v2491_v57 = vpop.f32.mrb[17].mxu0  ;;  %2647 = vst.msk [vmem:[#allocation5 + $0xc0] sm:$0xff] %vm372_vm11, %v10632_v54 }
 0x35b   : > { %v2492_v55 = vadd.f32 %v10506_v53, %v2491_v57  ;;  %v10638_v59 = vld [vmem:[#allocation3 + $0xb1] sm:$0xff] }
 0x35c   : > { %2588 = vst.msk [vmem:[#allocation3 + $0xe1] sm:$0xff] %vm372_vm11, %v2497_v52  ;;  %2761 = vrot.lane.b32.xlu1 %v10638_v59, %s9092_s13  ;;  %v10643_v58 = vld [vmem:[#allocation3 + $0xa9] sm:$0xff] }
 0x35d   : > { %v10645_v61 = vld [vmem:[#allocation3 + $0xb0] sm:$0xff]  ;;  %2587 = vst.msk [vmem:[#allocation3 + $0xd9] sm:$0xff] %vm372_vm11, %v2492_v55  ;;  %v8917_v60 = vpop.f32.mrb[18].mxu0  ;;  %2759 = vrot.lane.b32.xlu0 %v10643_v58, %s9092_s13  ;;  %v10652_v1 = vld [vmem:[#allocation3 + $0xa8] sm:$0xff] }
 0x35e   : > { %2650 = vst.msk [vmem:[#allocation5 + $0xf0] sm:$0xff] %vm372_vm11, %v10645_v61  ;;  %v2507_v62 = vadd.f32 %v8917_v60, %v10506_v53  ;;  %v2501_v3 = vpop.f32.mrb[19].mxu0  ;;  %2649 = vst.msk [vmem:[#allocation5 + $0xe0] sm:$0xff] %vm372_vm11, %v10652_v1 }
 0x35f   : > { %v2502_v2 = vadd.f32 %v10506_v53, %v2501_v3  ;;  %v10658_v5 = vld [vmem:[#allocation3 + $0xc9] sm:$0xff] }
 0x360   : > { %2590 = vst.msk [vmem:[#allocation3 + $0xf9] sm:$0xff] %vm372_vm11, %v2507_v62  ;;  %2765 = vrot.lane.b32.xlu1 %v10658_v5, %s9092_s13  ;;  %v10663_v4 = vld [vmem:[#allocation3 + $0xc1] sm:$0xff] }
 0x361   : > { %v10665_v7 = vld [vmem:[#allocation3 + $0xc8] sm:$0xff]  ;;  %2589 = vst.msk [vmem:[#allocation3 + $0xf1] sm:$0xff] %vm372_vm11, %v2502_v2  ;;  %v8920_v6 = vpop.f32.mrb[20].mxu0  ;;  %2763 = vrot.lane.b32.xlu0 %v10663_v4, %s9092_s13  ;;  %v10672_v9 = vld [vmem:[#allocation3 + $0xc0] sm:$0xff] }
 0x362   : > { %2652 = vst.msk [vmem:[#allocation5 + $0x110] sm:$0xff] %vm372_vm11, %v10665_v7  ;;  %v2517_v8 = vadd.f32 %v8920_v6, %v10506_v53  ;;  %v2511_v12 = vpop.f32.mrb[21].mxu0  ;;  %2651 = vst.msk [vmem:[#allocation5 + $0x100] sm:$0xff] %vm372_vm11, %v10672_v9 }
 0x363   : > { %v2512_v20 = vadd.f32 %v10506_v53, %v2511_v12  ;;  %v10678_v41 = vld [vmem:[#allocation3 + $0xe1] sm:$0xff] }
 0x364   : > { %2592 = vst.msk [vmem:[#allocation3 + $0x111] sm:$0xff] %vm372_vm11, %v2517_v8  ;;  %2769 = vrot.lane.b32.xlu1 %v10678_v41, %s9092_s13  ;;  %v10683_v24 = vld [vmem:[#allocation3 + $0xd9] sm:$0xff] }
 0x365   : > { %v10685_v21 = vld [vmem:[#allocation3 + $0xe0] sm:$0xff]  ;;  %2591 = vst.msk [vmem:[#allocation3 + $0x109] sm:$0xff] %vm372_vm11, %v2512_v20  ;;  %v8923_v28 = vpop.f32.mrb[22].mxu0  ;;  %2767 = vrot.lane.b32.xlu0 %v10683_v24, %s9092_s13  ;;  %v10692_v47 = vld [vmem:[#allocation3 + $0xd8] sm:$0xff] }
 0x366   : > { %2654 = vst.msk [vmem:[#allocation5 + $0x130] sm:$0xff] %vm372_vm11, %v10685_v21  ;;  %v2527_v29 = vadd.f32 %v8923_v28, %v10506_v53  ;;  %v2521_v50 = vpop.f32.mrb[23].mxu0  ;;  %2653 = vst.msk [vmem:[#allocation5 + $0x120] sm:$0xff] %vm372_vm11, %v10692_v47 }
 0x367   : > { %v2522_v56 = vadd.f32 %v10506_v53, %v2521_v50  ;;  %v10698_v11 = vld [vmem:[#allocation3 + $0xf9] sm:$0xff] }
 0x368   : > { %2594 = vst.msk [vmem:[#allocation3 + $0x129] sm:$0xff] %vm372_vm11, %v2527_v29  ;;  %2773 = vrot.lane.b32.xlu1 %v10698_v11, %s9092_s13  ;;  %v10703_v14 = vld [vmem:[#allocation3 + $0xf1] sm:$0xff] }
 0x369   : > { %v10705_v15 = vld [vmem:[#allocation3 + $0xf8] sm:$0xff]  ;;  %2593 = vst.msk [vmem:[#allocation3 + $0x121] sm:$0xff] %vm372_vm11, %v2522_v56  ;;  %v8926_v22 = vpop.f32.mrb[24].mxu0  ;;  %2771 = vrot.lane.b32.xlu0 %v10703_v14, %s9092_s13  ;;  %v10712_v23 = vld [vmem:[#allocation3 + $0xf0] sm:$0xff] }
 0x36a   : > { %2656 = vst.msk [vmem:[#allocation5 + $0x150] sm:$0xff] %vm372_vm11, %v10705_v15  ;;  %v2537_v49 = vadd.f32 %v8926_v22, %v10506_v53  ;;  %v2531_v48 = vpop.f32.mrb[25].mxu0  ;;  %2655 = vst.msk [vmem:[#allocation5 + $0x140] sm:$0xff] %vm372_vm11, %v10712_v23 }
 0x36b   : > { %v2532_v36 = vadd.f32 %v10506_v53, %v2531_v48  ;;  %v10718_v37 = vld [vmem:[#allocation3 + $0x111] sm:$0xff] }
 0x36c   : > { %2596 = vst.msk [vmem:[#allocation3 + $0x141] sm:$0xff] %vm372_vm11, %v2537_v49  ;;  %2777 = vrot.lane.b32.xlu1 %v10718_v37, %s9092_s13  ;;  %v10723_v32 = vld [vmem:[#allocation3 + $0x109] sm:$0xff] }
 0x36d   : > { %v10725_v45 = vld [vmem:[#allocation3 + $0x110] sm:$0xff]  ;;  %2595 = vst.msk [vmem:[#allocation3 + $0x139] sm:$0xff] %vm372_vm11, %v2532_v36  ;;  %v8929_v40 = vpop.f32.mrb[26].mxu0  ;;  %2775 = vrot.lane.b32.xlu0 %v10723_v32, %s9092_s13  ;;  %v10732_v52 = vld [vmem:[#allocation3 + $0x108] sm:$0xff] }
 0x36e   : > { %2658 = vst.msk [vmem:[#allocation5 + $0x170] sm:$0xff] %vm372_vm11, %v10725_v45  ;;  %v2547_v57 = vadd.f32 %v8929_v40, %v10506_v53  ;;  %v2541_v55 = vpop.f32.mrb[27].mxu0  ;;  %2657 = vst.msk [vmem:[#allocation5 + $0x160] sm:$0xff] %vm372_vm11, %v10732_v52 }
 0x36f   : > { %v2542_v60 = vadd.f32 %v10506_v53, %v2541_v55  ;;  %v10738_v62 = vld [vmem:[#allocation3 + $0x129] sm:$0xff] }
 0x370   : > { %2598 = vst.msk [vmem:[#allocation3 + $0x159] sm:$0xff] %vm372_vm11, %v2547_v57  ;;  %2781 = vrot.lane.b32.xlu1 %v10738_v62, %s9092_s13  ;;  %v10743_v3 = vld [vmem:[#allocation3 + $0x121] sm:$0xff] }
 0x371   : > { %v10745_v2 = vld [vmem:[#allocation3 + $0x128] sm:$0xff]  ;;  %2597 = vst.msk [vmem:[#allocation3 + $0x151] sm:$0xff] %vm372_vm11, %v2542_v60  ;;  %v8932_v6 = vpop.f32.mrb[28].mxu0  ;;  %2779 = vrot.lane.b32.xlu0 %v10743_v3, %s9092_s13  ;;  %v10752_v8 = vld [vmem:[#allocation3 + $0x120] sm:$0xff] }
 0x372   : > { %2660 = vst.msk [vmem:[#allocation5 + $0x190] sm:$0xff] %vm372_vm11, %v10745_v2  ;;  %v2557_v12 = vadd.f32 %v8932_v6, %v10506_v53  ;;  %v2551_v20 = vpop.f32.mrb[29].mxu0  ;;  %2659 = vst.msk [vmem:[#allocation5 + $0x180] sm:$0xff] %vm372_vm11, %v10752_v8 }
 0x373   : > { %v2552_v28 = vadd.f32 %v10506_v53, %v2551_v20  ;;  %v10758_v29 = vld [vmem:[#allocation3 + $0x141] sm:$0xff] }
 0x374   : > { %2600 = vst.msk [vmem:[#allocation3 + $0x171] sm:$0xff] %vm372_vm11, %v2557_v12  ;;  %2785 = vrot.lane.b32.xlu1 %v10758_v29, %s9092_s13  ;;  %v10763_v50 = vld [vmem:[#allocation3 + $0x139] sm:$0xff] }
 0x375   : > { %v10765_v56 = vld [vmem:[#allocation3 + $0x140] sm:$0xff]  ;;  %2599 = vst.msk [vmem:[#allocation3 + $0x169] sm:$0xff] %vm372_vm11, %v2552_v28  ;;  %2783 = vrot.lane.b32.xlu0 %v10763_v50, %s9092_s13  ;;  %v10772_v22 = vld [vmem:[#allocation3 + $0x138] sm:$0xff]  ;;  %v8935_v49 = vpop.f32.mrb[30].mxu0  ;;  %v2861_v28 = vld [vmem:[#allocation3 + $0xa] sm:$0xff] }
 0x376   : > { %2662 = vst.msk [vmem:[#allocation5 + $0x1b0] sm:$0xff] %vm372_vm11, %v10765_v56  ;;  %2661 = vst.msk [vmem:[#allocation5 + $0x1a0] sm:$0xff] %vm372_vm11, %v10772_v22  ;;  %v2567_v48 = vadd.f32 %v8935_v49, %v10506_v53  ;;  %v2561_v36 = vpop.f32.mrb[31].mxu0 }
 0x377   : > { %v10777_v40 = vld [vmem:[#allocation3 + $0x159] sm:$0xff]  ;;  %v2562_v57 = vadd.f32 %v10506_v53, %v2561_v36  ;;  %v10814_v36 = vld [vmem:[#allocation3 + $0x22] sm:$0xff] }
 0x378   : > { %2789 = vrot.lane.b32.xlu1 %v10777_v40, %s9092_s13  ;;  %v10782_v55 = vld [vmem:[#allocation3 + $0x151] sm:$0xff]  ;;  %2602 = vst.msk [vmem:[#allocation3 + $0x189] sm:$0xff] %vm372_vm11, %v2567_v48  ;;  %v2860_v48 = vld [vmem:[#allocation3 + $0x2] sm:$0xff]  ;;  %14083 = vst [vmem:[#allocation9_spill] sm:$0xff] %v10814_v36 }
 0x379   : > { %14080 = vst [vmem:[#allocation6_spill] sm:$0xff] %v10782_v55  ;;  %v10784_v60 = vld [vmem:[#allocation3 + $0x158] sm:$0xff]  ;;  %2787 = vrot.lane.b32.xlu0 %v10782_v55, %s9092_s13  ;;  %v10791_v6 = vld [vmem:[#allocation3 + $0x150] sm:$0xff]  ;;  %2601 = vst.msk [vmem:[#allocation3 + $0x181] sm:$0xff] %vm372_vm11, %v2562_v57 }
 0x37a   : > { %2664 = vst.msk [vmem:[#allocation5 + $0x1d0] sm:$0xff] %vm372_vm11, %v10784_v60  ;;  %2663 = vst.msk [vmem:[#allocation5 + $0x1c0] sm:$0xff] %vm372_vm11, %v10791_v6  ;;  %v10818_v57 = vld [vmem:[#allocation3 + $0x1a] sm:$0xff] }
 0x37b   : > { %v10796_v53 = vld [vmem:[#allocation3 + $0x171] sm:$0xff]  ;;  %14084 = vst [vmem:[#allocation10_spill] sm:$0xff] %v10818_v57 }
 0x37c   : > { %14081 = vst [vmem:[#allocation7_spill] sm:$0xff] %v10796_v53  ;;  %2793 = vrot.lane.b32.xlu1 %v10796_v53, %s9092_s13  ;;  %v10800_v12 = vld [vmem:[#allocation3 + $0x169] sm:$0xff]  ;;  %v10826_v53 = vld [vmem:[#allocation3 + $0x32] sm:$0xff] }
 0x37d   : > { %14082 = vst [vmem:[#allocation8_spill] sm:$0xff] %v10800_v12  ;;  %v10802_v20 = vld [vmem:[#allocation3 + $0x170] sm:$0xff]  ;;  %2791 = vrot.lane.b32.xlu0 %v10800_v12, %s9092_s13  ;;  %v10808_v49 = vld [vmem:[#allocation3 + $0x168] sm:$0xff]  ;;  %v10822_v12 = vld [vmem:[#allocation3 + $0x3a] sm:$0xff] }
 0x37e   : > { %2666 = vst.msk [vmem:[#allocation5 + $0x1f0] sm:$0xff] %vm372_vm11, %v10802_v20  ;;  %2665 = vst.msk [vmem:[#allocation5 + $0x1e0] sm:$0xff] %vm372_vm11, %v10808_v49  ;;  %v10929_v55 = vld [vmem:[#allocation3 + $0x172] sm:$0xff] }
 0x37f   : > { %14085 = vst [vmem:[#allocation11_spill] sm:$0xff] %v10822_v12  ;;  %14086 = vst [vmem:[#allocation12_spill] sm:$0xff] %v10826_v53 }
 0x380   : > { %2926 = vrot.lane.b32.xlu1 %v2861_v28, %s9094_s15  ;;  %v10830_v28 = vld [vmem:[#allocation3 + $0x52] sm:$0xff] }
 0x381   : > { %2924 = vrot.lane.b32.xlu0 %v2860_v48, %s9094_s15  ;;  %14087 = vst [vmem:[#allocation13_spill] sm:$0xff] %v10830_v28  ;;  %v10834_v48 = vld [vmem:[#allocation3 + $0x4a] sm:$0xff] }
 0x382   : > { %14088 = vst [vmem:[#allocation14_spill] sm:$0xff] %v10834_v48 }
 0x384   : > { %2930 = vrot.lane.b32.xlu1 %v10814_v36, %s9094_s15 }
 0x385   : > { %2928 = vrot.lane.b32.xlu0 %v10818_v57, %s9094_s15  ;;  %v10838_v57 = vld [vmem:[#allocation3 + $0x6a] sm:$0xff] }
 0x386   : > { %14089 = vst [vmem:[#allocation15_spill] sm:$0xff] %v10838_v57 }
 0x388   : > { %2934 = vrot.lane.b32.xlu1 %v10822_v12, %s9094_s15  ;;  %v10842_v12 = vld [vmem:[#allocation3 + $0x62] sm:$0xff] }
 0x389   : > { %2932 = vrot.lane.b32.xlu0 %v10826_v53, %s9094_s15  ;;  %14090 = vst [vmem:[#allocation16_spill] sm:$0xff] %v10842_v12  ;;  %v10846_v53 = vld [vmem:[#allocation3 + $0x82] sm:$0xff] }
 0x38a   : > { %14091 = vst [vmem:[#allocation17_spill] sm:$0xff] %v10846_v53 }
 0x38c   : > { %2938 = vrot.lane.b32.xlu1 %v10830_v28, %s9094_s15  ;;  %v10850_v28 = vld [vmem:[#allocation3 + $0x7a] sm:$0xff] }
 0x38d   : > { %2936 = vrot.lane.b32.xlu0 %v10834_v48, %s9094_s15  ;;  %14092 = vst [vmem:[#allocation18_spill] sm:$0xff] %v10850_v28  ;;  %v10854_v48 = vld [vmem:[#allocation3 + $0x9a] sm:$0xff] }
 0x38e   : > { %14093 = vst [vmem:[#allocation19_spill] sm:$0xff] %v10854_v48 }
 0x390   : > { %2942 = vrot.lane.b32.xlu1 %v10838_v57, %s9094_s15  ;;  %v10858_v57 = vld [vmem:[#allocation3 + $0x92] sm:$0xff] }
 0x391   : > { %2940 = vrot.lane.b32.xlu0 %v10842_v12, %s9094_s15  ;;  %14094 = vst [vmem:[#allocation20_spill] sm:$0xff] %v10858_v57  ;;  %v10862_v12 = vld [vmem:[#allocation3 + $0xb2] sm:$0xff] }
 0x392   : > { %14095 = vst [vmem:[#allocation21_spill] sm:$0xff] %v10862_v12 }
 0x394   : > { %2946 = vrot.lane.b32.xlu1 %v10846_v53, %s9094_s15  ;;  %v10866_v53 = vld [vmem:[#allocation3 + $0xaa] sm:$0xff] }
 0x395   : > { %2944 = vrot.lane.b32.xlu0 %v10850_v28, %s9094_s15  ;;  %14096 = vst [vmem:[#allocation22_spill] sm:$0xff] %v10866_v53  ;;  %v10870_v28 = vld [vmem:[#allocation3 + $0xca] sm:$0xff] }
 0x396   : > { %14097 = vst [vmem:[#allocation23_spill] sm:$0xff] %v10870_v28 }
 0x398   : > { %2950 = vrot.lane.b32.xlu1 %v10854_v48, %s9094_s15  ;;  %v10874_v48 = vld [vmem:[#allocation3 + $0xc2] sm:$0xff] }
 0x399   : > { %2948 = vrot.lane.b32.xlu0 %v10858_v57, %s9094_s15  ;;  %14098 = vst [vmem:[#allocation24_spill] sm:$0xff] %v10874_v48  ;;  %v10878_v57 = vld [vmem:[#allocation3 + $0xe2] sm:$0xff] }
 0x39a   : > { %14099 = vst [vmem:[#allocation25_spill] sm:$0xff] %v10878_v57 }
 0x39c   : > { %2954 = vrot.lane.b32.xlu1 %v10862_v12, %s9094_s15  ;;  %v10882_v12 = vld [vmem:[#allocation3 + $0xda] sm:$0xff] }
 0x39d   : > { %2952 = vrot.lane.b32.xlu0 %v10866_v53, %s9094_s15  ;;  %14100 = vst [vmem:[#allocation26_spill] sm:$0xff] %v10882_v12  ;;  %v10886_v53 = vld [vmem:[#allocation3 + $0xfa] sm:$0xff] }
 0x39e   : > { %14101 = vst [vmem:[#allocation27_spill] sm:$0xff] %v10886_v53 }
 0x3a0   : > { %2958 = vrot.lane.b32.xlu1 %v10870_v28, %s9094_s15  ;;  %v10890_v28 = vld [vmem:[#allocation3 + $0xf2] sm:$0xff] }
 0x3a1   : > { %2956 = vrot.lane.b32.xlu0 %v10874_v48, %s9094_s15  ;;  %14102 = vst [vmem:[#allocation28_spill] sm:$0xff] %v10890_v28  ;;  %v10894_v48 = vld [vmem:[#allocation3 + $0x112] sm:$0xff] }
 0x3a2   : > { %14103 = vst [vmem:[#allocation29_spill] sm:$0xff] %v10894_v48 }
 0x3a4   : > { %2962 = vrot.lane.b32.xlu1 %v10878_v57, %s9094_s15  ;;  %v10898_v57 = vld [vmem:[#allocation3 + $0x10a] sm:$0xff] }
 0x3a5   : > { %2960 = vrot.lane.b32.xlu0 %v10882_v12, %s9094_s15  ;;  %14104 = vst [vmem:[#allocation30_spill] sm:$0xff] %v10898_v57  ;;  %v10902_v12 = vld [vmem:[#allocation3 + $0x12a] sm:$0xff] }
 0x3a6   : > { %14105 = vst [vmem:[#allocation31_spill] sm:$0xff] %v10902_v12 }
 0x3a8   : > { %2966 = vrot.lane.b32.xlu1 %v10886_v53, %s9094_s15  ;;  %v10906_v53 = vld [vmem:[#allocation3 + $0x122] sm:$0xff] }
 0x3a9   : > { %2964 = vrot.lane.b32.xlu0 %v10890_v28, %s9094_s15  ;;  %14106 = vst [vmem:[#allocation32_spill] sm:$0xff] %v10906_v53  ;;  %v10910_v28 = vld [vmem:[#allocation3 + $0x142] sm:$0xff] }
 0x3aa   : > { %14107 = vst [vmem:[#allocation33_spill] sm:$0xff] %v10910_v28 }
 0x3ac   : > { %2970 = vrot.lane.b32.xlu1 %v10894_v48, %s9094_s15  ;;  %v10914_v48 = vld [vmem:[#allocation3 + $0x13a] sm:$0xff] }
 0x3ad   : > { %2968 = vrot.lane.b32.xlu0 %v10898_v57, %s9094_s15  ;;  %14108 = vst [vmem:[#allocation34_spill] sm:$0xff] %v10914_v48 }
 0x3b0   : > { %2974 = vrot.lane.b32.xlu1 %v10902_v12, %s9094_s15  ;;  %v10919_v12 = vld [vmem:[#allocation3 + $0x15a] sm:$0xff] }
 0x3b1   : > { %2972 = vrot.lane.b32.xlu0 %v10906_v53, %s9094_s15  ;;  %v10924_v53 = vld [vmem:[#allocation3 + $0x152] sm:$0xff] }
 0x3b2   : > { %14109 = vst [vmem:[#allocation35_spill] sm:$0xff] %v10924_v53 }
 0x3b4   : > { %2978 = vrot.lane.b32.xlu1 %v10910_v28, %s9094_s15 }
 0x3b5   : > { %2976 = vrot.lane.b32.xlu0 %v10914_v48, %s9094_s15 }
 0x3b6   : > { %v2738_v57 = vpop.permute.xlu1 %2737 }
 0x3b7   : > { %2831 = vst.msk [vmem:[#allocation5 + $0x30] sm:$0xff] %vm2827_vm0, %v2738_v57  ;;  %v2736_v36 = vpop.permute.xlu0 %2735 }
 0x3b8   : > { %2830 = vst.msk [vmem:[#allocation5 + $0x20] sm:$0xff] %vm2827_vm0, %v2736_v36  ;;  %2982 = vrot.lane.b32.xlu1 %v10919_v12, %s9094_s15  ;;  %v10934_v36 = vld [vmem:[#allocation3 + $0x16a] sm:$0xff] }
 0x3b9   : > { %2980 = vrot.lane.b32.xlu0 %v10924_v53, %s9094_s15 }
 0x3ba   : > { %v2742_v28 = vpop.permute.xlu1 %2741 }
 0x3bb   : > { %2833 = vst.msk [vmem:[#allocation5 + $0x50] sm:$0xff] %vm2827_vm0, %v2742_v28  ;;  %v2740_v48 = vpop.permute.xlu0 %2739 }
 0x3bc   : > { %2832 = vst.msk [vmem:[#allocation5 + $0x40] sm:$0xff] %vm2827_vm0, %v2740_v48  ;;  %2986 = vrot.lane.b32.xlu1 %v10929_v55, %s9094_s15 }
 0x3bd   : > { %2984 = vrot.lane.b32.xlu0 %v10934_v36, %s9094_s15 }
 0x3be   : > { %v2746_v57 = vpop.permute.xlu1 %2745 }
 0x3bf   : > { %2835 = vst.msk [vmem:[#allocation5 + $0x70] sm:$0xff] %vm2827_vm0, %v2746_v57  ;;  %v2744_v53 = vpop.permute.xlu0 %2743 }
 0x3c0   : > { %2834 = vst.msk [vmem:[#allocation5 + $0x60] sm:$0xff] %vm2827_vm0, %v2744_v53  ;;  %3119 = vrot.lane.b32.xlu1 %v10525_v13, %s9096_s17 }
 0x3c1   : > { %3117 = vrot.lane.b32.xlu0 %v10532_v17, %s9096_s17 }
 0x3c2   : > { %v2750_v28 = vpop.permute.xlu1 %2749 }
 0x3c3   : > { %2837 = vst.msk [vmem:[#allocation5 + $0x90] sm:$0xff] %vm2827_vm0, %v2750_v28  ;;  %v2748_v48 = vpop.permute.xlu0 %2747 }
 0x3c4   : > { %2836 = vst.msk [vmem:[#allocation5 + $0x80] sm:$0xff] %vm2827_vm0, %v2748_v48  ;;  %3123 = vrot.lane.b32.xlu1 %v10545_v43, %s9096_s17 }
 0x3c5   : > { %3121 = vrot.lane.b32.xlu0 %v10552_v44, %s9096_s17 }
 0x3c6   : > { %v2754_v57 = vpop.permute.xlu1 %2753 }
 0x3c7   : > { %2839 = vst.msk [vmem:[#allocation5 + $0xb0] sm:$0xff] %vm2827_vm0, %v2754_v57  ;;  %v2752_v53 = vpop.permute.xlu0 %2751 }
 0x3c8   : > { %2838 = vst.msk [vmem:[#allocation5 + $0xa0] sm:$0xff] %vm2827_vm0, %v2752_v53  ;;  %3127 = vrot.lane.b32.xlu1 %v10565_v31, %s9096_s17 }
 0x3c9   : > { %3125 = vrot.lane.b32.xlu0 %v10572_v63, %s9096_s17 }
 0x3ca   : > { %v2758_v13 = vpop.permute.xlu1 %2757 }
 0x3cb   : > { %2841 = vst.msk [vmem:[#allocation5 + $0xd0] sm:$0xff] %vm2827_vm0, %v2758_v13  ;;  %v2756_v17 = vpop.permute.xlu0 %2755 }
 0x3cc   : > { %2840 = vst.msk [vmem:[#allocation5 + $0xc0] sm:$0xff] %vm2827_vm0, %v2756_v17  ;;  %3131 = vrot.lane.b32.xlu1 %v10585_v19, %s9096_s17 }
 0x3cd   : > { %3129 = vrot.lane.b32.xlu0 %v10592_v35, %s9096_s17 }
 0x3ce   : > { %v2762_v28 = vpop.permute.xlu1 %2761 }
 0x3cf   : > { %2843 = vst.msk [vmem:[#allocation5 + $0xf0] sm:$0xff] %vm2827_vm0, %v2762_v28  ;;  %v2760_v48 = vpop.permute.xlu0 %2759 }
 0x3d0   : > { %2842 = vst.msk [vmem:[#allocation5 + $0xe0] sm:$0xff] %vm2827_vm0, %v2760_v48  ;;  %3135 = vrot.lane.b32.xlu1 %v10605_v46, %s9096_s17 }
 0x3d1   : > { %3133 = vrot.lane.b32.xlu0 %v10612_v30, %s9096_s17 }
 0x3d2   : > { %v2766_v57 = vpop.permute.xlu1 %2765 }
 0x3d3   : > { %2845 = vst.msk [vmem:[#allocation5 + $0x110] sm:$0xff] %vm2827_vm0, %v2766_v57  ;;  %v2764_v53 = vpop.permute.xlu0 %2763 }
 0x3d4   : > { %2844 = vst.msk [vmem:[#allocation5 + $0x100] sm:$0xff] %vm2827_vm0, %v2764_v53  ;;  %3139 = vrot.lane.b32.xlu1 %v10625_v51, %s9096_s17 }
 0x3d5   : > { %3137 = vrot.lane.b32.xlu0 %v10632_v54, %s9096_s17 }
 0x3d6   : > { %v2770_v13 = vpop.permute.xlu1 %2769 }
 0x3d7   : > { %2847 = vst.msk [vmem:[#allocation5 + $0x130] sm:$0xff] %vm2827_vm0, %v2770_v13  ;;  %v2768_v17 = vpop.permute.xlu0 %2767 }
 0x3d8   : > { %2846 = vst.msk [vmem:[#allocation5 + $0x120] sm:$0xff] %vm2827_vm0, %v2768_v17  ;;  %3143 = vrot.lane.b32.xlu1 %v10645_v61, %s9096_s17 }
 0x3d9   : > { %3141 = vrot.lane.b32.xlu0 %v10652_v1, %s9096_s17 }
 0x3da   : > { %v2774_v28 = vpop.permute.xlu1 %2773 }
 0x3db   : > { %2849 = vst.msk [vmem:[#allocation5 + $0x150] sm:$0xff] %vm2827_vm0, %v2774_v28  ;;  %v2772_v48 = vpop.permute.xlu0 %2771 }
 0x3dc   : > { %2848 = vst.msk [vmem:[#allocation5 + $0x140] sm:$0xff] %vm2827_vm0, %v2772_v48  ;;  %3147 = vrot.lane.b32.xlu1 %v10665_v7, %s9096_s17 }
 0x3dd   : > { %3145 = vrot.lane.b32.xlu0 %v10672_v9, %s9096_s17 }
 0x3de   : > { %v2778_v57 = vpop.permute.xlu1 %2777 }
 0x3df   : > { %2851 = vst.msk [vmem:[#allocation5 + $0x170] sm:$0xff] %vm2827_vm0, %v2778_v57  ;;  %v2776_v53 = vpop.permute.xlu0 %2775 }
 0x3e0   : > { %2850 = vst.msk [vmem:[#allocation5 + $0x160] sm:$0xff] %vm2827_vm0, %v2776_v53  ;;  %3151 = vrot.lane.b32.xlu1 %v10685_v21, %s9096_s17 }
 0x3e1   : > { %3149 = vrot.lane.b32.xlu0 %v10692_v47, %s9096_s17 }
 0x3e2   : > { %v2782_v13 = vpop.permute.xlu1 %2781 }
 0x3e3   : > { %2853 = vst.msk [vmem:[#allocation5 + $0x190] sm:$0xff] %vm2827_vm0, %v2782_v13  ;;  %v2780_v17 = vpop.permute.xlu0 %2779 }
 0x3e4   : > { %2852 = vst.msk [vmem:[#allocation5 + $0x180] sm:$0xff] %vm2827_vm0, %v2780_v17  ;;  %3155 = vrot.lane.b32.xlu1 %v10705_v15, %s9096_s17 }
 0x3e5   : > { %3153 = vrot.lane.b32.xlu0 %v10712_v23, %s9096_s17 }
 0x3e6   : > { %v2786_v28 = vpop.permute.xlu1 %2785 }
 0x3e7   : > { %2855 = vst.msk [vmem:[#allocation5 + $0x1b0] sm:$0xff] %vm2827_vm0, %v2786_v28  ;;  %v2784_v48 = vpop.permute.xlu0 %2783 }
 0x3e8   : > { %2854 = vst.msk [vmem:[#allocation5 + $0x1a0] sm:$0xff] %vm2827_vm0, %v2784_v48  ;;  %3159 = vrot.lane.b32.xlu1 %v10725_v45, %s9096_s17 }
 0x3e9   : > { %3157 = vrot.lane.b32.xlu0 %v10732_v52, %s9096_s17 }
 0x3ea   : > { %v2790_v57 = vpop.permute.xlu1 %2789 }
 0x3eb   : > { %2857 = vst.msk [vmem:[#allocation5 + $0x1d0] sm:$0xff] %vm2827_vm0, %v2790_v57  ;;  %v2788_v53 = vpop.permute.xlu0 %2787 }
 0x3ec   : > { %2856 = vst.msk [vmem:[#allocation5 + $0x1c0] sm:$0xff] %vm2827_vm0, %v2788_v53  ;;  %3163 = vrot.lane.b32.xlu1 %v10745_v2, %s9096_s17 }
 0x3ed   : > { %3161 = vrot.lane.b32.xlu0 %v10752_v8, %s9096_s17 }
 0x3ee   : > { %v2794_v13 = vpop.permute.xlu1 %2793 }
 0x3ef   : > { %2859 = vst.msk [vmem:[#allocation5 + $0x1f0] sm:$0xff] %vm2827_vm0, %v2794_v13  ;;  %v2792_v17 = vpop.permute.xlu0 %2791  ;;  %v11028_v13 = vld [vmem:[#allocation3 + $0x188] sm:$0xff] }
 0x3f0   : > { %2858 = vst.msk [vmem:[#allocation5 + $0x1e0] sm:$0xff] %vm2827_vm0, %v2792_v17  ;;  %3167 = vrot.lane.b32.xlu1 %v10765_v56, %s9096_s17 }
 0x3f1   : > { %3165 = vrot.lane.b32.xlu0 %v10772_v22, %s9096_s17 }
 0x3f2   : > { %v2927_v28 = vpop.permute.xlu1 %2926 }
 0x3f3   : > { %3022 = vst.msk [vmem:[#allocation5 + $0x10] sm:$0xff] %vm3020_vm1, %v2927_v28  ;;  %v2925_v48 = vpop.permute.xlu0 %2924  ;;  %v11030_v28 = vld [vmem:[#allocation3 + $0x180] sm:$0xff] }
 0x3f4   : > { %3021 = vst.msk [vmem:[#allocation5] sm:$0xff] %vm3020_vm1, %v2925_v48  ;;  %3171 = vrot.lane.b32.xlu1 %v10784_v60, %s9096_s17 }
 0x3f5   : > { %3169 = vrot.lane.b32.xlu0 %v10791_v6, %s9096_s17 }
 0x3f6   : > { %v2931_v57 = vpop.permute.xlu1 %2930 }
 0x3f7   : > { %3024 = vst.msk [vmem:[#allocation5 + $0x30] sm:$0xff] %vm3020_vm1, %v2931_v57  ;;  %v2929_v53 = vpop.permute.xlu0 %2928 }
 0x3f8   : > { %3023 = vst.msk [vmem:[#allocation5 + $0x20] sm:$0xff] %vm3020_vm1, %v2929_v53  ;;  %3175 = vrot.lane.b32.xlu1 %v10802_v20, %s9096_s17 }
 0x3f9   : > { %3173 = vrot.lane.b32.xlu0 %v10808_v49, %s9096_s17 }
 0x3fa   : > { %v2935_v17 = vpop.permute.xlu1 %2934 }
 0x3fb   : > { %3026 = vst.msk [vmem:[#allocation5 + $0x50] sm:$0xff] %vm3020_vm1, %v2935_v17  ;;  %v2933_v48 = vpop.permute.xlu0 %2932 }
 0x3fc   : > { %3025 = vst.msk [vmem:[#allocation5 + $0x40] sm:$0xff] %vm3020_vm1, %v2933_v48  ;;  %3179 = vrot.lane.b32.xlu1 %v11028_v13, %s9096_s17 }
 0x3fd   : > { %3177 = vrot.lane.b32.xlu0 %v11030_v28, %s9096_s17 }
 0x3fe   : > { %v2939_v57 = vpop.permute.xlu1 %2938 }
 0x3ff   : > { %3028 = vst.msk [vmem:[#allocation5 + $0x70] sm:$0xff] %vm3020_vm1, %v2939_v57  ;;  %v2937_v53 = vpop.permute.xlu0 %2936 }
 0x400   : > { %3027 = vst.msk [vmem:[#allocation5 + $0x60] sm:$0xff] %vm3020_vm1, %v2937_v53  ;;  %3312 = vrot.lane.b32.xlu1 %v10518_v10, %s9098_s9 }
 0x401   : > { %3310 = vrot.lane.b32.xlu0 %v10523_v16, %s9098_s9 }
 0x402   : > { %v2943_v17 = vpop.permute.xlu1 %2942 }
 0x403   : > { %3030 = vst.msk [vmem:[#allocation5 + $0x90] sm:$0xff] %vm3020_vm1, %v2943_v17  ;;  %v2941_v48 = vpop.permute.xlu0 %2940  ;;  %v14112_v17 = vld [vmem:[#allocation8_spill] sm:$0xff] }
 0x404   : > { %3029 = vst.msk [vmem:[#allocation5 + $0x80] sm:$0xff] %vm3020_vm1, %v2941_v48  ;;  %3316 = vrot.lane.b32.xlu1 %v10538_v42, %s9098_s9 }
 0x405   : > { %3314 = vrot.lane.b32.xlu0 %v10543_v0, %s9098_s9 }
 0x406   : > { %v2947_v57 = vpop.permute.xlu1 %2946 }
 0x407   : > { %3032 = vst.msk [vmem:[#allocation5 + $0xb0] sm:$0xff] %vm3020_vm1, %v2947_v57  ;;  %v2945_v53 = vpop.permute.xlu0 %2944 }
 0x408   : > { %3031 = vst.msk [vmem:[#allocation5 + $0xa0] sm:$0xff] %vm3020_vm1, %v2945_v53  ;;  %3320 = vrot.lane.b32.xlu1 %v10558_v34, %s9098_s9  ;;  %v11134_v53 = vld [vmem:[#allocation3 + $0x181] sm:$0xff] }
 0x409   : > { %3318 = vrot.lane.b32.xlu0 %v10563_v26, %s9098_s9 }
 0x40a   : > { %v2951_v10 = vpop.permute.xlu1 %2950 }
 0x40b   : > { %3034 = vst.msk [vmem:[#allocation5 + $0xd0] sm:$0xff] %vm3020_vm1, %v2951_v10  ;;  %v2949_v16 = vpop.permute.xlu0 %2948 }
 0x40c   : > { %3033 = vst.msk [vmem:[#allocation5 + $0xc0] sm:$0xff] %vm3020_vm1, %v2949_v16  ;;  %3324 = vrot.lane.b32.xlu1 %v10578_v27, %s9098_s9 }
 0x40d   : > { %3322 = vrot.lane.b32.xlu0 %v10583_v18, %s9098_s9 }
 0x40e   : > { %v2955_v42 = vpop.permute.xlu1 %2954 }
 0x40f   : > { %3036 = vst.msk [vmem:[#allocation5 + $0xf0] sm:$0xff] %vm3020_vm1, %v2955_v42  ;;  %v2953_v0 = vpop.permute.xlu0 %2952  ;;  %v14113_v42 = vld [vmem:[#allocation9_spill] sm:$0xff] }
 0x410   : > { %3035 = vst.msk [vmem:[#allocation5 + $0xe0] sm:$0xff] %vm3020_vm1, %v2953_v0  ;;  %3328 = vrot.lane.b32.xlu1 %v10598_v33, %s9098_s9  ;;  %v14114_v0 = vld [vmem:[#allocation10_spill] sm:$0xff] }
 0x411   : > { %3326 = vrot.lane.b32.xlu0 %v10603_v25, %s9098_s9 }
 0x412   : > { %v2959_v34 = vpop.permute.xlu1 %2958 }
 0x413   : > { %3038 = vst.msk [vmem:[#allocation5 + $0x110] sm:$0xff] %vm3020_vm1, %v2959_v34  ;;  %v2957_v26 = vpop.permute.xlu0 %2956 }
 0x414   : > { %3037 = vst.msk [vmem:[#allocation5 + $0x100] sm:$0xff] %vm3020_vm1, %v2957_v26  ;;  %3332 = vrot.lane.b32.xlu1 %v10618_v39, %s9098_s9 }
 0x415   : > { %3330 = vrot.lane.b32.xlu0 %v10623_v38, %s9098_s9 }
 0x416   : > { %v2963_v27 = vpop.permute.xlu1 %2962 }
 0x417   : > { %3040 = vst.msk [vmem:[#allocation5 + $0x130] sm:$0xff] %vm3020_vm1, %v2963_v27  ;;  %v2961_v18 = vpop.permute.xlu0 %2960  ;;  %v14115_v27 = vld [vmem:[#allocation11_spill] sm:$0xff] }
 0x418   : > { %3039 = vst.msk [vmem:[#allocation5 + $0x120] sm:$0xff] %vm3020_vm1, %v2961_v18  ;;  %3336 = vrot.lane.b32.xlu1 %v10638_v59, %s9098_s9  ;;  %v14116_v18 = vld [vmem:[#allocation12_spill] sm:$0xff] }
 0x419   : > { %3334 = vrot.lane.b32.xlu0 %v10643_v58, %s9098_s9 }
 0x41a   : > { %v2967_v33 = vpop.permute.xlu1 %2966 }
 0x41b   : > { %3042 = vst.msk [vmem:[#allocation5 + $0x150] sm:$0xff] %vm3020_vm1, %v2967_v33  ;;  %v2965_v25 = vpop.permute.xlu0 %2964 }
 0x41c   : > { %3041 = vst.msk [vmem:[#allocation5 + $0x140] sm:$0xff] %vm3020_vm1, %v2965_v25  ;;  %3340 = vrot.lane.b32.xlu1 %v10658_v5, %s9098_s9 }
 0x41d   : > { %3338 = vrot.lane.b32.xlu0 %v10663_v4, %s9098_s9 }
 0x41e   : > { %v2971_v39 = vpop.permute.xlu1 %2970 }
 0x41f   : > { %3044 = vst.msk [vmem:[#allocation5 + $0x170] sm:$0xff] %vm3020_vm1, %v2971_v39  ;;  %v2969_v38 = vpop.permute.xlu0 %2968  ;;  %v14117_v39 = vld [vmem:[#allocation13_spill] sm:$0xff] }
 0x420   : > { %3043 = vst.msk [vmem:[#allocation5 + $0x160] sm:$0xff] %vm3020_vm1, %v2969_v38  ;;  %3344 = vrot.lane.b32.xlu1 %v10678_v41, %s9098_s9  ;;  %v14118_v38 = vld [vmem:[#allocation14_spill] sm:$0xff] }
 0x421   : > { %3342 = vrot.lane.b32.xlu0 %v10683_v24, %s9098_s9 }
 0x422   : > { %v2975_v59 = vpop.permute.xlu1 %2974 }
 0x423   : > { %3046 = vst.msk [vmem:[#allocation5 + $0x190] sm:$0xff] %vm3020_vm1, %v2975_v59  ;;  %v2973_v58 = vpop.permute.xlu0 %2972 }
 0x424   : > { %3045 = vst.msk [vmem:[#allocation5 + $0x180] sm:$0xff] %vm3020_vm1, %v2973_v58  ;;  %3348 = vrot.lane.b32.xlu1 %v10698_v11, %s9098_s9 }
 0x425   : > { %3346 = vrot.lane.b32.xlu0 %v10703_v14, %s9098_s9 }
 0x426   : > { %v2979_v5 = vpop.permute.xlu1 %2978 }
 0x427   : > { %3048 = vst.msk [vmem:[#allocation5 + $0x1b0] sm:$0xff] %vm3020_vm1, %v2979_v5  ;;  %v2977_v4 = vpop.permute.xlu0 %2976  ;;  %v14119_v5 = vld [vmem:[#allocation15_spill] sm:$0xff] }
 0x428   : > { %3047 = vst.msk [vmem:[#allocation5 + $0x1a0] sm:$0xff] %vm3020_vm1, %v2977_v4  ;;  %3352 = vrot.lane.b32.xlu1 %v10718_v37, %s9098_s9  ;;  %v14120_v4 = vld [vmem:[#allocation16_spill] sm:$0xff] }
 0x429   : > { %3350 = vrot.lane.b32.xlu0 %v10723_v32, %s9098_s9 }
 0x42a   : > { %v2983_v41 = vpop.permute.xlu1 %2982 }
 0x42b   : > { %3050 = vst.msk [vmem:[#allocation5 + $0x1d0] sm:$0xff] %vm3020_vm1, %v2983_v41  ;;  %v2981_v24 = vpop.permute.xlu0 %2980 }
 0x42c   : > { %3049 = vst.msk [vmem:[#allocation5 + $0x1c0] sm:$0xff] %vm3020_vm1, %v2981_v24  ;;  %3356 = vrot.lane.b32.xlu1 %v10738_v62, %s9098_s9  ;;  %v14110_v62 = vld [vmem:[#allocation6_spill] sm:$0xff] }
 0x42d   : > { %3354 = vrot.lane.b32.xlu0 %v10743_v3, %s9098_s9 }
 0x42e   : > { %v2987_v11 = vpop.permute.xlu1 %2986 }
 0x42f   : > { %3052 = vst.msk [vmem:[#allocation5 + $0x1f0] sm:$0xff] %vm3020_vm1, %v2987_v11  ;;  %v2985_v14 = vpop.permute.xlu0 %2984  ;;  %v14121_v11 = vld [vmem:[#allocation17_spill] sm:$0xff] }
 0x430   : > { %3051 = vst.msk [vmem:[#allocation5 + $0x1e0] sm:$0xff] %vm3020_vm1, %v2985_v14  ;;  %3360 = vrot.lane.b32.xlu1 %v10758_v29, %s9098_s9  ;;  %v14122_v14 = vld [vmem:[#allocation18_spill] sm:$0xff] }
 0x431   : > { %3358 = vrot.lane.b32.xlu0 %v10763_v50, %s9098_s9  ;;  %v14111_v50 = vld [vmem:[#allocation7_spill] sm:$0xff] }
 0x432   : > { %v3120_v37 = vpop.permute.xlu1 %3119 }
 0x433   : > { %3215 = vst.msk [vmem:[#allocation5 + $0x10] sm:$0xff] %vm3213_vm2, %v3120_v37  ;;  %v3118_v32 = vpop.permute.xlu0 %3117 }
 0x434   : > { %3214 = vst.msk [vmem:[#allocation5] sm:$0xff] %vm3213_vm2, %v3118_v32  ;;  %3364 = vrot.lane.b32.xlu1 %v10777_v40, %s9098_s9  ;;  %v11129_v40 = vld [vmem:[#allocation3 + $0x189] sm:$0xff] }
 0x435   : > { %3362 = vrot.lane.b32.xlu0 %v14110_v62, %s9098_s9  ;;  %v14123_v62 = vld [vmem:[#allocation19_spill] sm:$0xff] }
 0x436   : > { %v3124_v3 = vpop.permute.xlu1 %3123 }
 0x437   : > { %3217 = vst.msk [vmem:[#allocation5 + $0x30] sm:$0xff] %vm3213_vm2, %v3124_v3  ;;  %v3122_v29 = vpop.permute.xlu0 %3121  ;;  %v14124_v3 = vld [vmem:[#allocation20_spill] sm:$0xff] }
 0x438   : > { %3216 = vst.msk [vmem:[#allocation5 + $0x20] sm:$0xff] %vm3213_vm2, %v3122_v29  ;;  %3368 = vrot.lane.b32.xlu1 %v14111_v50, %s9098_s9 }
 0x439   : > { %3366 = vrot.lane.b32.xlu0 %v14112_v17, %s9098_s9  ;;  %v14125_v17 = vld [vmem:[#allocation21_spill] sm:$0xff] }
 0x43a   : > { %v3128_v48 = vpop.permute.xlu1 %3127 }
 0x43b   : > { %3219 = vst.msk [vmem:[#allocation5 + $0x50] sm:$0xff] %vm3213_vm2, %v3128_v48  ;;  %v3126_v57 = vpop.permute.xlu0 %3125  ;;  %v14126_v48 = vld [vmem:[#allocation22_spill] sm:$0xff] }
 0x43c   : > { %3218 = vst.msk [vmem:[#allocation5 + $0x40] sm:$0xff] %vm3213_vm2, %v3126_v57  ;;  %3372 = vrot.lane.b32.xlu1 %v11129_v40, %s9098_s9 }
 0x43d   : > { %3370 = vrot.lane.b32.xlu0 %v11134_v53, %s9098_s9 }
 0x43e   : > { %v3132_v10 = vpop.permute.xlu1 %3131 }
 0x43f   : > { %3221 = vst.msk [vmem:[#allocation5 + $0x70] sm:$0xff] %vm3213_vm2, %v3132_v10  ;;  %v3130_v16 = vpop.permute.xlu0 %3129 }
 0x440   : > { %3220 = vst.msk [vmem:[#allocation5 + $0x60] sm:$0xff] %vm3213_vm2, %v3130_v16  ;;  %3505 = vrot.lane.b32.xlu1 %v14113_v42, %s9099_s12  ;;  %v14127_v16 = vld [vmem:[#allocation23_spill] sm:$0xff]  ;;  %v14128_v42 = vld [vmem:[#allocation24_spill] sm:$0xff] }
 0x441   : > { %3503 = vrot.lane.b32.xlu0 %v14114_v0, %s9099_s12 }
 0x442   : > { %v3136_v34 = vpop.permute.xlu1 %3135 }
 0x443   : > { %3223 = vst.msk [vmem:[#allocation5 + $0x90] sm:$0xff] %vm3213_vm2, %v3136_v34  ;;  %v3134_v26 = vpop.permute.xlu0 %3133 }
 0x444   : > { %3222 = vst.msk [vmem:[#allocation5 + $0x80] sm:$0xff] %vm3213_vm2, %v3134_v26  ;;  %3509 = vrot.lane.b32.xlu1 %v14115_v27, %s9099_s12  ;;  %v14129_v26 = vld [vmem:[#allocation25_spill] sm:$0xff]  ;;  %v14130_v27 = vld [vmem:[#allocation26_spill] sm:$0xff] }
 0x445   : > { %3507 = vrot.lane.b32.xlu0 %v14116_v18, %s9099_s12 }
 0x446   : > { %v3140_v33 = vpop.permute.xlu1 %3139 }
 0x447   : > { %3225 = vst.msk [vmem:[#allocation5 + $0xb0] sm:$0xff] %vm3213_vm2, %v3140_v33  ;;  %v3138_v25 = vpop.permute.xlu0 %3137 }
 0x448   : > { %3224 = vst.msk [vmem:[#allocation5 + $0xa0] sm:$0xff] %vm3213_vm2, %v3138_v25  ;;  %3513 = vrot.lane.b32.xlu1 %v14117_v39, %s9099_s12  ;;  %v14131_v25 = vld [vmem:[#allocation27_spill] sm:$0xff]  ;;  %v14132_v39 = vld [vmem:[#allocation28_spill] sm:$0xff] }
 0x449   : > { %3511 = vrot.lane.b32.xlu0 %v14118_v38, %s9099_s12 }
 0x44a   : > { %v3144_v59 = vpop.permute.xlu1 %3143 }
 0x44b   : > { %3227 = vst.msk [vmem:[#allocation5 + $0xd0] sm:$0xff] %vm3213_vm2, %v3144_v59  ;;  %v3142_v58 = vpop.permute.xlu0 %3141 }
 0x44c   : > { %3226 = vst.msk [vmem:[#allocation5 + $0xc0] sm:$0xff] %vm3213_vm2, %v3142_v58  ;;  %3517 = vrot.lane.b32.xlu1 %v14119_v5, %s9099_s12  ;;  %v14133_v58 = vld [vmem:[#allocation29_spill] sm:$0xff]  ;;  %v14134_v5 = vld [vmem:[#allocation30_spill] sm:$0xff] }
 0x44d   : > { %3515 = vrot.lane.b32.xlu0 %v14120_v4, %s9099_s12 }
 0x44e   : > { %v3148_v41 = vpop.permute.xlu1 %3147 }
 0x44f   : > { %3229 = vst.msk [vmem:[#allocation5 + $0xf0] sm:$0xff] %vm3213_vm2, %v3148_v41  ;;  %v3146_v24 = vpop.permute.xlu0 %3145 }
 0x450   : > { %3228 = vst.msk [vmem:[#allocation5 + $0xe0] sm:$0xff] %vm3213_vm2, %v3146_v24  ;;  %3521 = vrot.lane.b32.xlu1 %v14121_v11, %s9099_s12  ;;  %v14135_v24 = vld [vmem:[#allocation31_spill] sm:$0xff]  ;;  %v14136_v11 = vld [vmem:[#allocation32_spill] sm:$0xff] }
 0x451   : > { %3519 = vrot.lane.b32.xlu0 %v14122_v14, %s9099_s12 }
 0x452   : > { %v3152_v37 = vpop.permute.xlu1 %3151 }
 0x453   : > { %3231 = vst.msk [vmem:[#allocation5 + $0x110] sm:$0xff] %vm3213_vm2, %v3152_v37  ;;  %v3150_v32 = vpop.permute.xlu0 %3149 }
 0x454   : > { %3230 = vst.msk [vmem:[#allocation5 + $0x100] sm:$0xff] %vm3213_vm2, %v3150_v32  ;;  %3525 = vrot.lane.b32.xlu1 %v14123_v62, %s9099_s12  ;;  %v14137_v32 = vld [vmem:[#allocation33_spill] sm:$0xff]  ;;  %v14138_v62 = vld [vmem:[#allocation34_spill] sm:$0xff] }
 0x455   : > { %3523 = vrot.lane.b32.xlu0 %v14124_v3, %s9099_s12 }
 0x456   : > { %v3156_v29 = vpop.permute.xlu1 %3155 }
 0x457   : > { %3233 = vst.msk [vmem:[#allocation5 + $0x130] sm:$0xff] %vm3213_vm2, %v3156_v29  ;;  %v3154_v50 = vpop.permute.xlu0 %3153 }
 0x458   : > { %3232 = vst.msk [vmem:[#allocation5 + $0x120] sm:$0xff] %vm3213_vm2, %v3154_v50  ;;  %3529 = vrot.lane.b32.xlu1 %v14125_v17, %s9099_s12  ;;  %v14139_v50 = vld [vmem:[#allocation35_spill] sm:$0xff] }
 0x459   : > { %3527 = vrot.lane.b32.xlu0 %v14126_v48, %s9099_s12 }
 0x45a   : > { %v3160_v57 = vpop.permute.xlu1 %3159 }
 0x45b   : > { %3235 = vst.msk [vmem:[#allocation5 + $0x150] sm:$0xff] %vm3213_vm2, %v3160_v57  ;;  %v3158_v10 = vpop.permute.xlu0 %3157 }
 0x45c   : > { %3234 = vst.msk [vmem:[#allocation5 + $0x140] sm:$0xff] %vm3213_vm2, %v3158_v10  ;;  %3533 = vrot.lane.b32.xlu1 %v14127_v16, %s9099_s12  ;;  %v11234_v16 = vld [vmem:[#allocation3 + $0x182] sm:$0xff] }
 0x45d   : > { %3531 = vrot.lane.b32.xlu0 %v14128_v42, %s9099_s12 }
 0x45e   : > { %v3164_v0 = vpop.permute.xlu1 %3163 }
 0x45f   : > { %3237 = vst.msk [vmem:[#allocation5 + $0x170] sm:$0xff] %vm3213_vm2, %v3164_v0  ;;  %v3162_v34 = vpop.permute.xlu0 %3161 }
 0x460   : > { %3236 = vst.msk [vmem:[#allocation5 + $0x160] sm:$0xff] %vm3213_vm2, %v3162_v34  ;;  %3537 = vrot.lane.b32.xlu1 %v14129_v26, %s9099_s12 }
 0x461   : > { %3535 = vrot.lane.b32.xlu0 %v14130_v27, %s9099_s12  ;;  %v3663_v27 = vld [vmem:[#allocation3 + $0x198] sm:$0xff] }
 0x462   : > { %v3168_v18 = vpop.permute.xlu1 %3167 }
 0x463   : > { %3239 = vst.msk [vmem:[#allocation5 + $0x190] sm:$0xff] %vm3213_vm2, %v3168_v18  ;;  %v3166_v33 = vpop.permute.xlu0 %3165  ;;  %v3827_v18 = vld [vmem:[#allocation3 + $0x39] sm:$0xff] }
 0x464   : > { %3238 = vst.msk [vmem:[#allocation5 + $0x180] sm:$0xff] %vm3213_vm2, %v3166_v33  ;;  %3541 = vrot.lane.b32.xlu1 %v14131_v25, %s9099_s12  ;;  %v527_v33 = vld [vmem:[%s11336_s19 + $0x8] sm:$0xff] }
 0x465   : > { %3539 = vrot.lane.b32.xlu0 %v14132_v39, %s9099_s12  ;;  %v3826_v25 = vld [vmem:[#allocation3 + $0x31] sm:$0xff]  ;;  %560 = vst.msk [vmem:[#allocation4 + $0x21] sm:$0xff] %vm372_vm11, %v527_v33 }
 0x466   : > { %v3172_v38 = vpop.permute.xlu1 %3171  ;;  %v547_v33 = vld [vmem:[%s11336_s19 + $0xa8] sm:$0xff] }
 0x467   : > { %3241 = vst.msk [vmem:[#allocation5 + $0x1b0] sm:$0xff] %vm3213_vm2, %v3172_v38  ;;  %v3170_v59 = vpop.permute.xlu0 %3169  ;;  %v528_v38 = vld [vmem:[%s11336_s19 + $0x10] sm:$0xff] }
 0x468   : > { %3240 = vst.msk [vmem:[#allocation5 + $0x1a0] sm:$0xff] %vm3213_vm2, %v3170_v59  ;;  %3545 = vrot.lane.b32.xlu1 %v14133_v58, %s9099_s12  ;;  %v3829_v58 = vld [vmem:[#allocation3 + $0x51] sm:$0xff] }
 0x469   : > { %3543 = vrot.lane.b32.xlu0 %v14134_v5, %s9099_s12  ;;  %561 = vst.msk [vmem:[#allocation4 + $0x31] sm:$0xff] %vm372_vm11, %v528_v38  ;;  %v529_v5 = vld [vmem:[%s11336_s19 + $0x18] sm:$0xff]  ;;  %580 = vst.msk [vmem:[#allocation4 + $0x111] sm:$0xff] %vm372_vm11, %v547_v33  ;;  %v548_v38 = vld [vmem:[%s11336_s19 + $0xb0] sm:$0xff] }
 0x46a   : > { %v3176_v4 = vpop.permute.xlu1 %3175  ;;  %562 = vst.msk [vmem:[#allocation4 + $0x39] sm:$0xff] %vm372_vm11, %v529_v5  ;;  %581 = vst.msk [vmem:[#allocation4 + $0x121] sm:$0xff] %vm372_vm11, %v548_v38  ;;  %v549_v5 = vld [vmem:[%s11336_s19 + $0xb8] sm:$0xff]  ;;  %v4036_v33 = vld [vmem:[#allocation3 + $0xfa] sm:$0xff] }
 0x46b   : > { %3243 = vst.msk [vmem:[#allocation5 + $0x1d0] sm:$0xff] %vm3213_vm2, %v3176_v4  ;;  %v3174_v41 = vpop.permute.xlu0 %3173  ;;  %v3828_v4 = vld [vmem:[#allocation3 + $0x49] sm:$0xff] }
 0x46c   : > { %3242 = vst.msk [vmem:[#allocation5 + $0x1c0] sm:$0xff] %vm3213_vm2, %v3174_v41  ;;  %3549 = vrot.lane.b32.xlu1 %v14135_v24, %s9099_s12  ;;  %v530_v24 = vld [vmem:[%s11336_s19 + $0x20] sm:$0xff] }
 0x46d   : > { %3547 = vrot.lane.b32.xlu0 %v14136_v11, %s9099_s12  ;;  %563 = vst.msk [vmem:[#allocation4 + $0x49] sm:$0xff] %vm372_vm11, %v530_v24  ;;  %582 = vst.msk [vmem:[#allocation4 + $0x129] sm:$0xff] %vm372_vm11, %v549_v5  ;;  %v550_v24 = vld [vmem:[%s11336_s19 + $0xc0] sm:$0xff] }
 0x46e   : > { %v3180_v14 = vpop.permute.xlu1 %3179  ;;  %583 = vst.msk [vmem:[#allocation4 + $0x139] sm:$0xff] %vm372_vm11, %v550_v24  ;;  %v4039_v24 = vld [vmem:[#allocation3 + $0x122] sm:$0xff] }
 0x46f   : > { %3245 = vst.msk [vmem:[#allocation5 + $0x1f0] sm:$0xff] %vm3213_vm2, %v3180_v14  ;;  %v3178_v37 = vpop.permute.xlu0 %3177  ;;  %v3831_v14 = vld [vmem:[#allocation3 + $0x69] sm:$0xff] }
 0x470   : > { %3244 = vst.msk [vmem:[#allocation5 + $0x1e0] sm:$0xff] %vm3213_vm2, %v3178_v37  ;;  %3553 = vrot.lane.b32.xlu1 %v14137_v32, %s9099_s12  ;;  %v531_v37 = vld [vmem:[%s11336_s19 + $0x28] sm:$0xff]  ;;  %v3830_v32 = vld [vmem:[#allocation3 + $0x61] sm:$0xff] }
 0x471   : > { %3551 = vrot.lane.b32.xlu0 %v14138_v62, %s9099_s12  ;;  %564 = vst.msk [vmem:[#allocation4 + $0x51] sm:$0xff] %vm372_vm11, %v531_v37  ;;  %v551_v37 = vld [vmem:[%s11336_s19 + $0xc8] sm:$0xff] }
 0x472   : > { %v3313_v3 = vpop.permute.xlu1 %3312  ;;  %584 = vst.msk [vmem:[#allocation4 + $0x141] sm:$0xff] %vm372_vm11, %v551_v37  ;;  %v4042_v37 = vld [vmem:[#allocation3 + $0x142] sm:$0xff] }
 0x473   : > { %3408 = vst.msk [vmem:[#allocation5 + $0x10] sm:$0xff] %vm3406_vm3, %v3313_v3  ;;  %v3311_v29 = vpop.permute.xlu0 %3310  ;;  %v532_v3 = vld [vmem:[%s11336_s19 + $0x30] sm:$0xff] }
 0x474   : > { %3407 = vst.msk [vmem:[#allocation5] sm:$0xff] %vm3406_vm3, %v3311_v29  ;;  %3557 = vrot.lane.b32.xlu1 %v10919_v12, %s9099_s12  ;;  %v11229_v12 = vld [vmem:[#allocation3 + $0x18a] sm:$0xff] }
 0x475   : > { %3555 = vrot.lane.b32.xlu0 %v14139_v50, %s9099_s12  ;;  %v3833_v50 = vld [vmem:[#allocation3 + $0x81] sm:$0xff]  ;;  %565 = vst.msk [vmem:[#allocation4 + $0x61] sm:$0xff] %vm372_vm11, %v532_v3 }
 0x476   : > { %v3317_v17 = vpop.permute.xlu1 %3316  ;;  %v552_v3 = vld [vmem:[%s11336_s19 + $0xd0] sm:$0xff] }
 0x477   : > { %3410 = vst.msk [vmem:[#allocation5 + $0x30] sm:$0xff] %vm3406_vm3, %v3317_v17  ;;  %v3315_v48 = vpop.permute.xlu0 %3314  ;;  %v533_v17 = vld [vmem:[%s11336_s19 + $0x38] sm:$0xff] }
 0x478   : > { %3409 = vst.msk [vmem:[#allocation5 + $0x20] sm:$0xff] %vm3406_vm3, %v3315_v48  ;;  %3561 = vrot.lane.b32.xlu1 %v10929_v55, %s9099_s12  ;;  %v3832_v48 = vld [vmem:[#allocation3 + $0x79] sm:$0xff] }
 0x479   : > { %3559 = vrot.lane.b32.xlu0 %v10934_v36, %s9099_s12  ;;  %566 = vst.msk [vmem:[#allocation4 + $0x69] sm:$0xff] %vm372_vm11, %v533_v17  ;;  %585 = vst.msk [vmem:[#allocation4 + $0x151] sm:$0xff] %vm372_vm11, %v552_v3  ;;  %v553_v17 = vld [vmem:[%s11336_s19 + $0xd8] sm:$0xff] }
 0x47a   : > { %v3321_v57 = vpop.permute.xlu1 %3320  ;;  %586 = vst.msk [vmem:[#allocation4 + $0x159] sm:$0xff] %vm372_vm11, %v553_v17 }
 0x47b   : > { %3412 = vst.msk [vmem:[#allocation5 + $0x50] sm:$0xff] %vm3406_vm3, %v3321_v57  ;;  %v3319_v10 = vpop.permute.xlu0 %3318 }
 0x47c   : > { %3411 = vst.msk [vmem:[#allocation5 + $0x40] sm:$0xff] %vm3406_vm3, %v3319_v10  ;;  %3565 = vrot.lane.b32.xlu1 %v11229_v12, %s9099_s12  ;;  %v534_v10 = vld [vmem:[%s11336_s19 + $0x40] sm:$0xff] }
 0x47d   : > { %3563 = vrot.lane.b32.xlu0 %v11234_v16, %s9099_s12  ;;  %567 = vst.msk [vmem:[#allocation4 + $0x79] sm:$0xff] %vm372_vm11, %v534_v10  ;;  %v554_v10 = vld [vmem:[%s11336_s19 + $0xe0] sm:$0xff] }
 0x47e   : > { %v3325_v55 = vpop.permute.xlu1 %3324  ;;  %587 = vst.msk [vmem:[#allocation4 + $0x169] sm:$0xff] %vm372_vm11, %v554_v10  ;;  %v4045_v10 = vld [vmem:[#allocation3 + $0x16a] sm:$0xff] }
 0x47f   : > { %3414 = vst.msk [vmem:[#allocation5 + $0x70] sm:$0xff] %vm3406_vm3, %v3325_v55  ;;  %v3323_v36 = vpop.permute.xlu0 %3322 }
 0x480   : > { %3413 = vst.msk [vmem:[#allocation5 + $0x60] sm:$0xff] %vm3406_vm3, %v3323_v36  ;;  %3699 = vrot.lane.b32.xlu1 %v10545_v43, %s9100_s14  ;;  %v3835_v36 = vld [vmem:[#allocation3 + $0x99] sm:$0xff] }
 0x481   : > { %3697 = vrot.lane.b32.xlu0 %v10552_v44, %s9100_s14 }
 0x482   : > { %v3329_v42 = vpop.permute.xlu1 %3328 }
 0x483   : > { %3416 = vst.msk [vmem:[#allocation5 + $0x90] sm:$0xff] %vm3406_vm3, %v3329_v42  ;;  %v3327_v0 = vpop.permute.xlu0 %3326  ;;  %v535_v42 = vld [vmem:[%s11336_s19 + $0x48] sm:$0xff] }
 0x484   : > { %3415 = vst.msk [vmem:[#allocation5 + $0x80] sm:$0xff] %vm3406_vm3, %v3327_v0  ;;  %3703 = vrot.lane.b32.xlu1 %v10565_v31, %s9100_s14  ;;  %v3834_v0 = vld [vmem:[#allocation3 + $0x91] sm:$0xff] }
 0x485   : > { %3701 = vrot.lane.b32.xlu0 %v10572_v63, %s9100_s14  ;;  %568 = vst.msk [vmem:[#allocation4 + $0x81] sm:$0xff] %vm372_vm11, %v535_v42  ;;  %v3857_v42 = vld [vmem:[#allocation3 + $0x1a1] sm:$0xff] }
 0x486   : > { %v3333_v34 = vpop.permute.xlu1 %3332 }
 0x487   : > { %3418 = vst.msk [vmem:[#allocation5 + $0xb0] sm:$0xff] %vm3406_vm3, %v3333_v34  ;;  %v3331_v26 = vpop.permute.xlu0 %3330 }
 0x488   : > { %3417 = vst.msk [vmem:[#allocation5 + $0xa0] sm:$0xff] %vm3406_vm3, %v3331_v26  ;;  %3707 = vrot.lane.b32.xlu1 %v10585_v19, %s9100_s14  ;;  %v536_v26 = vld [vmem:[%s11336_s19 + $0x50] sm:$0xff] }
 0x489   : > { %3705 = vrot.lane.b32.xlu0 %v10592_v35, %s9100_s14  ;;  %569 = vst.msk [vmem:[#allocation4 + $0x91] sm:$0xff] %vm372_vm11, %v536_v26 }
 0x48a   : > { %v3337_v43 = vpop.permute.xlu1 %3336 }
 0x48b   : > { %3420 = vst.msk [vmem:[#allocation5 + $0xd0] sm:$0xff] %vm3406_vm3, %v3337_v43  ;;  %v3335_v44 = vpop.permute.xlu0 %3334 }
 0x48c   : > { %3419 = vst.msk [vmem:[#allocation5 + $0xc0] sm:$0xff] %vm3406_vm3, %v3335_v44  ;;  %3711 = vrot.lane.b32.xlu1 %v10605_v46, %s9100_s14  ;;  %v3837_v44 = vld [vmem:[#allocation3 + $0xb1] sm:$0xff] }
 0x48d   : > { %3709 = vrot.lane.b32.xlu0 %v10612_v30, %s9100_s14 }
 0x48e   : > { %v3341_v31 = vpop.permute.xlu1 %3340 }
 0x48f   : > { %3422 = vst.msk [vmem:[#allocation5 + $0xf0] sm:$0xff] %vm3406_vm3, %v3341_v31  ;;  %v3339_v63 = vpop.permute.xlu0 %3338  ;;  %v537_v31 = vld [vmem:[%s11336_s19 + $0x58] sm:$0xff] }
 0x490   : > { %3421 = vst.msk [vmem:[#allocation5 + $0xe0] sm:$0xff] %vm3406_vm3, %v3339_v63  ;;  %3715 = vrot.lane.b32.xlu1 %v10625_v51, %s9100_s14  ;;  %v3836_v63 = vld [vmem:[#allocation3 + $0xa9] sm:$0xff] }
 0x491   : > { %3713 = vrot.lane.b32.xlu0 %v10632_v54, %s9100_s14  ;;  %570 = vst.msk [vmem:[#allocation4 + $0x99] sm:$0xff] %vm372_vm11, %v537_v31 }
 0x492   : > { %v3345_v19 = vpop.permute.xlu1 %3344 }
 0x493   : > { %3424 = vst.msk [vmem:[#allocation5 + $0x110] sm:$0xff] %vm3406_vm3, %v3345_v19  ;;  %v3343_v35 = vpop.permute.xlu0 %3342 }
 0x494   : > { %3423 = vst.msk [vmem:[#allocation5 + $0x100] sm:$0xff] %vm3406_vm3, %v3343_v35  ;;  %3719 = vrot.lane.b32.xlu1 %v10645_v61, %s9100_s14  ;;  %v538_v35 = vld [vmem:[%s11336_s19 + $0x60] sm:$0xff] }
 0x495   : > { %3717 = vrot.lane.b32.xlu0 %v10652_v1, %s9100_s14  ;;  %571 = vst.msk [vmem:[#allocation4 + $0xa9] sm:$0xff] %vm372_vm11, %v538_v35  ;;  %v4021_v35 = vld [vmem:[#allocation3 + $0x4a] sm:$0xff] }
 0x496   : > { %v3349_v46 = vpop.permute.xlu1 %3348 }
 0x497   : > { %3426 = vst.msk [vmem:[#allocation5 + $0x130] sm:$0xff] %vm3406_vm3, %v3349_v46  ;;  %v3347_v30 = vpop.permute.xlu0 %3346 }
 0x498   : > { %3425 = vst.msk [vmem:[#allocation5 + $0x120] sm:$0xff] %vm3406_vm3, %v3347_v30  ;;  %3723 = vrot.lane.b32.xlu1 %v10665_v7, %s9100_s14  ;;  %v3839_v30 = vld [vmem:[#allocation3 + $0xc9] sm:$0xff] }
 0x499   : > { %3721 = vrot.lane.b32.xlu0 %v10672_v9, %s9100_s14 }
 0x49a   : > { %v3353_v51 = vpop.permute.xlu1 %3352 }
 0x49b   : > { %3428 = vst.msk [vmem:[#allocation5 + $0x150] sm:$0xff] %vm3406_vm3, %v3353_v51  ;;  %v3351_v54 = vpop.permute.xlu0 %3350  ;;  %v539_v51 = vld [vmem:[%s11336_s19 + $0x68] sm:$0xff] }
 0x49c   : > { %3427 = vst.msk [vmem:[#allocation5 + $0x140] sm:$0xff] %vm3406_vm3, %v3351_v54  ;;  %3727 = vrot.lane.b32.xlu1 %v10685_v21, %s9100_s14  ;;  %v3838_v54 = vld [vmem:[#allocation3 + $0xc1] sm:$0xff] }
 0x49d   : > { %3725 = vrot.lane.b32.xlu0 %v10692_v47, %s9100_s14  ;;  %572 = vst.msk [vmem:[#allocation4 + $0xb1] sm:$0xff] %vm372_vm11, %v539_v51  ;;  %v4024_v51 = vld [vmem:[#allocation3 + $0x6a] sm:$0xff] }
 0x49e   : > { %v3357_v61 = vpop.permute.xlu1 %3356 }
 0x49f   : > { %3430 = vst.msk [vmem:[#allocation5 + $0x170] sm:$0xff] %vm3406_vm3, %v3357_v61  ;;  %v3355_v1 = vpop.permute.xlu0 %3354 }
 0x4a0   : > { %3429 = vst.msk [vmem:[#allocation5 + $0x160] sm:$0xff] %vm3406_vm3, %v3355_v1  ;;  %3731 = vrot.lane.b32.xlu1 %v10705_v15, %s9100_s14  ;;  %v540_v1 = vld [vmem:[%s11336_s19 + $0x70] sm:$0xff] }
 0x4a1   : > { %3729 = vrot.lane.b32.xlu0 %v10712_v23, %s9100_s14  ;;  %573 = vst.msk [vmem:[#allocation4 + $0xc1] sm:$0xff] %vm372_vm11, %v540_v1 }
 0x4a2   : > { %v3361_v7 = vpop.permute.xlu1 %3360 }
 0x4a3   : > { %3432 = vst.msk [vmem:[#allocation5 + $0x190] sm:$0xff] %vm3406_vm3, %v3361_v7  ;;  %v3359_v9 = vpop.permute.xlu0 %3358 }
 0x4a4   : > { %3431 = vst.msk [vmem:[#allocation5 + $0x180] sm:$0xff] %vm3406_vm3, %v3359_v9  ;;  %3735 = vrot.lane.b32.xlu1 %v10725_v45, %s9100_s14  ;;  %v3841_v9 = vld [vmem:[#allocation3 + $0xe1] sm:$0xff] }
 0x4a5   : > { %3733 = vrot.lane.b32.xlu0 %v10732_v52, %s9100_s14 }
 0x4a6   : > { %v3365_v21 = vpop.permute.xlu1 %3364 }
 0x4a7   : > { %3434 = vst.msk [vmem:[#allocation5 + $0x1b0] sm:$0xff] %vm3406_vm3, %v3365_v21  ;;  %v3363_v47 = vpop.permute.xlu0 %3362  ;;  %v541_v21 = vld [vmem:[%s11336_s19 + $0x78] sm:$0xff] }
 0x4a8   : > { %3433 = vst.msk [vmem:[#allocation5 + $0x1a0] sm:$0xff] %vm3406_vm3, %v3363_v47  ;;  %3739 = vrot.lane.b32.xlu1 %v10745_v2, %s9100_s14  ;;  %v3840_v47 = vld [vmem:[#allocation3 + $0xd9] sm:$0xff] }
 0x4a9   : > { %3737 = vrot.lane.b32.xlu0 %v10752_v8, %s9100_s14  ;;  %574 = vst.msk [vmem:[#allocation4 + $0xc9] sm:$0xff] %vm372_vm11, %v541_v21 }
 0x4aa   : > { %v3369_v15 = vpop.permute.xlu1 %3368 }
 0x4ab   : > { %3436 = vst.msk [vmem:[#allocation5 + $0x1d0] sm:$0xff] %vm3406_vm3, %v3369_v15  ;;  %v3367_v23 = vpop.permute.xlu0 %3366 }
 0x4ac   : > { %3435 = vst.msk [vmem:[#allocation5 + $0x1c0] sm:$0xff] %vm3406_vm3, %v3367_v23  ;;  %3743 = vrot.lane.b32.xlu1 %v10765_v56, %s9100_s14  ;;  %v542_v23 = vld [vmem:[%s11336_s19 + $0x80] sm:$0xff] }
 0x4ad   : > { %3741 = vrot.lane.b32.xlu0 %v10772_v22, %s9100_s14  ;;  %575 = vst.msk [vmem:[#allocation4 + $0xd9] sm:$0xff] %vm372_vm11, %v542_v23  ;;  %v4027_v23 = vld [vmem:[#allocation3 + $0x92] sm:$0xff] }
 0x4ae   : > { %v3373_v45 = vpop.permute.xlu1 %3372 }
 0x4af   : > { %3438 = vst.msk [vmem:[#allocation5 + $0x1f0] sm:$0xff] %vm3406_vm3, %v3373_v45  ;;  %v3371_v52 = vpop.permute.xlu0 %3370 }
 0x4b0   : > { %3437 = vst.msk [vmem:[#allocation5 + $0x1e0] sm:$0xff] %vm3406_vm3, %v3371_v52  ;;  %3747 = vrot.lane.b32.xlu1 %v10784_v60, %s9100_s14  ;;  %v3664_v60 = vld [vmem:[#allocation3 + $0x1a0] sm:$0xff] }
 0x4b1   : > { %3745 = vrot.lane.b32.xlu0 %v10791_v6, %s9100_s14  ;;  %v3843_v52 = vld [vmem:[#allocation3 + $0xf9] sm:$0xff] }
 0x4b2   : > { %v3506_v2 = vpop.permute.xlu1 %3505 }
 0x4b3   : > { %3601 = vst.msk [vmem:[#allocation5 + $0x10] sm:$0xff] %vm3599_vm4, %v3506_v2  ;;  %v3504_v8 = vpop.permute.xlu0 %3503  ;;  %v543_v2 = vld [vmem:[%s11336_s19 + $0x88] sm:$0xff] }
 0x4b4   : > { %3600 = vst.msk [vmem:[#allocation5] sm:$0xff] %vm3599_vm4, %v3504_v8  ;;  %3751 = vrot.lane.b32.xlu1 %v10802_v20, %s9100_s14  ;;  %v3842_v8 = vld [vmem:[#allocation3 + $0xf1] sm:$0xff] }
 0x4b5   : > { %3749 = vrot.lane.b32.xlu0 %v10808_v49, %s9100_s14  ;;  %576 = vst.msk [vmem:[#allocation4 + $0xe1] sm:$0xff] %vm372_vm11, %v543_v2  ;;  %v4030_v2 = vld [vmem:[#allocation3 + $0xb2] sm:$0xff] }
 0x4b6   : > { %v3510_v56 = vpop.permute.xlu1 %3509 }
 0x4b7   : > { %3603 = vst.msk [vmem:[#allocation5 + $0x30] sm:$0xff] %vm3599_vm4, %v3510_v56  ;;  %v3508_v22 = vpop.permute.xlu0 %3507 }
 0x4b8   : > { %3602 = vst.msk [vmem:[#allocation5 + $0x20] sm:$0xff] %vm3599_vm4, %v3508_v22  ;;  %3755 = vrot.lane.b32.xlu1 %v11028_v13, %s9100_s14  ;;  %v526_v13 = vld [vmem:[%s11336_s19] sm:$0xff]  ;;  %v544_v22 = vld [vmem:[%s11336_s19 + $0x90] sm:$0xff] }
 0x4b9   : > { %3753 = vrot.lane.b32.xlu0 %v11030_v28, %s9100_s14  ;;  %559 = vst.msk [vmem:[#allocation4 + $0x19] sm:$0xff] %vm372_vm11, %v526_v13  ;;  %577 = vst.msk [vmem:[#allocation4 + $0xf1] sm:$0xff] %vm372_vm11, %v544_v22  ;;  %v546_v13 = vld [vmem:[%s11336_s19 + $0xa0] sm:$0xff] }
 0x4ba   : > { %v3514_v6 = vpop.permute.xlu1 %3513  ;;  %579 = vst.msk [vmem:[#allocation4 + $0x109] sm:$0xff] %vm372_vm11, %v546_v13  ;;  %v4033_v13 = vld [vmem:[#allocation3 + $0xda] sm:$0xff] }
 0x4bb   : > { %3605 = vst.msk [vmem:[#allocation5 + $0x50] sm:$0xff] %vm3599_vm4, %v3514_v6  ;;  %v3512_v20 = vpop.permute.xlu0 %3511  ;;  %v3845_v6 = vld [vmem:[#allocation3 + $0x111] sm:$0xff] }
 0x4bc   : > { %3604 = vst.msk [vmem:[#allocation5 + $0x40] sm:$0xff] %vm3599_vm4, %v3512_v20  ;;  %3759 = vrot.lane.b32.xlu1 %v3664_v60, %s9100_s14  ;;  %v3844_v20 = vld [vmem:[#allocation3 + $0x109] sm:$0xff] }
 0x4bd   : > { %3757 = vrot.lane.b32.xlu0 %v3663_v27, %s9100_s14  ;;  %v545_v27 = vld [vmem:[%s11336_s19 + $0x98] sm:$0xff] }
 0x4be   : > { %v3518_v49 = vpop.permute.xlu1 %3517  ;;  %578 = vst.msk [vmem:[#allocation4 + $0xf9] sm:$0xff] %vm372_vm11, %v545_v27 }
 0x4bf   : > { %3607 = vst.msk [vmem:[#allocation5 + $0x70] sm:$0xff] %vm3599_vm4, %v3518_v49  ;;  %v3516_v28 = vpop.permute.xlu0 %3515 }
 0x4c0   : > { %3606 = vst.msk [vmem:[#allocation5 + $0x60] sm:$0xff] %vm3599_vm4, %v3516_v28  ;;  %3892 = vrot.lane.b32.xlu1 %v3827_v18, %s9101_s20  ;;  %v3847_v18 = vld [vmem:[#allocation3 + $0x129] sm:$0xff] }
 0x4c1   : > { %3890 = vrot.lane.b32.xlu0 %v3826_v25, %s9101_s20  ;;  %v3846_v25 = vld [vmem:[#allocation3 + $0x121] sm:$0xff] }
 0x4c2   : > { %v3522_v39 = vpop.permute.xlu1 %3521 }
 0x4c3   : > { %3609 = vst.msk [vmem:[#allocation5 + $0x90] sm:$0xff] %vm3599_vm4, %v3522_v39  ;;  %v3520_v59 = vpop.permute.xlu0 %3519 }
 0x4c4   : > { %3608 = vst.msk [vmem:[#allocation5 + $0x80] sm:$0xff] %vm3599_vm4, %v3520_v59  ;;  %3896 = vrot.lane.b32.xlu1 %v3829_v58, %s9101_s20  ;;  %v3849_v58 = vld [vmem:[#allocation3 + $0x141] sm:$0xff] }
 0x4c5   : > { %3894 = vrot.lane.b32.xlu0 %v3828_v4, %s9101_s20  ;;  %v3848_v4 = vld [vmem:[#allocation3 + $0x139] sm:$0xff] }
 0x4c6   : > { %v3526_v41 = vpop.permute.xlu1 %3525 }
 0x4c7   : > { %3611 = vst.msk [vmem:[#allocation5 + $0xb0] sm:$0xff] %vm3599_vm4, %v3526_v41  ;;  %v3524_v11 = vpop.permute.xlu0 %3523 }
 0x4c8   : > { %3610 = vst.msk [vmem:[#allocation5 + $0xa0] sm:$0xff] %vm3599_vm4, %v3524_v11  ;;  %3900 = vrot.lane.b32.xlu1 %v3831_v14, %s9101_s20  ;;  %v3851_v14 = vld [vmem:[#allocation3 + $0x159] sm:$0xff] }
 0x4c9   : > { %3898 = vrot.lane.b32.xlu0 %v3830_v32, %s9101_s20  ;;  %v3850_v32 = vld [vmem:[#allocation3 + $0x151] sm:$0xff] }
 0x4ca   : > { %v3530_v62 = vpop.permute.xlu1 %3529 }
 0x4cb   : > { %3613 = vst.msk [vmem:[#allocation5 + $0xd0] sm:$0xff] %vm3599_vm4, %v3530_v62  ;;  %v3528_v29 = vpop.permute.xlu0 %3527 }
 0x4cc   : > { %3612 = vst.msk [vmem:[#allocation5 + $0xc0] sm:$0xff] %vm3599_vm4, %v3528_v29  ;;  %3904 = vrot.lane.b32.xlu1 %v3833_v50, %s9101_s20  ;;  %v3853_v50 = vld [vmem:[#allocation3 + $0x171] sm:$0xff] }
 0x4cd   : > { %3902 = vrot.lane.b32.xlu0 %v3832_v48, %s9101_s20  ;;  %v3852_v48 = vld [vmem:[#allocation3 + $0x169] sm:$0xff] }
 0x4ce   : > { %v3534_v57 = vpop.permute.xlu1 %3533 }
 0x4cf   : > { %3615 = vst.msk [vmem:[#allocation5 + $0xf0] sm:$0xff] %vm3599_vm4, %v3534_v57  ;;  %v3532_v55 = vpop.permute.xlu0 %3531 }
 0x4d0   : > { %3614 = vst.msk [vmem:[#allocation5 + $0xe0] sm:$0xff] %vm3599_vm4, %v3532_v55  ;;  %3908 = vrot.lane.b32.xlu1 %v3835_v36, %s9101_s20  ;;  %v555_v36 = vld [vmem:[%s11336_s19 + $0xe8] sm:$0xff] }
 0x4d1   : > { %3906 = vrot.lane.b32.xlu0 %v3834_v0, %s9101_s20  ;;  %588 = vst.msk [vmem:[#allocation4 + $0x171] sm:$0xff] %vm372_vm11, %v555_v36 }
 0x4d2   : > { %v3538_v34 = vpop.permute.xlu1 %3537 }
 0x4d3   : > { %3617 = vst.msk [vmem:[#allocation5 + $0x110] sm:$0xff] %vm3599_vm4, %v3538_v34  ;;  %v3536_v43 = vpop.permute.xlu0 %3535  ;;  %v3856_v34 = vld [vmem:[#allocation3 + $0x199] sm:$0xff] }
 0x4d4   : > { %3616 = vst.msk [vmem:[#allocation5 + $0x100] sm:$0xff] %vm3599_vm4, %v3536_v43  ;;  %3912 = vrot.lane.b32.xlu1 %v3837_v44, %s9101_s20  ;;  %v4020_v44 = vld [vmem:[#allocation3 + $0x3a] sm:$0xff] }
 0x4d5   : > { %3910 = vrot.lane.b32.xlu0 %v3836_v63, %s9101_s20 }
 0x4d6   : > { %v3542_v19 = vpop.permute.xlu1 %3541 }
 0x4d7   : > { %3619 = vst.msk [vmem:[#allocation5 + $0x130] sm:$0xff] %vm3599_vm4, %v3542_v19  ;;  %v3540_v46 = vpop.permute.xlu0 %3539  ;;  %v4022_v19 = vld [vmem:[#allocation3 + $0x52] sm:$0xff] }
 0x4d8   : > { %3618 = vst.msk [vmem:[#allocation5 + $0x120] sm:$0xff] %vm3599_vm4, %v3540_v46  ;;  %3916 = vrot.lane.b32.xlu1 %v3839_v30, %s9101_s20 }
 0x4d9   : > { %3914 = vrot.lane.b32.xlu0 %v3838_v54, %s9101_s20  ;;  %v4023_v54 = vld [vmem:[#allocation3 + $0x62] sm:$0xff] }
 0x4da   : > { %v3546_v61 = vpop.permute.xlu1 %3545 }
 0x4db   : > { %3621 = vst.msk [vmem:[#allocation5 + $0x150] sm:$0xff] %vm3599_vm4, %v3546_v61  ;;  %v3544_v7 = vpop.permute.xlu0 %3543 }
 0x4dc   : > { %3620 = vst.msk [vmem:[#allocation5 + $0x140] sm:$0xff] %vm3599_vm4, %v3544_v7  ;;  %3920 = vrot.lane.b32.xlu1 %v3841_v9, %s9101_s20  ;;  %v4026_v7 = vld [vmem:[#allocation3 + $0x82] sm:$0xff]  ;;  %v4025_v9 = vld [vmem:[#allocation3 + $0x7a] sm:$0xff] }
 0x4dd   : > { %3918 = vrot.lane.b32.xlu0 %v3840_v47, %s9101_s20 }
 0x4de   : > { %v3550_v15 = vpop.permute.xlu1 %3549 }
 0x4df   : > { %3623 = vst.msk [vmem:[#allocation5 + $0x170] sm:$0xff] %vm3599_vm4, %v3550_v15  ;;  %v3548_v45 = vpop.permute.xlu0 %3547  ;;  %v4028_v15 = vld [vmem:[#allocation3 + $0x9a] sm:$0xff] }
 0x4e0   : > { %3622 = vst.msk [vmem:[#allocation5 + $0x160] sm:$0xff] %vm3599_vm4, %v3548_v45  ;;  %3924 = vrot.lane.b32.xlu1 %v3843_v52, %s9101_s20 }
 0x4e1   : > { %3922 = vrot.lane.b32.xlu0 %v3842_v8, %s9101_s20  ;;  %v4029_v8 = vld [vmem:[#allocation3 + $0xaa] sm:$0xff] }
 0x4e2   : > { %v3554_v56 = vpop.permute.xlu1 %3553 }
 0x4e3   : > { %3625 = vst.msk [vmem:[#allocation5 + $0x190] sm:$0xff] %vm3599_vm4, %v3554_v56  ;;  %v3552_v60 = vpop.permute.xlu0 %3551 }
 0x4e4   : > { %3624 = vst.msk [vmem:[#allocation5 + $0x180] sm:$0xff] %vm3599_vm4, %v3552_v60  ;;  %3928 = vrot.lane.b32.xlu1 %v3845_v6, %s9101_s20  ;;  %v4032_v60 = vld [vmem:[#allocation3 + $0xca] sm:$0xff]  ;;  %v4031_v6 = vld [vmem:[#allocation3 + $0xc2] sm:$0xff] }
 0x4e5   : > { %3926 = vrot.lane.b32.xlu0 %v3844_v20, %s9101_s20 }
 0x4e6   : > { %v3558_v49 = vpop.permute.xlu1 %3557 }
 0x4e7   : > { %3627 = vst.msk [vmem:[#allocation5 + $0x1b0] sm:$0xff] %vm3599_vm4, %v3558_v49  ;;  %v3556_v28 = vpop.permute.xlu0 %3555  ;;  %v4034_v49 = vld [vmem:[#allocation3 + $0xe2] sm:$0xff] }
 0x4e8   : > { %3626 = vst.msk [vmem:[#allocation5 + $0x1a0] sm:$0xff] %vm3599_vm4, %v3556_v28  ;;  %3932 = vrot.lane.b32.xlu1 %v3847_v18, %s9101_s20 }
 0x4e9   : > { %3930 = vrot.lane.b32.xlu0 %v3846_v25, %s9101_s20  ;;  %v4035_v25 = vld [vmem:[#allocation3 + $0xf2] sm:$0xff] }
 0x4ea   : > { %v3562_v39 = vpop.permute.xlu1 %3561 }
 0x4eb   : > { %3629 = vst.msk [vmem:[#allocation5 + $0x1d0] sm:$0xff] %vm3599_vm4, %v3562_v39  ;;  %v3560_v59 = vpop.permute.xlu0 %3559 }
 0x4ec   : > { %3628 = vst.msk [vmem:[#allocation5 + $0x1c0] sm:$0xff] %vm3599_vm4, %v3560_v59  ;;  %3936 = vrot.lane.b32.xlu1 %v3849_v58, %s9101_s20  ;;  %v4038_v59 = vld [vmem:[#allocation3 + $0x112] sm:$0xff]  ;;  %v4037_v58 = vld [vmem:[#allocation3 + $0x10a] sm:$0xff] }
 0x4ed   : > { %3934 = vrot.lane.b32.xlu0 %v3848_v4, %s9101_s20 }
 0x4ee   : > { %v3566_v41 = vpop.permute.xlu1 %3565 }
 0x4ef   : > { %3631 = vst.msk [vmem:[#allocation5 + $0x1f0] sm:$0xff] %vm3599_vm4, %v3566_v41  ;;  %v3564_v11 = vpop.permute.xlu0 %3563  ;;  %v4040_v41 = vld [vmem:[#allocation3 + $0x12a] sm:$0xff] }
 0x4f0   : > { %3630 = vst.msk [vmem:[#allocation5 + $0x1e0] sm:$0xff] %vm3599_vm4, %v3564_v11  ;;  %3940 = vrot.lane.b32.xlu1 %v3851_v14, %s9101_s20 }
 0x4f1   : > { %3938 = vrot.lane.b32.xlu0 %v3850_v32, %s9101_s20  ;;  %v4041_v32 = vld [vmem:[#allocation3 + $0x13a] sm:$0xff] }
 0x4f2   : > { %v3700_v62 = vpop.permute.xlu1 %3699 }
 0x4f3   : > { %3795 = vst.msk [vmem:[#allocation5 + $0x10] sm:$0xff] %vm3793_vm5, %v3700_v62  ;;  %v3698_v29 = vpop.permute.xlu0 %3697 }
 0x4f4   : > { %3794 = vst.msk [vmem:[#allocation5] sm:$0xff] %vm3793_vm5, %v3698_v29  ;;  %3944 = vrot.lane.b32.xlu1 %v3853_v50, %s9101_s20  ;;  %v4044_v29 = vld [vmem:[#allocation3 + $0x15a] sm:$0xff]  ;;  %v4043_v50 = vld [vmem:[#allocation3 + $0x152] sm:$0xff] }
 0x4f5   : > { %3942 = vrot.lane.b32.xlu0 %v3852_v48, %s9101_s20 }
 0x4f6   : > { %v3704_v57 = vpop.permute.xlu1 %3703 }
 0x4f7   : > { %3797 = vst.msk [vmem:[#allocation5 + $0x30] sm:$0xff] %vm3793_vm5, %v3704_v57  ;;  %v3702_v55 = vpop.permute.xlu0 %3701  ;;  %v4046_v57 = vld [vmem:[#allocation3 + $0x172] sm:$0xff] }
 0x4f8   : > { %3796 = vst.msk [vmem:[#allocation5 + $0x20] sm:$0xff] %vm3793_vm5, %v3702_v55  ;;  %3948 = vrot.lane.b32.xlu1 %v11129_v40, %s9101_s20 }
 0x4f9   : > { %3946 = vrot.lane.b32.xlu0 %v11134_v53, %s9101_s20  ;;  %v4019_v53 = vld [vmem:[#allocation3 + $0x32] sm:$0xff] }
 0x4fa   : > { %v3708_v0 = vpop.permute.xlu1 %3707 }
 0x4fb   : > { %3799 = vst.msk [vmem:[#allocation5 + $0x50] sm:$0xff] %vm3793_vm5, %v3708_v0  ;;  %v3706_v26 = vpop.permute.xlu0 %3705 }
 0x4fc   : > { %3798 = vst.msk [vmem:[#allocation5 + $0x40] sm:$0xff] %vm3793_vm5, %v3706_v26  ;;  %3952 = vrot.lane.b32.xlu1 %v3857_v42, %s9101_s20  ;;  %v4050_v42 = vld [vmem:[#allocation3 + $0x1a2] sm:$0xff] }
 0x4fd   : > { %3950 = vrot.lane.b32.xlu0 %v3856_v34, %s9101_s20  ;;  %v4049_v34 = vld [vmem:[#allocation3 + $0x19a] sm:$0xff] }
 0x4fe   : > { %v3712_v43 = vpop.permute.xlu1 %3711 }
 0x4ff   : > { %3801 = vst.msk [vmem:[#allocation5 + $0x70] sm:$0xff] %vm3793_vm5, %v3712_v43  ;;  %v3710_v40 = vpop.permute.xlu0 %3709  ;;  %v4213_v43 = vld [vmem:[#allocation4 + $0x8] sm:$0xff] }
 0x500   : > { %3800 = vst.msk [vmem:[#allocation5 + $0x60] sm:$0xff] %vm3793_vm5, %v3710_v40  ;;  %4085 = vrot.lane.b32.xlu1 %v4020_v44, %s9102_s21  ;;  %v4212_v44 = vld [vmem:[#allocation4] sm:$0xff] }
 0x501   : > { %4083 = vrot.lane.b32.xlu0 %v4019_v53, %s9102_s21 }
 0x502   : > { %v3716_v31 = vpop.permute.xlu1 %3715 }
 0x503   : > { %3803 = vst.msk [vmem:[#allocation5 + $0x90] sm:$0xff] %vm3793_vm5, %v3716_v31  ;;  %v3714_v63 = vpop.permute.xlu0 %3713  ;;  %v11536_v31 = vld [vmem:[#allocation4 + $0x18] sm:$0xff] }
 0x504   : > { %3802 = vst.msk [vmem:[#allocation5 + $0x80] sm:$0xff] %vm3793_vm5, %v3714_v63  ;;  %4089 = vrot.lane.b32.xlu1 %v4022_v19, %s9102_s21  ;;  %v11544_v19 = vld [vmem:[#allocation4 + $0x38] sm:$0xff] }
 0x505   : > { %4087 = vrot.lane.b32.xlu0 %v4021_v35, %s9102_s21 }
 0x506   : > { %v3720_v46 = vpop.permute.xlu1 %3719 }
 0x507   : > { %3805 = vst.msk [vmem:[#allocation5 + $0xb0] sm:$0xff] %vm3793_vm5, %v3720_v46  ;;  %v3718_v30 = vpop.permute.xlu0 %3717  ;;  %v11546_v46 = vld [vmem:[#allocation4 + $0x30] sm:$0xff] }
 0x508   : > { %3804 = vst.msk [vmem:[#allocation5 + $0xa0] sm:$0xff] %vm3793_vm5, %v3718_v30  ;;  %4093 = vrot.lane.b32.xlu1 %v4024_v51, %s9102_s21  ;;  %v11554_v51 = vld [vmem:[#allocation4 + $0x50] sm:$0xff] }
 0x509   : > { %4091 = vrot.lane.b32.xlu0 %v4023_v54, %s9102_s21 }
 0x50a   : > { %v3724_v61 = vpop.permute.xlu1 %3723 }
 0x50b   : > { %3807 = vst.msk [vmem:[#allocation5 + $0xd0] sm:$0xff] %vm3793_vm5, %v3724_v61  ;;  %v3722_v1 = vpop.permute.xlu0 %3721  ;;  %v11556_v61 = vld [vmem:[#allocation4 + $0x48] sm:$0xff] }
 0x50c   : > { %3806 = vst.msk [vmem:[#allocation5 + $0xc0] sm:$0xff] %vm3793_vm5, %v3722_v1  ;;  %4097 = vrot.lane.b32.xlu1 %v4026_v7, %s9102_s21  ;;  %v11564_v7 = vld [vmem:[#allocation4 + $0x68] sm:$0xff] }
 0x50d   : > { %4095 = vrot.lane.b32.xlu0 %v4025_v9, %s9102_s21 }
 0x50e   : > { %v3728_v21 = vpop.permute.xlu1 %3727 }
 0x50f   : > { %3809 = vst.msk [vmem:[#allocation5 + $0xf0] sm:$0xff] %vm3793_vm5, %v3728_v21  ;;  %v3726_v47 = vpop.permute.xlu0 %3725  ;;  %v11566_v21 = vld [vmem:[#allocation4 + $0x60] sm:$0xff] }
 0x510   : > { %3808 = vst.msk [vmem:[#allocation5 + $0xe0] sm:$0xff] %vm3793_vm5, %v3726_v47  ;;  %4101 = vrot.lane.b32.xlu1 %v4028_v15, %s9102_s21  ;;  %v11574_v15 = vld [vmem:[#allocation4 + $0x80] sm:$0xff] }
 0x511   : > { %4099 = vrot.lane.b32.xlu0 %v4027_v23, %s9102_s21 }
 0x512   : > { %v3732_v45 = vpop.permute.xlu1 %3731 }
 0x513   : > { %3811 = vst.msk [vmem:[#allocation5 + $0x110] sm:$0xff] %vm3793_vm5, %v3732_v45  ;;  %v3730_v52 = vpop.permute.xlu0 %3729  ;;  %v11576_v45 = vld [vmem:[#allocation4 + $0x78] sm:$0xff] }
 0x514   : > { %3810 = vst.msk [vmem:[#allocation5 + $0x100] sm:$0xff] %vm3793_vm5, %v3730_v52  ;;  %4105 = vrot.lane.b32.xlu1 %v4030_v2, %s9102_s21  ;;  %v11584_v2 = vld [vmem:[#allocation4 + $0x98] sm:$0xff] }
 0x515   : > { %4103 = vrot.lane.b32.xlu0 %v4029_v8, %s9102_s21 }
 0x516   : > { %v3736_v56 = vpop.permute.xlu1 %3735 }
 0x517   : > { %3813 = vst.msk [vmem:[#allocation5 + $0x130] sm:$0xff] %vm3793_vm5, %v3736_v56  ;;  %v3734_v22 = vpop.permute.xlu0 %3733  ;;  %v11586_v56 = vld [vmem:[#allocation4 + $0x90] sm:$0xff] }
 0x518   : > { %3812 = vst.msk [vmem:[#allocation5 + $0x120] sm:$0xff] %vm3793_vm5, %v3734_v22  ;;  %4109 = vrot.lane.b32.xlu1 %v4032_v60, %s9102_s21  ;;  %v11594_v60 = vld [vmem:[#allocation4 + $0xb0] sm:$0xff] }
 0x519   : > { %4107 = vrot.lane.b32.xlu0 %v4031_v6, %s9102_s21 }
 0x51a   : > { %v3740_v27 = vpop.permute.xlu1 %3739 }
 0x51b   : > { %3815 = vst.msk [vmem:[#allocation5 + $0x150] sm:$0xff] %vm3793_vm5, %v3740_v27  ;;  %v3738_v20 = vpop.permute.xlu0 %3737  ;;  %v11596_v27 = vld [vmem:[#allocation4 + $0xa8] sm:$0xff] }
 0x51c   : > { %3814 = vst.msk [vmem:[#allocation5 + $0x140] sm:$0xff] %vm3793_vm5, %v3738_v20  ;;  %4113 = vrot.lane.b32.xlu1 %v4034_v49, %s9102_s21  ;;  %v11604_v49 = vld [vmem:[#allocation4 + $0xc8] sm:$0xff] }
 0x51d   : > { %4111 = vrot.lane.b32.xlu0 %v4033_v13, %s9102_s21 }
 0x51e   : > { %v3744_v28 = vpop.permute.xlu1 %3743 }
 0x51f   : > { %3817 = vst.msk [vmem:[#allocation5 + $0x170] sm:$0xff] %vm3793_vm5, %v3744_v28  ;;  %v3742_v18 = vpop.permute.xlu0 %3741  ;;  %v11606_v28 = vld [vmem:[#allocation4 + $0xc0] sm:$0xff] }
 0x520   : > { %3816 = vst.msk [vmem:[#allocation5 + $0x160] sm:$0xff] %vm3793_vm5, %v3742_v18  ;;  %4117 = vrot.lane.b32.xlu1 %v4036_v33, %s9102_s21  ;;  %v11614_v33 = vld [vmem:[#allocation4 + $0xe0] sm:$0xff] }
 0x521   : > { %4115 = vrot.lane.b32.xlu0 %v4035_v25, %s9102_s21 }
 0x522   : > { %v3748_v39 = vpop.permute.xlu1 %3747 }
 0x523   : > { %3819 = vst.msk [vmem:[#allocation5 + $0x190] sm:$0xff] %vm3793_vm5, %v3748_v39  ;;  %v3746_v38 = vpop.permute.xlu0 %3745  ;;  %v11616_v39 = vld [vmem:[#allocation4 + $0xd8] sm:$0xff] }
 0x524   : > { %3818 = vst.msk [vmem:[#allocation5 + $0x180] sm:$0xff] %vm3793_vm5, %v3746_v38  ;;  %4121 = vrot.lane.b32.xlu1 %v4038_v59, %s9102_s21  ;;  %v11624_v59 = vld [vmem:[#allocation4 + $0xf8] sm:$0xff] }
 0x525   : > { %4119 = vrot.lane.b32.xlu0 %v4037_v58, %s9102_s21 }
 0x526   : > { %v3752_v5 = vpop.permute.xlu1 %3751 }
 0x527   : > { %3821 = vst.msk [vmem:[#allocation5 + $0x1b0] sm:$0xff] %vm3793_vm5, %v3752_v5  ;;  %v3750_v4 = vpop.permute.xlu0 %3749  ;;  %v11626_v5 = vld [vmem:[#allocation4 + $0xf0] sm:$0xff] }
 0x528   : > { %3820 = vst.msk [vmem:[#allocation5 + $0x1a0] sm:$0xff] %vm3793_vm5, %v3750_v4  ;;  %4125 = vrot.lane.b32.xlu1 %v4040_v41, %s9102_s21  ;;  %v11634_v41 = vld [vmem:[#allocation4 + $0x110] sm:$0xff] }
 0x529   : > { %4123 = vrot.lane.b32.xlu0 %v4039_v24, %s9102_s21 }
 0x52a   : > { %v3756_v11 = vpop.permute.xlu1 %3755 }
 0x52b   : > { %3823 = vst.msk [vmem:[#allocation5 + $0x1d0] sm:$0xff] %vm3793_vm5, %v3756_v11  ;;  %v3754_v14 = vpop.permute.xlu0 %3753  ;;  %v11636_v11 = vld [vmem:[#allocation4 + $0x108] sm:$0xff] }
 0x52c   : > { %3822 = vst.msk [vmem:[#allocation5 + $0x1c0] sm:$0xff] %vm3793_vm5, %v3754_v14  ;;  %4129 = vrot.lane.b32.xlu1 %v4042_v37, %s9102_s21  ;;  %v11644_v37 = vld [vmem:[#allocation4 + $0x128] sm:$0xff] }
 0x52d   : > { %4127 = vrot.lane.b32.xlu0 %v4041_v32, %s9102_s21 }
 0x52e   : > { %v3760_v62 = vpop.permute.xlu1 %3759 }
 0x52f   : > { %3825 = vst.msk [vmem:[#allocation5 + $0x1f0] sm:$0xff] %vm3793_vm5, %v3760_v62  ;;  %v3758_v3 = vpop.permute.xlu0 %3757  ;;  %v11646_v62 = vld [vmem:[#allocation4 + $0x120] sm:$0xff] }
 0x530   : > { %3824 = vst.msk [vmem:[#allocation5 + $0x1e0] sm:$0xff] %vm3793_vm5, %v3758_v3  ;;  %4133 = vrot.lane.b32.xlu1 %v4044_v29, %s9102_s21  ;;  %v11654_v29 = vld [vmem:[#allocation4 + $0x140] sm:$0xff] }
 0x531   : > { %4131 = vrot.lane.b32.xlu0 %v4043_v50, %s9102_s21 }
 0x532   : > { %v3893_v17 = vpop.permute.xlu1 %3892 }
 0x533   : > { %3988 = vst.msk [vmem:[#allocation5 + $0x10] sm:$0xff] %vm3986_vm6, %v3893_v17  ;;  %v3891_v48 = vpop.permute.xlu0 %3890  ;;  %v11656_v17 = vld [vmem:[#allocation4 + $0x138] sm:$0xff] }
 0x534   : > { %3987 = vst.msk [vmem:[#allocation5] sm:$0xff] %vm3986_vm6, %v3891_v48  ;;  %4137 = vrot.lane.b32.xlu1 %v4046_v57, %s9102_s21  ;;  %v11664_v57 = vld [vmem:[#allocation4 + $0x158] sm:$0xff] }
 0x535   : > { %4135 = vrot.lane.b32.xlu0 %v4045_v10, %s9102_s21 }
 0x536   : > { %v3897_v55 = vpop.permute.xlu1 %3896 }
 0x537   : > { %3990 = vst.msk [vmem:[#allocation5 + $0x30] sm:$0xff] %vm3986_vm6, %v3897_v55  ;;  %v3895_v36 = vpop.permute.xlu0 %3894  ;;  %v11666_v55 = vld [vmem:[#allocation4 + $0x150] sm:$0xff] }
 0x538   : > { %3989 = vst.msk [vmem:[#allocation5 + $0x20] sm:$0xff] %vm3986_vm6, %v3895_v36  ;;  %4141 = vrot.lane.b32.xlu1 %v11229_v12, %s9102_s21 }
 0x539   : > { %4139 = vrot.lane.b32.xlu0 %v11234_v16, %s9102_s21  ;;  %v11534_v16 = vld [vmem:[#allocation4 + $0x20] sm:$0xff] }
 0x53a   : > { %v3901_v0 = vpop.permute.xlu1 %3900 }
 0x53b   : > { %3992 = vst.msk [vmem:[#allocation5 + $0x50] sm:$0xff] %vm3986_vm6, %v3901_v0  ;;  %v3899_v26 = vpop.permute.xlu0 %3898 }
 0x53c   : > { %3991 = vst.msk [vmem:[#allocation5 + $0x40] sm:$0xff] %vm3986_vm6, %v3899_v26  ;;  %4145 = vrot.lane.b32.xlu1 %v4050_v42, %s9102_s21  ;;  %v11674_v42 = vld [vmem:[#allocation4 + $0x170] sm:$0xff] }
 0x53d   : > { %4143 = vrot.lane.b32.xlu0 %v4049_v34, %s9102_s21  ;;  %v11676_v34 = vld [vmem:[#allocation4 + $0x168] sm:$0xff] }
 0x53e   : > { %v3905_v40 = vpop.permute.xlu1 %3904 }
 0x53f   : > { %3994 = vst.msk [vmem:[#allocation5 + $0x70] sm:$0xff] %vm3986_vm6, %v3905_v40  ;;  %v3903_v12 = vpop.permute.xlu0 %3902 }
 0x540   : > { %3993 = vst.msk [vmem:[#allocation5 + $0x60] sm:$0xff] %vm3986_vm6, %v3903_v12  ;;  %4278 = vrot.lane.b32.xlu1 %v4213_v43, %s9103_s22  ;;  %v4406_v43 = vld [vmem:[#allocation4 + $0x9] sm:$0xff] }
 0x541   : > { %4276 = vrot.lane.b32.xlu0 %v4212_v44, %s9103_s22  ;;  %v4405_v44 = vld [vmem:[#allocation4 + $0x1] sm:$0xff] }
 0x542   : > { %v3909_v53 = vpop.permute.xlu1 %3908 }
 0x543   : > { %3996 = vst.msk [vmem:[#allocation5 + $0x90] sm:$0xff] %vm3986_vm6, %v3909_v53  ;;  %v3907_v63 = vpop.permute.xlu0 %3906  ;;  %v11688_v53 = vld [vmem:[#allocation4 + $0x21] sm:$0xff] }
 0x544   : > { %3995 = vst.msk [vmem:[#allocation5 + $0x80] sm:$0xff] %vm3986_vm6, %v3907_v63  ;;  %4282 = vrot.lane.b32.xlu1 %v11534_v16, %s9103_s22 }
 0x545   : > { %4280 = vrot.lane.b32.xlu0 %v11536_v31, %s9103_s22 }
 0x546   : > { %v3913_v35 = vpop.permute.xlu1 %3912 }
 0x547   : > { %3998 = vst.msk [vmem:[#allocation5 + $0xb0] sm:$0xff] %vm3986_vm6, %v3913_v35  ;;  %v3911_v30 = vpop.permute.xlu0 %3910  ;;  %v11690_v35 = vld [vmem:[#allocation4 + $0x19] sm:$0xff] }
 0x548   : > { %3997 = vst.msk [vmem:[#allocation5 + $0xa0] sm:$0xff] %vm3986_vm6, %v3911_v30  ;;  %4286 = vrot.lane.b32.xlu1 %v11544_v19, %s9103_s22 }
 0x549   : > { %4284 = vrot.lane.b32.xlu0 %v11546_v46, %s9103_s22 }
 0x54a   : > { %v3917_v54 = vpop.permute.xlu1 %3916 }
 0x54b   : > { %4000 = vst.msk [vmem:[#allocation5 + $0xd0] sm:$0xff] %vm3986_vm6, %v3917_v54  ;;  %v3915_v1 = vpop.permute.xlu0 %3914  ;;  %v11698_v54 = vld [vmem:[#allocation4 + $0x39] sm:$0xff] }
 0x54c   : > { %3999 = vst.msk [vmem:[#allocation5 + $0xc0] sm:$0xff] %vm3986_vm6, %v3915_v1  ;;  %4290 = vrot.lane.b32.xlu1 %v11554_v51, %s9103_s22 }
 0x54d   : > { %4288 = vrot.lane.b32.xlu0 %v11556_v61, %s9103_s22 }
 0x54e   : > { %v3921_v9 = vpop.permute.xlu1 %3920 }
 0x54f   : > { %4002 = vst.msk [vmem:[#allocation5 + $0xf0] sm:$0xff] %vm3986_vm6, %v3921_v9  ;;  %v3919_v47 = vpop.permute.xlu0 %3918  ;;  %v11700_v9 = vld [vmem:[#allocation4 + $0x31] sm:$0xff] }
 0x550   : > { %4001 = vst.msk [vmem:[#allocation5 + $0xe0] sm:$0xff] %vm3986_vm6, %v3919_v47  ;;  %4294 = vrot.lane.b32.xlu1 %v11564_v7, %s9103_s22 }
 0x551   : > { %4292 = vrot.lane.b32.xlu0 %v11566_v21, %s9103_s22 }
 0x552   : > { %v3925_v23 = vpop.permute.xlu1 %3924 }
 0x553   : > { %4004 = vst.msk [vmem:[#allocation5 + $0x110] sm:$0xff] %vm3986_vm6, %v3925_v23  ;;  %v3923_v52 = vpop.permute.xlu0 %3922  ;;  %v11708_v23 = vld [vmem:[#allocation4 + $0x51] sm:$0xff] }
 0x554   : > { %4003 = vst.msk [vmem:[#allocation5 + $0x100] sm:$0xff] %vm3986_vm6, %v3923_v52  ;;  %4298 = vrot.lane.b32.xlu1 %v11574_v15, %s9103_s22 }
 0x555   : > { %4296 = vrot.lane.b32.xlu0 %v11576_v45, %s9103_s22 }
 0x556   : > { %v3929_v8 = vpop.permute.xlu1 %3928 }
 0x557   : > { %4006 = vst.msk [vmem:[#allocation5 + $0x130] sm:$0xff] %vm3986_vm6, %v3929_v8  ;;  %v3927_v22 = vpop.permute.xlu0 %3926  ;;  %v11710_v8 = vld [vmem:[#allocation4 + $0x49] sm:$0xff] }
 0x558   : > { %4005 = vst.msk [vmem:[#allocation5 + $0x120] sm:$0xff] %vm3986_vm6, %v3927_v22  ;;  %4302 = vrot.lane.b32.xlu1 %v11584_v2, %s9103_s22 }
 0x559   : > { %4300 = vrot.lane.b32.xlu0 %v11586_v56, %s9103_s22 }
 0x55a   : > { %v3933_v6 = vpop.permute.xlu1 %3932 }
 0x55b   : > { %4008 = vst.msk [vmem:[#allocation5 + $0x150] sm:$0xff] %vm3986_vm6, %v3933_v6  ;;  %v3931_v20 = vpop.permute.xlu0 %3930  ;;  %v11718_v6 = vld [vmem:[#allocation4 + $0x69] sm:$0xff] }
 0x55c   : > { %4007 = vst.msk [vmem:[#allocation5 + $0x140] sm:$0xff] %vm3986_vm6, %v3931_v20  ;;  %4306 = vrot.lane.b32.xlu1 %v11594_v60, %s9103_s22 }
 0x55d   : > { %4304 = vrot.lane.b32.xlu0 %v11596_v27, %s9103_s22 }
 0x55e   : > { %v3937_v13 = vpop.permute.xlu1 %3936 }
 0x55f   : > { %4010 = vst.msk [vmem:[#allocation5 + $0x170] sm:$0xff] %vm3986_vm6, %v3937_v13  ;;  %v3935_v18 = vpop.permute.xlu0 %3934  ;;  %v11720_v13 = vld [vmem:[#allocation4 + $0x61] sm:$0xff] }
 0x560   : > { %4009 = vst.msk [vmem:[#allocation5 + $0x160] sm:$0xff] %vm3986_vm6, %v3935_v18  ;;  %4310 = vrot.lane.b32.xlu1 %v11604_v49, %s9103_s22 }
 0x561   : > { %4308 = vrot.lane.b32.xlu0 %v11606_v28, %s9103_s22 }
 0x562   : > { %v3941_v25 = vpop.permute.xlu1 %3940 }
 0x563   : > { %4012 = vst.msk [vmem:[#allocation5 + $0x190] sm:$0xff] %vm3986_vm6, %v3941_v25  ;;  %v3939_v38 = vpop.permute.xlu0 %3938  ;;  %v11728_v25 = vld [vmem:[#allocation4 + $0x81] sm:$0xff] }
 0x564   : > { %4011 = vst.msk [vmem:[#allocation5 + $0x180] sm:$0xff] %vm3986_vm6, %v3939_v38  ;;  %4314 = vrot.lane.b32.xlu1 %v11614_v33, %s9103_s22 }
 0x565   : > { %4312 = vrot.lane.b32.xlu0 %v11616_v39, %s9103_s22 }
 0x566   : > { %v3945_v58 = vpop.permute.xlu1 %3944 }
 0x567   : > { %4014 = vst.msk [vmem:[#allocation5 + $0x1b0] sm:$0xff] %vm3986_vm6, %v3945_v58  ;;  %v3943_v4 = vpop.permute.xlu0 %3942  ;;  %v11730_v58 = vld [vmem:[#allocation4 + $0x79] sm:$0xff] }
 0x568   : > { %4013 = vst.msk [vmem:[#allocation5 + $0x1a0] sm:$0xff] %vm3986_vm6, %v3943_v4  ;;  %4318 = vrot.lane.b32.xlu1 %v11624_v59, %s9103_s22 }
 0x569   : > { %4316 = vrot.lane.b32.xlu0 %v11626_v5, %s9103_s22 }
 0x56a   : > { %v3949_v24 = vpop.permute.xlu1 %3948 }
 0x56b   : > { %4016 = vst.msk [vmem:[#allocation5 + $0x1d0] sm:$0xff] %vm3986_vm6, %v3949_v24  ;;  %v3947_v14 = vpop.permute.xlu0 %3946  ;;  %v11738_v24 = vld [vmem:[#allocation4 + $0x99] sm:$0xff] }
 0x56c   : > { %4015 = vst.msk [vmem:[#allocation5 + $0x1c0] sm:$0xff] %vm3986_vm6, %v3947_v14  ;;  %4322 = vrot.lane.b32.xlu1 %v11634_v41, %s9103_s22 }
 0x56d   : > { %4320 = vrot.lane.b32.xlu0 %v11636_v11, %s9103_s22 }
 0x56e   : > { %v3953_v32 = vpop.permute.xlu1 %3952 }
 0x56f   : > { %4018 = vst.msk [vmem:[#allocation5 + $0x1f0] sm:$0xff] %vm3986_vm6, %v3953_v32  ;;  %v3951_v3 = vpop.permute.xlu0 %3950  ;;  %v11740_v32 = vld [vmem:[#allocation4 + $0x91] sm:$0xff] }
 0x570   : > { %4017 = vst.msk [vmem:[#allocation5 + $0x1e0] sm:$0xff] %vm3986_vm6, %v3951_v3  ;;  %4326 = vrot.lane.b32.xlu1 %v11644_v37, %s9103_s22 }
 0x571   : > { %4324 = vrot.lane.b32.xlu0 %v11646_v62, %s9103_s22 }
 0x572   : > { %v4086_v50 = vpop.permute.xlu1 %4085 }
 0x573   : > { %4181 = vst.msk [vmem:[#allocation5 + $0x10] sm:$0xff] %vm4179_vm7, %v4086_v50  ;;  %v4084_v48 = vpop.permute.xlu0 %4083  ;;  %v11748_v50 = vld [vmem:[#allocation4 + $0xb1] sm:$0xff] }
 0x574   : > { %4180 = vst.msk [vmem:[#allocation5] sm:$0xff] %vm4179_vm7, %v4084_v48  ;;  %4330 = vrot.lane.b32.xlu1 %v11654_v29, %s9103_s22 }
 0x575   : > { %4328 = vrot.lane.b32.xlu0 %v11656_v17, %s9103_s22 }
 0x576   : > { %v4090_v10 = vpop.permute.xlu1 %4089 }
 0x577   : > { %4183 = vst.msk [vmem:[#allocation5 + $0x30] sm:$0xff] %vm4179_vm7, %v4090_v10  ;;  %v4088_v36 = vpop.permute.xlu0 %4087  ;;  %v11750_v10 = vld [vmem:[#allocation4 + $0xa9] sm:$0xff] }
 0x578   : > { %4182 = vst.msk [vmem:[#allocation5 + $0x20] sm:$0xff] %vm4179_vm7, %v4088_v36  ;;  %4334 = vrot.lane.b32.xlu1 %v11664_v57, %s9103_s22 }
 0x579   : > { %4332 = vrot.lane.b32.xlu0 %v11666_v55, %s9103_s22 }
 0x57a   : > { %v4094_v0 = vpop.permute.xlu1 %4093 }
 0x57b   : > { %4185 = vst.msk [vmem:[#allocation5 + $0x50] sm:$0xff] %vm4179_vm7, %v4094_v0  ;;  %v4092_v26 = vpop.permute.xlu0 %4091  ;;  %v11758_v0 = vld [vmem:[#allocation4 + $0xc9] sm:$0xff] }
 0x57c   : > { %4184 = vst.msk [vmem:[#allocation5 + $0x40] sm:$0xff] %vm4179_vm7, %v4092_v26  ;;  %4338 = vrot.lane.b32.xlu1 %v11674_v42, %s9103_s22 }
 0x57d   : > { %4336 = vrot.lane.b32.xlu0 %v11676_v34, %s9103_s22 }
 0x57e   : > { %v4098_v40 = vpop.permute.xlu1 %4097 }
 0x57f   : > { %4187 = vst.msk [vmem:[#allocation5 + $0x70] sm:$0xff] %vm4179_vm7, %v4098_v40  ;;  %v4096_v12 = vpop.permute.xlu0 %4095 }
 0x580   : > { %4186 = vst.msk [vmem:[#allocation5 + $0x60] sm:$0xff] %vm4179_vm7, %v4096_v12  ;;  %4471 = vrot.lane.b32.xlu1 %v4406_v43, %s9104_s23  ;;  %v11760_v43 = vld [vmem:[#allocation4 + $0xc1] sm:$0xff] }
 0x581   : > { %4469 = vrot.lane.b32.xlu0 %v4405_v44, %s9104_s23  ;;  %v11768_v44 = vld [vmem:[#allocation4 + $0xe1] sm:$0xff] }
 0x582   : > { %v4102_v63 = vpop.permute.xlu1 %4101 }
 0x583   : > { %4189 = vst.msk [vmem:[#allocation5 + $0x90] sm:$0xff] %vm4179_vm7, %v4102_v63  ;;  %v4100_v30 = vpop.permute.xlu0 %4099  ;;  %v11770_v63 = vld [vmem:[#allocation4 + $0xd9] sm:$0xff] }
 0x584   : > { %4188 = vst.msk [vmem:[#allocation5 + $0x80] sm:$0xff] %vm4179_vm7, %v4100_v30  ;;  %4475 = vrot.lane.b32.xlu1 %v11688_v53, %s9104_s23 }
 0x585   : > { %4473 = vrot.lane.b32.xlu0 %v11690_v35, %s9104_s23 }
 0x586   : > { %v4106_v1 = vpop.permute.xlu1 %4105 }
 0x587   : > { %4191 = vst.msk [vmem:[#allocation5 + $0xb0] sm:$0xff] %vm4179_vm7, %v4106_v1  ;;  %v4104_v47 = vpop.permute.xlu0 %4103  ;;  %v11778_v1 = vld [vmem:[#allocation4 + $0xf9] sm:$0xff] }
 0x588   : > { %4190 = vst.msk [vmem:[#allocation5 + $0xa0] sm:$0xff] %vm4179_vm7, %v4104_v47  ;;  %4479 = vrot.lane.b32.xlu1 %v11698_v54, %s9104_s23 }
 0x589   : > { %4477 = vrot.lane.b32.xlu0 %v11700_v9, %s9104_s23 }
 0x58a   : > { %v4110_v52 = vpop.permute.xlu1 %4109 }
 0x58b   : > { %4193 = vst.msk [vmem:[#allocation5 + $0xd0] sm:$0xff] %vm4179_vm7, %v4110_v52  ;;  %v4108_v22 = vpop.permute.xlu0 %4107  ;;  %v11780_v52 = vld [vmem:[#allocation4 + $0xf1] sm:$0xff] }
 0x58c   : > { %4192 = vst.msk [vmem:[#allocation5 + $0xc0] sm:$0xff] %vm4179_vm7, %v4108_v22  ;;  %4483 = vrot.lane.b32.xlu1 %v11708_v23, %s9104_s23 }
 0x58d   : > { %4481 = vrot.lane.b32.xlu0 %v11710_v8, %s9104_s23 }
 0x58e   : > { %v4114_v20 = vpop.permute.xlu1 %4113 }
 0x58f   : > { %4195 = vst.msk [vmem:[#allocation5 + $0xf0] sm:$0xff] %vm4179_vm7, %v4114_v20  ;;  %v4112_v18 = vpop.permute.xlu0 %4111  ;;  %v11788_v20 = vld [vmem:[#allocation4 + $0x111] sm:$0xff] }
 0x590   : > { %4194 = vst.msk [vmem:[#allocation5 + $0xe0] sm:$0xff] %vm4179_vm7, %v4112_v18  ;;  %4487 = vrot.lane.b32.xlu1 %v11718_v6, %s9104_s23 }
 0x591   : > { %4485 = vrot.lane.b32.xlu0 %v11720_v13, %s9104_s23 }
 0x592   : > { %v4118_v38 = vpop.permute.xlu1 %4117 }
 0x593   : > { %4197 = vst.msk [vmem:[#allocation5 + $0x110] sm:$0xff] %vm4179_vm7, %v4118_v38  ;;  %v4116_v4 = vpop.permute.xlu0 %4115  ;;  %v11790_v38 = vld [vmem:[#allocation4 + $0x109] sm:$0xff] }
 0x594   : > { %4196 = vst.msk [vmem:[#allocation5 + $0x100] sm:$0xff] %vm4179_vm7, %v4116_v4  ;;  %4491 = vrot.lane.b32.xlu1 %v11728_v25, %s9104_s23 }
 0x595   : > { %4489 = vrot.lane.b32.xlu0 %v11730_v58, %s9104_s23 }
 0x596   : > { %v4122_v14 = vpop.permute.xlu1 %4121 }
 0x597   : > { %4199 = vst.msk [vmem:[#allocation5 + $0x130] sm:$0xff] %vm4179_vm7, %v4122_v14  ;;  %v4120_v3 = vpop.permute.xlu0 %4119  ;;  %v11798_v14 = vld [vmem:[#allocation4 + $0x129] sm:$0xff] }
 0x598   : > { %4198 = vst.msk [vmem:[#allocation5 + $0x120] sm:$0xff] %vm4179_vm7, %v4120_v3  ;;  %4495 = vrot.lane.b32.xlu1 %v11738_v24, %s9104_s23 }
 0x599   : > { %4493 = vrot.lane.b32.xlu0 %v11740_v32, %s9104_s23 }
 0x59a   : > { %v4126_v48 = vpop.permute.xlu1 %4125 }
 0x59b   : > { %4201 = vst.msk [vmem:[#allocation5 + $0x150] sm:$0xff] %vm4179_vm7, %v4126_v48  ;;  %v4124_v36 = vpop.permute.xlu0 %4123  ;;  %v11800_v48 = vld [vmem:[#allocation4 + $0x121] sm:$0xff] }
 0x59c   : > { %4200 = vst.msk [vmem:[#allocation5 + $0x140] sm:$0xff] %vm4179_vm7, %v4124_v36  ;;  %4499 = vrot.lane.b32.xlu1 %v11748_v50, %s9104_s23 }
 0x59d   : > { %4497 = vrot.lane.b32.xlu0 %v11750_v10, %s9104_s23 }
 0x59e   : > { %v4130_v26 = vpop.permute.xlu1 %4129 }
 0x59f   : > { %4203 = vst.msk [vmem:[#allocation5 + $0x170] sm:$0xff] %vm4179_vm7, %v4130_v26  ;;  %v4128_v40 = vpop.permute.xlu0 %4127  ;;  %v11808_v26 = vld [vmem:[#allocation4 + $0x141] sm:$0xff] }
 0x5a0   : > { %4202 = vst.msk [vmem:[#allocation5 + $0x160] sm:$0xff] %vm4179_vm7, %v4128_v40  ;;  %4503 = vrot.lane.b32.xlu1 %v11758_v0, %s9104_s23  ;;  %14140 = vst [vmem:[#allocation6_spill] sm:$0xff] %v11808_v26 }
 0x5a1   : > { %4501 = vrot.lane.b32.xlu0 %v11760_v43, %s9104_s23 }
 0x5a2   : > { %v4134_v12 = vpop.permute.xlu1 %4133 }
 0x5a3   : > { %4205 = vst.msk [vmem:[#allocation5 + $0x190] sm:$0xff] %vm4179_vm7, %v4134_v12  ;;  %v4132_v30 = vpop.permute.xlu0 %4131  ;;  %v11810_v12 = vld [vmem:[#allocation4 + $0x139] sm:$0xff] }
 0x5a4   : > { %4204 = vst.msk [vmem:[#allocation5 + $0x180] sm:$0xff] %vm4179_vm7, %v4132_v30  ;;  %4507 = vrot.lane.b32.xlu1 %v11768_v44, %s9104_s23  ;;  %14141 = vst [vmem:[#allocation7_spill] sm:$0xff] %v11810_v12 }
 0x5a5   : > { %4505 = vrot.lane.b32.xlu0 %v11770_v63, %s9104_s23 }
 0x5a6   : > { %v4138_v47 = vpop.permute.xlu1 %4137 }
 0x5a7   : > { %4207 = vst.msk [vmem:[#allocation5 + $0x1b0] sm:$0xff] %vm4179_vm7, %v4138_v47  ;;  %v4136_v22 = vpop.permute.xlu0 %4135  ;;  %v11818_v47 = vld [vmem:[#allocation4 + $0x159] sm:$0xff] }
 0x5a8   : > { %4206 = vst.msk [vmem:[#allocation5 + $0x1a0] sm:$0xff] %vm4179_vm7, %v4136_v22  ;;  %4511 = vrot.lane.b32.xlu1 %v11778_v1, %s9104_s23 }
 0x5a9   : > { %4509 = vrot.lane.b32.xlu0 %v11780_v52, %s9104_s23 }
 0x5aa   : > { %v4142_v18 = vpop.permute.xlu1 %4141 }
 0x5ab   : > { %4209 = vst.msk [vmem:[#allocation5 + $0x1d0] sm:$0xff] %vm4179_vm7, %v4142_v18  ;;  %v4140_v4 = vpop.permute.xlu0 %4139  ;;  %v11820_v18 = vld [vmem:[#allocation4 + $0x151] sm:$0xff] }
 0x5ac   : > { %4208 = vst.msk [vmem:[#allocation5 + $0x1c0] sm:$0xff] %vm4179_vm7, %v4140_v4  ;;  %4515 = vrot.lane.b32.xlu1 %v11788_v20, %s9104_s23  ;;  %14142 = vst [vmem:[#allocation8_spill] sm:$0xff] %v11820_v18  ;;  %v556_v4 = vld [vmem:[%s11336_s19 + $0xf0] sm:$0xff] }
 0x5ad   : > { %4513 = vrot.lane.b32.xlu0 %v11790_v38, %s9104_s23  ;;  %589 = vst.msk [vmem:[#allocation4 + $0x181] sm:$0xff] %vm372_vm11, %v556_v4 }
 0x5ae   : > { %v4146_v3 = vpop.permute.xlu1 %4145 }
 0x5af   : > { %v4144_v36 = vpop.permute.xlu0 %4143  ;;  %4211 = vst.msk [vmem:[#allocation5 + $0x1f0] sm:$0xff] %vm4179_vm7, %v4146_v3 }
 0x5b0   : > { %4210 = vst.msk [vmem:[#allocation5 + $0x1e0] sm:$0xff] %vm4179_vm7, %v4144_v36  ;;  %4519 = vrot.lane.b32.xlu1 %v11798_v14, %s9104_s23  ;;  %v557_v36 = vld [vmem:[%s11336_s19 + $0xf8] sm:$0xff] }
 0x5b1   : > { %4517 = vrot.lane.b32.xlu0 %v11800_v48, %s9104_s23  ;;  %590 = vst.msk [vmem:[#allocation4 + $0x189] sm:$0xff] %vm372_vm11, %v557_v36 }
 0x5b2   : > { %v4279_v40 = vpop.permute.xlu1 %4278 }
 0x5b3   : > { %v4277_v30 = vpop.permute.xlu0 %4276  ;;  %4374 = vst.msk [vmem:[#allocation5 + $0x10] sm:$0xff] %vm4372_vm8, %v4279_v40  ;;  %v11832_v40 = vld [vmem:[#allocation4 + $0x171] sm:$0xff] }
 0x5b4   : > { %4373 = vst.msk [vmem:[#allocation5] sm:$0xff] %vm4372_vm8, %v4277_v30  ;;  %4523 = vrot.lane.b32.xlu1 %v11808_v26, %s9104_s23  ;;  %14143 = vst [vmem:[#allocation9_spill] sm:$0xff] %v11832_v40 }
 0x5b5   : > { %4521 = vrot.lane.b32.xlu0 %v11810_v12, %s9104_s23  ;;  %v11834_v12 = vld [vmem:[#allocation4 + $0x169] sm:$0xff] }
 0x5b6   : > { %v4283_v22 = vpop.permute.xlu1 %4282 }
 0x5b7   : > { %v4281_v3 = vpop.permute.xlu0 %4280  ;;  %4376 = vst.msk [vmem:[#allocation5 + $0x30] sm:$0xff] %vm4372_vm8, %v4283_v22  ;;  %v4599_v22 = vld [vmem:[#allocation4 + $0xa] sm:$0xff] }
 0x5b8   : > { %4375 = vst.msk [vmem:[#allocation5 + $0x20] sm:$0xff] %vm4372_vm8, %v4281_v3  ;;  %4527 = vrot.lane.b32.xlu1 %v11818_v47, %s9104_s23  ;;  %v4598_v3 = vld [vmem:[#allocation4 + $0x2] sm:$0xff] }
 0x5b9   : > { %4525 = vrot.lane.b32.xlu0 %v11820_v18, %s9104_s23 }
 0x5ba   : > { %v4287_v30 = vpop.permute.xlu1 %4286 }
 0x5bb   : > { %v4285_v26 = vpop.permute.xlu0 %4284  ;;  %4378 = vst.msk [vmem:[#allocation5 + $0x50] sm:$0xff] %vm4372_vm8, %v4287_v30 }
 0x5bc   : > { %4377 = vst.msk [vmem:[#allocation5 + $0x40] sm:$0xff] %vm4372_vm8, %v4285_v26  ;;  %4531 = vrot.lane.b32.xlu1 %v11832_v40, %s9104_s23  ;;  %v11846_v26 = vld [vmem:[#allocation4 + $0x22] sm:$0xff]  ;;  %v11848_v40 = vld [vmem:[#allocation4 + $0x1a] sm:$0xff] }
 0x5bd   : > { %4529 = vrot.lane.b32.xlu0 %v11834_v12, %s9104_s23  ;;  %14144 = vst [vmem:[#allocation10_spill] sm:$0xff] %v11846_v26  ;;  %14145 = vst [vmem:[#allocation11_spill] sm:$0xff] %v11848_v40 }
 0x5be   : > { %v4291_v4 = vpop.permute.xlu1 %4290 }
 0x5bf   : > { %v4289_v36 = vpop.permute.xlu0 %4288  ;;  %4380 = vst.msk [vmem:[#allocation5 + $0x70] sm:$0xff] %vm4372_vm8, %v4291_v4  ;;  %v11856_v4 = vld [vmem:[#allocation4 + $0x3a] sm:$0xff] }
 0x5c0   : > { %4379 = vst.msk [vmem:[#allocation5 + $0x60] sm:$0xff] %vm4372_vm8, %v4289_v36  ;;  %4664 = vrot.lane.b32.xlu1 %v4599_v22, %s9105_s24  ;;  %14146 = vst [vmem:[#allocation12_spill] sm:$0xff] %v11856_v4 }
 0x5c1   : > { %4662 = vrot.lane.b32.xlu0 %v4598_v3, %s9105_s24  ;;  %v11858_v3 = vld [vmem:[#allocation4 + $0x32] sm:$0xff] }
 0x5c2   : > { %v4295_v30 = vpop.permute.xlu1 %4294  ;;  %14147 = vst [vmem:[#allocation13_spill] sm:$0xff] %v11858_v3 }
 0x5c3   : > { %v4293_v18 = vpop.permute.xlu0 %4292  ;;  %4382 = vst.msk [vmem:[#allocation5 + $0x90] sm:$0xff] %vm4372_vm8, %v4295_v30 }
 0x5c4   : > { %4381 = vst.msk [vmem:[#allocation5 + $0x80] sm:$0xff] %vm4372_vm8, %v4293_v18  ;;  %4668 = vrot.lane.b32.xlu1 %v11846_v26, %s9105_s24  ;;  %v11866_v18 = vld [vmem:[#allocation4 + $0x52] sm:$0xff] }
 0x5c5   : > { %4666 = vrot.lane.b32.xlu0 %v11848_v40, %s9105_s24  ;;  %14148 = vst [vmem:[#allocation14_spill] sm:$0xff] %v11866_v18  ;;  %v11868_v40 = vld [vmem:[#allocation4 + $0x4a] sm:$0xff] }
 0x5c6   : > { %v4299_v22 = vpop.permute.xlu1 %4298  ;;  %14149 = vst [vmem:[#allocation15_spill] sm:$0xff] %v11868_v40 }
 0x5c7   : > { %v4297_v36 = vpop.permute.xlu0 %4296  ;;  %4384 = vst.msk [vmem:[#allocation5 + $0xb0] sm:$0xff] %vm4372_vm8, %v4299_v22  ;;  %v11876_v22 = vld [vmem:[#allocation4 + $0x6a] sm:$0xff] }
 0x5c8   : > { %4383 = vst.msk [vmem:[#allocation5 + $0xa0] sm:$0xff] %vm4372_vm8, %v4297_v36  ;;  %4672 = vrot.lane.b32.xlu1 %v11856_v4, %s9105_s24  ;;  %14150 = vst [vmem:[#allocation16_spill] sm:$0xff] %v11876_v22 }
 0x5c9   : > { %4670 = vrot.lane.b32.xlu0 %v11858_v3, %s9105_s24  ;;  %v11878_v3 = vld [vmem:[#allocation4 + $0x62] sm:$0xff] }
 0x5ca   : > { %v4303_v30 = vpop.permute.xlu1 %4302  ;;  %14151 = vst [vmem:[#allocation17_spill] sm:$0xff] %v11878_v3 }
 0x5cb   : > { %v4301_v26 = vpop.permute.xlu0 %4300  ;;  %4386 = vst.msk [vmem:[#allocation5 + $0xd0] sm:$0xff] %vm4372_vm8, %v4303_v30 }
 0x5cc   : > { %4385 = vst.msk [vmem:[#allocation5 + $0xc0] sm:$0xff] %vm4372_vm8, %v4301_v26  ;;  %4676 = vrot.lane.b32.xlu1 %v11866_v18, %s9105_s24  ;;  %v11886_v26 = vld [vmem:[#allocation4 + $0x82] sm:$0xff] }
 0x5cd   : > { %4674 = vrot.lane.b32.xlu0 %v11868_v40, %s9105_s24  ;;  %14152 = vst [vmem:[#allocation18_spill] sm:$0xff] %v11886_v26  ;;  %v11888_v40 = vld [vmem:[#allocation4 + $0x7a] sm:$0xff] }
 0x5ce   : > { %v4307_v36 = vpop.permute.xlu1 %4306  ;;  %14153 = vst [vmem:[#allocation19_spill] sm:$0xff] %v11888_v40 }
 0x5cf   : > { %v4305_v4 = vpop.permute.xlu0 %4304  ;;  %4388 = vst.msk [vmem:[#allocation5 + $0xf0] sm:$0xff] %vm4372_vm8, %v4307_v36 }
 0x5d0   : > { %4387 = vst.msk [vmem:[#allocation5 + $0xe0] sm:$0xff] %vm4372_vm8, %v4305_v4  ;;  %4680 = vrot.lane.b32.xlu1 %v11876_v22, %s9105_s24  ;;  %v11896_v4 = vld [vmem:[#allocation4 + $0x9a] sm:$0xff] }
 0x5d1   : > { %4678 = vrot.lane.b32.xlu0 %v11878_v3, %s9105_s24  ;;  %14154 = vst [vmem:[#allocation20_spill] sm:$0xff] %v11896_v4  ;;  %v11898_v3 = vld [vmem:[#allocation4 + $0x92] sm:$0xff] }
 0x5d2   : > { %v4311_v30 = vpop.permute.xlu1 %4310  ;;  %14155 = vst [vmem:[#allocation21_spill] sm:$0xff] %v11898_v3 }
 0x5d3   : > { %v4309_v18 = vpop.permute.xlu0 %4308  ;;  %4390 = vst.msk [vmem:[#allocation5 + $0x110] sm:$0xff] %vm4372_vm8, %v4311_v30 }
 0x5d4   : > { %4389 = vst.msk [vmem:[#allocation5 + $0x100] sm:$0xff] %vm4372_vm8, %v4309_v18  ;;  %4684 = vrot.lane.b32.xlu1 %v11886_v26, %s9105_s24  ;;  %v11906_v18 = vld [vmem:[#allocation4 + $0xb2] sm:$0xff] }
 0x5d5   : > { %4682 = vrot.lane.b32.xlu0 %v11888_v40, %s9105_s24  ;;  %14156 = vst [vmem:[#allocation22_spill] sm:$0xff] %v11906_v18  ;;  %v11908_v40 = vld [vmem:[#allocation4 + $0xaa] sm:$0xff] }
 0x5d6   : > { %v4315_v36 = vpop.permute.xlu1 %4314  ;;  %14157 = vst [vmem:[#allocation23_spill] sm:$0xff] %v11908_v40 }
 0x5d7   : > { %v4313_v22 = vpop.permute.xlu0 %4312  ;;  %4392 = vst.msk [vmem:[#allocation5 + $0x130] sm:$0xff] %vm4372_vm8, %v4315_v36 }
 0x5d8   : > { %4391 = vst.msk [vmem:[#allocation5 + $0x120] sm:$0xff] %vm4372_vm8, %v4313_v22  ;;  %4688 = vrot.lane.b32.xlu1 %v11896_v4, %s9105_s24  ;;  %v11916_v22 = vld [vmem:[#allocation4 + $0xca] sm:$0xff] }
 0x5d9   : > { %4686 = vrot.lane.b32.xlu0 %v11898_v3, %s9105_s24  ;;  %14158 = vst [vmem:[#allocation24_spill] sm:$0xff] %v11916_v22  ;;  %v11918_v3 = vld [vmem:[#allocation4 + $0xc2] sm:$0xff] }
 0x5da   : > { %v4319_v30 = vpop.permute.xlu1 %4318  ;;  %14159 = vst [vmem:[#allocation25_spill] sm:$0xff] %v11918_v3 }
 0x5db   : > { %v4317_v26 = vpop.permute.xlu0 %4316  ;;  %4394 = vst.msk [vmem:[#allocation5 + $0x150] sm:$0xff] %vm4372_vm8, %v4319_v30 }
 0x5dc   : > { %4393 = vst.msk [vmem:[#allocation5 + $0x140] sm:$0xff] %vm4372_vm8, %v4317_v26  ;;  %4692 = vrot.lane.b32.xlu1 %v11906_v18, %s9105_s24  ;;  %v11926_v26 = vld [vmem:[#allocation4 + $0xe2] sm:$0xff] }
 0x5dd   : > { %4690 = vrot.lane.b32.xlu0 %v11908_v40, %s9105_s24  ;;  %14160 = vst [vmem:[#allocation26_spill] sm:$0xff] %v11926_v26  ;;  %v11928_v40 = vld [vmem:[#allocation4 + $0xda] sm:$0xff] }
 0x5de   : > { %v4323_v36 = vpop.permute.xlu1 %4322  ;;  %14161 = vst [vmem:[#allocation27_spill] sm:$0xff] %v11928_v40 }
 0x5df   : > { %v4321_v4 = vpop.permute.xlu0 %4320  ;;  %4396 = vst.msk [vmem:[#allocation5 + $0x170] sm:$0xff] %vm4372_vm8, %v4323_v36 }
 0x5e0   : > { %4395 = vst.msk [vmem:[#allocation5 + $0x160] sm:$0xff] %vm4372_vm8, %v4321_v4  ;;  %4696 = vrot.lane.b32.xlu1 %v11916_v22, %s9105_s24  ;;  %v11936_v4 = vld [vmem:[#allocation4 + $0xfa] sm:$0xff] }
 0x5e1   : > { %4694 = vrot.lane.b32.xlu0 %v11918_v3, %s9105_s24  ;;  %14162 = vst [vmem:[#allocation28_spill] sm:$0xff] %v11936_v4  ;;  %v11938_v3 = vld [vmem:[#allocation4 + $0xf2] sm:$0xff] }
 0x5e2   : > { %v4327_v30 = vpop.permute.xlu1 %4326  ;;  %14163 = vst [vmem:[#allocation29_spill] sm:$0xff] %v11938_v3 }
 0x5e3   : > { %v4325_v18 = vpop.permute.xlu0 %4324  ;;  %4398 = vst.msk [vmem:[#allocation5 + $0x190] sm:$0xff] %vm4372_vm8, %v4327_v30 }
 0x5e4   : > { %4397 = vst.msk [vmem:[#allocation5 + $0x180] sm:$0xff] %vm4372_vm8, %v4325_v18  ;;  %4700 = vrot.lane.b32.xlu1 %v11926_v26, %s9105_s24  ;;  %v11946_v18 = vld [vmem:[#allocation4 + $0x112] sm:$0xff] }
 0x5e5   : > { %4698 = vrot.lane.b32.xlu0 %v11928_v40, %s9105_s24  ;;  %14164 = vst [vmem:[#allocation30_spill] sm:$0xff] %v11946_v18  ;;  %v11948_v40 = vld [vmem:[#allocation4 + $0x10a] sm:$0xff] }
 0x5e6   : > { %v4331_v36 = vpop.permute.xlu1 %4330  ;;  %14165 = vst [vmem:[#allocation31_spill] sm:$0xff] %v11948_v40 }
 0x5e7   : > { %v4329_v22 = vpop.permute.xlu0 %4328  ;;  %4400 = vst.msk [vmem:[#allocation5 + $0x1b0] sm:$0xff] %vm4372_vm8, %v4331_v36 }
 0x5e8   : > { %4399 = vst.msk [vmem:[#allocation5 + $0x1a0] sm:$0xff] %vm4372_vm8, %v4329_v22  ;;  %4704 = vrot.lane.b32.xlu1 %v11936_v4, %s9105_s24  ;;  %v11956_v22 = vld [vmem:[#allocation4 + $0x12a] sm:$0xff] }
 0x5e9   : > { %4702 = vrot.lane.b32.xlu0 %v11938_v3, %s9105_s24  ;;  %14166 = vst [vmem:[#allocation32_spill] sm:$0xff] %v11956_v22  ;;  %v11958_v3 = vld [vmem:[#allocation4 + $0x122] sm:$0xff] }
 0x5ea   : > { %v4335_v30 = vpop.permute.xlu1 %4334  ;;  %14167 = vst [vmem:[#allocation33_spill] sm:$0xff] %v11958_v3 }
 0x5eb   : > { %v4333_v26 = vpop.permute.xlu0 %4332  ;;  %4402 = vst.msk [vmem:[#allocation5 + $0x1d0] sm:$0xff] %vm4372_vm8, %v4335_v30 }
 0x5ec   : > { %4401 = vst.msk [vmem:[#allocation5 + $0x1c0] sm:$0xff] %vm4372_vm8, %v4333_v26  ;;  %4708 = vrot.lane.b32.xlu1 %v11946_v18, %s9105_s24  ;;  %v11966_v26 = vld [vmem:[#allocation4 + $0x142] sm:$0xff] }
 0x5ed   : > { %4706 = vrot.lane.b32.xlu0 %v11948_v40, %s9105_s24  ;;  %14168 = vst [vmem:[#allocation34_spill] sm:$0xff] %v11966_v26  ;;  %v11968_v40 = vld [vmem:[#allocation4 + $0x13a] sm:$0xff] }
 0x5ee   : > { %v4339_v36 = vpop.permute.xlu1 %4338  ;;  %14169 = vst [vmem:[#allocation35_spill] sm:$0xff] %v11968_v40 }
 0x5ef   : > { %v4337_v4 = vpop.permute.xlu0 %4336  ;;  %4404 = vst.msk [vmem:[#allocation5 + $0x1f0] sm:$0xff] %vm4372_vm8, %v4339_v36 }
 0x5f0   : > { %4403 = vst.msk [vmem:[#allocation5 + $0x1e0] sm:$0xff] %vm4372_vm8, %v4337_v4  ;;  %4712 = vrot.lane.b32.xlu1 %v11956_v22, %s9105_s24  ;;  %v11976_v4 = vld [vmem:[#allocation4 + $0x15a] sm:$0xff]  ;;  %vm5909_vm8 = vcmask 130048  }
 0x5f1   : > { %4710 = vrot.lane.b32.xlu0 %v11958_v3, %s9105_s24  ;;  %v11978_v3 = vld [vmem:[#allocation4 + $0x152] sm:$0xff] }
 0x5f2   : > { %v4472_v30 = vpop.permute.xlu1 %4471 }
 0x5f3   : > { %v4470_v18 = vpop.permute.xlu0 %4469  ;;  %4567 = vst.msk [vmem:[#allocation5 + $0x10] sm:$0xff] %vm4565_vm9, %v4472_v30 }
 0x5f4   : > { %4566 = vst.msk [vmem:[#allocation5] sm:$0xff] %vm4565_vm9, %v4470_v18  ;;  %4716 = vrot.lane.b32.xlu1 %v11966_v26, %s9105_s24  ;;  %v11986_v18 = vld [vmem:[#allocation4 + $0x172] sm:$0xff] }
 0x5f5   : > { %4714 = vrot.lane.b32.xlu0 %v11968_v40, %s9105_s24  ;;  %v11988_v40 = vld [vmem:[#allocation4 + $0x16a] sm:$0xff] }
 0x5f6   : > { %v4476_v36 = vpop.permute.xlu1 %4475 }
 0x5f7   : > { %v4474_v22 = vpop.permute.xlu0 %4473  ;;  %4569 = vst.msk [vmem:[#allocation5 + $0x30] sm:$0xff] %vm4565_vm9, %v4476_v36 }
 0x5f8   : > { %4568 = vst.msk [vmem:[#allocation5 + $0x20] sm:$0xff] %vm4565_vm9, %v4474_v22  ;;  %4720 = vrot.lane.b32.xlu1 %v11976_v4, %s9105_s24 }
 0x5f9   : > { %4718 = vrot.lane.b32.xlu0 %v11978_v3, %s9105_s24 }
 0x5fa   : > { %v4480_v30 = vpop.permute.xlu1 %4479 }
 0x5fb   : > { %v4478_v26 = vpop.permute.xlu0 %4477  ;;  %4571 = vst.msk [vmem:[#allocation5 + $0x50] sm:$0xff] %vm4565_vm9, %v4480_v30 }
 0x5fc   : > { %4570 = vst.msk [vmem:[#allocation5 + $0x40] sm:$0xff] %vm4565_vm9, %v4478_v26  ;;  %4724 = vrot.lane.b32.xlu1 %v11986_v18, %s9105_s24 }
 0x5fd   : > { %4722 = vrot.lane.b32.xlu0 %v11988_v40, %s9105_s24 }
 0x5fe   : > { %v4484_v22 = vpop.permute.xlu1 %4483 }
 0x5ff   : > { %v4482_v36 = vpop.permute.xlu0 %4481  ;;  %4573 = vst.msk [vmem:[#allocation5 + $0x70] sm:$0xff] %vm4565_vm9, %v4484_v22 }
 0x600   : > { %4572 = vst.msk [vmem:[#allocation5 + $0x60] sm:$0xff] %vm4565_vm9, %v4482_v36  ;;  %4857 = vrot.lane.b32.xlu1 %v11534_v16, %s9106_s25 }
 0x601   : > { %4855 = vrot.lane.b32.xlu0 %v11536_v31, %s9106_s25 }
 0x602   : > { %v4488_v26 = vpop.permute.xlu1 %4487 }
 0x603   : > { %v4486_v30 = vpop.permute.xlu0 %4485  ;;  %4575 = vst.msk [vmem:[#allocation5 + $0x90] sm:$0xff] %vm4565_vm9, %v4488_v26  ;;  %v4821_v26 = vld [vmem:[#allocation4 + $0x180] sm:$0xff] }
 0x604   : > { %4574 = vst.msk [vmem:[#allocation5 + $0x80] sm:$0xff] %vm4565_vm9, %v4486_v30  ;;  %4861 = vrot.lane.b32.xlu1 %v11544_v19, %s9106_s25 }
 0x605   : > { %4859 = vrot.lane.b32.xlu0 %v11546_v46, %s9106_s25 }
 0x606   : > { %v4492_v22 = vpop.permute.xlu1 %4491 }
 0x607   : > { %v4490_v36 = vpop.permute.xlu0 %4489  ;;  %4577 = vst.msk [vmem:[#allocation5 + $0xb0] sm:$0xff] %vm4565_vm9, %v4492_v22 }
 0x608   : > { %4576 = vst.msk [vmem:[#allocation5 + $0xa0] sm:$0xff] %vm4565_vm9, %v4490_v36  ;;  %4865 = vrot.lane.b32.xlu1 %v11554_v51, %s9106_s25 }
 0x609   : > { %4863 = vrot.lane.b32.xlu0 %v11556_v61, %s9106_s25 }
 0x60a   : > { %v4496_v16 = vpop.permute.xlu1 %4495 }
 0x60b   : > { %v4494_v31 = vpop.permute.xlu0 %4493  ;;  %4579 = vst.msk [vmem:[#allocation5 + $0xd0] sm:$0xff] %vm4565_vm9, %v4496_v16 }
 0x60c   : > { %4578 = vst.msk [vmem:[#allocation5 + $0xc0] sm:$0xff] %vm4565_vm9, %v4494_v31  ;;  %4869 = vrot.lane.b32.xlu1 %v11564_v7, %s9106_s25 }
 0x60d   : > { %4867 = vrot.lane.b32.xlu0 %v11566_v21, %s9106_s25 }
 0x60e   : > { %v4500_v19 = vpop.permute.xlu1 %4499 }
 0x60f   : > { %v4498_v46 = vpop.permute.xlu0 %4497  ;;  %4581 = vst.msk [vmem:[#allocation5 + $0xf0] sm:$0xff] %vm4565_vm9, %v4500_v19 }
 0x610   : > { %4580 = vst.msk [vmem:[#allocation5 + $0xe0] sm:$0xff] %vm4565_vm9, %v4498_v46  ;;  %4873 = vrot.lane.b32.xlu1 %v11574_v15, %s9106_s25  ;;  %v14173_v46 = vld [vmem:[#allocation9_spill] sm:$0xff] }
 0x611   : > { %4871 = vrot.lane.b32.xlu0 %v11576_v45, %s9106_s25 }
 0x612   : > { %v4504_v51 = vpop.permute.xlu1 %4503 }
 0x613   : > { %v4502_v61 = vpop.permute.xlu0 %4501  ;;  %4583 = vst.msk [vmem:[#allocation5 + $0x110] sm:$0xff] %vm4565_vm9, %v4504_v51  ;;  %v5015_v51 = vld [vmem:[#allocation4 + $0x189] sm:$0xff] }
 0x614   : > { %4582 = vst.msk [vmem:[#allocation5 + $0x100] sm:$0xff] %vm4565_vm9, %v4502_v61  ;;  %4877 = vrot.lane.b32.xlu1 %v11584_v2, %s9106_s25 }
 0x615   : > { %4875 = vrot.lane.b32.xlu0 %v11586_v56, %s9106_s25 }
 0x616   : > { %v4508_v7 = vpop.permute.xlu1 %4507 }
 0x617   : > { %v4506_v21 = vpop.permute.xlu0 %4505  ;;  %4585 = vst.msk [vmem:[#allocation5 + $0x130] sm:$0xff] %vm4565_vm9, %v4508_v7  ;;  %v5014_v7 = vld [vmem:[#allocation4 + $0x181] sm:$0xff] }
 0x618   : > { %4584 = vst.msk [vmem:[#allocation5 + $0x120] sm:$0xff] %vm4565_vm9, %v4506_v21  ;;  %4881 = vrot.lane.b32.xlu1 %v11594_v60, %s9106_s25 }
 0x619   : > { %4879 = vrot.lane.b32.xlu0 %v11596_v27, %s9106_s25 }
 0x61a   : > { %v4512_v15 = vpop.permute.xlu1 %4511 }
 0x61b   : > { %v4510_v45 = vpop.permute.xlu0 %4509  ;;  %4587 = vst.msk [vmem:[#allocation5 + $0x150] sm:$0xff] %vm4565_vm9, %v4512_v15 }
 0x61c   : > { %4586 = vst.msk [vmem:[#allocation5 + $0x140] sm:$0xff] %vm4565_vm9, %v4510_v45  ;;  %4885 = vrot.lane.b32.xlu1 %v11604_v49, %s9106_s25  ;;  %v14175_v45 = vld [vmem:[#allocation11_spill] sm:$0xff] }
 0x61d   : > { %4883 = vrot.lane.b32.xlu0 %v11606_v28, %s9106_s25 }
 0x61e   : > { %v4516_v2 = vpop.permute.xlu1 %4515 }
 0x61f   : > { %v4514_v56 = vpop.permute.xlu0 %4513  ;;  %4589 = vst.msk [vmem:[#allocation5 + $0x170] sm:$0xff] %vm4565_vm9, %v4516_v2 }
 0x620   : > { %4588 = vst.msk [vmem:[#allocation5 + $0x160] sm:$0xff] %vm4565_vm9, %v4514_v56  ;;  %4889 = vrot.lane.b32.xlu1 %v11614_v33, %s9106_s25 }
 0x621   : > { %4887 = vrot.lane.b32.xlu0 %v11616_v39, %s9106_s25 }
 0x622   : > { %v4520_v60 = vpop.permute.xlu1 %4519 }
 0x623   : > { %v4518_v27 = vpop.permute.xlu0 %4517  ;;  %4591 = vst.msk [vmem:[#allocation5 + $0x190] sm:$0xff] %vm4565_vm9, %v4520_v60  ;;  %v14176_v60 = vld [vmem:[#allocation12_spill] sm:$0xff] }
 0x624   : > { %4590 = vst.msk [vmem:[#allocation5 + $0x180] sm:$0xff] %vm4565_vm9, %v4518_v27  ;;  %4893 = vrot.lane.b32.xlu1 %v11624_v59, %s9106_s25  ;;  %v14177_v27 = vld [vmem:[#allocation13_spill] sm:$0xff] }
 0x625   : > { %4891 = vrot.lane.b32.xlu0 %v11626_v5, %s9106_s25 }
 0x626   : > { %v4524_v49 = vpop.permute.xlu1 %4523 }
 0x627   : > { %v4522_v28 = vpop.permute.xlu0 %4521  ;;  %4593 = vst.msk [vmem:[#allocation5 + $0x1b0] sm:$0xff] %vm4565_vm9, %v4524_v49 }
 0x628   : > { %4592 = vst.msk [vmem:[#allocation5 + $0x1a0] sm:$0xff] %vm4565_vm9, %v4522_v28  ;;  %4897 = vrot.lane.b32.xlu1 %v11634_v41, %s9106_s25 }
 0x629   : > { %4895 = vrot.lane.b32.xlu0 %v11636_v11, %s9106_s25 }
 0x62a   : > { %v4528_v33 = vpop.permute.xlu1 %4527 }
 0x62b   : > { %v4526_v39 = vpop.permute.xlu0 %4525  ;;  %4595 = vst.msk [vmem:[#allocation5 + $0x1d0] sm:$0xff] %vm4565_vm9, %v4528_v33  ;;  %v14178_v33 = vld [vmem:[#allocation14_spill] sm:$0xff] }
 0x62c   : > { %4594 = vst.msk [vmem:[#allocation5 + $0x1c0] sm:$0xff] %vm4565_vm9, %v4526_v39  ;;  %4901 = vrot.lane.b32.xlu1 %v11644_v37, %s9106_s25  ;;  %v14179_v39 = vld [vmem:[#allocation15_spill] sm:$0xff] }
 0x62d   : > { %4899 = vrot.lane.b32.xlu0 %v11646_v62, %s9106_s25 }
 0x62e   : > { %v4532_v59 = vpop.permute.xlu1 %4531 }
 0x62f   : > { %v4530_v5 = vpop.permute.xlu0 %4529  ;;  %4597 = vst.msk [vmem:[#allocation5 + $0x1f0] sm:$0xff] %vm4565_vm9, %v4532_v59 }
 0x630   : > { %4596 = vst.msk [vmem:[#allocation5 + $0x1e0] sm:$0xff] %vm4565_vm9, %v4530_v5  ;;  %4905 = vrot.lane.b32.xlu1 %v11654_v29, %s9106_s25  ;;  %v4822_v29 = vld [vmem:[#allocation4 + $0x188] sm:$0xff] }
 0x631   : > { %4903 = vrot.lane.b32.xlu0 %v11656_v17, %s9106_s25 }
 0x632   : > { %v4665_v41 = vpop.permute.xlu1 %4664 }
 0x633   : > { %v4663_v11 = vpop.permute.xlu0 %4662  ;;  %4760 = vst.msk [vmem:[#allocation5 + $0x10] sm:$0xff] %vm4758_vm10, %v4665_v41  ;;  %v14180_v41 = vld [vmem:[#allocation16_spill] sm:$0xff] }
 0x634   : > { %4759 = vst.msk [vmem:[#allocation5] sm:$0xff] %vm4758_vm10, %v4663_v11  ;;  %4909 = vrot.lane.b32.xlu1 %v11664_v57, %s9106_s25  ;;  %v14181_v11 = vld [vmem:[#allocation17_spill] sm:$0xff] }
 0x635   : > { %4907 = vrot.lane.b32.xlu0 %v11666_v55, %s9106_s25 }
 0x636   : > { %v4669_v37 = vpop.permute.xlu1 %4668 }
 0x637   : > { %v4667_v62 = vpop.permute.xlu0 %4666  ;;  %4762 = vst.msk [vmem:[#allocation5 + $0x30] sm:$0xff] %vm4758_vm10, %v4669_v37 }
 0x638   : > { %4761 = vst.msk [vmem:[#allocation5 + $0x20] sm:$0xff] %vm4758_vm10, %v4667_v62  ;;  %4913 = vrot.lane.b32.xlu1 %v11674_v42, %s9106_s25 }
 0x639   : > { %4911 = vrot.lane.b32.xlu0 %v11676_v34, %s9106_s25 }
 0x63a   : > { %v4673_v17 = vpop.permute.xlu1 %4672 }
 0x63b   : > { %v4671_v30 = vpop.permute.xlu0 %4670  ;;  %4764 = vst.msk [vmem:[#allocation5 + $0x50] sm:$0xff] %vm4758_vm10, %v4673_v17  ;;  %v14183_v17 = vld [vmem:[#allocation19_spill] sm:$0xff] }
 0x63c   : > { %4763 = vst.msk [vmem:[#allocation5 + $0x40] sm:$0xff] %vm4758_vm10, %v4671_v30  ;;  %4917 = vrot.lane.b32.xlu1 %v4822_v29, %s9106_s25  ;;  %v14182_v29 = vld [vmem:[#allocation18_spill] sm:$0xff] }
 0x63d   : > { %4915 = vrot.lane.b32.xlu0 %v4821_v26, %s9106_s25 }
 0x63e   : > { %v4677_v57 = vpop.permute.xlu1 %4676 }
 0x63f   : > { %v4675_v55 = vpop.permute.xlu0 %4674  ;;  %4766 = vst.msk [vmem:[#allocation5 + $0x70] sm:$0xff] %vm4758_vm10, %v4677_v57  ;;  %v14184_v57 = vld [vmem:[#allocation20_spill] sm:$0xff] }
 0x640   : > { %4765 = vst.msk [vmem:[#allocation5 + $0x60] sm:$0xff] %vm4758_vm10, %v4675_v55  ;;  %5050 = vrot.lane.b32.xlu1 %v11688_v53, %s9107_s26  ;;  %v14185_v55 = vld [vmem:[#allocation21_spill] sm:$0xff] }
 0x641   : > { %5048 = vrot.lane.b32.xlu0 %v11690_v35, %s9107_s26 }
 0x642   : > { %v4681_v42 = vpop.permute.xlu1 %4680 }
 0x643   : > { %v4679_v34 = vpop.permute.xlu0 %4678  ;;  %4768 = vst.msk [vmem:[#allocation5 + $0x90] sm:$0xff] %vm4758_vm10, %v4681_v42  ;;  %v9109_v42 = vmov 0.0|0.0  }
 0x644   : > { %4767 = vst.msk [vmem:[#allocation5 + $0x80] sm:$0xff] %vm4758_vm10, %v4679_v34  ;;  %5054 = vrot.lane.b32.xlu1 %v11698_v54, %s9107_s26  ;;  %9010 = vmatprep.subr.bf16.mxu1 %v9109_v42  ;;  %v5884_v34 = vld [vmem:[%s13879_s3] sm:$0xff] }
 0x645   : > { %5052 = vrot.lane.b32.xlu0 %v11700_v9, %s9107_s26 }
 0x646   : > { %v4685_v22 = vpop.permute.xlu1 %4684 }
 0x647   : > { %v4683_v36 = vpop.permute.xlu0 %4682  ;;  %4770 = vst.msk [vmem:[#allocation5 + $0xb0] sm:$0xff] %vm4758_vm10, %v4685_v22  ;;  %v5885_v22 = vld [vmem:[%s13879_s3 + $0x8] sm:$0xff] }
 0x648   : > { %4769 = vst.msk [vmem:[#allocation5 + $0xa0] sm:$0xff] %vm4758_vm10, %v4683_v36  ;;  %5058 = vrot.lane.b32.xlu1 %v11708_v23, %s9107_s26 }
 0x649   : > { %5056 = vrot.lane.b32.xlu0 %v11710_v8, %s9107_s26 }
 0x64a   : > { %v4689_v53 = vpop.permute.xlu1 %4688 }
 0x64b   : > { %v4687_v35 = vpop.permute.xlu0 %4686  ;;  %4772 = vst.msk [vmem:[#allocation5 + $0xd0] sm:$0xff] %vm4758_vm10, %v4689_v53  ;;  %v9011_v53 = vpack.c.bf16 %v5885_v22, %v5884_v34  ;;  %v5900_v34 = vld [vmem:[%s13879_s3 + $0x80] sm:$0xff]  ;;  %v5901_v22 = vld [vmem:[%s13879_s3 + $0x88] sm:$0xff] }
 0x64c   : > { %4771 = vst.msk [vmem:[#allocation5 + $0xc0] sm:$0xff] %vm4758_vm10, %v4687_v35  ;;  %5062 = vrot.lane.b32.xlu1 %v11718_v6, %s9107_s26 }
 0x64d   : > { %5060 = vrot.lane.b32.xlu0 %v11720_v13, %s9107_s26  ;;  %9012 = vmatpush1.bf16.msra.mxu1 %v9011_v53  ;;  %v9035_v53 = vpack.c.bf16 %v5901_v22, %v5900_v34  ;;  %v5579_v34 = vld [vmem:[#allocation4 + $0xe1] sm:$0xff] }
 0x64e   : > { %v4693_v54 = vpop.permute.xlu1 %4692  ;;  %9013 = vmatprep.subr.bf16.mxu1 %v9109_v42  ;;  %5611 = vst.msk [vmem:[#allocation5 + $0xf8] sm:$0xff] %vm372_vm11, %v5579_v34  ;;  %v5396_v34 = vld [vmem:[#allocation4 + $0x158] sm:$0xff] }
 0x64f   : > { %v4691_v9 = vpop.permute.xlu0 %4690  ;;  %4774 = vst.msk [vmem:[#allocation5 + $0xf0] sm:$0xff] %vm4758_vm10, %v4693_v54  ;;  %v14186_v54 = vld [vmem:[#allocation22_spill] sm:$0xff] }
 0x650   : > { %4773 = vst.msk [vmem:[#allocation5 + $0xe0] sm:$0xff] %vm4758_vm10, %v4691_v9  ;;  %5066 = vrot.lane.b32.xlu1 %v11728_v25, %s9107_s26  ;;  %v14187_v9 = vld [vmem:[#allocation23_spill] sm:$0xff] }
 0x651   : > { %5064 = vrot.lane.b32.xlu0 %v11730_v58, %s9107_s26 }
 0x652   : > { %v4697_v23 = vpop.permute.xlu1 %4696 }
 0x653   : > { %v4695_v8 = vpop.permute.xlu0 %4694  ;;  %4776 = vst.msk [vmem:[#allocation5 + $0x110] sm:$0xff] %vm4758_vm10, %v4697_v23  ;;  %v5886_v23 = vld [vmem:[%s13879_s3 + $0x10] sm:$0xff] }
 0x654   : > { %4775 = vst.msk [vmem:[#allocation5 + $0x100] sm:$0xff] %vm4758_vm10, %v4695_v8  ;;  %5070 = vrot.lane.b32.xlu1 %v11738_v24, %s9107_s26  ;;  %v5887_v8 = vld [vmem:[%s13879_s3 + $0x18] sm:$0xff] }
 0x655   : > { %5068 = vrot.lane.b32.xlu0 %v11740_v32, %s9107_s26 }
 0x656   : > { %v4701_v6 = vpop.permute.xlu1 %4700 }
 0x657   : > { %v4699_v13 = vpop.permute.xlu0 %4698  ;;  %4778 = vst.msk [vmem:[#allocation5 + $0x130] sm:$0xff] %vm4758_vm10, %v4701_v6 }
 0x658   : > { %4777 = vst.msk [vmem:[#allocation5 + $0x120] sm:$0xff] %vm4758_vm10, %v4699_v13  ;;  %5074 = vrot.lane.b32.xlu1 %v11748_v50, %s9107_s26  ;;  %v9014_v13 = vpack.c.bf16 %v5887_v8, %v5886_v23  ;;  %v5568_v23 = vld [vmem:[#allocation4 + $0x61] sm:$0xff] }
 0x659   : > { %5072 = vrot.lane.b32.xlu0 %v11750_v10, %s9107_s26  ;;  %5600 = vst.msk [vmem:[#allocation5 + $0x48] sm:$0xff] %vm372_vm11, %v5568_v23 }
 0x65a   : > { %v4705_v25 = vpop.permute.xlu1 %4704  ;;  %9015 = vmatpush1.bf16.msra.mxu1 %v9014_v13  ;;  %v5569_v13 = vld [vmem:[#allocation4 + $0x69] sm:$0xff] }
 0x65b   : > { %v4703_v58 = vpop.permute.xlu0 %4702  ;;  %4780 = vst.msk [vmem:[#allocation5 + $0x150] sm:$0xff] %vm4758_vm10, %v4705_v25  ;;  %9016 = vmatprep.subr.bf16.mxu1 %v9109_v42 }
 0x65c   : > { %4779 = vst.msk [vmem:[#allocation5 + $0x140] sm:$0xff] %vm4758_vm10, %v4703_v58  ;;  %5078 = vrot.lane.b32.xlu1 %v11758_v0, %s9107_s26  ;;  %v14188_v58 = vld [vmem:[#allocation24_spill] sm:$0xff] }
 0x65d   : > { %5076 = vrot.lane.b32.xlu0 %v11760_v43, %s9107_s26  ;;  %5601 = vst.msk [vmem:[#allocation5 + $0x58] sm:$0xff] %vm372_vm11, %v5569_v13  ;;  %v5582_v13 = vld [vmem:[#allocation4 + $0x109] sm:$0xff] }
 0x65e   : > { %v4709_v24 = vpop.permute.xlu1 %4708  ;;  %5614 = vst.msk [vmem:[#allocation5 + $0x128] sm:$0xff] %vm372_vm11, %v5582_v13 }
 0x65f   : > { %v4707_v32 = vpop.permute.xlu0 %4706  ;;  %4782 = vst.msk [vmem:[#allocation5 + $0x170] sm:$0xff] %vm4758_vm10, %v4709_v24  ;;  %v14189_v24 = vld [vmem:[#allocation25_spill] sm:$0xff] }
 0x660   : > { %4781 = vst.msk [vmem:[#allocation5 + $0x160] sm:$0xff] %vm4758_vm10, %v4707_v32  ;;  %5082 = vrot.lane.b32.xlu1 %v11768_v44, %s9107_s26  ;;  %v5888_v32 = vld [vmem:[%s13879_s3 + $0x20] sm:$0xff] }
 0x661   : > { %5080 = vrot.lane.b32.xlu0 %v11770_v63, %s9107_s26 }
 0x662   : > { %v4713_v50 = vpop.permute.xlu1 %4712 }
 0x663   : > { %v4711_v10 = vpop.permute.xlu0 %4710  ;;  %4784 = vst.msk [vmem:[#allocation5 + $0x190] sm:$0xff] %vm4758_vm10, %v4713_v50  ;;  %v5889_v50 = vld [vmem:[%s13879_s3 + $0x28] sm:$0xff] }
 0x664   : > { %4783 = vst.msk [vmem:[#allocation5 + $0x180] sm:$0xff] %vm4758_vm10, %v4711_v10  ;;  %5086 = vrot.lane.b32.xlu1 %v11778_v1, %s9107_s26 }
 0x665   : > { %5084 = vrot.lane.b32.xlu0 %v11780_v52, %s9107_s26 }
 0x666   : > { %v4717_v0 = vpop.permute.xlu1 %4716 }
 0x667   : > { %v4715_v43 = vpop.permute.xlu0 %4714  ;;  %4786 = vst.msk [vmem:[#allocation5 + $0x1b0] sm:$0xff] %vm4758_vm10, %v4717_v0  ;;  %v9017_v0 = vpack.c.bf16 %v5889_v50, %v5888_v32  ;;  %v5631_v50 = vld [vmem:[#allocation4 + $0x52] sm:$0xff] }
 0x668   : > { %4785 = vst.msk [vmem:[#allocation5 + $0x1a0] sm:$0xff] %vm4758_vm10, %v4715_v43  ;;  %5090 = vrot.lane.b32.xlu1 %v11788_v20, %s9107_s26  ;;  %v14170_v20 = vld [vmem:[#allocation6_spill] sm:$0xff] }
 0x669   : > { %5088 = vrot.lane.b32.xlu0 %v11790_v38, %s9107_s26  ;;  %v14171_v38 = vld [vmem:[#allocation7_spill] sm:$0xff]  ;;  %9018 = vmatpush1.bf16.msra.mxu1 %v9017_v0  ;;  %v5571_v0 = vld [vmem:[#allocation4 + $0x81] sm:$0xff] }
 0x66a   : > { %v4721_v44 = vpop.permute.xlu1 %4720  ;;  %9019 = vmatprep.subr.bf16.mxu1 %v9109_v42  ;;  %5603 = vst.msk [vmem:[#allocation5 + $0x78] sm:$0xff] %vm372_vm11, %v5571_v0  ;;  %v5388_v0 = vld [vmem:[#allocation4 + $0xf8] sm:$0xff] }
 0x66b   : > { %v4719_v63 = vpop.permute.xlu0 %4718  ;;  %4788 = vst.msk [vmem:[#allocation5 + $0x1d0] sm:$0xff] %vm4758_vm10, %v4721_v44  ;;  %v14190_v44 = vld [vmem:[#allocation26_spill] sm:$0xff] }
 0x66c   : > { %4787 = vst.msk [vmem:[#allocation5 + $0x1c0] sm:$0xff] %vm4758_vm10, %v4719_v63  ;;  %5094 = vrot.lane.b32.xlu1 %v11798_v14, %s9107_s26  ;;  %v14172_v14 = vld [vmem:[#allocation8_spill] sm:$0xff]  ;;  %v14191_v63 = vld [vmem:[#allocation27_spill] sm:$0xff] }
 0x66d   : > { %5092 = vrot.lane.b32.xlu0 %v11800_v48, %s9107_s26 }
 0x66e   : > { %v4725_v1 = vpop.permute.xlu1 %4724 }
 0x66f   : > { %v4723_v52 = vpop.permute.xlu0 %4722  ;;  %4790 = vst.msk [vmem:[#allocation5 + $0x1f0] sm:$0xff] %vm4758_vm10, %v4725_v1  ;;  %v5890_v1 = vld [vmem:[%s13879_s3 + $0x30] sm:$0xff] }
 0x670   : > { %4789 = vst.msk [vmem:[#allocation5 + $0x1e0] sm:$0xff] %vm4758_vm10, %v4723_v52  ;;  %5098 = vrot.lane.b32.xlu1 %v14170_v20, %s9107_s26  ;;  %v5891_v52 = vld [vmem:[%s13879_s3 + $0x38] sm:$0xff] }
 0x671   : > { %5096 = vrot.lane.b32.xlu0 %v14171_v38, %s9107_s26  ;;  %v9020_v38 = vpack.c.bf16 %v5891_v52, %v5890_v1  ;;  %v5572_v1 = vld [vmem:[#allocation4 + $0x91] sm:$0xff] }
 0x672   : > { %v4858_v16 = vpop.permute.xlu1 %4857  ;;  %5604 = vst.msk [vmem:[#allocation5 + $0x88] sm:$0xff] %vm372_vm11, %v5572_v1  ;;  %v5389_v1 = vld [vmem:[#allocation4 + $0x108] sm:$0xff] }
 0x673   : > { %v4856_v31 = vpop.permute.xlu0 %4855  ;;  %4953 = vst.msk [vmem:[#allocation5 + $0x10] sm:$0xff] %vm4951_vm12, %v4858_v16  ;;  %9021 = vmatpush1.bf16.msra.mxu1 %v9020_v38 }
 0x674   : > { %4952 = vst.msk [vmem:[#allocation5] sm:$0xff] %vm4951_vm12, %v4856_v31  ;;  %5102 = vrot.lane.b32.xlu1 %v11818_v47, %s9107_s26  ;;  %v14192_v31 = vld [vmem:[#allocation28_spill] sm:$0xff]  ;;  %9022 = vmatprep.subr.bf16.mxu1 %v9109_v42 }
 0x675   : > { %5100 = vrot.lane.b32.xlu0 %v14172_v14, %s9107_s26  ;;  %v14193_v14 = vld [vmem:[#allocation29_spill] sm:$0xff] }
 0x676   : > { %v4862_v48 = vpop.permute.xlu1 %4861 }
 0x677   : > { %v4860_v19 = vpop.permute.xlu0 %4859  ;;  %4955 = vst.msk [vmem:[#allocation5 + $0x30] sm:$0xff] %vm4951_vm12, %v4862_v48  ;;  %v5892_v48 = vld [vmem:[%s13879_s3 + $0x40] sm:$0xff] }
 0x678   : > { %4954 = vst.msk [vmem:[#allocation5 + $0x20] sm:$0xff] %vm4951_vm12, %v4860_v19  ;;  %5106 = vrot.lane.b32.xlu1 %v14173_v46, %s9107_s26  ;;  %v5893_v19 = vld [vmem:[%s13879_s3 + $0x48] sm:$0xff] }
 0x679   : > { %5104 = vrot.lane.b32.xlu0 %v11834_v12, %s9107_s26  ;;  %v14174_v12 = vld [vmem:[#allocation10_spill] sm:$0xff] }
 0x67a   : > { %v4866_v61 = vpop.permute.xlu1 %4865 }
 0x67b   : > { %v4864_v21 = vpop.permute.xlu0 %4863  ;;  %4957 = vst.msk [vmem:[#allocation5 + $0x50] sm:$0xff] %vm4951_vm12, %v4866_v61 }
 0x67c   : > { %4956 = vst.msk [vmem:[#allocation5 + $0x40] sm:$0xff] %vm4951_vm12, %v4864_v21  ;;  %5110 = vrot.lane.b32.xlu1 %v5015_v51, %s9107_s26  ;;  %v9023_v51 = vpack.c.bf16 %v5893_v19, %v5892_v48  ;;  %v14195_v21 = vld [vmem:[#allocation31_spill] sm:$0xff] }
 0x67d   : > { %5108 = vrot.lane.b32.xlu0 %v5014_v7, %s9107_s26  ;;  %v14194_v7 = vld [vmem:[#allocation30_spill] sm:$0xff]  ;;  %v5634_v48 = vld [vmem:[#allocation4 + $0x7a] sm:$0xff] }
 0x67e   : > { %v4870_v47 = vpop.permute.xlu1 %4869  ;;  %9024 = vmatpush1.bf16.msra.mxu1 %v9023_v51  ;;  %v5574_v51 = vld [vmem:[#allocation4 + $0xa9] sm:$0xff] }
 0x67f   : > { %v4868_v15 = vpop.permute.xlu0 %4867  ;;  %4959 = vst.msk [vmem:[#allocation5 + $0x70] sm:$0xff] %vm4951_vm12, %v4870_v47  ;;  %9025 = vmatprep.subr.bf16.mxu1 %v9109_v42  ;;  %v5894_v47 = vld [vmem:[%s13879_s3 + $0x50] sm:$0xff] }
 0x680   : > { %4958 = vst.msk [vmem:[#allocation5 + $0x60] sm:$0xff] %vm4951_vm12, %v4868_v15  ;;  %5243 = vrot.lane.b32.xlu1 %v14174_v12, %s9108_s28  ;;  %v5895_v15 = vld [vmem:[%s13879_s3 + $0x58] sm:$0xff] }
 0x681   : > { %5241 = vrot.lane.b32.xlu0 %v14175_v45, %s9108_s28  ;;  %v9026_v45 = vpack.c.bf16 %v5895_v15, %v5894_v47  ;;  %5606 = vst.msk [vmem:[#allocation5 + $0xa8] sm:$0xff] %vm372_vm11, %v5574_v51  ;;  %v5379_v47 = vld [vmem:[#allocation4 + $0x90] sm:$0xff]  ;;  %v5391_v51 = vld [vmem:[#allocation4 + $0x120] sm:$0xff] }
 0x682   : > { %v4874_v2 = vpop.permute.xlu1 %4873  ;;  %v5575_v15 = vld [vmem:[#allocation4 + $0xb1] sm:$0xff] }
 0x683   : > { %v4872_v56 = vpop.permute.xlu0 %4871  ;;  %4961 = vst.msk [vmem:[#allocation5 + $0x90] sm:$0xff] %vm4951_vm12, %v4874_v2  ;;  %9027 = vmatpush1.bf16.msra.mxu1 %v9026_v45  ;;  %v5636_v45 = vld [vmem:[#allocation4 + $0x92] sm:$0xff] }
 0x684   : > { %4960 = vst.msk [vmem:[#allocation5 + $0x80] sm:$0xff] %vm4951_vm12, %v4872_v56  ;;  %5247 = vrot.lane.b32.xlu1 %v14176_v60, %s9108_s28  ;;  %v14196_v56 = vld [vmem:[#allocation32_spill] sm:$0xff]  ;;  %9028 = vmatprep.subr.bf16.mxu1 %v9109_v42 }
 0x685   : > { %5245 = vrot.lane.b32.xlu0 %v14177_v27, %s9108_s28  ;;  %5607 = vst.msk [vmem:[#allocation5 + $0xb8] sm:$0xff] %vm372_vm11, %v5575_v15  ;;  %v5392_v15 = vld [vmem:[#allocation4 + $0x128] sm:$0xff] }
 0x686   : > { %v4878_v49 = vpop.permute.xlu1 %4877 }
 0x687   : > { %v4876_v28 = vpop.permute.xlu0 %4875  ;;  %4963 = vst.msk [vmem:[#allocation5 + $0xb0] sm:$0xff] %vm4951_vm12, %v4878_v49  ;;  %v14197_v49 = vld [vmem:[#allocation33_spill] sm:$0xff] }
 0x688   : > { %4962 = vst.msk [vmem:[#allocation5 + $0xa0] sm:$0xff] %vm4951_vm12, %v4876_v28  ;;  %5251 = vrot.lane.b32.xlu1 %v14178_v33, %s9108_s28  ;;  %v5896_v28 = vld [vmem:[%s13879_s3 + $0x60] sm:$0xff]  ;;  %v5897_v33 = vld [vmem:[%s13879_s3 + $0x68] sm:$0xff] }
 0x689   : > { %5249 = vrot.lane.b32.xlu0 %v14179_v39, %s9108_s28 }
 0x68a   : > { %v4882_v59 = vpop.permute.xlu1 %4881 }
 0x68b   : > { %v4880_v5 = vpop.permute.xlu0 %4879  ;;  %4965 = vst.msk [vmem:[#allocation5 + $0xd0] sm:$0xff] %vm4951_vm12, %v4882_v59 }
 0x68c   : > { %4964 = vst.msk [vmem:[#allocation5 + $0xc0] sm:$0xff] %vm4951_vm12, %v4880_v5  ;;  %5255 = vrot.lane.b32.xlu1 %v14180_v41, %s9108_s28  ;;  %v9029_v5 = vpack.c.bf16 %v5897_v33, %v5896_v28  ;;  %v5564_v41 = vld [vmem:[#allocation4 + $0x31] sm:$0xff]  ;;  %v5637_v33 = vld [vmem:[#allocation4 + $0x9a] sm:$0xff] }
 0x68d   : > { %5253 = vrot.lane.b32.xlu0 %v14181_v11, %s9108_s28  ;;  %5596 = vst.msk [vmem:[#allocation5 + $0x8] sm:$0xff] %vm372_vm11, %v5564_v41  ;;  %v5577_v41 = vld [vmem:[#allocation4 + $0xc9] sm:$0xff] }
 0x68e   : > { %v4886_v37 = vpop.permute.xlu1 %4885  ;;  %9030 = vmatpush1.bf16.msra.mxu1 %v9029_v5  ;;  %v5381_v5 = vld [vmem:[#allocation4 + $0xa8] sm:$0xff]  ;;  %5609 = vst.msk [vmem:[#allocation5 + $0xd8] sm:$0xff] %vm372_vm11, %v5577_v41  ;;  %v5394_v41 = vld [vmem:[#allocation4 + $0x140] sm:$0xff] }
 0x68f   : > { %v4884_v62 = vpop.permute.xlu0 %4883  ;;  %4967 = vst.msk [vmem:[#allocation5 + $0xf0] sm:$0xff] %vm4951_vm12, %v4886_v37  ;;  %v14198_v37 = vld [vmem:[#allocation34_spill] sm:$0xff]  ;;  %9031 = vmatprep.subr.bf16.mxu1 %v9109_v42 }
 0x690   : > { %4966 = vst.msk [vmem:[#allocation5 + $0xe0] sm:$0xff] %vm4951_vm12, %v4884_v62  ;;  %5259 = vrot.lane.b32.xlu1 %v14182_v29, %s9108_s28  ;;  %v14199_v62 = vld [vmem:[#allocation35_spill] sm:$0xff]  ;;  %v5898_v29 = vld [vmem:[%s13879_s3 + $0x70] sm:$0xff] }
 0x691   : > { %5257 = vrot.lane.b32.xlu0 %v14183_v17, %s9108_s28  ;;  %v5899_v17 = vld [vmem:[%s13879_s3 + $0x78] sm:$0xff] }
 0x692   : > { %v4890_v26 = vpop.permute.xlu1 %4889 }
 0x693   : > { %v4888_v30 = vpop.permute.xlu0 %4887  ;;  %4969 = vst.msk [vmem:[#allocation5 + $0x110] sm:$0xff] %vm4951_vm12, %v4890_v26 }
 0x694   : > { %4968 = vst.msk [vmem:[#allocation5 + $0x100] sm:$0xff] %vm4951_vm12, %v4888_v30  ;;  %5263 = vrot.lane.b32.xlu1 %v14184_v57, %s9108_s28  ;;  %v9032_v30 = vpack.c.bf16 %v5899_v17, %v5898_v29  ;;  %v5565_v57 = vld [vmem:[#allocation4 + $0x39] sm:$0xff]  ;;  %v5382_v29 = vld [vmem:[#allocation4 + $0xb0] sm:$0xff] }
 0x695   : > { %5261 = vrot.lane.b32.xlu0 %v14185_v55, %s9108_s28  ;;  %5597 = vst.msk [vmem:[#allocation5 + $0x18] sm:$0xff] %vm372_vm11, %v5565_v57  ;;  %v5578_v17 = vld [vmem:[#allocation4 + $0xd9] sm:$0xff] }
 0x696   : > { %v4894_v36 = vpop.permute.xlu1 %4893  ;;  %9033 = vmatpush1.bf16.msra.mxu1 %v9032_v30  ;;  %v5639_v30 = vld [vmem:[#allocation4 + $0xb2] sm:$0xff]  ;;  %5610 = vst.msk [vmem:[#allocation5 + $0xe8] sm:$0xff] %vm372_vm11, %v5578_v17 }
 0x697   : > { %v4892_v35 = vpop.permute.xlu0 %4891  ;;  %4971 = vst.msk [vmem:[#allocation5 + $0x130] sm:$0xff] %vm4951_vm12, %v4894_v36  ;;  %v5566_v36 = vld [vmem:[#allocation4 + $0x49] sm:$0xff]  ;;  %9034 = vmatprep.subr.bf16.mxu1 %v9109_v42 }
 0x698   : > { %4970 = vst.msk [vmem:[#allocation5 + $0x120] sm:$0xff] %vm4951_vm12, %v4892_v35  ;;  %5267 = vrot.lane.b32.xlu1 %v14186_v54, %s9108_s28  ;;  %v5371_v54 = vld [vmem:[#allocation4 + $0x30] sm:$0xff] }
 0x699   : > { %5265 = vrot.lane.b32.xlu0 %v14187_v9, %s9108_s28  ;;  %5598 = vst.msk [vmem:[#allocation5 + $0x28] sm:$0xff] %vm372_vm11, %v5566_v36  ;;  %v5640_v36 = vld [vmem:[#allocation4 + $0xc2] sm:$0xff]  ;;  %v5395_v17 = vld [vmem:[#allocation4 + $0x150] sm:$0xff] }
 0x69a   : > { %v4898_v6 = vpop.permute.xlu1 %4897  ;;  %9036 = vmatpush1.bf16.msra.mxu1 %v9035_v53 }
 0x69b   : > { %v4896_v25 = vpop.permute.xlu0 %4895  ;;  %4973 = vst.msk [vmem:[#allocation5 + $0x150] sm:$0xff] %vm4951_vm12, %v4898_v6  ;;  %v5373_v6 = vld [vmem:[#allocation4 + $0x48] sm:$0xff] }
 0x69c   : > { %4972 = vst.msk [vmem:[#allocation5 + $0x140] sm:$0xff] %vm4951_vm12, %v4896_v25  ;;  %5271 = vrot.lane.b32.xlu1 %v14188_v58, %s9108_s28  ;;  %v5374_v58 = vld [vmem:[#allocation4 + $0x50] sm:$0xff] }
 0x69d   : > { %5269 = vrot.lane.b32.xlu0 %v14189_v24, %s9108_s28  ;;  %v5570_v24 = vld [vmem:[#allocation4 + $0x79] sm:$0xff] }
 0x69e   : > { %v4902_v10 = vpop.permute.xlu1 %4901  ;;  %5602 = vst.msk [vmem:[#allocation5 + $0x68] sm:$0xff] %vm372_vm11, %v5570_v24  ;;  %v5387_v24 = vld [vmem:[#allocation4 + $0xf0] sm:$0xff] }
 0x69f   : > { %v4900_v43 = vpop.permute.xlu0 %4899  ;;  %4975 = vst.msk [vmem:[#allocation5 + $0x170] sm:$0xff] %vm4951_vm12, %v4902_v10  ;;  %v5375_v10 = vld [vmem:[#allocation4 + $0x60] sm:$0xff] }
 0x6a0   : > { %4974 = vst.msk [vmem:[#allocation5 + $0x160] sm:$0xff] %vm4951_vm12, %v4900_v43  ;;  %5275 = vrot.lane.b32.xlu1 %v14190_v44, %s9108_s28  ;;  %v5632_v44 = vld [vmem:[#allocation4 + $0x62] sm:$0xff] }
 0x6a1   : > { %5273 = vrot.lane.b32.xlu0 %v14191_v63, %s9108_s28  ;;  %v5376_v63 = vld [vmem:[#allocation4 + $0x68] sm:$0xff] }
 0x6a2   : > { %v4906_v20 = vpop.permute.xlu1 %4905 }
 0x6a3   : > { %v4904_v16 = vpop.permute.xlu0 %4903  ;;  %4977 = vst.msk [vmem:[#allocation5 + $0x190] sm:$0xff] %vm4951_vm12, %v4906_v20  ;;  %v5633_v20 = vld [vmem:[#allocation4 + $0x6a] sm:$0xff] }
 0x6a4   : > { %4976 = vst.msk [vmem:[#allocation5 + $0x180] sm:$0xff] %vm4951_vm12, %v4904_v16  ;;  %5279 = vrot.lane.b32.xlu1 %v14192_v31, %s9108_s28  ;;  %v5377_v16 = vld [vmem:[#allocation4 + $0x78] sm:$0xff] }
 0x6a5   : > { %5277 = vrot.lane.b32.xlu0 %v14193_v14, %s9108_s28  ;;  %v5573_v31 = vld [vmem:[#allocation4 + $0x99] sm:$0xff] }
 0x6a6   : > { %v4910_v46 = vpop.permute.xlu1 %4909  ;;  %5605 = vst.msk [vmem:[#allocation5 + $0x98] sm:$0xff] %vm372_vm11, %v5573_v31  ;;  %v5390_v31 = vld [vmem:[#allocation4 + $0x110] sm:$0xff] }
 0x6a7   : > { %v4908_v61 = vpop.permute.xlu0 %4907  ;;  %4979 = vst.msk [vmem:[#allocation5 + $0x1b0] sm:$0xff] %vm4951_vm12, %v4910_v46  ;;  %v5378_v46 = vld [vmem:[#allocation4 + $0x80] sm:$0xff] }
 0x6a8   : > { %4978 = vst.msk [vmem:[#allocation5 + $0x1a0] sm:$0xff] %vm4951_vm12, %v4908_v61  ;;  %5283 = vrot.lane.b32.xlu1 %v14194_v7, %s9108_s28  ;;  %v5635_v7 = vld [vmem:[#allocation4 + $0x82] sm:$0xff] }
 0x6a9   : > { %5281 = vrot.lane.b32.xlu0 %v14195_v21, %s9108_s28 }
 0x6aa   : > { %v4914_v12 = vpop.permute.xlu1 %4913 }
 0x6ab   : > { %v4912_v2 = vpop.permute.xlu0 %4911  ;;  %4981 = vst.msk [vmem:[#allocation5 + $0x1d0] sm:$0xff] %vm4951_vm12, %v4914_v12 }
 0x6ac   : > { %4980 = vst.msk [vmem:[#allocation5 + $0x1c0] sm:$0xff] %vm4951_vm12, %v4912_v2  ;;  %5287 = vrot.lane.b32.xlu1 %v14196_v56, %s9108_s28  ;;  %v5380_v56 = vld [vmem:[#allocation4 + $0x98] sm:$0xff] }
 0x6ad   : > { %5285 = vrot.lane.b32.xlu0 %v14197_v49, %s9108_s28  ;;  %v5576_v49 = vld [vmem:[#allocation4 + $0xc1] sm:$0xff] }
 0x6ae   : > { %v4918_v59 = vpop.permute.xlu1 %4917  ;;  %5608 = vst.msk [vmem:[#allocation5 + $0xc8] sm:$0xff] %vm372_vm11, %v5576_v49  ;;  %v5393_v49 = vld [vmem:[#allocation4 + $0x138] sm:$0xff] }
 0x6af   : > { %v4916_v11 = vpop.permute.xlu0 %4915  ;;  %4983 = vst.msk [vmem:[#allocation5 + $0x1f0] sm:$0xff] %vm4951_vm12, %v4918_v59 }
 0x6b0   : > { %4982 = vst.msk [vmem:[#allocation5 + $0x1e0] sm:$0xff] %vm4951_vm12, %v4916_v11  ;;  %5291 = vrot.lane.b32.xlu1 %v14198_v37, %s9108_s28  ;;  %v5638_v37 = vld [vmem:[#allocation4 + $0xaa] sm:$0xff] }
 0x6b1   : > { %5289 = vrot.lane.b32.xlu0 %v14199_v62, %s9108_s28 }
 0x6b2   : > { %v5051_v26 = vpop.permute.xlu1 %5050 }
 0x6b3   : > { %v5049_v55 = vpop.permute.xlu0 %5048  ;;  %5146 = vst.msk [vmem:[#allocation5 + $0x10] sm:$0xff] %vm5144_vm13, %v5051_v26 }
 0x6b4   : > { %5145 = vst.msk [vmem:[#allocation5] sm:$0xff] %vm5144_vm13, %v5049_v55  ;;  %5295 = vrot.lane.b32.xlu1 %v11976_v4, %s9108_s28  ;;  %v5383_v55 = vld [vmem:[#allocation4 + $0xc0] sm:$0xff] }
 0x6b5   : > { %5293 = vrot.lane.b32.xlu0 %v11978_v3, %s9108_s28  ;;  %v5567_v3 = vld [vmem:[#allocation4 + $0x51] sm:$0xff] }
 0x6b6   : > { %v5055_v35 = vpop.permute.xlu1 %5054  ;;  %5599 = vst.msk [vmem:[#allocation5 + $0x38] sm:$0xff] %vm372_vm11, %v5567_v3  ;;  %v5641_v3 = vld [vmem:[#allocation4 + $0xca] sm:$0xff] }
 0x6b7   : > { %v5053_v4 = vpop.permute.xlu0 %5052  ;;  %5148 = vst.msk [vmem:[#allocation5 + $0x30] sm:$0xff] %vm5144_vm13, %v5055_v35  ;;  %v5384_v35 = vld [vmem:[#allocation4 + $0xc8] sm:$0xff] }
 0x6b8   : > { %5147 = vst.msk [vmem:[#allocation5 + $0x20] sm:$0xff] %vm5144_vm13, %v5053_v4  ;;  %5299 = vrot.lane.b32.xlu1 %v11986_v18, %s9108_s28  ;;  %v5372_v18 = vld [vmem:[#allocation4 + $0x38] sm:$0xff] }
 0x6b9   : > { %5297 = vrot.lane.b32.xlu0 %v11988_v40, %s9108_s28  ;;  %v5580_v4 = vld [vmem:[#allocation4 + $0xf1] sm:$0xff] }
 0x6ba   : > { %v5059_v9 = vpop.permute.xlu1 %5058  ;;  %5612 = vst.msk [vmem:[#allocation5 + $0x108] sm:$0xff] %vm372_vm11, %v5580_v4  ;;  %v5397_v4 = vld [vmem:[#allocation4 + $0x168] sm:$0xff] }
 0x6bb   : > { %v5057_v42 = vpop.permute.xlu0 %5056  ;;  %5150 = vst.msk [vmem:[#allocation5 + $0x50] sm:$0xff] %vm5144_vm13, %v5059_v9 }
 0x6bc   : > { %5149 = vst.msk [vmem:[#allocation5 + $0x40] sm:$0xff] %vm5144_vm13, %v5057_v42  ;;  %5435 = vrot.lane.b32.xlu1 %v5371_v54, %s9110_s16  ;;  %v5385_v42 = vld [vmem:[#allocation4 + $0xd8] sm:$0xff] }
 0x6bd   : > { %5692 = vrot.lane.b32.xlu0 %v14177_v27, %s9092_s13 }
 0x6be   : > { %v5063_v8 = vpop.permute.xlu1 %5062 }
 0x6bf   : > { %v5061_v40 = vpop.permute.xlu0 %5060  ;;  %5152 = vst.msk [vmem:[#allocation5 + $0x70] sm:$0xff] %vm5144_vm13, %v5063_v8  ;;  %v5642_v8 = vld [vmem:[#allocation4 + $0xda] sm:$0xff] }
 0x6c0   : > { %5151 = vst.msk [vmem:[#allocation5 + $0x60] sm:$0xff] %vm5144_vm13, %v5061_v40  ;;  %5437 = vrot.lane.b32.xlu1 %v5372_v18, %s9110_s16  ;;  %v5581_v18 = vld [vmem:[#allocation4 + $0xf9] sm:$0xff] }
 0x6c1   : > { %5694 = vrot.lane.b32.xlu0 %v14176_v60, %s9092_s13  ;;  %5613 = vst.msk [vmem:[#allocation5 + $0x118] sm:$0xff] %vm372_vm11, %v5581_v18  ;;  %v5398_v18 = vld [vmem:[#allocation4 + $0x170] sm:$0xff] }
 0x6c2   : > { %v5067_v25 = vpop.permute.xlu1 %5066 }
 0x6c3   : > { %v5065_v27 = vpop.permute.xlu0 %5064  ;;  %5154 = vst.msk [vmem:[#allocation5 + $0x90] sm:$0xff] %vm5144_vm13, %v5067_v25 }
 0x6c4   : > { %5153 = vst.msk [vmem:[#allocation5 + $0x80] sm:$0xff] %vm5144_vm13, %v5065_v27  ;;  %5439 = vrot.lane.b32.xlu1 %v5373_v6, %s9110_s16  ;;  %v5386_v6 = vld [vmem:[#allocation4 + $0xe0] sm:$0xff] }
 0x6c5   : > { %5696 = vrot.lane.b32.xlu0 %v14179_v39, %s9092_s13  ;;  %v5643_v27 = vld [vmem:[#allocation4 + $0xe2] sm:$0xff] }
 0x6c6   : > { %v5071_v32 = vpop.permute.xlu1 %5070 }
 0x6c7   : > { %v5069_v60 = vpop.permute.xlu0 %5068  ;;  %5156 = vst.msk [vmem:[#allocation5 + $0xb0] sm:$0xff] %vm5144_vm13, %v5071_v32  ;;  %v5583_v32 = vld [vmem:[#allocation4 + $0x111] sm:$0xff] }
 0x6c8   : > { %5155 = vst.msk [vmem:[#allocation5 + $0xa0] sm:$0xff] %vm5144_vm13, %v5069_v60  ;;  %5441 = vrot.lane.b32.xlu1 %v5374_v58, %s9110_s16  ;;  %v5644_v60 = vld [vmem:[#allocation4 + $0xf2] sm:$0xff] }
 0x6c9   : > { %5698 = vrot.lane.b32.xlu0 %v5631_v50, %s9092_s13  ;;  %5615 = vst.msk [vmem:[#allocation5 + $0x138] sm:$0xff] %vm372_vm11, %v5583_v32  ;;  %v5657_v32 = vld [vmem:[#allocation4 + $0x18a] sm:$0xff] }
 0x6ca   : > { %v5075_v43 = vpop.permute.xlu1 %5074 }
 0x6cb   : > { %v5073_v39 = vpop.permute.xlu0 %5072  ;;  %5158 = vst.msk [vmem:[#allocation5 + $0xd0] sm:$0xff] %vm5144_vm13, %v5075_v43  ;;  %v5584_v43 = vld [vmem:[#allocation4 + $0x121] sm:$0xff] }
 0x6cc   : > { %5157 = vst.msk [vmem:[#allocation5 + $0xc0] sm:$0xff] %vm5144_vm13, %v5073_v39  ;;  %5443 = vrot.lane.b32.xlu1 %v5375_v10, %s9110_s16  ;;  %v5645_v39 = vld [vmem:[#allocation4 + $0xfa] sm:$0xff] }
 0x6cd   : > { %5700 = vrot.lane.b32.xlu0 %v5632_v44, %s9092_s13  ;;  %5616 = vst.msk [vmem:[#allocation5 + $0x148] sm:$0xff] %vm372_vm11, %v5584_v43 }
 0x6ce   : > { %v5079_v52 = vpop.permute.xlu1 %5078 }
 0x6cf   : > { %v5077_v38 = vpop.permute.xlu0 %5076  ;;  %5160 = vst.msk [vmem:[#allocation5 + $0xf0] sm:$0xff] %vm5144_vm13, %v5079_v52  ;;  %v5585_v52 = vld [vmem:[#allocation4 + $0x129] sm:$0xff] }
 0x6d0   : > { %5159 = vst.msk [vmem:[#allocation5 + $0xe0] sm:$0xff] %vm5144_vm13, %v5077_v38  ;;  %5445 = vrot.lane.b32.xlu1 %v5376_v63, %s9110_s16  ;;  %v5646_v38 = vld [vmem:[#allocation4 + $0x10a] sm:$0xff] }
 0x6d1   : > { %5702 = vrot.lane.b32.xlu0 %v5633_v20, %s9092_s13  ;;  %5617 = vst.msk [vmem:[#allocation5 + $0x158] sm:$0xff] %vm372_vm11, %v5585_v52  ;;  %v5402_v52 = vld [vmem:[#allocation4 + $0x1a0] sm:$0xff] }
 0x6d2   : > { %v5083_v14 = vpop.permute.xlu1 %5082 }
 0x6d3   : > { %v5081_v19 = vpop.permute.xlu0 %5080  ;;  %5162 = vst.msk [vmem:[#allocation5 + $0x110] sm:$0xff] %vm5144_vm13, %v5083_v14  ;;  %v5586_v14 = vld [vmem:[#allocation4 + $0x139] sm:$0xff] }
 0x6d4   : > { %5161 = vst.msk [vmem:[#allocation5 + $0x100] sm:$0xff] %vm5144_vm13, %v5081_v19  ;;  %5447 = vrot.lane.b32.xlu1 %v5377_v16, %s9110_s16  ;;  %v5647_v19 = vld [vmem:[#allocation4 + $0x112] sm:$0xff] }
 0x6d5   : > { %5704 = vrot.lane.b32.xlu0 %v5634_v48, %s9092_s13  ;;  %5618 = vst.msk [vmem:[#allocation5 + $0x168] sm:$0xff] %vm372_vm11, %v5586_v14 }
 0x6d6   : > { %v5087_v61 = vpop.permute.xlu1 %5086 }
 0x6d7   : > { %v5085_v21 = vpop.permute.xlu0 %5084  ;;  %5164 = vst.msk [vmem:[#allocation5 + $0x130] sm:$0xff] %vm5144_vm13, %v5087_v61  ;;  %v5587_v61 = vld [vmem:[#allocation4 + $0x141] sm:$0xff] }
 0x6d8   : > { %5163 = vst.msk [vmem:[#allocation5 + $0x120] sm:$0xff] %vm5144_vm13, %v5085_v21  ;;  %5449 = vrot.lane.b32.xlu1 %v5378_v46, %s9110_s16  ;;  %v5648_v21 = vld [vmem:[#allocation4 + $0x122] sm:$0xff] }
 0x6d9   : > { %5706 = vrot.lane.b32.xlu0 %v5635_v7, %s9092_s13  ;;  %5619 = vst.msk [vmem:[#allocation5 + $0x178] sm:$0xff] %vm372_vm11, %v5587_v61 }
 0x6da   : > { %v5091_v12 = vpop.permute.xlu1 %5090 }
 0x6db   : > { %v5089_v2 = vpop.permute.xlu0 %5088  ;;  %5166 = vst.msk [vmem:[#allocation5 + $0x150] sm:$0xff] %vm5144_vm13, %v5091_v12  ;;  %v5588_v12 = vld [vmem:[#allocation4 + $0x151] sm:$0xff] }
 0x6dc   : > { %5165 = vst.msk [vmem:[#allocation5 + $0x140] sm:$0xff] %vm5144_vm13, %v5089_v2  ;;  %5451 = vrot.lane.b32.xlu1 %v5379_v47, %s9110_s16  ;;  %v5649_v2 = vld [vmem:[#allocation4 + $0x12a] sm:$0xff] }
 0x6dd   : > { %5708 = vrot.lane.b32.xlu0 %v5636_v45, %s9092_s13  ;;  %5620 = vst.msk [vmem:[#allocation5 + $0x188] sm:$0xff] %vm372_vm11, %v5588_v12 }
 0x6de   : > { %v5095_v28 = vpop.permute.xlu1 %5094 }
 0x6df   : > { %v5093_v59 = vpop.permute.xlu0 %5092  ;;  %5168 = vst.msk [vmem:[#allocation5 + $0x170] sm:$0xff] %vm5144_vm13, %v5095_v28  ;;  %v5589_v28 = vld [vmem:[#allocation4 + $0x159] sm:$0xff] }
 0x6e0   : > { %5167 = vst.msk [vmem:[#allocation5 + $0x160] sm:$0xff] %vm5144_vm13, %v5093_v59  ;;  %5453 = vrot.lane.b32.xlu1 %v5380_v56, %s9110_s16  ;;  %v5650_v59 = vld [vmem:[#allocation4 + $0x13a] sm:$0xff] }
 0x6e1   : > { %5710 = vrot.lane.b32.xlu0 %v5637_v33, %s9092_s13  ;;  %5621 = vst.msk [vmem:[#allocation5 + $0x198] sm:$0xff] %vm372_vm11, %v5589_v28 }
 0x6e2   : > { %v5099_v11 = vpop.permute.xlu1 %5098 }
 0x6e3   : > { %v5097_v62 = vpop.permute.xlu0 %5096  ;;  %5170 = vst.msk [vmem:[#allocation5 + $0x190] sm:$0xff] %vm5144_vm13, %v5099_v11  ;;  %v5590_v11 = vld [vmem:[#allocation4 + $0x169] sm:$0xff] }
 0x6e4   : > { %5169 = vst.msk [vmem:[#allocation5 + $0x180] sm:$0xff] %vm5144_vm13, %v5097_v62  ;;  %5455 = vrot.lane.b32.xlu1 %v5381_v5, %s9110_s16  ;;  %v5651_v62 = vld [vmem:[#allocation4 + $0x142] sm:$0xff] }
 0x6e5   : > { %5712 = vrot.lane.b32.xlu0 %v5638_v37, %s9092_s13  ;;  %5622 = vst.msk [vmem:[#allocation5 + $0x1a8] sm:$0xff] %vm372_vm11, %v5590_v11 }
 0x6e6   : > { %v5103_v26 = vpop.permute.xlu1 %5102 }
 0x6e7   : > { %v5101_v57 = vpop.permute.xlu0 %5100  ;;  %5172 = vst.msk [vmem:[#allocation5 + $0x1b0] sm:$0xff] %vm5144_vm13, %v5103_v26  ;;  %v5591_v26 = vld [vmem:[#allocation4 + $0x171] sm:$0xff] }
 0x6e8   : > { %5171 = vst.msk [vmem:[#allocation5 + $0x1a0] sm:$0xff] %vm5144_vm13, %v5101_v57  ;;  %5457 = vrot.lane.b32.xlu1 %v5382_v29, %s9110_s16  ;;  %v5652_v57 = vld [vmem:[#allocation4 + $0x152] sm:$0xff] }
 0x6e9   : > { %5714 = vrot.lane.b32.xlu0 %v5639_v30, %s9092_s13  ;;  %5623 = vst.msk [vmem:[#allocation5 + $0x1b8] sm:$0xff] %vm372_vm11, %v5591_v26 }
 0x6ea   : > { %v5107_v22 = vpop.permute.xlu1 %5106 }
 0x6eb   : > { %v5105_v53 = vpop.permute.xlu0 %5104  ;;  %5174 = vst.msk [vmem:[#allocation5 + $0x1d0] sm:$0xff] %vm5144_vm13, %v5107_v22  ;;  %v5592_v22 = vld [vmem:[#allocation4 + $0x181] sm:$0xff] }
 0x6ec   : > { %5173 = vst.msk [vmem:[#allocation5 + $0x1c0] sm:$0xff] %vm5144_vm13, %v5105_v53  ;;  %5459 = vrot.lane.b32.xlu1 %v5383_v55, %s9110_s16  ;;  %v5653_v53 = vld [vmem:[#allocation4 + $0x15a] sm:$0xff] }
 0x6ed   : > { %5716 = vrot.lane.b32.xlu0 %v5640_v36, %s9092_s13  ;;  %5624 = vst.msk [vmem:[#allocation5 + $0x1c8] sm:$0xff] %vm372_vm11, %v5592_v22 }
 0x6ee   : > { %v5111_v54 = vpop.permute.xlu1 %5110 }
 0x6ef   : > { %v5109_v9 = vpop.permute.xlu0 %5108  ;;  %5176 = vst.msk [vmem:[#allocation5 + $0x1f0] sm:$0xff] %vm5144_vm13, %v5111_v54  ;;  %v5593_v54 = vld [vmem:[#allocation4 + $0x189] sm:$0xff] }
 0x6f0   : > { %5175 = vst.msk [vmem:[#allocation5 + $0x1e0] sm:$0xff] %vm5144_vm13, %v5109_v9  ;;  %5461 = vrot.lane.b32.xlu1 %v5384_v35, %s9110_s16  ;;  %v5654_v9 = vld [vmem:[#allocation4 + $0x16a] sm:$0xff] }
 0x6f1   : > { %5718 = vrot.lane.b32.xlu0 %v5641_v3, %s9092_s13  ;;  %5625 = vst.msk [vmem:[#allocation5 + $0x1d8] sm:$0xff] %vm372_vm11, %v5593_v54 }
 0x6f2   : > { %v5244_v23 = vpop.permute.xlu1 %5243 }
 0x6f3   : > { %v5242_v40 = vpop.permute.xlu0 %5241  ;;  %5339 = vst.msk [vmem:[#allocation5 + $0x10] sm:$0xff] %vm5337_vm14, %v5244_v23 }
 0x6f4   : > { %5338 = vst.msk [vmem:[#allocation5] sm:$0xff] %vm5337_vm14, %v5242_v40  ;;  %5463 = vrot.lane.b32.xlu1 %v5385_v42, %s9110_s16 }
 0x6f5   : > { %5720 = vrot.lane.b32.xlu0 %v5642_v8, %s9092_s13  ;;  %v5655_v8 = vld [vmem:[#allocation4 + $0x172] sm:$0xff] }
 0x6f6   : > { %v5248_v25 = vpop.permute.xlu1 %5247 }
 0x6f7   : > { %v5246_v58 = vpop.permute.xlu0 %5245  ;;  %5341 = vst.msk [vmem:[#allocation5 + $0x30] sm:$0xff] %vm5337_vm14, %v5248_v25  ;;  %v5656_v25 = vld [vmem:[#allocation4 + $0x182] sm:$0xff] }
 0x6f8   : > { %5340 = vst.msk [vmem:[#allocation5 + $0x20] sm:$0xff] %vm5337_vm14, %v5246_v58  ;;  %5465 = vrot.lane.b32.xlu1 %v5386_v6, %s9110_s16  ;;  %v5399_v6 = vld [vmem:[#allocation4 + $0x180] sm:$0xff]  ;;  %v5400_v58 = vld [vmem:[#allocation4 + $0x188] sm:$0xff] }
 0x6f9   : > { %5722 = vrot.lane.b32.xlu0 %v5643_v27, %s9092_s13 }
 0x6fa   : > { %v5252_v50 = vpop.permute.xlu1 %5251 }
 0x6fb   : > { %v5250_v10 = vpop.permute.xlu0 %5249  ;;  %5343 = vst.msk [vmem:[#allocation5 + $0x50] sm:$0xff] %vm5337_vm14, %v5252_v50 }
 0x6fc   : > { %5342 = vst.msk [vmem:[#allocation5 + $0x40] sm:$0xff] %vm5337_vm14, %v5250_v10  ;;  %5467 = vrot.lane.b32.xlu1 %v5387_v24, %s9110_s16 }
 0x6fd   : > { %5724 = vrot.lane.b32.xlu0 %v5644_v60, %s9092_s13  ;;  %v5658_v60 = vld [vmem:[#allocation4 + $0x19a] sm:$0xff] }
 0x6fe   : > { %v5256_v44 = vpop.permute.xlu1 %5255 }
 0x6ff   : > { %v5254_v63 = vpop.permute.xlu0 %5253  ;;  %5345 = vst.msk [vmem:[#allocation5 + $0x70] sm:$0xff] %vm5337_vm14, %v5256_v44 }
 0x700   : > { %5344 = vst.msk [vmem:[#allocation5 + $0x60] sm:$0xff] %vm5337_vm14, %v5254_v63  ;;  %5469 = vrot.lane.b32.xlu1 %v5388_v0, %s9110_s16 }
 0x701   : > { %5726 = vrot.lane.b32.xlu0 %v5645_v39, %s9092_s13  ;;  %v5401_v39 = vld [vmem:[#allocation4 + $0x198] sm:$0xff] }
 0x702   : > { %v5260_v20 = vpop.permute.xlu1 %5259 }
 0x703   : > { %v5258_v16 = vpop.permute.xlu0 %5257  ;;  %5347 = vst.msk [vmem:[#allocation5 + $0x90] sm:$0xff] %vm5337_vm14, %v5260_v20 }
 0x704   : > { %5346 = vst.msk [vmem:[#allocation5 + $0x80] sm:$0xff] %vm5337_vm14, %v5258_v16  ;;  %5471 = vrot.lane.b32.xlu1 %v5389_v1, %s9110_s16  ;;  %v5659_v16 = vld [vmem:[#allocation4 + $0x1a2] sm:$0xff] }
 0x705   : > { %5728 = vrot.lane.b32.xlu0 %v5646_v38, %s9092_s13 }
 0x706   : > { %v5264_v48 = vpop.permute.xlu1 %5263 }
 0x707   : > { %v5262_v46 = vpop.permute.xlu0 %5261  ;;  %5349 = vst.msk [vmem:[#allocation5 + $0xb0] sm:$0xff] %vm5337_vm14, %v5264_v48 }
 0x708   : > { %5348 = vst.msk [vmem:[#allocation5 + $0xa0] sm:$0xff] %vm5337_vm14, %v5262_v46  ;;  %5473 = vrot.lane.b32.xlu1 %v5390_v31, %s9110_s16 }
 0x709   : > { %5730 = vrot.lane.b32.xlu0 %v5647_v19, %s9092_s13 }
 0x70a   : > { %v5268_v7 = vpop.permute.xlu1 %5267 }
 0x70b   : > { %v5266_v47 = vpop.permute.xlu0 %5265  ;;  %5351 = vst.msk [vmem:[#allocation5 + $0xd0] sm:$0xff] %vm5337_vm14, %v5268_v7 }
 0x70c   : > { %5350 = vst.msk [vmem:[#allocation5 + $0xc0] sm:$0xff] %vm5337_vm14, %v5266_v47  ;;  %5475 = vrot.lane.b32.xlu1 %v5391_v51, %s9110_s16 }
 0x70d   : > { %5732 = vrot.lane.b32.xlu0 %v5648_v21, %s9092_s13 }
 0x70e   : > { %v5272_v45 = vpop.permute.xlu1 %5271 }
 0x70f   : > { %v5270_v56 = vpop.permute.xlu0 %5269  ;;  %5353 = vst.msk [vmem:[#allocation5 + $0xf0] sm:$0xff] %vm5337_vm14, %v5272_v45 }
 0x710   : > { %5352 = vst.msk [vmem:[#allocation5 + $0xe0] sm:$0xff] %vm5337_vm14, %v5270_v56  ;;  %5477 = vrot.lane.b32.xlu1 %v5392_v15, %s9110_s16 }
 0x711   : > { %5734 = vrot.lane.b32.xlu0 %v5649_v2, %s9092_s13 }
 0x712   : > { %v5276_v33 = vpop.permute.xlu1 %5275 }
 0x713   : > { %v5274_v5 = vpop.permute.xlu0 %5273  ;;  %5355 = vst.msk [vmem:[#allocation5 + $0x110] sm:$0xff] %vm5337_vm14, %v5276_v33 }
 0x714   : > { %5354 = vst.msk [vmem:[#allocation5 + $0x100] sm:$0xff] %vm5337_vm14, %v5274_v5  ;;  %5479 = vrot.lane.b32.xlu1 %v5393_v49, %s9110_s16 }
 0x715   : > { %5736 = vrot.lane.b32.xlu0 %v5650_v59, %s9092_s13 }
 0x716   : > { %v5280_v37 = vpop.permute.xlu1 %5279 }
 0x717   : > { %v5278_v29 = vpop.permute.xlu0 %5277  ;;  %5357 = vst.msk [vmem:[#allocation5 + $0x130] sm:$0xff] %vm5337_vm14, %v5280_v37 }
 0x718   : > { %5356 = vst.msk [vmem:[#allocation5 + $0x120] sm:$0xff] %vm5337_vm14, %v5278_v29  ;;  %5481 = vrot.lane.b32.xlu1 %v5394_v41, %s9110_s16 }
 0x719   : > { %5738 = vrot.lane.b32.xlu0 %v5651_v62, %s9092_s13 }
 0x71a   : > { %v5284_v30 = vpop.permute.xlu1 %5283 }
 0x71b   : > { %v5282_v55 = vpop.permute.xlu0 %5281  ;;  %5359 = vst.msk [vmem:[#allocation5 + $0x150] sm:$0xff] %vm5337_vm14, %v5284_v30 }
 0x71c   : > { %5358 = vst.msk [vmem:[#allocation5 + $0x140] sm:$0xff] %vm5337_vm14, %v5282_v55  ;;  %5483 = vrot.lane.b32.xlu1 %v5395_v17, %s9110_s16 }
 0x71d   : > { %5740 = vrot.lane.b32.xlu0 %v5652_v57, %s9092_s13 }
 0x71e   : > { %v5288_v36 = vpop.permute.xlu1 %5287 }
 0x71f   : > { %v5286_v35 = vpop.permute.xlu0 %5285  ;;  %5361 = vst.msk [vmem:[#allocation5 + $0x170] sm:$0xff] %vm5337_vm14, %v5288_v36 }
 0x720   : > { %5360 = vst.msk [vmem:[#allocation5 + $0x160] sm:$0xff] %vm5337_vm14, %v5286_v35  ;;  %5485 = vrot.lane.b32.xlu1 %v5396_v34, %s9110_s16 }
 0x721   : > { %5742 = vrot.lane.b32.xlu0 %v5653_v53, %s9092_s13 }
 0x722   : > { %v5292_v3 = vpop.permute.xlu1 %5291 }
 0x723   : > { %v5290_v42 = vpop.permute.xlu0 %5289  ;;  %5363 = vst.msk [vmem:[#allocation5 + $0x190] sm:$0xff] %vm5337_vm14, %v5292_v3 }
 0x724   : > { %5362 = vst.msk [vmem:[#allocation5 + $0x180] sm:$0xff] %vm5337_vm14, %v5290_v42  ;;  %5487 = vrot.lane.b32.xlu1 %v5397_v4, %s9110_s16 }
 0x725   : > { %5744 = vrot.lane.b32.xlu0 %v5654_v9, %s9092_s13 }
 0x726   : > { %v5296_v23 = vpop.permute.xlu1 %5295 }
 0x727   : > { %v5294_v40 = vpop.permute.xlu0 %5293  ;;  %5365 = vst.msk [vmem:[#allocation5 + $0x1b0] sm:$0xff] %vm5337_vm14, %v5296_v23 }
 0x728   : > { %5364 = vst.msk [vmem:[#allocation5 + $0x1a0] sm:$0xff] %vm5337_vm14, %v5294_v40  ;;  %5489 = vrot.lane.b32.xlu1 %v5398_v18, %s9110_s16 }
 0x729   : > { %5746 = vrot.lane.b32.xlu0 %v5655_v8, %s9092_s13 }
 0x72a   : > { %v5300_v13 = vpop.permute.xlu1 %5299 }
 0x72b   : > { %v5298_v27 = vpop.permute.xlu0 %5297  ;;  %5367 = vst.msk [vmem:[#allocation5 + $0x1d0] sm:$0xff] %vm5337_vm14, %v5300_v13 }
 0x72c   : > { %5366 = vst.msk [vmem:[#allocation5 + $0x1c0] sm:$0xff] %vm5337_vm14, %v5298_v27  ;;  %5491 = vrot.lane.b32.xlu1 %v5399_v6, %s9110_s16 }
 0x72d   : > { %5748 = vrot.lane.b32.xlu0 %v5656_v25, %s9092_s13 }
 0x72e   : > { %v5436_v24 = vpop.permute.xlu1 %5435 }
 0x72f   : > { %v5693_v50 = vpop.permute.xlu0 %5692  ;;  %5532 = vst.msk [vmem:[#allocation5] sm:$0xff] %vm5531_vm15, %v5436_v24 }
 0x730   : > { %5788 = vst.msk [vmem:[#allocation5 + $0x8] sm:$0xff] %vm2827_vm0, %v5693_v50  ;;  %5493 = vrot.lane.b32.xlu1 %v5400_v58, %s9110_s16 }
 0x731   : > { %5750 = vrot.lane.b32.xlu0 %v5657_v32, %s9092_s13 }
 0x732   : > { %v5438_v10 = vpop.permute.xlu1 %5437 }
 0x733   : > { %v5695_v0 = vpop.permute.xlu0 %5694  ;;  %5533 = vst.msk [vmem:[#allocation5 + $0x10] sm:$0xff] %vm5531_vm15, %v5438_v10 }
 0x734   : > { %5789 = vst.msk [vmem:[#allocation5 + $0x18] sm:$0xff] %vm2827_vm0, %v5695_v0  ;;  %5752 = vrot.lane.b32.xlu1 %v5658_v60, %s9092_s13 }
 0x735   : > { %5301 = vrot.lane.b32.xlu0 %v5656_v25, %s9108_s28 }
 0x736   : > { %v5440_v43 = vpop.permute.xlu1 %5439  ;;  %v5820_v44 = vld [vmem:[#allocation5] sm:$0xff] }
 0x737   : > { %v5697_v63 = vpop.permute.xlu0 %5696  ;;  %5534 = vst.msk [vmem:[#allocation5 + $0x20] sm:$0xff] %vm5531_vm15, %v5440_v43  ;;  %v5821_v1 = vld [vmem:[#allocation5 + $0x8] sm:$0xff] }
 0x738   : > { %5790 = vst.msk [vmem:[#allocation5 + $0x28] sm:$0xff] %vm2827_vm0, %v5697_v63  ;;  %8730 = vmatprep.mubr.msk.f32.mxu1 %vm5909_vm8, %v5821_v1  ;;  %5303 = vrot.lane.b32.xlu1 %v5657_v32, %s9108_s28 }
 0x739   : > { %6071 = vmatmul.mubr.f32.vlgmr.msra.gmra.mrb[0].mxu1 %v5820_v44  ;;  %5495 = vrot.lane.b32.xlu0 %v5401_v39, %s9110_s16 }
 0x73a   : > { %v5442_v20 = vpop.permute.xlu1 %5441  ;;  %v5822_v38 = vld [vmem:[#allocation5 + $0x10] sm:$0xff] }
 0x73b   : > { %v5699_v31 = vpop.permute.xlu0 %5698  ;;  %5535 = vst.msk [vmem:[#allocation5 + $0x30] sm:$0xff] %vm5531_vm15, %v5442_v20  ;;  %v5823_v14 = vld [vmem:[#allocation5 + $0x18] sm:$0xff] }
 0x73c   : > { %5791 = vst.msk [vmem:[#allocation5 + $0x38] sm:$0xff] %vm2827_vm0, %v5699_v31  ;;  %8731 = vmatprep.mubr.msk.f32.mxu1 %vm5909_vm8, %v5823_v14  ;;  %5497 = vrot.lane.b32.xlu1 %v5402_v52, %s9110_s16 }
 0x73d   : > { %6076 = vmatmul.mubr.f32.gmra.mrb[2].mxu1 %v5822_v38  ;;  %5754 = vrot.lane.b32.xlu0 %v5659_v16, %s9092_s13 }
 0x73e   : > { %v5444_v48 = vpop.permute.xlu1 %5443  ;;  %v5824_v19 = vld [vmem:[#allocation5 + $0x20] sm:$0xff] }
 0x73f   : > { %v5701_v46 = vpop.permute.xlu0 %5700  ;;  %5536 = vst.msk [vmem:[#allocation5 + $0x40] sm:$0xff] %vm5531_vm15, %v5444_v48  ;;  %v5825_v51 = vld [vmem:[#allocation5 + $0x28] sm:$0xff] }
 0x740   : > { %5792 = vst.msk [vmem:[#allocation5 + $0x48] sm:$0xff] %vm2827_vm0, %v5701_v46  ;;  %8732 = vmatprep.mubr.msk.f32.mxu1 %vm5909_vm8, %v5825_v51 }
 0x741   : > { %6081 = vmatmul.mubr.f32.gmra.mrb[4].mxu1 %v5824_v19 }
 0x742   : > { %v5446_v61 = vpop.permute.xlu1 %5445  ;;  %v5826_v7 = vld [vmem:[#allocation5 + $0x30] sm:$0xff] }
 0x743   : > { %v5703_v21 = vpop.permute.xlu0 %5702  ;;  %5537 = vst.msk [vmem:[#allocation5 + $0x50] sm:$0xff] %vm5531_vm15, %v5446_v61  ;;  %v5827_v47 = vld [vmem:[#allocation5 + $0x38] sm:$0xff] }
 0x744   : > { %5793 = vst.msk [vmem:[#allocation5 + $0x58] sm:$0xff] %vm2827_vm0, %v5703_v21  ;;  %8733 = vmatprep.mubr.msk.f32.mxu1 %vm5909_vm8, %v5827_v47 }
 0x745   : > { %6086 = vmatmul.mubr.f32.gmra.mrb[6].mxu1 %v5826_v7 }
 0x746   : > { %v5448_v15 = vpop.permute.xlu1 %5447  ;;  %v5828_v12 = vld [vmem:[#allocation5 + $0x40] sm:$0xff] }
 0x747   : > { %v5705_v45 = vpop.permute.xlu0 %5704  ;;  %5538 = vst.msk [vmem:[#allocation5 + $0x60] sm:$0xff] %vm5531_vm15, %v5448_v15  ;;  %v5829_v2 = vld [vmem:[#allocation5 + $0x48] sm:$0xff] }
 0x748   : > { %5794 = vst.msk [vmem:[#allocation5 + $0x68] sm:$0xff] %vm2827_vm0, %v5705_v45  ;;  %8734 = vmatprep.mubr.msk.f32.mxu1 %vm5909_vm8, %v5829_v2 }
 0x749   : > { %6091 = vmatmul.mubr.f32.gmra.mrb[8].mxu1 %v5828_v12 }
 0x74a   : > { %v5450_v56 = vpop.permute.xlu1 %5449  ;;  %v5830_v49 = vld [vmem:[#allocation5 + $0x50] sm:$0xff] }
 0x74b   : > { %v5707_v28 = vpop.permute.xlu0 %5706  ;;  %5539 = vst.msk [vmem:[#allocation5 + $0x70] sm:$0xff] %vm5531_vm15, %v5450_v56  ;;  %v5831_v33 = vld [vmem:[#allocation5 + $0x58] sm:$0xff] }
 0x74c   : > { %5795 = vst.msk [vmem:[#allocation5 + $0x78] sm:$0xff] %vm2827_vm0, %v5707_v28  ;;  %8735 = vmatprep.mubr.msk.f32.mxu1 %vm5909_vm8, %v5831_v33 }
 0x74d   : > { %6096 = vmatmul.mubr.f32.gmra.mrb[10].mxu1 %v5830_v49 }
 0x74e   : > { %v5452_v59 = vpop.permute.xlu1 %5451  ;;  %v5832_v5 = vld [vmem:[#allocation5 + $0x60] sm:$0xff] }
 0x74f   : > { %v5709_v41 = vpop.permute.xlu0 %5708  ;;  %5540 = vst.msk [vmem:[#allocation5 + $0x80] sm:$0xff] %vm5531_vm15, %v5452_v59  ;;  %v5833_v11 = vld [vmem:[#allocation5 + $0x68] sm:$0xff] }
 0x750   : > { %5796 = vst.msk [vmem:[#allocation5 + $0x88] sm:$0xff] %vm2827_vm0, %v5709_v41  ;;  %8736 = vmatprep.mubr.msk.f32.mxu1 %vm5909_vm8, %v5833_v11 }
 0x751   : > { %6101 = vmatmul.mubr.f32.gmra.mrb[12].mxu1 %v5832_v5 }
 0x752   : > { %v5454_v37 = vpop.permute.xlu1 %5453  ;;  %v5834_v62 = vld [vmem:[#allocation5 + $0x70] sm:$0xff] }
 0x753   : > { %v5711_v29 = vpop.permute.xlu0 %5710  ;;  %5541 = vst.msk [vmem:[#allocation5 + $0x90] sm:$0xff] %vm5531_vm15, %v5454_v37  ;;  %v5835_v17 = vld [vmem:[#allocation5 + $0x78] sm:$0xff] }
 0x754   : > { %5797 = vst.msk [vmem:[#allocation5 + $0x98] sm:$0xff] %vm2827_vm0, %v5711_v29  ;;  %8737 = vmatprep.mubr.msk.f32.mxu1 %vm5909_vm8, %v5835_v17 }
 0x755   : > { %6106 = vmatmul.mubr.f32.gmra.mrb[14].mxu1 %v5834_v62 }
 0x756   : > { %v5456_v26 = vpop.permute.xlu1 %5455  ;;  %v5836_v30 = vld [vmem:[#allocation5 + $0x80] sm:$0xff] }
 0x757   : > { %v5713_v57 = vpop.permute.xlu0 %5712  ;;  %5542 = vst.msk [vmem:[#allocation5 + $0xa0] sm:$0xff] %vm5531_vm15, %v5456_v26  ;;  %v5837_v55 = vld [vmem:[#allocation5 + $0x88] sm:$0xff] }
 0x758   : > { %5798 = vst.msk [vmem:[#allocation5 + $0xa8] sm:$0xff] %vm2827_vm0, %v5713_v57  ;;  %8738 = vmatprep.mubr.msk.f32.mxu1 %vm5909_vm8, %v5837_v55 }
 0x759   : > { %6111 = vmatmul.mubr.f32.gmra.mrb[16].mxu1 %v5836_v30 }
 0x75a   : > { %v5458_v34 = vpop.permute.xlu1 %5457  ;;  %v5838_v22 = vld [vmem:[#allocation5 + $0x90] sm:$0xff] }
 0x75b   : > { %v5715_v36 = vpop.permute.xlu0 %5714  ;;  %5543 = vst.msk [vmem:[#allocation5 + $0xb0] sm:$0xff] %vm5531_vm15, %v5458_v34  ;;  %v5839_v53 = vld [vmem:[#allocation5 + $0x98] sm:$0xff]  ;;  %v6423_v34 = vld [vmem:[#allocation3 + $0x1] sm:$0xff] }
 0x75c   : > { %5799 = vst.msk [vmem:[#allocation5 + $0xb8] sm:$0xff] %vm2827_vm0, %v5715_v36  ;;  %8739 = vmatprep.mubr.msk.f32.mxu1 %vm5909_vm8, %v5839_v53  ;;  %6487 = vrot.lane.b32.xlu0 %v6423_v34, %s9092_s13 }
 0x75d   : > { %6116 = vmatmul.mubr.f32.gmra.mrb[18].mxu1 %v5838_v22  ;;  %v5594_v22 = vld [vmem:[#allocation4 + $0x199] sm:$0xff] }
 0x75e   : > { %v5460_v35 = vpop.permute.xlu1 %5459  ;;  %v5840_v4 = vld [vmem:[#allocation5 + $0xa0] sm:$0xff]  ;;  %5626 = vst.msk [vmem:[#allocation5 + $0x1e8] sm:$0xff] %vm372_vm11, %v5594_v22 }
 0x75f   : > { %v5717_v54 = vpop.permute.xlu0 %5716  ;;  %5544 = vst.msk [vmem:[#allocation5 + $0xc0] sm:$0xff] %vm5531_vm15, %v5460_v35  ;;  %v5841_v3 = vld [vmem:[#allocation5 + $0xa8] sm:$0xff] }
 0x760   : > { %5800 = vst.msk [vmem:[#allocation5 + $0xc8] sm:$0xff] %vm2827_vm0, %v5717_v54  ;;  %8740 = vmatprep.mubr.msk.f32.mxu1 %vm5909_vm8, %v5841_v3  ;;  %v6424_v54 = vld [vmem:[#allocation3 + $0x9] sm:$0xff]  ;;  %v5595_v3 = vld [vmem:[#allocation4 + $0x1a1] sm:$0xff] }
 0x761   : > { %6121 = vmatmul.mubr.f32.gmra.mrb[20].mxu1 %v5840_v4  ;;  %6489 = vrot.lane.b32.xlu1 %v6424_v54, %s9092_s13  ;;  %5627 = vst.msk [vmem:[#allocation5 + $0x1f8] sm:$0xff] %vm372_vm11, %v5595_v3 }
 0x762   : > { %v5462_v9 = vpop.permute.xlu1 %5461  ;;  %v5842_v42 = vld [vmem:[#allocation5 + $0xb0] sm:$0xff] }
 0x763   : > { %v5719_v18 = vpop.permute.xlu0 %5718  ;;  %5545 = vst.msk [vmem:[#allocation5 + $0xd0] sm:$0xff] %vm5531_vm15, %v5462_v9  ;;  %v5843_v23 = vld [vmem:[#allocation5 + $0xb8] sm:$0xff] }
 0x764   : > { %5801 = vst.msk [vmem:[#allocation5 + $0xd8] sm:$0xff] %vm2827_vm0, %v5719_v18  ;;  %8741 = vmatprep.mubr.msk.f32.mxu1 %vm5909_vm8, %v5843_v23 }
 0x765   : > { %6126 = vmatmul.mubr.f32.gmra.mrb[22].mxu1 %v5842_v42 }
 0x766   : > { %v5464_v8 = vpop.permute.xlu1 %5463  ;;  %v5844_v40 = vld [vmem:[#allocation5 + $0xc0] sm:$0xff] }
 0x767   : > { %v5721_v6 = vpop.permute.xlu0 %5720  ;;  %5546 = vst.msk [vmem:[#allocation5 + $0xe0] sm:$0xff] %vm5531_vm15, %v5464_v8  ;;  %v5845_v13 = vld [vmem:[#allocation5 + $0xc8] sm:$0xff] }
 0x768   : > { %5802 = vst.msk [vmem:[#allocation5 + $0xe8] sm:$0xff] %vm2827_vm0, %v5721_v6  ;;  %8742 = vmatprep.mubr.msk.f32.mxu1 %vm5909_vm8, %v5845_v13 }
 0x769   : > { %6131 = vmatmul.mubr.f32.gmra.mrb[24].mxu1 %v5844_v40 }
 0x76a   : > { %v5466_v25 = vpop.permute.xlu1 %5465  ;;  %v5846_v27 = vld [vmem:[#allocation5 + $0xd0] sm:$0xff] }
 0x76b   : > { %v5723_v58 = vpop.permute.xlu0 %5722  ;;  %5547 = vst.msk [vmem:[#allocation5 + $0xf0] sm:$0xff] %vm5531_vm15, %v5466_v25  ;;  %v5847_v24 = vld [vmem:[#allocation5 + $0xd8] sm:$0xff] }
 0x76c   : > { %5803 = vst.msk [vmem:[#allocation5 + $0xf8] sm:$0xff] %vm2827_vm0, %v5723_v58  ;;  %8743 = vmatprep.mubr.msk.f32.mxu1 %vm5909_vm8, %v5847_v24 }
 0x76d   : > { %6136 = vmatmul.mubr.f32.gmra.mrb[26].mxu1 %v5846_v27 }
 0x76e   : > { %v5468_v32 = vpop.permute.xlu1 %5467  ;;  %v5848_v50 = vld [vmem:[#allocation5 + $0xe0] sm:$0xff] }
 0x76f   : > { %v5725_v60 = vpop.permute.xlu0 %5724  ;;  %5548 = vst.msk [vmem:[#allocation5 + $0x100] sm:$0xff] %vm5531_vm15, %v5468_v32  ;;  %v5849_v10 = vld [vmem:[#allocation5 + $0xe8] sm:$0xff] }
 0x770   : > { %5804 = vst.msk [vmem:[#allocation5 + $0x108] sm:$0xff] %vm2827_vm0, %v5725_v60  ;;  %8744 = vmatprep.mubr.msk.f32.mxu1 %vm5909_vm8, %v5849_v10 }
 0x771   : > { %6141 = vmatmul.mubr.f32.gmra.mrb[28].mxu1 %v5848_v50 }
 0x772   : > { %v5470_v0 = vpop.permute.xlu1 %5469  ;;  %v5850_v43 = vld [vmem:[#allocation5 + $0xf0] sm:$0xff] }
 0x773   : > { %v5727_v44 = vpop.permute.xlu0 %5726  ;;  %5549 = vst.msk [vmem:[#allocation5 + $0x110] sm:$0xff] %vm5531_vm15, %v5470_v0  ;;  %v5851_v39 = vld [vmem:[#allocation5 + $0xf8] sm:$0xff] }
 0x774   : > { %5805 = vst.msk [vmem:[#allocation5 + $0x118] sm:$0xff] %vm2827_vm0, %v5727_v44  ;;  %8745 = vmatprep.mubr.msk.f32.mxu1 %vm5909_vm8, %v5851_v39 }
 0x775   : > { %6146 = vmatmul.mubr.f32.gmra.mrb[30].mxu1 %v5850_v43 }
 0x776   : > { %v5472_v63 = vpop.permute.xlu1 %5471  ;;  %v5852_v1 = vld [vmem:[#allocation5 + $0x100] sm:$0xff] }
 0x777   : > { %v5729_v52 = vpop.permute.xlu0 %5728  ;;  %5550 = vst.msk [vmem:[#allocation5 + $0x120] sm:$0xff] %vm5531_vm15, %v5472_v63  ;;  %v5853_v20 = vld [vmem:[#allocation5 + $0x108] sm:$0xff] }
 0x778   : > { %5806 = vst.msk [vmem:[#allocation5 + $0x128] sm:$0xff] %vm2827_vm0, %v5729_v52  ;;  %8746 = vmatprep.mubr.msk.f32.mxu1 %vm5909_vm8, %v5853_v20  ;;  %v6359_v52 = vld [vmem:[#allocation3] sm:$0xff]  ;;  %v12600_v20 = vld [vmem:[%s13882_s6] ss:$0 sm:$0xff] }
 0x779   : > { %6151 = vmatmul.mubr.f32.gmra.mrb[32].mxu1 %v5852_v1  ;;  %6391 = vst.msk [vmem:[#allocation5] sm:$0xff] %vm372_vm11, %v6359_v52 }
 0x77a   : > { %v5474_v38 = vpop.permute.xlu1 %5473  ;;  %v5854_v16 = vld [vmem:[#allocation5 + $0x110] sm:$0xff] }
 0x77b   : > { %v5731_v31 = vpop.permute.xlu0 %5730  ;;  %5551 = vst.msk [vmem:[#allocation5 + $0x130] sm:$0xff] %vm5531_vm15, %v5474_v38  ;;  %v5855_v14 = vld [vmem:[#allocation5 + $0x118] sm:$0xff] }
 0x77c   : > { %5807 = vst.msk [vmem:[#allocation5 + $0x138] sm:$0xff] %vm2827_vm0, %v5731_v31  ;;  %8747 = vmatprep.mubr.msk.f32.mxu1 %vm5909_vm8, %v5855_v14 }
 0x77d   : > { %6156 = vmatmul.mubr.f32.gmra.mrb[34].mxu1 %v5854_v16  ;;  %v6360_v16 = vld [vmem:[#allocation3 + $0x8] sm:$0xff] }
 0x77e   : > { %v5476_v48 = vpop.permute.xlu1 %5475  ;;  %v5856_v19 = vld [vmem:[#allocation5 + $0x120] sm:$0xff]  ;;  %6392 = vst.msk [vmem:[#allocation5 + $0x10] sm:$0xff] %vm372_vm11, %v6360_v16 }
 0x77f   : > { %v5733_v46 = vpop.permute.xlu0 %5732  ;;  %5552 = vst.msk [vmem:[#allocation5 + $0x140] sm:$0xff] %vm5531_vm15, %v5476_v48  ;;  %v5857_v51 = vld [vmem:[#allocation5 + $0x128] sm:$0xff] }
 0x780   : > { %5808 = vst.msk [vmem:[#allocation5 + $0x148] sm:$0xff] %vm2827_vm0, %v5733_v46  ;;  %8748 = vmatprep.mubr.msk.f32.mxu1 %vm5909_vm8, %v5857_v51 }
 0x781   : > { %6161 = vmatmul.mubr.f32.gmra.mrb[36].mxu1 %v5856_v19 }
 0x782   : > { %v5478_v61 = vpop.permute.xlu1 %5477  ;;  %v5858_v7 = vld [vmem:[#allocation5 + $0x130] sm:$0xff] }
 0x783   : > { %v5735_v21 = vpop.permute.xlu0 %5734  ;;  %5553 = vst.msk [vmem:[#allocation5 + $0x150] sm:$0xff] %vm5531_vm15, %v5478_v61  ;;  %v5859_v47 = vld [vmem:[#allocation5 + $0x138] sm:$0xff] }
 0x784   : > { %5809 = vst.msk [vmem:[#allocation5 + $0x158] sm:$0xff] %vm2827_vm0, %v5735_v21  ;;  %8749 = vmatprep.mubr.msk.f32.mxu1 %vm5909_vm8, %v5859_v47 }
 0x785   : > { %6166 = vmatmul.mubr.f32.gmra.mrb[38].mxu1 %v5858_v7 }
 0x786   : > { %v5480_v15 = vpop.permute.xlu1 %5479  ;;  %v5860_v12 = vld [vmem:[#allocation5 + $0x140] sm:$0xff] }
 0x787   : > { %v5737_v45 = vpop.permute.xlu0 %5736  ;;  %5554 = vst.msk [vmem:[#allocation5 + $0x160] sm:$0xff] %vm5531_vm15, %v5480_v15  ;;  %v5861_v2 = vld [vmem:[#allocation5 + $0x148] sm:$0xff] }
 0x788   : > { %5810 = vst.msk [vmem:[#allocation5 + $0x168] sm:$0xff] %vm2827_vm0, %v5737_v45  ;;  %8750 = vmatprep.mubr.msk.f32.mxu1 %vm5909_vm8, %v5861_v2 }
 0x789   : > { %6171 = vmatmul.mubr.f32.gmra.mrb[40].mxu1 %v5860_v12 }
 0x78a   : > { %v5482_v56 = vpop.permute.xlu1 %5481  ;;  %v5862_v49 = vld [vmem:[#allocation5 + $0x150] sm:$0xff] }
 0x78b   : > { %v5739_v28 = vpop.permute.xlu0 %5738  ;;  %5555 = vst.msk [vmem:[#allocation5 + $0x170] sm:$0xff] %vm5531_vm15, %v5482_v56  ;;  %v5863_v33 = vld [vmem:[#allocation5 + $0x158] sm:$0xff] }
 0x78c   : > { %5811 = vst.msk [vmem:[#allocation5 + $0x178] sm:$0xff] %vm2827_vm0, %v5739_v28  ;;  %8751 = vmatprep.mubr.msk.f32.mxu1 %vm5909_vm8, %v5863_v33 }
 0x78d   : > { %6176 = vmatmul.mubr.f32.gmra.mrb[42].mxu1 %v5862_v49 }
 0x78e   : > { %v5484_v59 = vpop.permute.xlu1 %5483  ;;  %v5864_v5 = vld [vmem:[#allocation5 + $0x160] sm:$0xff] }
 0x78f   : > { %v5741_v41 = vpop.permute.xlu0 %5740  ;;  %5556 = vst.msk [vmem:[#allocation5 + $0x180] sm:$0xff] %vm5531_vm15, %v5484_v59  ;;  %v5865_v11 = vld [vmem:[#allocation5 + $0x168] sm:$0xff] }
 0x790   : > { %5812 = vst.msk [vmem:[#allocation5 + $0x188] sm:$0xff] %vm2827_vm0, %v5741_v41  ;;  %8752 = vmatprep.mubr.msk.f32.mxu1 %vm5909_vm8, %v5865_v11 }
 0x791   : > { %6181 = vmatmul.mubr.f32.gmra.mrb[44].mxu1 %v5864_v5 }
 0x792   : > { %v5486_v37 = vpop.permute.xlu1 %5485  ;;  %v5866_v62 = vld [vmem:[#allocation5 + $0x170] sm:$0xff] }
 0x793   : > { %v5743_v29 = vpop.permute.xlu0 %5742  ;;  %5557 = vst.msk [vmem:[#allocation5 + $0x190] sm:$0xff] %vm5531_vm15, %v5486_v37  ;;  %v5867_v17 = vld [vmem:[#allocation5 + $0x178] sm:$0xff] }
 0x794   : > { %5813 = vst.msk [vmem:[#allocation5 + $0x198] sm:$0xff] %vm2827_vm0, %v5743_v29  ;;  %8753 = vmatprep.mubr.msk.f32.mxu1 %vm5909_vm8, %v5867_v17 }
 0x795   : > { %6186 = vmatmul.mubr.f32.gmra.mrb[46].mxu1 %v5866_v62 }
 0x796   : > { %v5488_v26 = vpop.permute.xlu1 %5487  ;;  %v5868_v30 = vld [vmem:[#allocation5 + $0x180] sm:$0xff] }
 0x797   : > { %v5745_v57 = vpop.permute.xlu0 %5744  ;;  %5558 = vst.msk [vmem:[#allocation5 + $0x1a0] sm:$0xff] %vm5531_vm15, %v5488_v26  ;;  %v5869_v55 = vld [vmem:[#allocation5 + $0x188] sm:$0xff] }
 0x798   : > { %5814 = vst.msk [vmem:[#allocation5 + $0x1a8] sm:$0xff] %vm2827_vm0, %v5745_v57  ;;  %8754 = vmatprep.mubr.msk.f32.mxu1 %vm5909_vm8, %v5869_v55 }
 0x799   : > { %6191 = vmatmul.mubr.f32.gmra.mrb[48].mxu1 %v5868_v30 }
 0x79a   : > { %v5490_v36 = vpop.permute.xlu1 %5489  ;;  %v5870_v53 = vld [vmem:[#allocation5 + $0x190] sm:$0xff] }
 0x79b   : > { %v5747_v35 = vpop.permute.xlu0 %5746  ;;  %5559 = vst.msk [vmem:[#allocation5 + $0x1b0] sm:$0xff] %vm5531_vm15, %v5490_v36  ;;  %v5871_v4 = vld [vmem:[#allocation5 + $0x198] sm:$0xff] }
 0x79c   : > { %5815 = vst.msk [vmem:[#allocation5 + $0x1b8] sm:$0xff] %vm2827_vm0, %v5747_v35  ;;  %8755 = vmatprep.mubr.msk.f32.mxu1 %vm5909_vm8, %v5871_v4 }
 0x79d   : > { %6196 = vmatmul.mubr.f32.gmra.mrb[50].mxu1 %v5870_v53 }
 0x79e   : > { %v5492_v9 = vpop.permute.xlu1 %5491  ;;  %v5872_v42 = vld [vmem:[#allocation5 + $0x1a0] sm:$0xff] }
 0x79f   : > { %v5749_v18 = vpop.permute.xlu0 %5748  ;;  %5560 = vst.msk [vmem:[#allocation5 + $0x1c0] sm:$0xff] %vm5531_vm15, %v5492_v9  ;;  %v5873_v23 = vld [vmem:[#allocation5 + $0x1a8] sm:$0xff] }
 0x7a0   : > { %5816 = vst.msk [vmem:[#allocation5 + $0x1c8] sm:$0xff] %vm2827_vm0, %v5749_v18  ;;  %8756 = vmatprep.mubr.msk.f32.mxu1 %vm5909_vm8, %v5873_v23 }
 0x7a1   : > { %6201 = vmatmul.mubr.f32.gmra.mrb[52].mxu1 %v5872_v42 }
 0x7a2   : > { %v5494_v8 = vpop.permute.xlu1 %5493  ;;  %v5874_v40 = vld [vmem:[#allocation5 + $0x1b0] sm:$0xff] }
 0x7a3   : > { %v5751_v6 = vpop.permute.xlu0 %5750  ;;  %5561 = vst.msk [vmem:[#allocation5 + $0x1d0] sm:$0xff] %vm5531_vm15, %v5494_v8  ;;  %v5875_v13 = vld [vmem:[#allocation5 + $0x1b8] sm:$0xff] }
 0x7a4   : > { %5817 = vst.msk [vmem:[#allocation5 + $0x1d8] sm:$0xff] %vm2827_vm0, %v5751_v6  ;;  %8757 = vmatprep.mubr.msk.f32.mxu1 %vm5909_vm8, %v5875_v13 }
 0x7a5   : > { %6206 = vmatmul.mubr.f32.gmra.mrb[54].mxu1 %v5874_v40 }
 0x7a6   : > { %v5876_v25 = vld [vmem:[#allocation5 + $0x1c0] sm:$0xff]  ;;  %v5753_v27 = vpop.permute.xlu1 %5752 }
 0x7a7   : > { %v5877_v58 = vld [vmem:[#allocation5 + $0x1c8] sm:$0xff]  ;;  %v5302_v24 = vpop.permute.xlu0 %5301  ;;  %5818 = vst.msk [vmem:[#allocation5 + $0x1e8] sm:$0xff] %vm2827_vm0, %v5753_v27 }
 0x7a8   : > { %8758 = vmatprep.mubr.msk.f32.mxu1 %vm5909_vm8, %v5877_v58  ;;  %5368 = vst.msk [vmem:[#allocation5 + $0x1e0] sm:$0xff] %vm5337_vm14, %v5302_v24 }
 0x7a9   : > { %6211 = vmatmul.mubr.f32.gmra.mrb[56].mxu1 %v5876_v25 }
 0x7aa   : > { %v5878_v32 = vld [vmem:[#allocation5 + $0x1d0] sm:$0xff]  ;;  %v5304_v50 = vpop.permute.xlu1 %5303 }
 0x7ab   : > { %v5879_v60 = vld [vmem:[#allocation5 + $0x1d8] sm:$0xff]  ;;  %v5496_v10 = vpop.permute.xlu0 %5495  ;;  %5369 = vst.msk [vmem:[#allocation5 + $0x1f0] sm:$0xff] %vm5337_vm14, %v5304_v50 }
 0x7ac   : > { %8759 = vmatprep.mubr.msk.f32.mxu1 %vm5909_vm8, %v5879_v60  ;;  %5562 = vst.msk [vmem:[#allocation5 + $0x1e0] sm:$0xff] %vm5531_vm15, %v5496_v10 }
 0x7ad   : > { %6216 = vmatmul.mubr.f32.gmra.mrb[58].mxu1 %v5878_v32 }
 0x7ae   : > { %v5498_v0 = vpop.permute.xlu1 %5497  ;;  %v5881_v43 = vld [vmem:[#allocation5 + $0x1e8] sm:$0xff] }
 0x7af   : > { %v5755_v44 = vpop.permute.xlu0 %5754  ;;  %5563 = vst.msk [vmem:[#allocation5 + $0x1f0] sm:$0xff] %vm5531_vm15, %v5498_v0  ;;  %8760 = vmatprep.mubr.msk.f32.mxu1 %vm5909_vm8, %v5881_v43 }
 0x7b0   : > { %5819 = vst.msk [vmem:[#allocation5 + $0x1f8] sm:$0xff] %vm2827_vm0, %v5755_v44 }
 0x7b3   : > { %v5880_v39 = vld [vmem:[#allocation5 + $0x1e0] sm:$0xff] }
 0x7b4   : > { %6221 = vmatmul.mubr.f32.gmra.mrb[60].mxu1 %v5880_v39 }
 0x7b6   : > { %v5882_v63 = vld [vmem:[#allocation5 + $0x1f0] sm:$0xff] }
 0x7b7   : > { %v5883_v1 = vld [vmem:[#allocation5 + $0x1f8] sm:$0xff] }
 0x7b8   : > { %8761 = vmatprep.mubr.msk.f32.mxu1 %vm5909_vm8, %v5883_v1 }
 0x7b9   : > { %6226 = vmatmul.mubr.f32.gmra.mrb[62].mxu1 %v5882_v63 }
 0x7ce   : > { %v6488_v38 = vpop.permute.xlu0 %6487 }
 0x7cf   : > { %6583 = vst.msk [vmem:[#allocation5] sm:$0xff] %vm2827_vm0, %v6488_v38 }
 0x7d3   : > { %v6490_v19 = vpop.permute.xlu1 %6489 }
 0x7d4   : > { %6584 = vst.msk [vmem:[#allocation5 + $0x10] sm:$0xff] %vm2827_vm0, %v6490_v19 }
 0x80c   : > { %v6072_v31 = vpop.f32.mrb[0].mxu1 }
 0x80d   : > { %v12605_v14 = vadd.f32 %v12600_v20, %v6072_v31  ;;  %v6074_v48 = vpop.f32.mrb[1].mxu1 }
 0x80f   : > { %14200 = vst [vmem:[#allocation6_spill] sm:$0xff] %v12605_v14  ;;  %vm6231_vm9 = vcmp.ge.f32.partialorder %v12605_v14, 0.0  ;;  %v6263_v46 = vmul.f32 0.2, %v12605_v14 }
 0x810   : > { %v6077_v51 = vpop.f32.mrb[2].mxu1 }
 0x811   : > { %v6295_v61 = vsel %vm6231_vm9, %v12605_v14, %v6263_v46  ;;  %v12612_v7 = vadd.f32 %v12600_v20, %v6077_v51  ;;  %v6079_v21 = vpop.f32.mrb[3].mxu1 }
 0x812   : > { %6327 = vst.msk [vmem:[#allocation3 + $0x19] sm:$0xff] %vm372_vm11, %v6295_v61 }
 0x813   : > { %14201 = vst [vmem:[#allocation7_spill] sm:$0xff] %v12612_v7  ;;  %vm6232_vm10 = vcmp.ge.f32.partialorder %v12612_v7, 0.0  ;;  %v6264_v47 = vmul.f32 0.2, %v12612_v7 }
 0x814   : > { %v6082_v15 = vpop.f32.mrb[4].mxu1 }
 0x815   : > { %v6296_v12 = vsel %vm6232_vm10, %v12612_v7, %v6264_v47  ;;  %v12619_v45 = vadd.f32 %v12600_v20, %v6082_v15  ;;  %v6084_v2 = vpop.f32.mrb[5].mxu1 }
 0x816   : > { %6328 = vst.msk [vmem:[#allocation3 + $0x21] sm:$0xff] %vm372_vm11, %v6296_v12 }
 0x817   : > { %14202 = vst [vmem:[#allocation8_spill] sm:$0xff] %v12619_v45  ;;  %vm6233_vm12 = vcmp.ge.f32.partialorder %v12619_v45, 0.0  ;;  %v6265_v56 = vmul.f32 0.2, %v12619_v45 }
 0x818   : > { %v6087_v49 = vpop.f32.mrb[6].mxu1 }
 0x819   : > { %v6297_v28 = vsel %vm6233_vm12, %v12619_v45, %v6265_v56  ;;  %v12626_v33 = vadd.f32 %v12600_v20, %v6087_v49  ;;  %v6089_v59 = vpop.f32.mrb[7].mxu1  ;;  %v6425_v5 = vld [vmem:[#allocation3 + $0x19] sm:$0xff] }
 0x81a   : > { %v12628_v41 = vld [vmem:[#allocation3 + $0x18] sm:$0xff]  ;;  %6329 = vst.msk [vmem:[#allocation3 + $0x31] sm:$0xff] %vm372_vm11, %v6297_v28  ;;  %6491 = vrot.lane.b32.xlu0 %v6425_v5, %s9092_s13 }
 0x81b   : > { %14203 = vst [vmem:[#allocation9_spill] sm:$0xff] %v12626_v33  ;;  %6393 = vst.msk [vmem:[#allocation5 + $0x20] sm:$0xff] %vm372_vm11, %v12628_v41  ;;  %vm6234_vm13 = vcmp.ge.f32.partialorder %v12626_v33, 0.0  ;;  %v6266_v11 = vmul.f32 0.2, %v12626_v33 }
 0x81c   : > { %v6092_v37 = vpop.f32.mrb[8].mxu1 }
 0x81d   : > { %v6298_v62 = vsel %vm6234_vm13, %v12626_v33, %v6266_v11  ;;  %v12638_v29 = vadd.f32 %v12600_v20, %v6092_v37  ;;  %v6094_v17 = vpop.f32.mrb[9].mxu1  ;;  %v6426_v26 = vld [vmem:[#allocation3 + $0x21] sm:$0xff] }
 0x81e   : > { %v12640_v30 = vld [vmem:[#allocation3 + $0x20] sm:$0xff]  ;;  %6330 = vst.msk [vmem:[#allocation3 + $0x39] sm:$0xff] %vm372_vm11, %v6298_v62  ;;  %6493 = vrot.lane.b32.xlu1 %v6426_v26, %s9092_s13 }
 0x81f   : > { %14204 = vst [vmem:[#allocation10_spill] sm:$0xff] %v12638_v29  ;;  %6394 = vst.msk [vmem:[#allocation5 + $0x30] sm:$0xff] %vm372_vm11, %v12640_v30  ;;  %vm6235_vm14 = vcmp.ge.f32.partialorder %v12638_v29, 0.0  ;;  %v6267_v57 = vmul.f32 0.2, %v12638_v29 }
 0x820   : > { %v6097_v55 = vpop.f32.mrb[10].mxu1 }
 0x821   : > { %v6299_v34 = vsel %vm6235_vm14, %v12638_v29, %v6267_v57  ;;  %v12650_v22 = vadd.f32 %v12600_v20, %v6097_v55  ;;  %v6099_v36 = vpop.f32.mrb[11].mxu1  ;;  %v6427_v53 = vld [vmem:[#allocation3 + $0x31] sm:$0xff] }
 0x822   : > { %v12652_v35 = vld [vmem:[#allocation3 + $0x30] sm:$0xff]  ;;  %6331 = vst.msk [vmem:[#allocation3 + $0x49] sm:$0xff] %vm372_vm11, %v6299_v34  ;;  %6495 = vrot.lane.b32.xlu0 %v6427_v53, %s9092_s13 }
 0x823   : > { %14205 = vst [vmem:[#allocation11_spill] sm:$0xff] %v12650_v22  ;;  %6395 = vst.msk [vmem:[#allocation5 + $0x40] sm:$0xff] %vm372_vm11, %v12652_v35  ;;  %vm6236_vm15 = vcmp.ge.f32.partialorder %v12650_v22, 0.0  ;;  %v6268_v4 = vmul.f32 0.2, %v12650_v22 }
 0x824   : > { %v6102_v54 = vpop.f32.mrb[12].mxu1 }
 0x825   : > { %v6300_v3 = vsel %vm6236_vm15, %v12650_v22, %v6268_v4  ;;  %v12662_v9 = vadd.f32 %v12600_v20, %v6102_v54  ;;  %v6104_v42 = vpop.f32.mrb[13].mxu1  ;;  %v6428_v18 = vld [vmem:[#allocation3 + $0x39] sm:$0xff] }
 0x826   : > { %v12664_v23 = vld [vmem:[#allocation3 + $0x38] sm:$0xff]  ;;  %6332 = vst.msk [vmem:[#allocation3 + $0x51] sm:$0xff] %vm372_vm11, %v6300_v3  ;;  %6497 = vrot.lane.b32.xlu1 %v6428_v18, %s9092_s13 }
 0x827   : > { %14206 = vst [vmem:[#allocation12_spill] sm:$0xff] %v12662_v9  ;;  %6396 = vst.msk [vmem:[#allocation5 + $0x50] sm:$0xff] %vm372_vm11, %v12664_v23  ;;  %vm6237_vm8 = vcmp.ge.f32.partialorder %v12662_v9, 0.0  ;;  %v6269_v8 = vmul.f32 0.2, %v12662_v9 }
 0x828   : > { %v6107_v40 = vpop.f32.mrb[14].mxu1 }
 0x829   : > { %v6301_v6 = vsel %vm6237_vm8, %v12662_v9, %v6269_v8  ;;  %v12674_v13 = vadd.f32 %v12600_v20, %v6107_v40  ;;  %v6109_v25 = vpop.f32.mrb[15].mxu1  ;;  %v12676_v27 = vld [vmem:[#allocation3 + $0x49] sm:$0xff] }
 0x82a   : > { %v12678_v58 = vld [vmem:[#allocation3 + $0x48] sm:$0xff]  ;;  %6333 = vst.msk [vmem:[#allocation3 + $0x61] sm:$0xff] %vm372_vm11, %v6301_v6  ;;  %6499 = vrot.lane.b32.xlu0 %v12676_v27, %s9092_s13 }
 0x82b   : > { %14207 = vst [vmem:[#allocation13_spill] sm:$0xff] %v12674_v13  ;;  %6397 = vst.msk [vmem:[#allocation5 + $0x60] sm:$0xff] %vm372_vm11, %v12678_v58  ;;  %vm6238_vm9 = vcmp.ge.f32.partialorder %v12674_v13, 0.0  ;;  %v6270_v24 = vmul.f32 0.2, %v12674_v13 }
 0x82c   : > { %v6112_v32 = vpop.f32.mrb[16].mxu1 }
 0x82d   : > { %v6302_v50 = vsel %vm6238_vm9, %v12674_v13, %v6270_v24  ;;  %v12689_v60 = vadd.f32 %v12600_v20, %v6112_v32  ;;  %v6114_v10 = vpop.f32.mrb[17].mxu1  ;;  %v12691_v0 = vld [vmem:[#allocation3 + $0x51] sm:$0xff] }
 0x82e   : > { %6334 = vst.msk [vmem:[#allocation3 + $0x69] sm:$0xff] %vm372_vm11, %v6302_v50  ;;  %6501 = vrot.lane.b32.xlu1 %v12691_v0, %s9092_s13  ;;  %v12696_v43 = vld [vmem:[#allocation3 + $0x50] sm:$0xff] }
 0x82f   : > { %14208 = vst [vmem:[#allocation14_spill] sm:$0xff] %v12689_v60  ;;  %vm6239_vm10 = vcmp.ge.f32.partialorder %v12689_v60, 0.0  ;;  %v6271_v44 = vmul.f32 0.2, %v12689_v60  ;;  %6398 = vst.msk [vmem:[#allocation5 + $0x70] sm:$0xff] %vm372_vm11, %v12696_v43 }
 0x830   : > { %v6117_v39 = vpop.f32.mrb[18].mxu1 }
 0x831   : > { %v6303_v63 = vsel %vm6239_vm10, %v12689_v60, %v6271_v44  ;;  %v12704_v1 = vadd.f32 %v12600_v20, %v6117_v39  ;;  %v6119_v52 = vpop.f32.mrb[19].mxu1  ;;  %v12706_v38 = vld [vmem:[#allocation3 + $0x61] sm:$0xff] }
 0x832   : > { %v12708_v16 = vld [vmem:[#allocation3 + $0x60] sm:$0xff]  ;;  %6335 = vst.msk [vmem:[#allocation3 + $0x79] sm:$0xff] %vm372_vm11, %v6303_v63  ;;  %6503 = vrot.lane.b32.xlu0 %v12706_v38, %s9092_s13 }
 0x833   : > { %14209 = vst [vmem:[#allocation15_spill] sm:$0xff] %v12704_v1  ;;  %6399 = vst.msk [vmem:[#allocation5 + $0x80] sm:$0xff] %vm372_vm11, %v12708_v16  ;;  %vm6240_vm12 = vcmp.ge.f32.partialorder %v12704_v1, 0.0  ;;  %v6272_v31 = vmul.f32 0.2, %v12704_v1 }
 0x834   : > { %v6122_v48 = vpop.f32.mrb[20].mxu1 }
 0x835   : > { %v6304_v19 = vsel %vm6240_vm12, %v12704_v1, %v6272_v31  ;;  %v12719_v46 = vadd.f32 %v12600_v20, %v6122_v48  ;;  %v6124_v51 = vpop.f32.mrb[21].mxu1  ;;  %v12721_v61 = vld [vmem:[#allocation3 + $0x69] sm:$0xff] }
 0x836   : > { %6336 = vst.msk [vmem:[#allocation3 + $0x81] sm:$0xff] %vm372_vm11, %v6304_v19  ;;  %6505 = vrot.lane.b32.xlu1 %v12721_v61, %s9092_s13  ;;  %v12726_v21 = vld [vmem:[#allocation3 + $0x68] sm:$0xff] }
 0x837   : > { %14210 = vst [vmem:[#allocation16_spill] sm:$0xff] %v12719_v46  ;;  %vm6241_vm13 = vcmp.ge.f32.partialorder %v12719_v46, 0.0  ;;  %v6273_v47 = vmul.f32 0.2, %v12719_v46  ;;  %6400 = vst.msk [vmem:[#allocation5 + $0x90] sm:$0xff] %vm372_vm11, %v12726_v21 }
 0x838   : > { %v6127_v15 = vpop.f32.mrb[22].mxu1 }
 0x839   : > { %v6305_v12 = vsel %vm6241_vm13, %v12719_v46, %v6273_v47  ;;  %v12734_v2 = vadd.f32 %v12600_v20, %v6127_v15  ;;  %v6129_v56 = vpop.f32.mrb[23].mxu1  ;;  %v12736_v49 = vld [vmem:[#allocation3 + $0x79] sm:$0xff]  ;;  %v6616_v46 = vld [vmem:[#allocation3 + $0xa] sm:$0xff] }
 0x83a   : > { %v12738_v28 = vld [vmem:[#allocation3 + $0x78] sm:$0xff]  ;;  %6337 = vst.msk [vmem:[#allocation3 + $0x91] sm:$0xff] %vm372_vm11, %v6305_v12  ;;  %6507 = vrot.lane.b32.xlu0 %v12736_v49, %s9092_s13 }
 0x83b   : > { %14211 = vst [vmem:[#allocation17_spill] sm:$0xff] %v12734_v2  ;;  %6401 = vst.msk [vmem:[#allocation5 + $0xa0] sm:$0xff] %vm372_vm11, %v12738_v28  ;;  %vm6242_vm14 = vcmp.ge.f32.partialorder %v12734_v2, 0.0  ;;  %v6274_v59 = vmul.f32 0.2, %v12734_v2 }
 0x83c   : > { %v6132_v5 = vpop.f32.mrb[24].mxu1 }
 0x83d   : > { %v6306_v11 = vsel %vm6242_vm14, %v12734_v2, %v6274_v59  ;;  %v12749_v37 = vadd.f32 %v12600_v20, %v6132_v5  ;;  %v6134_v62 = vpop.f32.mrb[25].mxu1  ;;  %v12751_v17 = vld [vmem:[#allocation3 + $0x81] sm:$0xff] }
 0x83e   : > { %6338 = vst.msk [vmem:[#allocation3 + $0x99] sm:$0xff] %vm372_vm11, %v6306_v11  ;;  %6509 = vrot.lane.b32.xlu1 %v12751_v17, %s9092_s13  ;;  %v12756_v26 = vld [vmem:[#allocation3 + $0x80] sm:$0xff] }
 0x83f   : > { %14212 = vst [vmem:[#allocation18_spill] sm:$0xff] %v12749_v37  ;;  %vm6243_vm15 = vcmp.ge.f32.partialorder %v12749_v37, 0.0  ;;  %v6275_v57 = vmul.f32 0.2, %v12749_v37  ;;  %6402 = vst.msk [vmem:[#allocation5 + $0xb0] sm:$0xff] %vm372_vm11, %v12756_v26  ;;  %v13063_v1 = vld [vmem:[#allocation3 + $0x82] sm:$0xff] }
 0x840   : > { %v6137_v55 = vpop.f32.mrb[26].mxu1 }
 0x841   : > { %v6307_v34 = vsel %vm6243_vm15, %v12749_v37, %v6275_v57  ;;  %v12764_v36 = vadd.f32 %v12600_v20, %v6137_v55  ;;  %v6139_v53 = vpop.f32.mrb[27].mxu1  ;;  %v12766_v4 = vld [vmem:[#allocation3 + $0x91] sm:$0xff] }
 0x842   : > { %v12768_v54 = vld [vmem:[#allocation3 + $0x90] sm:$0xff]  ;;  %6339 = vst.msk [vmem:[#allocation3 + $0xa9] sm:$0xff] %vm372_vm11, %v6307_v34  ;;  %6511 = vrot.lane.b32.xlu0 %v12766_v4, %s9092_s13 }
 0x843   : > { %14213 = vst [vmem:[#allocation19_spill] sm:$0xff] %v12764_v36  ;;  %6403 = vst.msk [vmem:[#allocation5 + $0xc0] sm:$0xff] %vm372_vm11, %v12768_v54  ;;  %vm6244_vm8 = vcmp.ge.f32.partialorder %v12764_v36, 0.0  ;;  %v6276_v3 = vmul.f32 0.2, %v12764_v36 }
 0x844   : > { %v6142_v42 = vpop.f32.mrb[28].mxu1 }
 0x845   : > { %v6308_v18 = vsel %vm6244_vm8, %v12764_v36, %v6276_v3  ;;  %v12779_v8 = vadd.f32 %v12600_v20, %v6142_v42  ;;  %v6144_v40 = vpop.f32.mrb[29].mxu1  ;;  %v12781_v6 = vld [vmem:[#allocation3 + $0x99] sm:$0xff] }
 0x846   : > { %6340 = vst.msk [vmem:[#allocation3 + $0xb1] sm:$0xff] %vm372_vm11, %v6308_v18  ;;  %6513 = vrot.lane.b32.xlu1 %v12781_v6, %s9092_s13  ;;  %v12786_v25 = vld [vmem:[#allocation3 + $0x98] sm:$0xff] }
 0x847   : > { %14214 = vst [vmem:[#allocation20_spill] sm:$0xff] %v12779_v8  ;;  %vm6245_vm9 = vcmp.ge.f32.partialorder %v12779_v8, 0.0  ;;  %v6277_v24 = vmul.f32 0.2, %v12779_v8  ;;  %6404 = vst.msk [vmem:[#allocation5 + $0xd0] sm:$0xff] %vm372_vm11, %v12786_v25  ;;  %v13065_v60 = vld [vmem:[#allocation3 + $0x92] sm:$0xff] }
 0x848   : > { %v6147_v32 = vpop.f32.mrb[30].mxu1  ;;  %v13072_v13 = vld [vmem:[#allocation3 + $0x9a] sm:$0xff] }
 0x849   : > { %v6309_v50 = vsel %vm6245_vm9, %v12779_v8, %v6277_v24  ;;  %v12794_v10 = vadd.f32 %v12600_v20, %v6147_v32  ;;  %v6149_v44 = vpop.f32.mrb[31].mxu1  ;;  %v12796_v39 = vld [vmem:[#allocation3 + $0xa9] sm:$0xff] }
 0x84a   : > { %v12798_v63 = vld [vmem:[#allocation3 + $0xa8] sm:$0xff]  ;;  %6341 = vst.msk [vmem:[#allocation3 + $0xc1] sm:$0xff] %vm372_vm11, %v6309_v50  ;;  %6515 = vrot.lane.b32.xlu0 %v12796_v39, %s9092_s13 }
 0x84b   : > { %14215 = vst [vmem:[#allocation21_spill] sm:$0xff] %v12794_v10  ;;  %6405 = vst.msk [vmem:[#allocation5 + $0xe0] sm:$0xff] %vm372_vm11, %v12798_v63  ;;  %vm6246_vm10 = vcmp.ge.f32.partialorder %v12794_v10, 0.0  ;;  %v6278_v52 = vmul.f32 0.2, %v12794_v10 }
 0x84c   : > { %v6152_v31 = vpop.f32.mrb[32].mxu1 }
 0x84d   : > { %v6310_v48 = vsel %vm6246_vm10, %v12794_v10, %v6278_v52  ;;  %v12809_v19 = vadd.f32 %v12600_v20, %v6152_v31  ;;  %v6154_v51 = vpop.f32.mrb[33].mxu1  ;;  %v12811_v47 = vld [vmem:[#allocation3 + $0xb1] sm:$0xff] }
 0x84e   : > { %6342 = vst.msk [vmem:[#allocation3 + $0xc9] sm:$0xff] %vm372_vm11, %v6310_v48  ;;  %6517 = vrot.lane.b32.xlu1 %v12811_v47, %s9092_s13  ;;  %v12816_v15 = vld [vmem:[#allocation3 + $0xb0] sm:$0xff] }
 0x84f   : > { %14216 = vst [vmem:[#allocation22_spill] sm:$0xff] %v12809_v19  ;;  %vm6247_vm12 = vcmp.ge.f32.partialorder %v12809_v19, 0.0  ;;  %v6279_v12 = vmul.f32 0.2, %v12809_v19  ;;  %6406 = vst.msk [vmem:[#allocation5 + $0xf0] sm:$0xff] %vm372_vm11, %v12816_v15  ;;  %v13074_v9 = vld [vmem:[#allocation3 + $0xaa] sm:$0xff] }
 0x850   : > { %v6157_v56 = vpop.f32.mrb[34].mxu1  ;;  %v13081_v22 = vld [vmem:[#allocation3 + $0xb2] sm:$0xff] }
 0x851   : > { %v6311_v59 = vsel %vm6247_vm12, %v12809_v19, %v6279_v12  ;;  %v12824_v5 = vadd.f32 %v12600_v20, %v6157_v56  ;;  %v6159_v11 = vpop.f32.mrb[35].mxu1  ;;  %v12826_v62 = vld [vmem:[#allocation3 + $0xc1] sm:$0xff]  ;;  %14232 = vst [vmem:[#allocation38_spill] sm:$0xff] %v13081_v22 }
 0x852   : > { %v12828_v57 = vld [vmem:[#allocation3 + $0xc0] sm:$0xff]  ;;  %6343 = vst.msk [vmem:[#allocation3 + $0xd9] sm:$0xff] %vm372_vm11, %v6311_v59  ;;  %6519 = vrot.lane.b32.xlu0 %v12826_v62, %s9092_s13 }
 0x853   : > { %14217 = vst [vmem:[#allocation23_spill] sm:$0xff] %v12824_v5  ;;  %6407 = vst.msk [vmem:[#allocation5 + $0x100] sm:$0xff] %vm372_vm11, %v12828_v57  ;;  %vm6248_vm13 = vcmp.ge.f32.partialorder %v12824_v5, 0.0  ;;  %v6280_v55 = vmul.f32 0.2, %v12824_v5 }
 0x854   : > { %v6162_v34 = vpop.f32.mrb[36].mxu1 }
 0x855   : > { %v6312_v53 = vsel %vm6248_vm13, %v12824_v5, %v6280_v55  ;;  %v12839_v3 = vadd.f32 %v12600_v20, %v6162_v34  ;;  %v6164_v42 = vpop.f32.mrb[37].mxu1  ;;  %v12841_v18 = vld [vmem:[#allocation3 + $0xc9] sm:$0xff] }
 0x856   : > { %6344 = vst.msk [vmem:[#allocation3 + $0xe1] sm:$0xff] %vm372_vm11, %v6312_v53  ;;  %6521 = vrot.lane.b32.xlu1 %v12841_v18, %s9092_s13  ;;  %v12846_v40 = vld [vmem:[#allocation3 + $0xc8] sm:$0xff] }
 0x857   : > { %14218 = vst [vmem:[#allocation24_spill] sm:$0xff] %v12839_v3  ;;  %vm6249_vm14 = vcmp.ge.f32.partialorder %v12839_v3, 0.0  ;;  %v6281_v24 = vmul.f32 0.2, %v12839_v3  ;;  %6408 = vst.msk [vmem:[#allocation5 + $0x110] sm:$0xff] %vm372_vm11, %v12846_v40  ;;  %v13083_v29 = vld [vmem:[#allocation3 + $0xc2] sm:$0xff] }
 0x858   : > { %v6167_v32 = vpop.f32.mrb[38].mxu1  ;;  %14233 = vst [vmem:[#allocation39_spill] sm:$0xff] %v13083_v29  ;;  %v13090_v33 = vld [vmem:[#allocation3 + $0xca] sm:$0xff] }
 0x859   : > { %v6313_v50 = vsel %vm6249_vm14, %v12839_v3, %v6281_v24  ;;  %v12854_v44 = vadd.f32 %v12600_v20, %v6167_v32  ;;  %v6169_v52 = vpop.f32.mrb[39].mxu1  ;;  %v12856_v31 = vld [vmem:[#allocation3 + $0xd9] sm:$0xff]  ;;  %14234 = vst [vmem:[#allocation40_spill] sm:$0xff] %v13090_v33 }
 0x85a   : > { %v12858_v48 = vld [vmem:[#allocation3 + $0xd8] sm:$0xff]  ;;  %6345 = vst.msk [vmem:[#allocation3 + $0xf1] sm:$0xff] %vm372_vm11, %v6313_v50  ;;  %6523 = vrot.lane.b32.xlu0 %v12856_v31, %s9092_s13 }
 0x85b   : > { %14219 = vst [vmem:[#allocation25_spill] sm:$0xff] %v12854_v44  ;;  %6409 = vst.msk [vmem:[#allocation5 + $0x120] sm:$0xff] %vm372_vm11, %v12858_v48  ;;  %vm6250_vm15 = vcmp.ge.f32.partialorder %v12854_v44, 0.0  ;;  %v6282_v51 = vmul.f32 0.2, %v12854_v44 }
 0x85c   : > { %v6172_v12 = vpop.f32.mrb[40].mxu1 }
 0x85d   : > { %v6314_v56 = vsel %vm6250_vm15, %v12854_v44, %v6282_v51  ;;  %v12869_v59 = vadd.f32 %v12600_v20, %v6172_v12  ;;  %v6174_v11 = vpop.f32.mrb[41].mxu1  ;;  %v6442_v55 = vld [vmem:[#allocation3 + $0xe1] sm:$0xff] }
 0x85e   : > { %6346 = vst.msk [vmem:[#allocation3 + $0xf9] sm:$0xff] %vm372_vm11, %v6314_v56  ;;  %6525 = vrot.lane.b32.xlu1 %v6442_v55, %s9092_s13  ;;  %v12873_v34 = vld [vmem:[#allocation3 + $0xe0] sm:$0xff] }
 0x85f   : > { %14220 = vst [vmem:[#allocation26_spill] sm:$0xff] %v12869_v59  ;;  %vm6251_vm8 = vcmp.ge.f32.partialorder %v12869_v59, 0.0  ;;  %v6283_v53 = vmul.f32 0.2, %v12869_v59  ;;  %6410 = vst.msk [vmem:[#allocation5 + $0x130] sm:$0xff] %vm372_vm11, %v12873_v34  ;;  %v6633_v45 = vld [vmem:[#allocation3 + $0xda] sm:$0xff] }
 0x860   : > { %v6177_v42 = vpop.f32.mrb[42].mxu1  ;;  %v6634_v7 = vld [vmem:[#allocation3 + $0xe2] sm:$0xff] }
 0x861   : > { %v6315_v24 = vsel %vm6251_vm8, %v12869_v59, %v6283_v53  ;;  %v12881_v32 = vadd.f32 %v12600_v20, %v6177_v42  ;;  %v6179_v50 = vpop.f32.mrb[43].mxu1  ;;  %v6443_v52 = vld [vmem:[#allocation3 + $0xf1] sm:$0xff] }
 0x862   : > { %v12883_v51 = vld [vmem:[#allocation3 + $0xf0] sm:$0xff]  ;;  %6347 = vst.msk [vmem:[#allocation3 + $0x109] sm:$0xff] %vm372_vm11, %v6315_v24  ;;  %6527 = vrot.lane.b32.xlu0 %v6443_v52, %s9092_s13 }
 0x863   : > { %14221 = vst [vmem:[#allocation27_spill] sm:$0xff] %v12881_v32  ;;  %6411 = vst.msk [vmem:[#allocation5 + $0x140] sm:$0xff] %vm372_vm11, %v12883_v51  ;;  %vm6252_vm9 = vcmp.ge.f32.partialorder %v12881_v32, 0.0  ;;  %v6284_v12 = vmul.f32 0.2, %v12881_v32 }
 0x864   : > { %v6182_v56 = vpop.f32.mrb[44].mxu1 }
 0x865   : > { %v6316_v11 = vsel %vm6252_vm9, %v12881_v32, %v6284_v12  ;;  %v12893_v55 = vadd.f32 %v12600_v20, %v6182_v56  ;;  %v6184_v53 = vpop.f32.mrb[45].mxu1  ;;  %v6444_v42 = vld [vmem:[#allocation3 + $0xf9] sm:$0xff] }
 0x866   : > { %6348 = vst.msk [vmem:[#allocation3 + $0x111] sm:$0xff] %vm372_vm11, %v6316_v11  ;;  %6529 = vrot.lane.b32.xlu1 %v6444_v42, %s9092_s13  ;;  %v12897_v24 = vld [vmem:[#allocation3 + $0xf8] sm:$0xff] }
 0x867   : > { %14222 = vst [vmem:[#allocation28_spill] sm:$0xff] %v12893_v55  ;;  %vm6253_vm10 = vcmp.ge.f32.partialorder %v12893_v55, 0.0  ;;  %v6285_v50 = vmul.f32 0.2, %v12893_v55  ;;  %6412 = vst.msk [vmem:[#allocation5 + $0x150] sm:$0xff] %vm372_vm11, %v12897_v24  ;;  %v6635_v14 = vld [vmem:[#allocation3 + $0xf2] sm:$0xff] }
 0x868   : > { %v6187_v52 = vpop.f32.mrb[46].mxu1 }
 0x869   : > { %v6317_v12 = vsel %vm6253_vm10, %v12893_v55, %v6285_v50  ;;  %v12905_v56 = vadd.f32 %v12600_v20, %v6187_v52  ;;  %v6189_v53 = vpop.f32.mrb[47].mxu1  ;;  %v6445_v32 = vld [vmem:[#allocation3 + $0x109] sm:$0xff] }
 0x86a   : > { %v12907_v11 = vld [vmem:[#allocation3 + $0x108] sm:$0xff]  ;;  %6349 = vst.msk [vmem:[#allocation3 + $0x121] sm:$0xff] %vm372_vm11, %v6317_v12  ;;  %6531 = vrot.lane.b32.xlu0 %v6445_v32, %s9092_s13 }
 0x86b   : > { %14223 = vst [vmem:[#allocation29_spill] sm:$0xff] %v12905_v56  ;;  %6413 = vst.msk [vmem:[#allocation5 + $0x160] sm:$0xff] %vm372_vm11, %v12907_v11  ;;  %vm6254_vm12 = vcmp.ge.f32.partialorder %v12905_v56, 0.0  ;;  %v6286_v42 = vmul.f32 0.2, %v12905_v56 }
 0x86c   : > { %v6192_v59 = vpop.f32.mrb[48].mxu1 }
 0x86d   : > { %v6318_v50 = vsel %vm6254_vm12, %v12905_v56, %v6286_v42  ;;  %v12917_v52 = vadd.f32 %v12600_v20, %v6192_v59  ;;  %v6194_v53 = vpop.f32.mrb[49].mxu1  ;;  %v6446_v55 = vld [vmem:[#allocation3 + $0x111] sm:$0xff] }
 0x86e   : > { %6350 = vst.msk [vmem:[#allocation3 + $0x129] sm:$0xff] %vm372_vm11, %v6318_v50  ;;  %6533 = vrot.lane.b32.xlu1 %v6446_v55, %s9092_s13  ;;  %v12921_v32 = vld [vmem:[#allocation3 + $0x110] sm:$0xff] }
 0x86f   : > { %14224 = vst [vmem:[#allocation30_spill] sm:$0xff] %v12917_v52  ;;  %vm6255_vm13 = vcmp.ge.f32.partialorder %v12917_v52, 0.0  ;;  %v6287_v12 = vmul.f32 0.2, %v12917_v52  ;;  %6414 = vst.msk [vmem:[#allocation5 + $0x170] sm:$0xff] %vm372_vm11, %v12921_v32 }
 0x870   : > { %v6197_v44 = vpop.f32.mrb[50].mxu1 }
 0x871   : > { %v6319_v42 = vsel %vm6255_vm13, %v12917_v52, %v6287_v12  ;;  %v12929_v59 = vadd.f32 %v12600_v20, %v6197_v44  ;;  %v6199_v53 = vpop.f32.mrb[51].mxu1  ;;  %v6447_v56 = vld [vmem:[#allocation3 + $0x121] sm:$0xff] }
 0x872   : > { %v12931_v50 = vld [vmem:[#allocation3 + $0x120] sm:$0xff]  ;;  %6351 = vst.msk [vmem:[#allocation3 + $0x139] sm:$0xff] %vm372_vm11, %v6319_v42  ;;  %6535 = vrot.lane.b32.xlu0 %v6447_v56, %s9092_s13 }
 0x873   : > { %14225 = vst [vmem:[#allocation31_spill] sm:$0xff] %v12929_v59  ;;  %6415 = vst.msk [vmem:[#allocation5 + $0x180] sm:$0xff] %vm372_vm11, %v12931_v50  ;;  %vm6256_vm14 = vcmp.ge.f32.partialorder %v12929_v59, 0.0  ;;  %v6288_v55 = vmul.f32 0.2, %v12929_v59 }
 0x874   : > { %v6202_v3 = vpop.f32.mrb[52].mxu1 }
 0x875   : > { %v6320_v12 = vsel %vm6256_vm14, %v12929_v59, %v6288_v55  ;;  %v12941_v44 = vadd.f32 %v12600_v20, %v6202_v3  ;;  %v6204_v53 = vpop.f32.mrb[53].mxu1  ;;  %v6448_v52 = vld [vmem:[#allocation3 + $0x129] sm:$0xff] }
 0x876   : > { %6352 = vst.msk [vmem:[#allocation3 + $0x141] sm:$0xff] %vm372_vm11, %v6320_v12  ;;  %6537 = vrot.lane.b32.xlu1 %v6448_v52, %s9092_s13  ;;  %v12945_v56 = vld [vmem:[#allocation3 + $0x128] sm:$0xff] }
 0x877   : > { %14226 = vst [vmem:[#allocation32_spill] sm:$0xff] %v12941_v44  ;;  %vm6257_vm15 = vcmp.ge.f32.partialorder %v12941_v44, 0.0  ;;  %v6289_v42 = vmul.f32 0.2, %v12941_v44  ;;  %6416 = vst.msk [vmem:[#allocation5 + $0x190] sm:$0xff] %vm372_vm11, %v12945_v56 }
 0x878   : > { %v6207_v5 = vpop.f32.mrb[54].mxu1 }
 0x879   : > { %v6321_v55 = vsel %vm6257_vm15, %v12941_v44, %v6289_v42  ;;  %v12953_v3 = vadd.f32 %v12600_v20, %v6207_v5  ;;  %v6209_v53 = vpop.f32.mrb[55].mxu1  ;;  %v6449_v59 = vld [vmem:[#allocation3 + $0x139] sm:$0xff] }
 0x87a   : > { %v12955_v12 = vld [vmem:[#allocation3 + $0x138] sm:$0xff]  ;;  %6353 = vst.msk [vmem:[#allocation3 + $0x151] sm:$0xff] %vm372_vm11, %v6321_v55  ;;  %6539 = vrot.lane.b32.xlu0 %v6449_v59, %s9092_s13 }
 0x87b   : > { %14227 = vst [vmem:[#allocation33_spill] sm:$0xff] %v12953_v3  ;;  %6417 = vst.msk [vmem:[#allocation5 + $0x1a0] sm:$0xff] %vm372_vm11, %v12955_v12  ;;  %vm6258_vm8 = vcmp.ge.f32.partialorder %v12953_v3, 0.0  ;;  %v6290_v52 = vmul.f32 0.2, %v12953_v3 }
 0x87c   : > { %v6212_v19 = vpop.f32.mrb[56].mxu1 }
 0x87d   : > { %v6322_v42 = vsel %vm6258_vm8, %v12953_v3, %v6290_v52  ;;  %v12965_v5 = vadd.f32 %v12600_v20, %v6212_v19  ;;  %v6214_v53 = vpop.f32.mrb[57].mxu1  ;;  %v6450_v44 = vld [vmem:[#allocation3 + $0x141] sm:$0xff] }
 0x87e   : > { %6354 = vst.msk [vmem:[#allocation3 + $0x159] sm:$0xff] %vm372_vm11, %v6322_v42  ;;  %6541 = vrot.lane.b32.xlu1 %v6450_v44, %s9092_s13  ;;  %v12969_v59 = vld [vmem:[#allocation3 + $0x140] sm:$0xff] }
 0x87f   : > { %14228 = vst [vmem:[#allocation34_spill] sm:$0xff] %v12965_v5  ;;  %vm6259_vm9 = vcmp.ge.f32.partialorder %v12965_v5, 0.0  ;;  %v6291_v55 = vmul.f32 0.2, %v12965_v5  ;;  %6418 = vst.msk [vmem:[#allocation5 + $0x1b0] sm:$0xff] %vm372_vm11, %v12969_v59 }
 0x880   : > { %v6217_v10 = vpop.f32.mrb[58].mxu1 }
 0x881   : > { %v6323_v52 = vsel %vm6259_vm9, %v12965_v5, %v6291_v55  ;;  %v12977_v19 = vadd.f32 %v12600_v20, %v6217_v10  ;;  %v6219_v53 = vpop.f32.mrb[59].mxu1  ;;  %v6451_v3 = vld [vmem:[#allocation3 + $0x151] sm:$0xff] }
 0x882   : > { %v12979_v42 = vld [vmem:[#allocation3 + $0x150] sm:$0xff]  ;;  %6355 = vst.msk [vmem:[#allocation3 + $0x169] sm:$0xff] %vm372_vm11, %v6323_v52  ;;  %6543 = vrot.lane.b32.xlu0 %v6451_v3, %s9092_s13 }
 0x883   : > { %14229 = vst [vmem:[#allocation35_spill] sm:$0xff] %v12977_v19  ;;  %6419 = vst.msk [vmem:[#allocation5 + $0x1c0] sm:$0xff] %vm372_vm11, %v12979_v42  ;;  %vm6260_vm10 = vcmp.ge.f32.partialorder %v12977_v19, 0.0  ;;  %v6292_v44 = vmul.f32 0.2, %v12977_v19 }
 0x885   : > { %v6324_v55 = vsel %vm6260_vm10, %v12977_v19, %v6292_v44  ;;  %v6452_v5 = vld [vmem:[#allocation3 + $0x159] sm:$0xff] }
 0x886   : > { %6356 = vst.msk [vmem:[#allocation3 + $0x171] sm:$0xff] %vm372_vm11, %v6324_v55  ;;  %6545 = vrot.lane.b32.xlu1 %v6452_v5, %s9092_s13  ;;  %v12990_v10 = vld [vmem:[#allocation3 + $0x158] sm:$0xff]  ;;  %v6615_v5 = vld [vmem:[#allocation3 + $0x2] sm:$0xff] }
 0x887   : > { %v6222_v53 = vpop.f32.mrb[60].mxu1  ;;  %6420 = vst.msk [vmem:[#allocation5 + $0x1d0] sm:$0xff] %vm372_vm11, %v12990_v10 }
 0x888   : > { %v12995_v3 = vadd.f32 %v12600_v20, %v6222_v53  ;;  %v6224_v52 = vpop.f32.mrb[61].mxu1 }
 0x889   : > { %v6453_v8 = vld [vmem:[#allocation3 + $0x169] sm:$0xff] }
 0x88a   : > { %14230 = vst [vmem:[#allocation36_spill] sm:$0xff] %v12995_v3  ;;  %v12997_v36 = vld [vmem:[#allocation3 + $0x168] sm:$0xff]  ;;  %6547 = vrot.lane.b32.xlu0 %v6453_v8, %s9092_s13  ;;  %vm6261_vm12 = vcmp.ge.f32.partialorder %v12995_v3, 0.0  ;;  %v6293_v44 = vmul.f32 0.2, %v12995_v3 }
 0x88b   : > { %6421 = vst.msk [vmem:[#allocation5 + $0x1e0] sm:$0xff] %vm372_vm11, %v12997_v36 }
 0x88c   : > { %v6492_v55 = vpop.permute.xlu0 %6491  ;;  %v6325_v19 = vsel %vm6261_vm12, %v12995_v3, %v6293_v44  ;;  %v6227_v37 = vpop.f32.mrb[62].mxu1  ;;  %v13056_v3 = vld [vmem:[#allocation3 + $0x7a] sm:$0xff] }
 0x88d   : > { %6585 = vst.msk [vmem:[#allocation5 + $0x20] sm:$0xff] %vm2827_vm0, %v6492_v55  ;;  %v6454_v53 = vld [vmem:[#allocation3 + $0x171] sm:$0xff]  ;;  %v13008_v52 = vadd.f32 %v12600_v20, %v6227_v37  ;;  %v6229_v8 = vpop.f32.mrb[63].mxu1  ;;  %v13019_v20 = vld [vmem:[#allocation3 + $0x1a] sm:$0xff] }
 0x88e   : > { %6357 = vst.msk [vmem:[#allocation3 + $0x181] sm:$0xff] %vm372_vm11, %v6325_v19  ;;  %6549 = vrot.lane.b32.xlu1 %v6454_v53, %s9092_s13  ;;  %6679 = vrot.lane.b32.xlu0 %v6615_v5, %s9094_s15  ;;  %v13012_v2 = vld [vmem:[#allocation3 + $0x170] sm:$0xff]  ;;  %v13027_v5 = vld [vmem:[#allocation3 + $0x22] sm:$0xff] }
 0x88f   : > { %14231 = vst [vmem:[#allocation37_spill] sm:$0xff] %v13008_v52  ;;  %vm6262_vm13 = vcmp.ge.f32.partialorder %v13008_v52, 0.0  ;;  %v6294_v44 = vmul.f32 0.2, %v13008_v52  ;;  %6422 = vst.msk [vmem:[#allocation5 + $0x1f0] sm:$0xff] %vm372_vm11, %v13012_v2  ;;  %v13029_v53 = vld [vmem:[#allocation3 + $0x32] sm:$0xff] }
 0x890   : > { %v6494_v55 = vpop.permute.xlu1 %6493 }
 0x891   : > { %6586 = vst.msk [vmem:[#allocation5 + $0x30] sm:$0xff] %vm2827_vm0, %v6494_v55  ;;  %v6326_v37 = vsel %vm6262_vm13, %v13008_v52, %v6294_v44  ;;  %v13038_v44 = vld [vmem:[#allocation3 + $0x4a] sm:$0xff] }
 0x892   : > { %6681 = vrot.lane.b32.xlu1 %v6616_v46, %s9094_s15  ;;  %6683 = vrot.lane.b32.xlu0 %v13019_v20, %s9094_s15  ;;  %6358 = vst.msk [vmem:[#allocation3 + $0x189] sm:$0xff] %vm372_vm11, %v6326_v37  ;;  %v13036_v46 = vld [vmem:[#allocation3 + $0x3a] sm:$0xff]  ;;  %v13045_v37 = vld [vmem:[#allocation3 + $0x52] sm:$0xff]  ;;  %v13054_v52 = vld [vmem:[#allocation3 + $0x6a] sm:$0xff] }
 0x894   : > { %v6496_v19 = vpop.permute.xlu0 %6495 }
 0x895   : > { %6587 = vst.msk [vmem:[#allocation5 + $0x40] sm:$0xff] %vm2827_vm0, %v6496_v19  ;;  %v13047_v19 = vld [vmem:[#allocation3 + $0x62] sm:$0xff] }
 0x896   : > { %6685 = vrot.lane.b32.xlu1 %v13027_v5, %s9094_s15  ;;  %6687 = vrot.lane.b32.xlu0 %v13029_v53, %s9094_s15 }
 0x898   : > { %v6498_v8 = vpop.permute.xlu1 %6497 }
 0x899   : > { %6588 = vst.msk [vmem:[#allocation5 + $0x50] sm:$0xff] %vm2827_vm0, %v6498_v8 }
 0x89a   : > { %6689 = vrot.lane.b32.xlu1 %v13036_v46, %s9094_s15  ;;  %6691 = vrot.lane.b32.xlu0 %v13038_v44, %s9094_s15 }
 0x89c   : > { %v6500_v55 = vpop.permute.xlu0 %6499 }
 0x89d   : > { %6589 = vst.msk [vmem:[#allocation5 + $0x60] sm:$0xff] %vm2827_vm0, %v6500_v55 }
 0x89e   : > { %6693 = vrot.lane.b32.xlu1 %v13045_v37, %s9094_s15  ;;  %6695 = vrot.lane.b32.xlu0 %v13047_v19, %s9094_s15 }
 0x8a0   : > { %v6502_v8 = vpop.permute.xlu1 %6501 }
 0x8a1   : > { %6590 = vst.msk [vmem:[#allocation5 + $0x70] sm:$0xff] %vm2827_vm0, %v6502_v8 }
 0x8a2   : > { %6697 = vrot.lane.b32.xlu1 %v13054_v52, %s9094_s15  ;;  %6699 = vrot.lane.b32.xlu0 %v13056_v3, %s9094_s15 }
 0x8a4   : > { %v6504_v55 = vpop.permute.xlu0 %6503 }
 0x8a5   : > { %6591 = vst.msk [vmem:[#allocation5 + $0x80] sm:$0xff] %vm2827_vm0, %v6504_v55 }
 0x8a6   : > { %6701 = vrot.lane.b32.xlu1 %v13063_v1, %s9094_s15  ;;  %6703 = vrot.lane.b32.xlu0 %v13065_v60, %s9094_s15 }
 0x8a8   : > { %v6506_v8 = vpop.permute.xlu1 %6505 }
 0x8a9   : > { %6592 = vst.msk [vmem:[#allocation5 + $0x90] sm:$0xff] %vm2827_vm0, %v6506_v8 }
 0x8aa   : > { %6705 = vrot.lane.b32.xlu1 %v13072_v13, %s9094_s15  ;;  %6707 = vrot.lane.b32.xlu0 %v13074_v9, %s9094_s15 }
 0x8ac   : > { %v6508_v55 = vpop.permute.xlu0 %6507 }
 0x8ad   : > { %6593 = vst.msk [vmem:[#allocation5 + $0xa0] sm:$0xff] %vm2827_vm0, %v6508_v55 }
 0x8ae   : > { %6709 = vrot.lane.b32.xlu1 %v13081_v22, %s9094_s15  ;;  %6711 = vrot.lane.b32.xlu0 %v13083_v29, %s9094_s15  ;;  %v6637_v22 = vld [vmem:[#allocation3 + $0x10a] sm:$0xff] }
 0x8b0   : > { %v6510_v8 = vpop.permute.xlu1 %6509 }
 0x8b1   : > { %6594 = vst.msk [vmem:[#allocation5 + $0xb0] sm:$0xff] %vm2827_vm0, %v6510_v8  ;;  %v6636_v8 = vld [vmem:[#allocation3 + $0xfa] sm:$0xff] }
 0x8b2   : > { %6713 = vrot.lane.b32.xlu1 %v13090_v33, %s9094_s15  ;;  %6715 = vrot.lane.b32.xlu0 %v6633_v45, %s9094_s15  ;;  %v6638_v45 = vld [vmem:[#allocation3 + $0x112] sm:$0xff] }
 0x8b4   : > { %v6512_v55 = vpop.permute.xlu0 %6511 }
 0x8b5   : > { %6595 = vst.msk [vmem:[#allocation5 + $0xc0] sm:$0xff] %vm2827_vm0, %v6512_v55  ;;  %v6639_v55 = vld [vmem:[#allocation3 + $0x122] sm:$0xff] }
 0x8b6   : > { %6717 = vrot.lane.b32.xlu1 %v6634_v7, %s9094_s15  ;;  %6719 = vrot.lane.b32.xlu0 %v6635_v14, %s9094_s15  ;;  %v6640_v14 = vld [vmem:[#allocation3 + $0x12a] sm:$0xff] }
 0x8b8   : > { %v6514_v29 = vpop.permute.xlu1 %6513 }
 0x8b9   : > { %6596 = vst.msk [vmem:[#allocation5 + $0xd0] sm:$0xff] %vm2827_vm0, %v6514_v29  ;;  %v6641_v29 = vld [vmem:[#allocation3 + $0x13a] sm:$0xff] }
 0x8ba   : > { %6721 = vrot.lane.b32.xlu1 %v6636_v8, %s9094_s15  ;;  %6723 = vrot.lane.b32.xlu0 %v6637_v22, %s9094_s15  ;;  %v6642_v22 = vld [vmem:[#allocation3 + $0x142] sm:$0xff] }
 0x8bc   : > { %v6516_v33 = vpop.permute.xlu0 %6515 }
 0x8bd   : > { %6597 = vst.msk [vmem:[#allocation5 + $0xe0] sm:$0xff] %vm2827_vm0, %v6516_v33  ;;  %v6643_v33 = vld [vmem:[#allocation3 + $0x152] sm:$0xff] }
 0x8be   : > { %6725 = vrot.lane.b32.xlu1 %v6638_v45, %s9094_s15  ;;  %6727 = vrot.lane.b32.xlu0 %v6639_v55, %s9094_s15  ;;  %v6644_v55 = vld [vmem:[#allocation3 + $0x15a] sm:$0xff] }
 0x8c0   : > { %v6518_v7 = vpop.permute.xlu1 %6517 }
 0x8c1   : > { %6598 = vst.msk [vmem:[#allocation5 + $0xf0] sm:$0xff] %vm2827_vm0, %v6518_v7  ;;  %v6645_v7 = vld [vmem:[#allocation3 + $0x16a] sm:$0xff] }
 0x8c2   : > { %6729 = vrot.lane.b32.xlu1 %v6640_v14, %s9094_s15  ;;  %6731 = vrot.lane.b32.xlu0 %v6641_v29, %s9094_s15  ;;  %v6646_v29 = vld [vmem:[#allocation3 + $0x172] sm:$0xff] }
 0x8c4   : > { %v6520_v8 = vpop.permute.xlu0 %6519 }
 0x8c5   : > { %6599 = vst.msk [vmem:[#allocation5 + $0x100] sm:$0xff] %vm2827_vm0, %v6520_v8 }
 0x8c6   : > { %6733 = vrot.lane.b32.xlu1 %v6642_v22, %s9094_s15  ;;  %6735 = vrot.lane.b32.xlu0 %v6643_v33, %s9094_s15 }
 0x8c8   : > { %v6522_v45 = vpop.permute.xlu1 %6521 }
 0x8c9   : > { %6600 = vst.msk [vmem:[#allocation5 + $0x110] sm:$0xff] %vm2827_vm0, %v6522_v45 }
 0x8ca   : > { %6737 = vrot.lane.b32.xlu1 %v6644_v55, %s9094_s15  ;;  %6739 = vrot.lane.b32.xlu0 %v6645_v7, %s9094_s15 }
 0x8cc   : > { %v6524_v14 = vpop.permute.xlu0 %6523 }
 0x8cd   : > { %6601 = vst.msk [vmem:[#allocation5 + $0x120] sm:$0xff] %vm2827_vm0, %v6524_v14 }
 0x8ce   : > { %6741 = vrot.lane.b32.xlu1 %v6646_v29, %s9094_s15  ;;  %6871 = vrot.lane.b32.xlu0 %v12628_v41, %s9096_s17 }
 0x8d0   : > { %v6526_v8 = vpop.permute.xlu1 %6525 }
 0x8d1   : > { %6602 = vst.msk [vmem:[#allocation5 + $0x130] sm:$0xff] %vm2827_vm0, %v6526_v8 }
 0x8d2   : > { %6873 = vrot.lane.b32.xlu1 %v12640_v30, %s9096_s17  ;;  %6875 = vrot.lane.b32.xlu0 %v12652_v35, %s9096_s17 }
 0x8d4   : > { %v6528_v22 = vpop.permute.xlu0 %6527 }
 0x8d5   : > { %6603 = vst.msk [vmem:[#allocation5 + $0x140] sm:$0xff] %vm2827_vm0, %v6528_v22 }
 0x8d6   : > { %6877 = vrot.lane.b32.xlu1 %v12664_v23, %s9096_s17  ;;  %6879 = vrot.lane.b32.xlu0 %v12678_v58, %s9096_s17 }
 0x8d8   : > { %v6530_v33 = vpop.permute.xlu1 %6529 }
 0x8d9   : > { %6604 = vst.msk [vmem:[#allocation5 + $0x150] sm:$0xff] %vm2827_vm0, %v6530_v33 }
 0x8da   : > { %6881 = vrot.lane.b32.xlu1 %v12696_v43, %s9096_s17  ;;  %6883 = vrot.lane.b32.xlu0 %v12708_v16, %s9096_s17 }
 0x8dc   : > { %v6532_v41 = vpop.permute.xlu0 %6531 }
 0x8dd   : > { %6605 = vst.msk [vmem:[#allocation5 + $0x160] sm:$0xff] %vm2827_vm0, %v6532_v41 }
 0x8de   : > { %6885 = vrot.lane.b32.xlu1 %v12726_v21, %s9096_s17  ;;  %6887 = vrot.lane.b32.xlu0 %v12738_v28, %s9096_s17 }
 0x8e0   : > { %v6534_v30 = vpop.permute.xlu1 %6533 }
 0x8e1   : > { %6606 = vst.msk [vmem:[#allocation5 + $0x170] sm:$0xff] %vm2827_vm0, %v6534_v30 }
 0x8e2   : > { %6889 = vrot.lane.b32.xlu1 %v12756_v26, %s9096_s17  ;;  %6891 = vrot.lane.b32.xlu0 %v12768_v54, %s9096_s17 }
 0x8e4   : > { %v6536_v45 = vpop.permute.xlu0 %6535 }
 0x8e5   : > { %6607 = vst.msk [vmem:[#allocation5 + $0x180] sm:$0xff] %vm2827_vm0, %v6536_v45 }
 0x8e6   : > { %6893 = vrot.lane.b32.xlu1 %v12786_v25, %s9096_s17  ;;  %6895 = vrot.lane.b32.xlu0 %v12798_v63, %s9096_s17 }
 0x8e8   : > { %v6538_v55 = vpop.permute.xlu1 %6537 }
 0x8e9   : > { %6608 = vst.msk [vmem:[#allocation5 + $0x190] sm:$0xff] %vm2827_vm0, %v6538_v55  ;;  %v13200_v55 = vld [vmem:[#allocation3 + $0x31] sm:$0xff] }
 0x8ea   : > { %6897 = vrot.lane.b32.xlu1 %v12816_v15, %s9096_s17  ;;  %6899 = vrot.lane.b32.xlu0 %v12828_v57, %s9096_s17 }
 0x8ec   : > { %v6540_v7 = vpop.permute.xlu0 %6539 }
 0x8ed   : > { %6609 = vst.msk [vmem:[#allocation5 + $0x1a0] sm:$0xff] %vm2827_vm0, %v6540_v7 }
 0x8ee   : > { %6901 = vrot.lane.b32.xlu1 %v12846_v40, %s9096_s17  ;;  %6903 = vrot.lane.b32.xlu0 %v12858_v48, %s9096_s17 }
 0x8f0   : > { %v6542_v14 = vpop.permute.xlu1 %6541 }
 0x8f1   : > { %6610 = vst.msk [vmem:[#allocation5 + $0x1b0] sm:$0xff] %vm2827_vm0, %v6542_v14 }
 0x8f2   : > { %6905 = vrot.lane.b32.xlu1 %v12873_v34, %s9096_s17  ;;  %6907 = vrot.lane.b32.xlu0 %v12883_v51, %s9096_s17 }
 0x8f4   : > { %v6544_v29 = vpop.permute.xlu0 %6543 }
 0x8f5   : > { %6611 = vst.msk [vmem:[#allocation5 + $0x1c0] sm:$0xff] %vm2827_vm0, %v6544_v29  ;;  %v13207_v29 = vld [vmem:[#allocation3 + $0x39] sm:$0xff] }
 0x8f6   : > { %6909 = vrot.lane.b32.xlu1 %v12897_v24, %s9096_s17  ;;  %6911 = vrot.lane.b32.xlu0 %v12907_v11, %s9096_s17 }
 0x8f8   : > { %v6546_v8 = vpop.permute.xlu1 %6545 }
 0x8f9   : > { %6612 = vst.msk [vmem:[#allocation5 + $0x1d0] sm:$0xff] %vm2827_vm0, %v6546_v8 }
 0x8fa   : > { %6913 = vrot.lane.b32.xlu1 %v12921_v32, %s9096_s17  ;;  %6915 = vrot.lane.b32.xlu0 %v12931_v50, %s9096_s17 }
 0x8fc   : > { %v6548_v22 = vpop.permute.xlu0 %6547 }
 0x8fd   : > { %6613 = vst.msk [vmem:[#allocation5 + $0x1e0] sm:$0xff] %vm2827_vm0, %v6548_v22 }
 0x8fe   : > { %6917 = vrot.lane.b32.xlu1 %v12945_v56, %s9096_s17  ;;  %6919 = vrot.lane.b32.xlu0 %v12955_v12, %s9096_s17 }
 0x900   : > { %v6550_v33 = vpop.permute.xlu1 %6549  ;;  %v6680_v11 = vpop.permute.xlu0 %6679 }
 0x901   : > { %6614 = vst.msk [vmem:[#allocation5 + $0x1f0] sm:$0xff] %vm2827_vm0, %v6550_v33  ;;  %vm8007_vm0 = vcmask 588800  }
 0x902   : > { %6775 = vst.msk [vmem:[#allocation5] sm:$0xff] %vm3020_vm1, %v6680_v11  ;;  %6921 = vrot.lane.b32.xlu1 %v12969_v59, %s9096_s17  ;;  %6923 = vrot.lane.b32.xlu0 %v12979_v42, %s9096_s17  ;;  %v6837_v59 = vld [vmem:[#allocation3 + $0x180] sm:$0xff] }
 0x904   : > { %v6682_v32 = vpop.permute.xlu1 %6681  ;;  %v6684_v50 = vpop.permute.xlu0 %6683 }
 0x905   : > { %6776 = vst.msk [vmem:[#allocation5 + $0x10] sm:$0xff] %vm3020_vm1, %v6682_v32  ;;  %6777 = vst.msk [vmem:[#allocation5 + $0x20] sm:$0xff] %vm3020_vm1, %v6684_v50 }
 0x906   : > { %6925 = vrot.lane.b32.xlu1 %v12990_v10, %s9096_s17  ;;  %6927 = vrot.lane.b32.xlu0 %v12997_v36, %s9096_s17  ;;  %v6838_v10 = vld [vmem:[#allocation3 + $0x188] sm:$0xff]  ;;  %v6999_v36 = vld [vmem:[#allocation3 + $0x19] sm:$0xff] }
 0x908   : > { %v6686_v56 = vpop.permute.xlu1 %6685  ;;  %v6688_v12 = vpop.permute.xlu0 %6687 }
 0x909   : > { %6778 = vst.msk [vmem:[#allocation5 + $0x30] sm:$0xff] %vm3020_vm1, %v6686_v56  ;;  %6779 = vst.msk [vmem:[#allocation5 + $0x40] sm:$0xff] %vm3020_vm1, %v6688_v12 }
 0x90a   : > { %6929 = vrot.lane.b32.xlu1 %v13012_v2, %s9096_s17  ;;  %6931 = vrot.lane.b32.xlu0 %v6837_v59, %s9096_s17  ;;  %v7000_v2 = vld [vmem:[#allocation3 + $0x21] sm:$0xff] }
 0x90c   : > { %v6690_v42 = vpop.permute.xlu1 %6689  ;;  %v6692_v41 = vpop.permute.xlu0 %6691 }
 0x90d   : > { %6780 = vst.msk [vmem:[#allocation5 + $0x50] sm:$0xff] %vm3020_vm1, %v6690_v42  ;;  %6781 = vst.msk [vmem:[#allocation5 + $0x60] sm:$0xff] %vm3020_vm1, %v6692_v41 }
 0x90e   : > { %6933 = vrot.lane.b32.xlu1 %v6838_v10, %s9096_s17  ;;  %7063 = vrot.lane.b32.xlu0 %v6999_v36, %s9098_s9 }
 0x910   : > { %v6694_v30 = vpop.permute.xlu1 %6693  ;;  %v6696_v45 = vpop.permute.xlu0 %6695 }
 0x911   : > { %6782 = vst.msk [vmem:[#allocation5 + $0x70] sm:$0xff] %vm3020_vm1, %v6694_v30  ;;  %6783 = vst.msk [vmem:[#allocation5 + $0x80] sm:$0xff] %vm3020_vm1, %v6696_v45 }
 0x912   : > { %7065 = vrot.lane.b32.xlu1 %v7000_v2, %s9098_s9  ;;  %7067 = vrot.lane.b32.xlu0 %v13200_v55, %s9098_s9 }
 0x914   : > { %v6698_v7 = vpop.permute.xlu1 %6697  ;;  %v6700_v14 = vpop.permute.xlu0 %6699 }
 0x915   : > { %6784 = vst.msk [vmem:[#allocation5 + $0x90] sm:$0xff] %vm3020_vm1, %v6698_v7  ;;  %6785 = vst.msk [vmem:[#allocation5 + $0xa0] sm:$0xff] %vm3020_vm1, %v6700_v14 }
 0x916   : > { %7069 = vrot.lane.b32.xlu1 %v13207_v29, %s9098_s9  ;;  %7071 = vrot.lane.b32.xlu0 %v12676_v27, %s9098_s9 }
 0x918   : > { %v6702_v8 = vpop.permute.xlu1 %6701  ;;  %v6704_v22 = vpop.permute.xlu0 %6703 }
 0x919   : > { %6786 = vst.msk [vmem:[#allocation5 + $0xb0] sm:$0xff] %vm3020_vm1, %v6702_v8  ;;  %6787 = vst.msk [vmem:[#allocation5 + $0xc0] sm:$0xff] %vm3020_vm1, %v6704_v22  ;;  %v7577_v22 = vld [vmem:[#allocation3 + $0x49] sm:$0xff] }
 0x91a   : > { %7073 = vrot.lane.b32.xlu1 %v12691_v0, %s9098_s9  ;;  %7075 = vrot.lane.b32.xlu0 %v12706_v38, %s9098_s9 }
 0x91c   : > { %v6706_v33 = vpop.permute.xlu1 %6705  ;;  %v6708_v11 = vpop.permute.xlu0 %6707 }
 0x91d   : > { %6788 = vst.msk [vmem:[#allocation5 + $0xd0] sm:$0xff] %vm3020_vm1, %v6706_v33  ;;  %6789 = vst.msk [vmem:[#allocation5 + $0xe0] sm:$0xff] %vm3020_vm1, %v6708_v11 }
 0x91e   : > { %7077 = vrot.lane.b32.xlu1 %v12721_v61, %s9098_s9  ;;  %7079 = vrot.lane.b32.xlu0 %v12736_v49, %s9098_s9 }
 0x920   : > { %v6710_v27 = vpop.permute.xlu1 %6709  ;;  %v6712_v32 = vpop.permute.xlu0 %6711 }
 0x921   : > { %6790 = vst.msk [vmem:[#allocation5 + $0xf0] sm:$0xff] %vm3020_vm1, %v6710_v27  ;;  %6791 = vst.msk [vmem:[#allocation5 + $0x100] sm:$0xff] %vm3020_vm1, %v6712_v32 }
 0x922   : > { %7081 = vrot.lane.b32.xlu1 %v12751_v17, %s9098_s9  ;;  %7083 = vrot.lane.b32.xlu0 %v12766_v4, %s9098_s9  ;;  %v7991_v17 = vld [vmem:[%s13880_s4] sm:$0xff]  ;;  %v7992_v4 = vld [vmem:[%s13880_s4 + $0x8] sm:$0xff] }
 0x924   : > { %v6714_v0 = vpop.permute.xlu1 %6713  ;;  %v6716_v38 = vpop.permute.xlu0 %6715 }
 0x925   : > { %6792 = vst.msk [vmem:[#allocation5 + $0x110] sm:$0xff] %vm3020_vm1, %v6714_v0  ;;  %6793 = vst.msk [vmem:[#allocation5 + $0x120] sm:$0xff] %vm3020_vm1, %v6716_v38  ;;  %v7579_v38 = vld [vmem:[#allocation3 + $0x61] sm:$0xff] }
 0x926   : > { %7085 = vrot.lane.b32.xlu1 %v12781_v6, %s9098_s9  ;;  %7087 = vrot.lane.b32.xlu0 %v12796_v39, %s9098_s9  ;;  %v9037_v6 = vpack.c.bf16 %v7992_v4, %v7991_v17 }
 0x928   : > { %v6718_v61 = vpop.permute.xlu1 %6717  ;;  %v6720_v49 = vpop.permute.xlu0 %6719  ;;  %9038 = vmatprep.subr.bf16.mxu0 %v9037_v6 }
 0x929   : > { %6794 = vst.msk [vmem:[#allocation5 + $0x130] sm:$0xff] %vm3020_vm1, %v6718_v61  ;;  %6795 = vst.msk [vmem:[#allocation5 + $0x140] sm:$0xff] %vm3020_vm1, %v6720_v49  ;;  %9040 = vmatpush3.bf16.msra.mxu0 %v9037_v6 }
 0x92a   : > { %7089 = vrot.lane.b32.xlu1 %v12811_v47, %s9098_s9  ;;  %7091 = vrot.lane.b32.xlu0 %v12826_v62, %s9098_s9  ;;  %v7993_v47 = vld [vmem:[%s13880_s4 + $0x10] sm:$0xff]  ;;  %v7994_v62 = vld [vmem:[%s13880_s4 + $0x18] sm:$0xff] }
 0x92b   : > { %v9041_v56 = vpack.c.bf16 %v7994_v62, %v7993_v47 }
 0x92c   : > { %v6722_v39 = vpop.permute.xlu1 %6721  ;;  %v6724_v50 = vpop.permute.xlu0 %6723 }
 0x92d   : > { %6796 = vst.msk [vmem:[#allocation5 + $0x150] sm:$0xff] %vm3020_vm1, %v6722_v39  ;;  %6797 = vst.msk [vmem:[#allocation5 + $0x160] sm:$0xff] %vm3020_vm1, %v6724_v50  ;;  %9042 = vmatprep.subr.bf16.mxu0 %v9041_v56  ;;  %v7581_v39 = vld [vmem:[#allocation3 + $0x79] sm:$0xff] }
 0x92e   : > { %7093 = vrot.lane.b32.xlu1 %v12841_v18, %s9098_s9  ;;  %7095 = vrot.lane.b32.xlu0 %v12856_v31, %s9098_s9  ;;  %v7995_v18 = vld [vmem:[%s13880_s4 + $0x20] sm:$0xff]  ;;  %v7996_v31 = vld [vmem:[%s13880_s4 + $0x28] sm:$0xff] }
 0x92f   : > { %9044 = vmatpush3.bf16.msra.mxu0 %v9041_v56  ;;  %v9045_v42 = vpack.c.bf16 %v7996_v31, %v7995_v18 }
 0x930   : > { %v6726_v12 = vpop.permute.xlu1 %6725  ;;  %v6728_v59 = vpop.permute.xlu0 %6727 }
 0x931   : > { %6798 = vst.msk [vmem:[#allocation5 + $0x170] sm:$0xff] %vm3020_vm1, %v6726_v12  ;;  %6799 = vst.msk [vmem:[#allocation5 + $0x180] sm:$0xff] %vm3020_vm1, %v6728_v59  ;;  %9046 = vmatprep.subr.bf16.mxu0 %v9045_v42  ;;  %v7583_v59 = vld [vmem:[#allocation3 + $0x91] sm:$0xff] }
 0x932   : > { %7255 = vrot.lane.b32.xlu1 %v13019_v20, %s9099_s12  ;;  %7257 = vrot.lane.b32.xlu0 %v13027_v5, %s9099_s12  ;;  %v7997_v20 = vld [vmem:[%s13880_s4 + $0x30] sm:$0xff]  ;;  %v7998_v5 = vld [vmem:[%s13880_s4 + $0x38] sm:$0xff] }
 0x933   : > { %9048 = vmatpush3.bf16.msra.mxu0 %v9045_v42  ;;  %v9049_v36 = vpack.c.bf16 %v7998_v5, %v7997_v20  ;;  %v7585_v20 = vld [vmem:[#allocation3 + $0xa9] sm:$0xff] }
 0x934   : > { %v6730_v41 = vpop.permute.xlu1 %6729  ;;  %v6732_v10 = vpop.permute.xlu0 %6731 }
 0x935   : > { %6800 = vst.msk [vmem:[#allocation5 + $0x190] sm:$0xff] %vm3020_vm1, %v6730_v41  ;;  %6801 = vst.msk [vmem:[#allocation5 + $0x1a0] sm:$0xff] %vm3020_vm1, %v6732_v10  ;;  %9050 = vmatprep.subr.bf16.mxu0 %v9049_v36 }
 0x936   : > { %7447 = vrot.lane.b32.xlu1 %v12652_v35, %s9100_s14  ;;  %7449 = vrot.lane.b32.xlu0 %v12664_v23, %s9100_s14  ;;  %v7999_v35 = vld [vmem:[%s13880_s4 + $0x40] sm:$0xff] }
 0x937   : > { %9052 = vmatpush3.bf16.msra.mxu0 %v9049_v36 }
 0x938   : > { %v6734_v30 = vpop.permute.xlu1 %6733  ;;  %v6736_v45 = vpop.permute.xlu0 %6735  ;;  %8952 = vmatprep.subr.mxu0 %v7999_v35 }
 0x939   : > { %6802 = vst.msk [vmem:[#allocation5 + $0x1b0] sm:$0xff] %vm3020_vm1, %v6734_v30  ;;  %6803 = vst.msk [vmem:[#allocation5 + $0x1c0] sm:$0xff] %vm3020_vm1, %v6736_v45  ;;  %v14235_v30 = vld [vmem:[#allocation38_spill] sm:$0xff] }
 0x93a   : > { %7639 = vrot.lane.b32.xlu1 %v13200_v55, %s9101_s20  ;;  %7641 = vrot.lane.b32.xlu0 %v13207_v29, %s9101_s20 }
 0x93b   : > { %8953 = vmatpush3.msra.mxu0 %v7999_v35 }
 0x93c   : > { %v6738_v23 = vpop.permute.xlu1 %6737  ;;  %v6740_v2 = vpop.permute.xlu0 %6739 }
 0x93d   : > { %6804 = vst.msk [vmem:[#allocation5 + $0x1d0] sm:$0xff] %vm3020_vm1, %v6738_v23  ;;  %6805 = vst.msk [vmem:[#allocation5 + $0x1e0] sm:$0xff] %vm3020_vm1, %v6740_v2  ;;  %v7587_v2 = vld [vmem:[#allocation3 + $0xc1] sm:$0xff] }
 0x93e   : > { %7831 = vrot.lane.b32.xlu1 %v13029_v53, %s9102_s21  ;;  %7259 = vrot.lane.b32.xlu0 %v13029_v53, %s9099_s12 }
 0x940   : > { %v6742_v55 = vpop.permute.xlu1 %6741  ;;  %v6872_v7 = vpop.permute.xlu0 %6871 }
 0x941   : > { %6806 = vst.msk [vmem:[#allocation5 + $0x1f0] sm:$0xff] %vm3020_vm1, %v6742_v55  ;;  %v7588_v55 = vld [vmem:[#allocation3 + $0xc9] sm:$0xff] }
 0x942   : > { %6967 = vst.msk [vmem:[#allocation5] sm:$0xff] %vm3213_vm2, %v6872_v7  ;;  %7833 = vrot.lane.b32.xlu1 %v13036_v46, %s9102_s21  ;;  %7261 = vrot.lane.b32.xlu0 %v13036_v46, %s9099_s12  ;;  %v7578_v46 = vld [vmem:[#allocation3 + $0x51] sm:$0xff] }
 0x944   : > { %v6874_v14 = vpop.permute.xlu1 %6873  ;;  %v6876_v29 = vpop.permute.xlu0 %6875 }
 0x945   : > { %6968 = vst.msk [vmem:[#allocation5 + $0x10] sm:$0xff] %vm3213_vm2, %v6874_v14  ;;  %6969 = vst.msk [vmem:[#allocation5 + $0x20] sm:$0xff] %vm3213_vm2, %v6876_v29 }
 0x946   : > { %7451 = vrot.lane.b32.xlu1 %v12678_v58, %s9100_s14  ;;  %7453 = vrot.lane.b32.xlu0 %v12696_v43, %s9100_s14 }
 0x948   : > { %v6878_v53 = vpop.permute.xlu1 %6877  ;;  %v6880_v8 = vpop.permute.xlu0 %6879 }
 0x949   : > { %6970 = vst.msk [vmem:[#allocation5 + $0x30] sm:$0xff] %vm3213_vm2, %v6878_v53  ;;  %6971 = vst.msk [vmem:[#allocation5 + $0x40] sm:$0xff] %vm3213_vm2, %v6880_v8  ;;  %v14237_v53 = vld [vmem:[#allocation40_spill] sm:$0xff] }
 0x94a   : > { %7643 = vrot.lane.b32.xlu1 %v7577_v22, %s9101_s20  ;;  %7645 = vrot.lane.b32.xlu0 %v7578_v46, %s9101_s20 }
 0x94c   : > { %v6882_v33 = vpop.permute.xlu1 %6881  ;;  %v6884_v11 = vpop.permute.xlu0 %6883 }
 0x94d   : > { %6972 = vst.msk [vmem:[#allocation5 + $0x50] sm:$0xff] %vm3213_vm2, %v6882_v33  ;;  %6973 = vst.msk [vmem:[#allocation5 + $0x60] sm:$0xff] %vm3213_vm2, %v6884_v11  ;;  %v7589_v11 = vld [vmem:[#allocation3 + $0xd9] sm:$0xff] }
 0x94e   : > { %7835 = vrot.lane.b32.xlu1 %v13038_v44, %s9102_s21  ;;  %7263 = vrot.lane.b32.xlu0 %v13038_v44, %s9099_s12 }
 0x950   : > { %v6886_v58 = vpop.permute.xlu1 %6885  ;;  %v6888_v43 = vpop.permute.xlu0 %6887 }
 0x951   : > { %6974 = vst.msk [vmem:[#allocation5 + $0x70] sm:$0xff] %vm3213_vm2, %v6886_v58  ;;  %6975 = vst.msk [vmem:[#allocation5 + $0x80] sm:$0xff] %vm3213_vm2, %v6888_v43  ;;  %v7590_v58 = vld [vmem:[#allocation3 + $0xe1] sm:$0xff] }
 0x952   : > { %7837 = vrot.lane.b32.xlu1 %v13045_v37, %s9102_s21  ;;  %7265 = vrot.lane.b32.xlu0 %v13045_v37, %s9099_s12  ;;  %v7580_v37 = vld [vmem:[#allocation3 + $0x69] sm:$0xff] }
 0x954   : > { %v6890_v27 = vpop.permute.xlu1 %6889  ;;  %v6892_v32 = vpop.permute.xlu0 %6891 }
 0x955   : > { %6976 = vst.msk [vmem:[#allocation5 + $0x90] sm:$0xff] %vm3213_vm2, %v6890_v27  ;;  %6977 = vst.msk [vmem:[#allocation5 + $0xa0] sm:$0xff] %vm3213_vm2, %v6892_v32 }
 0x956   : > { %7455 = vrot.lane.b32.xlu1 %v12708_v16, %s9100_s14  ;;  %7457 = vrot.lane.b32.xlu0 %v12726_v21, %s9100_s14 }
 0x958   : > { %v6894_v44 = vpop.permute.xlu1 %6893  ;;  %v6896_v0 = vpop.permute.xlu0 %6895 }
 0x959   : > { %6978 = vst.msk [vmem:[#allocation5 + $0xb0] sm:$0xff] %vm3213_vm2, %v6894_v44  ;;  %6979 = vst.msk [vmem:[#allocation5 + $0xc0] sm:$0xff] %vm3213_vm2, %v6896_v0  ;;  %v7782_v44 = vld [vmem:[#allocation3 + $0xe2] sm:$0xff] }
 0x95a   : > { %7647 = vrot.lane.b32.xlu1 %v7579_v38, %s9101_s20  ;;  %7649 = vrot.lane.b32.xlu0 %v7580_v37, %s9101_s20 }
 0x95c   : > { %v6898_v61 = vpop.permute.xlu1 %6897  ;;  %v6900_v49 = vpop.permute.xlu0 %6899 }
 0x95d   : > { %6980 = vst.msk [vmem:[#allocation5 + $0xd0] sm:$0xff] %vm3213_vm2, %v6898_v61  ;;  %6981 = vst.msk [vmem:[#allocation5 + $0xe0] sm:$0xff] %vm3213_vm2, %v6900_v49 }
 0x95e   : > { %7839 = vrot.lane.b32.xlu1 %v13047_v19, %s9102_s21  ;;  %7267 = vrot.lane.b32.xlu0 %v13047_v19, %s9099_s12 }
 0x960   : > { %v6902_v16 = vpop.permute.xlu1 %6901  ;;  %v6904_v21 = vpop.permute.xlu0 %6903 }
 0x961   : > { %6982 = vst.msk [vmem:[#allocation5 + $0xf0] sm:$0xff] %vm3213_vm2, %v6902_v16  ;;  %6983 = vst.msk [vmem:[#allocation5 + $0x100] sm:$0xff] %vm3213_vm2, %v6904_v21  ;;  %v7591_v16 = vld [vmem:[#allocation3 + $0xf1] sm:$0xff] }
 0x962   : > { %7841 = vrot.lane.b32.xlu1 %v13054_v52, %s9102_s21  ;;  %7269 = vrot.lane.b32.xlu0 %v13054_v52, %s9099_s12  ;;  %v7582_v52 = vld [vmem:[#allocation3 + $0x81] sm:$0xff] }
 0x964   : > { %v6906_v17 = vpop.permute.xlu1 %6905  ;;  %v6908_v4 = vpop.permute.xlu0 %6907 }
 0x965   : > { %6984 = vst.msk [vmem:[#allocation5 + $0x110] sm:$0xff] %vm3213_vm2, %v6906_v17  ;;  %6985 = vst.msk [vmem:[#allocation5 + $0x120] sm:$0xff] %vm3213_vm2, %v6908_v4 }
 0x966   : > { %7459 = vrot.lane.b32.xlu1 %v12738_v28, %s9100_s14  ;;  %7461 = vrot.lane.b32.xlu0 %v12756_v26, %s9100_s14 }
 0x968   : > { %v6910_v19 = vpop.permute.xlu1 %6909  ;;  %v6912_v6 = vpop.permute.xlu0 %6911 }
 0x969   : > { %6986 = vst.msk [vmem:[#allocation5 + $0x130] sm:$0xff] %vm3213_vm2, %v6910_v19  ;;  %6987 = vst.msk [vmem:[#allocation5 + $0x140] sm:$0xff] %vm3213_vm2, %v6912_v6 }
 0x96a   : > { %7651 = vrot.lane.b32.xlu1 %v7581_v39, %s9101_s20  ;;  %7653 = vrot.lane.b32.xlu0 %v7582_v52, %s9101_s20 }
 0x96c   : > { %v6914_v50 = vpop.permute.xlu1 %6913  ;;  %v6916_v47 = vpop.permute.xlu0 %6915 }
 0x96d   : > { %6988 = vst.msk [vmem:[#allocation5 + $0x150] sm:$0xff] %vm3213_vm2, %v6914_v50  ;;  %6989 = vst.msk [vmem:[#allocation5 + $0x160] sm:$0xff] %vm3213_vm2, %v6916_v47  ;;  %v7784_v50 = vld [vmem:[#allocation3 + $0xfa] sm:$0xff] }
 0x96e   : > { %7843 = vrot.lane.b32.xlu1 %v13056_v3, %s9102_s21  ;;  %7271 = vrot.lane.b32.xlu0 %v13056_v3, %s9099_s12 }
 0x970   : > { %v6918_v28 = vpop.permute.xlu1 %6917  ;;  %v6920_v26 = vpop.permute.xlu0 %6919 }
 0x971   : > { %6990 = vst.msk [vmem:[#allocation5 + $0x170] sm:$0xff] %vm3213_vm2, %v6918_v28  ;;  %6991 = vst.msk [vmem:[#allocation5 + $0x180] sm:$0xff] %vm3213_vm2, %v6920_v26 }
 0x972   : > { %7845 = vrot.lane.b32.xlu1 %v13063_v1, %s9102_s21  ;;  %7273 = vrot.lane.b32.xlu0 %v13063_v1, %s9099_s12  ;;  %v7584_v1 = vld [vmem:[#allocation3 + $0x99] sm:$0xff] }
 0x974   : > { %v6922_v62 = vpop.permute.xlu1 %6921  ;;  %v6924_v56 = vpop.permute.xlu0 %6923 }
 0x975   : > { %6992 = vst.msk [vmem:[#allocation5 + $0x190] sm:$0xff] %vm3213_vm2, %v6922_v62  ;;  %6993 = vst.msk [vmem:[#allocation5 + $0x1a0] sm:$0xff] %vm3213_vm2, %v6924_v56  ;;  %v7401_v62 = vld [vmem:[#allocation3 + $0x108] sm:$0xff] }
 0x976   : > { %7463 = vrot.lane.b32.xlu1 %v12768_v54, %s9100_s14  ;;  %7465 = vrot.lane.b32.xlu0 %v12786_v25, %s9100_s14 }
 0x978   : > { %v6926_v3 = vpop.permute.xlu1 %6925  ;;  %v6928_v12 = vpop.permute.xlu0 %6927 }
 0x979   : > { %6994 = vst.msk [vmem:[#allocation5 + $0x1b0] sm:$0xff] %vm3213_vm2, %v6926_v3  ;;  %6995 = vst.msk [vmem:[#allocation5 + $0x1c0] sm:$0xff] %vm3213_vm2, %v6928_v12 }
 0x97a   : > { %7655 = vrot.lane.b32.xlu1 %v7583_v59, %s9101_s20  ;;  %7657 = vrot.lane.b32.xlu0 %v7584_v1, %s9101_s20  ;;  %v7402_v59 = vld [vmem:[#allocation3 + $0x110] sm:$0xff] }
 0x97b   : > { %v7593_v1 = vld [vmem:[#allocation3 + $0x109] sm:$0xff] }
 0x97c   : > { %v6930_v18 = vpop.permute.xlu1 %6929  ;;  %v6932_v31 = vpop.permute.xlu0 %6931 }
 0x97d   : > { %6996 = vst.msk [vmem:[#allocation5 + $0x1d0] sm:$0xff] %vm3213_vm2, %v6930_v18  ;;  %6997 = vst.msk [vmem:[#allocation5 + $0x1e0] sm:$0xff] %vm3213_vm2, %v6932_v31 }
 0x97e   : > { %7847 = vrot.lane.b32.xlu1 %v13065_v60, %s9102_s21  ;;  %7275 = vrot.lane.b32.xlu0 %v13065_v60, %s9099_s12 }
 0x980   : > { %v6934_v54 = vpop.permute.xlu1 %6933  ;;  %v7064_v25 = vpop.permute.xlu0 %7063 }
 0x981   : > { %6998 = vst.msk [vmem:[#allocation5 + $0x1f0] sm:$0xff] %vm3213_vm2, %v6934_v54  ;;  %v7594_v54 = vld [vmem:[#allocation3 + $0x111] sm:$0xff] }
 0x982   : > { %7159 = vst.msk [vmem:[#allocation5] sm:$0xff] %vm3406_vm3, %v7064_v25  ;;  %7849 = vrot.lane.b32.xlu1 %v13072_v13, %s9102_s21  ;;  %7277 = vrot.lane.b32.xlu0 %v13072_v13, %s9099_s12  ;;  %v7586_v13 = vld [vmem:[#allocation3 + $0xb1] sm:$0xff] }
 0x984   : > { %v7066_v42 = vpop.permute.xlu1 %7065  ;;  %v7068_v41 = vpop.permute.xlu0 %7067 }
 0x985   : > { %7160 = vst.msk [vmem:[#allocation5 + $0x10] sm:$0xff] %vm3406_vm3, %v7066_v42  ;;  %7161 = vst.msk [vmem:[#allocation5 + $0x20] sm:$0xff] %vm3406_vm3, %v7068_v41  ;;  %v7785_v41 = vld [vmem:[#allocation3 + $0x10a] sm:$0xff] }
 0x986   : > { %7467 = vrot.lane.b32.xlu1 %v12798_v63, %s9100_s14  ;;  %7469 = vrot.lane.b32.xlu0 %v12816_v15, %s9100_s14 }
 0x988   : > { %v7070_v60 = vpop.permute.xlu1 %7069  ;;  %v7072_v10 = vpop.permute.xlu0 %7071 }
 0x989   : > { %7162 = vst.msk [vmem:[#allocation5 + $0x30] sm:$0xff] %vm3406_vm3, %v7070_v60  ;;  %7163 = vst.msk [vmem:[#allocation5 + $0x40] sm:$0xff] %vm3406_vm3, %v7072_v10 }
 0x98a   : > { %7659 = vrot.lane.b32.xlu1 %v7585_v20, %s9101_s20  ;;  %7661 = vrot.lane.b32.xlu0 %v7586_v13, %s9101_s20  ;;  %v7786_v13 = vld [vmem:[#allocation3 + $0x112] sm:$0xff] }
 0x98c   : > { %v7074_v5 = vpop.permute.xlu1 %7073  ;;  %v7076_v36 = vpop.permute.xlu0 %7075 }
 0x98d   : > { %7164 = vst.msk [vmem:[#allocation5 + $0x50] sm:$0xff] %vm3406_vm3, %v7074_v5  ;;  %7165 = vst.msk [vmem:[#allocation5 + $0x60] sm:$0xff] %vm3406_vm3, %v7076_v36 }
 0x98e   : > { %7851 = vrot.lane.b32.xlu1 %v13074_v9, %s9102_s21  ;;  %7279 = vrot.lane.b32.xlu0 %v13074_v9, %s9099_s12 }
 0x990   : > { %v7078_v63 = vpop.permute.xlu1 %7077  ;;  %v7080_v15 = vpop.permute.xlu0 %7079 }
 0x991   : > { %7166 = vst.msk [vmem:[#allocation5 + $0x70] sm:$0xff] %vm3406_vm3, %v7078_v63  ;;  %7167 = vst.msk [vmem:[#allocation5 + $0x80] sm:$0xff] %vm3406_vm3, %v7080_v15  ;;  %v7403_v15 = vld [vmem:[#allocation3 + $0x120] sm:$0xff] }
 0x992   : > { %7853 = vrot.lane.b32.xlu1 %v14235_v30, %s9102_s21  ;;  %7281 = vrot.lane.b32.xlu0 %v14235_v30, %s9099_s12 }
 0x994   : > { %v7082_v45 = vpop.permute.xlu1 %7081  ;;  %v7084_v35 = vpop.permute.xlu0 %7083 }
 0x995   : > { %7168 = vst.msk [vmem:[#allocation5 + $0x90] sm:$0xff] %vm3406_vm3, %v7082_v45  ;;  %7169 = vst.msk [vmem:[#allocation5 + $0xa0] sm:$0xff] %vm3406_vm3, %v7084_v35  ;;  %v7404_v35 = vld [vmem:[#allocation3 + $0x128] sm:$0xff] }
 0x996   : > { %7471 = vrot.lane.b32.xlu1 %v12828_v57, %s9100_s14  ;;  %7473 = vrot.lane.b32.xlu0 %v12846_v40, %s9100_s14  ;;  %v14236_v57 = vld [vmem:[#allocation39_spill] sm:$0xff] }
 0x998   : > { %v7086_v9 = vpop.permute.xlu1 %7085  ;;  %v7088_v23 = vpop.permute.xlu0 %7087 }
 0x999   : > { %7170 = vst.msk [vmem:[#allocation5 + $0xb0] sm:$0xff] %vm3406_vm3, %v7086_v9  ;;  %7171 = vst.msk [vmem:[#allocation5 + $0xc0] sm:$0xff] %vm3406_vm3, %v7088_v23  ;;  %v7595_v9 = vld [vmem:[#allocation3 + $0x121] sm:$0xff] }
 0x99a   : > { %7663 = vrot.lane.b32.xlu1 %v7587_v2, %s9101_s20  ;;  %7665 = vrot.lane.b32.xlu0 %v7588_v55, %s9101_s20  ;;  %v7596_v55 = vld [vmem:[#allocation3 + $0x129] sm:$0xff] }
 0x99c   : > { %v7090_v7 = vpop.permute.xlu1 %7089  ;;  %v7092_v14 = vpop.permute.xlu0 %7091 }
 0x99d   : > { %7172 = vst.msk [vmem:[#allocation5 + $0xd0] sm:$0xff] %vm3406_vm3, %v7090_v7  ;;  %7173 = vst.msk [vmem:[#allocation5 + $0xe0] sm:$0xff] %vm3406_vm3, %v7092_v14 }
 0x99e   : > { %7855 = vrot.lane.b32.xlu1 %v14236_v57, %s9102_s21  ;;  %7283 = vrot.lane.b32.xlu0 %v14236_v57, %s9099_s12 }
 0x9a0   : > { %v7094_v40 = vpop.permute.xlu1 %7093  ;;  %v7096_v29 = vpop.permute.xlu0 %7095 }
 0x9a1   : > { %7174 = vst.msk [vmem:[#allocation5 + $0xf0] sm:$0xff] %vm3406_vm3, %v7094_v40  ;;  %7175 = vst.msk [vmem:[#allocation5 + $0x100] sm:$0xff] %vm3406_vm3, %v7096_v29  ;;  %v7787_v40 = vld [vmem:[#allocation3 + $0x122] sm:$0xff] }
 0x9a2   : > { %7857 = vrot.lane.b32.xlu1 %v14237_v53, %s9102_s21  ;;  %7285 = vrot.lane.b32.xlu0 %v14237_v53, %s9099_s12 }
 0x9a4   : > { %v7256_v8 = vpop.permute.xlu1 %7255  ;;  %v7258_v22 = vpop.permute.xlu0 %7257 }
 0x9a5   : > { %7351 = vst.msk [vmem:[#allocation5] sm:$0xff] %vm3599_vm4, %v7256_v8  ;;  %7352 = vst.msk [vmem:[#allocation5 + $0x10] sm:$0xff] %vm3599_vm4, %v7258_v22  ;;  %v7788_v22 = vld [vmem:[#allocation3 + $0x12a] sm:$0xff] }
 0x9a6   : > { %7475 = vrot.lane.b32.xlu1 %v12858_v48, %s9100_s14  ;;  %7477 = vrot.lane.b32.xlu0 %v12873_v34, %s9100_s14  ;;  %v7781_v48 = vld [vmem:[#allocation3 + $0xda] sm:$0xff] }
 0x9a8   : > { %v7448_v46 = vpop.permute.xlu1 %7447  ;;  %v7450_v33 = vpop.permute.xlu0 %7449 }
 0x9a9   : > { %7543 = vst.msk [vmem:[#allocation5] sm:$0xff] %vm3793_vm5, %v7448_v46  ;;  %7544 = vst.msk [vmem:[#allocation5 + $0x10] sm:$0xff] %vm3793_vm5, %v7450_v33 }
 0x9aa   : > { %7667 = vrot.lane.b32.xlu1 %v7589_v11, %s9101_s20  ;;  %7669 = vrot.lane.b32.xlu0 %v7590_v58, %s9101_s20  ;;  %v7405_v11 = vld [vmem:[#allocation3 + $0x138] sm:$0xff] }
 0x9ac   : > { %v7640_v43 = vpop.permute.xlu1 %7639  ;;  %v7642_v27 = vpop.permute.xlu0 %7641 }
 0x9ad   : > { %7735 = vst.msk [vmem:[#allocation5] sm:$0xff] %vm3986_vm6, %v7640_v43  ;;  %7736 = vst.msk [vmem:[#allocation5 + $0x10] sm:$0xff] %vm3986_vm6, %v7642_v27  ;;  %v7406_v27 = vld [vmem:[#allocation3 + $0x140] sm:$0xff] }
 0x9ae   : > { %7859 = vrot.lane.b32.xlu1 %v7781_v48, %s9102_s21  ;;  %7097 = vrot.lane.b32.xlu0 %v7590_v58, %s9098_s9 }
 0x9b0   : > { %v7832_v34 = vpop.permute.xlu1 %7831  ;;  %v7260_v32 = vpop.permute.xlu0 %7259 }
 0x9b1   : > { %7927 = vst.msk [vmem:[#allocation5] sm:$0xff] %vm4179_vm7, %v7832_v34 }
 0x9b2   : > { %7353 = vst.msk [vmem:[#allocation5 + $0x20] sm:$0xff] %vm3599_vm4, %v7260_v32  ;;  %7287 = vrot.lane.b32.xlu1 %v7781_v48, %s9099_s12  ;;  %7861 = vrot.lane.b32.xlu0 %v7782_v44, %s9102_s21  ;;  %v7597_v48 = vld [vmem:[#allocation3 + $0x139] sm:$0xff] }
 0x9b4   : > { %v7834_v0 = vpop.permute.xlu1 %7833  ;;  %v7262_v38 = vpop.permute.xlu0 %7261 }
 0x9b5   : > { %7928 = vst.msk [vmem:[#allocation5 + $0x10] sm:$0xff] %vm4179_vm7, %v7834_v0  ;;  %v7598_v0 = vld [vmem:[#allocation3 + $0x141] sm:$0xff] }
 0x9b6   : > { %7354 = vst.msk [vmem:[#allocation5 + $0x30] sm:$0xff] %vm3599_vm4, %v7262_v38  ;;  %7289 = vrot.lane.b32.xlu1 %v7782_v44, %s9099_s12  ;;  %7479 = vrot.lane.b32.xlu0 %v12883_v51, %s9100_s14  ;;  %v7592_v51 = vld [vmem:[#allocation3 + $0xf9] sm:$0xff] }
 0x9b8   : > { %v7452_v37 = vpop.permute.xlu1 %7451  ;;  %v7454_v61 = vpop.permute.xlu0 %7453  ;;  %v7959_v49 = vld [vmem:[#allocation5] sm:$0xff] }
 0x9b9   : > { %7545 = vst.msk [vmem:[#allocation5 + $0x20] sm:$0xff] %vm3793_vm5, %v7452_v37  ;;  %7546 = vst.msk [vmem:[#allocation5 + $0x30] sm:$0xff] %vm3793_vm5, %v7454_v61  ;;  %8954 = vmatprep.mubr.msk.f32.mxu0 %vm8007_vm0, %v7959_v49  ;;  %v7789_v49 = vld [vmem:[#allocation3 + $0x13a] sm:$0xff] }
 0x9ba   : > { %7481 = vrot.lane.b32.xlu1 %v12897_v24, %s9100_s14  ;;  %7671 = vrot.lane.b32.xlu0 %v7591_v16, %s9101_s20  ;;  %v7783_v24 = vld [vmem:[#allocation3 + $0xf2] sm:$0xff] }
 0x9bc   : > { %v7644_v21 = vpop.permute.xlu1 %7643  ;;  %v7646_v17 = vpop.permute.xlu0 %7645  ;;  %v7960_v4 = vld [vmem:[#allocation5 + $0x10] sm:$0xff] }
 0x9bd   : > { %7737 = vst.msk [vmem:[#allocation5 + $0x20] sm:$0xff] %vm3986_vm6, %v7644_v21  ;;  %7738 = vst.msk [vmem:[#allocation5 + $0x30] sm:$0xff] %vm3986_vm6, %v7646_v17  ;;  %8955 = vmatmul.mubr.msk.f32.vlgmr.msra.gmra.mrb[32].mxu0 %vm8007_vm0, %v7960_v4  ;;  %v7790_v17 = vld [vmem:[#allocation3 + $0x142] sm:$0xff] }
 0x9be   : > { %7099 = vrot.lane.b32.xlu1 %v7591_v16, %s9098_s9  ;;  %7673 = vrot.lane.b32.xlu0 %v7592_v51, %s9101_s20 }
 0x9c0   : > { %v7836_v19 = vpop.permute.xlu1 %7835  ;;  %v7264_v6 = vpop.permute.xlu0 %7263 }
 0x9c1   : > { %7929 = vst.msk [vmem:[#allocation5 + $0x20] sm:$0xff] %vm4179_vm7, %v7836_v19  ;;  %v7407_v19 = vld [vmem:[#allocation3 + $0x150] sm:$0xff] }
 0x9c2   : > { %7355 = vst.msk [vmem:[#allocation5 + $0x40] sm:$0xff] %vm3599_vm4, %v7264_v6  ;;  %7863 = vrot.lane.b32.xlu1 %v7783_v24, %s9102_s21  ;;  %7101 = vrot.lane.b32.xlu0 %v7592_v51, %s9098_s9 }
 0x9c4   : > { %v7838_v39 = vpop.permute.xlu1 %7837  ;;  %v7266_v52 = vpop.permute.xlu0 %7265 }
 0x9c5   : > { %7930 = vst.msk [vmem:[#allocation5 + $0x30] sm:$0xff] %vm4179_vm7, %v7838_v39 }
 0x9c6   : > { %7356 = vst.msk [vmem:[#allocation5 + $0x50] sm:$0xff] %vm3599_vm4, %v7266_v52  ;;  %7291 = vrot.lane.b32.xlu1 %v7783_v24, %s9099_s12  ;;  %7865 = vrot.lane.b32.xlu0 %v7784_v50, %s9102_s21  ;;  %v7408_v52 = vld [vmem:[#allocation3 + $0x158] sm:$0xff] }
 0x9c8   : > { %v7456_v47 = vpop.permute.xlu1 %7455  ;;  %v7458_v28 = vpop.permute.xlu0 %7457  ;;  %v7961_v26 = vld [vmem:[#allocation5 + $0x20] sm:$0xff] }
 0x9c9   : > { %7547 = vst.msk [vmem:[#allocation5 + $0x40] sm:$0xff] %vm3793_vm5, %v7456_v47  ;;  %7548 = vst.msk [vmem:[#allocation5 + $0x50] sm:$0xff] %vm3793_vm5, %v7458_v28  ;;  %8957 = vmatprep.mubr.msk.f32.mxu0 %vm8007_vm0, %v7961_v26 }
 0x9ca   : > { %7293 = vrot.lane.b32.xlu1 %v7784_v50, %s9099_s12  ;;  %7483 = vrot.lane.b32.xlu0 %v7401_v62, %s9100_s14  ;;  %v7599_v50 = vld [vmem:[#allocation3 + $0x151] sm:$0xff]  ;;  %v7600_v62 = vld [vmem:[#allocation3 + $0x159] sm:$0xff] }
 0x9cc   : > { %v7648_v56 = vpop.permute.xlu1 %7647  ;;  %v7650_v3 = vpop.permute.xlu0 %7649  ;;  %v7962_v12 = vld [vmem:[#allocation5 + $0x30] sm:$0xff] }
 0x9cd   : > { %7739 = vst.msk [vmem:[#allocation5 + $0x40] sm:$0xff] %vm3986_vm6, %v7648_v56  ;;  %7740 = vst.msk [vmem:[#allocation5 + $0x50] sm:$0xff] %vm3986_vm6, %v7650_v3  ;;  %8958 = vmatmul.mubr.msk.f32.gmra.mrb[34].mxu0 %vm8007_vm0, %v7962_v12  ;;  %v7791_v12 = vld [vmem:[#allocation3 + $0x152] sm:$0xff] }
 0x9ce   : > { %7485 = vrot.lane.b32.xlu1 %v7402_v59, %s9100_s14  ;;  %7675 = vrot.lane.b32.xlu0 %v7593_v1, %s9101_s20 }
 0x9d0   : > { %v7840_v18 = vpop.permute.xlu1 %7839  ;;  %v7268_v31 = vpop.permute.xlu0 %7267 }
 0x9d1   : > { %7931 = vst.msk [vmem:[#allocation5 + $0x40] sm:$0xff] %vm4179_vm7, %v7840_v18  ;;  %v7792_v18 = vld [vmem:[#allocation3 + $0x15a] sm:$0xff] }
 0x9d2   : > { %7357 = vst.msk [vmem:[#allocation5 + $0x60] sm:$0xff] %vm3599_vm4, %v7268_v31  ;;  %7103 = vrot.lane.b32.xlu1 %v7593_v1, %s9098_s9  ;;  %7677 = vrot.lane.b32.xlu0 %v7594_v54, %s9101_s20 }
 0x9d4   : > { %v7842_v25 = vpop.permute.xlu1 %7841  ;;  %v7270_v42 = vpop.permute.xlu0 %7269 }
 0x9d5   : > { %7932 = vst.msk [vmem:[#allocation5 + $0x50] sm:$0xff] %vm4179_vm7, %v7842_v25 }
 0x9d6   : > { %7358 = vst.msk [vmem:[#allocation5 + $0x70] sm:$0xff] %vm3599_vm4, %v7270_v42  ;;  %7867 = vrot.lane.b32.xlu1 %v7785_v41, %s9102_s21  ;;  %7105 = vrot.lane.b32.xlu0 %v7594_v54, %s9098_s9  ;;  %v7409_v42 = vld [vmem:[#allocation3 + $0x168] sm:$0xff] }
 0x9d8   : > { %v7460_v60 = vpop.permute.xlu1 %7459  ;;  %v7462_v10 = vpop.permute.xlu0 %7461  ;;  %v7963_v20 = vld [vmem:[#allocation5 + $0x40] sm:$0xff] }
 0x9d9   : > { %7549 = vst.msk [vmem:[#allocation5 + $0x60] sm:$0xff] %vm3793_vm5, %v7460_v60  ;;  %7550 = vst.msk [vmem:[#allocation5 + $0x70] sm:$0xff] %vm3793_vm5, %v7462_v10  ;;  %8960 = vmatprep.mubr.msk.f32.mxu0 %vm8007_vm0, %v7963_v20  ;;  %v7410_v20 = vld [vmem:[#allocation3 + $0x170] sm:$0xff] }
 0x9da   : > { %7295 = vrot.lane.b32.xlu1 %v7785_v41, %s9099_s12  ;;  %7869 = vrot.lane.b32.xlu0 %v7786_v13, %s9102_s21 }
 0x9dc   : > { %v7652_v5 = vpop.permute.xlu1 %7651  ;;  %v7654_v36 = vpop.permute.xlu0 %7653  ;;  %v7964_v63 = vld [vmem:[#allocation5 + $0x50] sm:$0xff] }
 0x9dd   : > { %7741 = vst.msk [vmem:[#allocation5 + $0x60] sm:$0xff] %vm3986_vm6, %v7652_v5  ;;  %7742 = vst.msk [vmem:[#allocation5 + $0x70] sm:$0xff] %vm3986_vm6, %v7654_v36  ;;  %8961 = vmatmul.mubr.msk.f32.gmra.mrb[36].mxu0 %vm8007_vm0, %v7964_v63  ;;  %v7602_v63 = vld [vmem:[#allocation3 + $0x171] sm:$0xff] }
 0x9de   : > { %7297 = vrot.lane.b32.xlu1 %v7786_v13, %s9099_s12  ;;  %7487 = vrot.lane.b32.xlu0 %v7403_v15, %s9100_s14  ;;  %v7601_v13 = vld [vmem:[#allocation3 + $0x169] sm:$0xff] }
 0x9e0   : > { %v7844_v30 = vpop.permute.xlu1 %7843  ;;  %v7272_v45 = vpop.permute.xlu0 %7271 }
 0x9e1   : > { %7933 = vst.msk [vmem:[#allocation5 + $0x60] sm:$0xff] %vm4179_vm7, %v7844_v30 }
 0x9e2   : > { %7359 = vst.msk [vmem:[#allocation5 + $0x80] sm:$0xff] %vm3599_vm4, %v7272_v45  ;;  %7489 = vrot.lane.b32.xlu1 %v7404_v35, %s9100_s14  ;;  %7679 = vrot.lane.b32.xlu0 %v7595_v9, %s9101_s20  ;;  %v7793_v45 = vld [vmem:[#allocation3 + $0x16a] sm:$0xff] }
 0x9e4   : > { %v7846_v23 = vpop.permute.xlu1 %7845  ;;  %v7274_v2 = vpop.permute.xlu0 %7273 }
 0x9e5   : > { %7934 = vst.msk [vmem:[#allocation5 + $0x70] sm:$0xff] %vm4179_vm7, %v7846_v23 }
 0x9e6   : > { %7360 = vst.msk [vmem:[#allocation5 + $0x90] sm:$0xff] %vm3599_vm4, %v7274_v2  ;;  %7107 = vrot.lane.b32.xlu1 %v7595_v9, %s9098_s9  ;;  %7681 = vrot.lane.b32.xlu0 %v7596_v55, %s9101_s20  ;;  %v7794_v2 = vld [vmem:[#allocation3 + $0x172] sm:$0xff] }
 0x9e8   : > { %v7464_v7 = vpop.permute.xlu1 %7463  ;;  %v7466_v14 = vpop.permute.xlu0 %7465  ;;  %v7965_v57 = vld [vmem:[#allocation5 + $0x60] sm:$0xff] }
 0x9e9   : > { %7551 = vst.msk [vmem:[#allocation5 + $0x80] sm:$0xff] %vm3793_vm5, %v7464_v7  ;;  %7552 = vst.msk [vmem:[#allocation5 + $0x90] sm:$0xff] %vm3793_vm5, %v7466_v14  ;;  %8963 = vmatprep.mubr.msk.f32.mxu0 %vm8007_vm0, %v7965_v57  ;;  %v7411_v57 = vld [vmem:[#allocation3 + $0x180] sm:$0xff] }
 0x9ea   : > { %7871 = vrot.lane.b32.xlu1 %v7787_v40, %s9102_s21  ;;  %7109 = vrot.lane.b32.xlu0 %v7596_v55, %s9098_s9 }
 0x9ec   : > { %v7656_v29 = vpop.permute.xlu1 %7655  ;;  %v7658_v53 = vpop.permute.xlu0 %7657  ;;  %v7966_v8 = vld [vmem:[#allocation5 + $0x70] sm:$0xff] }
 0x9ed   : > { %7743 = vst.msk [vmem:[#allocation5 + $0x80] sm:$0xff] %vm3986_vm6, %v7656_v29  ;;  %7744 = vst.msk [vmem:[#allocation5 + $0x90] sm:$0xff] %vm3986_vm6, %v7658_v53  ;;  %8964 = vmatmul.mubr.msk.f32.gmra.mrb[38].mxu0 %vm8007_vm0, %v7966_v8  ;;  %v7412_v53 = vld [vmem:[#allocation3 + $0x188] sm:$0xff] }
 0x9ee   : > { %7299 = vrot.lane.b32.xlu1 %v7787_v40, %s9099_s12  ;;  %7873 = vrot.lane.b32.xlu0 %v7788_v22, %s9102_s21  ;;  %v7603_v8 = vld [vmem:[#allocation3 + $0x181] sm:$0xff] }
 0x9f0   : > { %v7848_v46 = vpop.permute.xlu1 %7847  ;;  %v7276_v33 = vpop.permute.xlu0 %7275 }
 0x9f1   : > { %7935 = vst.msk [vmem:[#allocation5 + $0x80] sm:$0xff] %vm4179_vm7, %v7848_v46 }
 0x9f2   : > { %7361 = vst.msk [vmem:[#allocation5 + $0xa0] sm:$0xff] %vm3599_vm4, %v7276_v33  ;;  %7301 = vrot.lane.b32.xlu1 %v7788_v22, %s9099_s12  ;;  %7491 = vrot.lane.b32.xlu0 %v7405_v11, %s9100_s14  ;;  %v7604_v33 = vld [vmem:[#allocation3 + $0x189] sm:$0xff] }
 0x9f4   : > { %v7850_v58 = vpop.permute.xlu1 %7849  ;;  %v7278_v43 = vpop.permute.xlu0 %7277 }
 0x9f5   : > { %7936 = vst.msk [vmem:[#allocation5 + $0x90] sm:$0xff] %vm4179_vm7, %v7850_v58 }
 0x9f6   : > { %7362 = vst.msk [vmem:[#allocation5 + $0xb0] sm:$0xff] %vm3599_vm4, %v7278_v43  ;;  %7493 = vrot.lane.b32.xlu1 %v7406_v27, %s9100_s14  ;;  %7683 = vrot.lane.b32.xlu0 %v7597_v48, %s9101_s20  ;;  %v7795_v43 = vld [vmem:[#allocation3 + $0x182] sm:$0xff] }
 0x9f8   : > { %v7468_v34 = vpop.permute.xlu1 %7467  ;;  %v7470_v32 = vpop.permute.xlu0 %7469  ;;  %v7967_v44 = vld [vmem:[#allocation5 + $0x80] sm:$0xff] }
 0x9f9   : > { %7553 = vst.msk [vmem:[#allocation5 + $0xa0] sm:$0xff] %vm3793_vm5, %v7468_v34  ;;  %7554 = vst.msk [vmem:[#allocation5 + $0xb0] sm:$0xff] %vm3793_vm5, %v7470_v32  ;;  %8966 = vmatprep.mubr.msk.f32.mxu0 %vm8007_vm0, %v7967_v44  ;;  %v7796_v32 = vld [vmem:[#allocation3 + $0x18a] sm:$0xff]  ;;  %v7413_v44 = vld [vmem:[#allocation3 + $0x198] sm:$0xff] }
 0x9fa   : > { %7111 = vrot.lane.b32.xlu1 %v7597_v48, %s9098_s9  ;;  %7685 = vrot.lane.b32.xlu0 %v7598_v0, %s9101_s20 }
 0x9fc   : > { %v7660_v38 = vpop.permute.xlu1 %7659  ;;  %v7662_v37 = vpop.permute.xlu0 %7661  ;;  %v7968_v61 = vld [vmem:[#allocation5 + $0x90] sm:$0xff] }
 0x9fd   : > { %7745 = vst.msk [vmem:[#allocation5 + $0xa0] sm:$0xff] %vm3986_vm6, %v7660_v38  ;;  %7746 = vst.msk [vmem:[#allocation5 + $0xb0] sm:$0xff] %vm3986_vm6, %v7662_v37  ;;  %8967 = vmatmul.mubr.msk.f32.gmra.mrb[40].mxu0 %vm8007_vm0, %v7968_v61  ;;  %v7414_v61 = vld [vmem:[#allocation3 + $0x1a0] sm:$0xff] }
 0x9fe   : > { %7875 = vrot.lane.b32.xlu1 %v7789_v49, %s9102_s21  ;;  %7113 = vrot.lane.b32.xlu0 %v7598_v0, %s9098_s9 }
 0xa00   : > { %v7852_v16 = vpop.permute.xlu1 %7851  ;;  %v7280_v21 = vpop.permute.xlu0 %7279 }
 0xa01   : > { %7937 = vst.msk [vmem:[#allocation5 + $0xa0] sm:$0xff] %vm4179_vm7, %v7852_v16 }
 0xa02   : > { %7363 = vst.msk [vmem:[#allocation5 + $0xc0] sm:$0xff] %vm3599_vm4, %v7280_v21  ;;  %7303 = vrot.lane.b32.xlu1 %v7789_v49, %s9099_s12  ;;  %7877 = vrot.lane.b32.xlu0 %v7790_v17, %s9102_s21  ;;  %v7605_v49 = vld [vmem:[#allocation3 + $0x199] sm:$0xff] }
 0xa04   : > { %v7854_v4 = vpop.permute.xlu1 %7853  ;;  %v7282_v51 = vpop.permute.xlu0 %7281 }
 0xa05   : > { %7938 = vst.msk [vmem:[#allocation5 + $0xb0] sm:$0xff] %vm4179_vm7, %v7854_v4  ;;  %v7797_v4 = vld [vmem:[#allocation3 + $0x19a] sm:$0xff] }
 0xa06   : > { %7364 = vst.msk [vmem:[#allocation5 + $0xd0] sm:$0xff] %vm3599_vm4, %v7282_v51  ;;  %7305 = vrot.lane.b32.xlu1 %v7790_v17, %s9099_s12  ;;  %7495 = vrot.lane.b32.xlu0 %v7407_v19, %s9100_s14  ;;  %v7606_v17 = vld [vmem:[#allocation3 + $0x1a1] sm:$0xff] }
 0xa08   : > { %v7472_v6 = vpop.permute.xlu1 %7471  ;;  %v7474_v24 = vpop.permute.xlu0 %7473  ;;  %v7969_v39 = vld [vmem:[#allocation5 + $0xa0] sm:$0xff] }
 0xa09   : > { %7555 = vst.msk [vmem:[#allocation5 + $0xc0] sm:$0xff] %vm3793_vm5, %v7472_v6  ;;  %7556 = vst.msk [vmem:[#allocation5 + $0xd0] sm:$0xff] %vm3793_vm5, %v7474_v24  ;;  %8969 = vmatprep.mubr.msk.f32.mxu0 %vm8007_vm0, %v7969_v39  ;;  %v7798_v6 = vld [vmem:[#allocation3 + $0x1a2] sm:$0xff] }
 0xa0a   : > { %7497 = vrot.lane.b32.xlu1 %v7408_v52, %s9100_s14  ;;  %7687 = vrot.lane.b32.xlu0 %v7599_v50, %s9101_s20  ;;  %v14238_v52 = vld [vmem:[#allocation6_spill] sm:$0xff] }
 0xa0c   : > { %v7664_v47 = vpop.permute.xlu1 %7663  ;;  %v7666_v28 = vpop.permute.xlu0 %7665  ;;  %v7970_v26 = vld [vmem:[#allocation5 + $0xb0] sm:$0xff] }
 0xa0d   : > { %7747 = vst.msk [vmem:[#allocation5 + $0xc0] sm:$0xff] %vm3986_vm6, %v7664_v47  ;;  %7748 = vst.msk [vmem:[#allocation5 + $0xd0] sm:$0xff] %vm3986_vm6, %v7666_v28  ;;  %8970 = vmatmul.mubr.msk.f32.gmra.mrb[42].mxu0 %vm8007_vm0, %v7970_v26  ;;  %v14239_v26 = vld [vmem:[#allocation7_spill] sm:$0xff] }
 0xa0e   : > { %7115 = vrot.lane.b32.xlu1 %v7599_v50, %s9098_s9  ;;  %7689 = vrot.lane.b32.xlu0 %v7600_v62, %s9101_s20 }
 0xa10   : > { %v7856_v56 = vpop.permute.xlu1 %7855  ;;  %v7284_v3 = vpop.permute.xlu0 %7283 }
 0xa11   : > { %7939 = vst.msk [vmem:[#allocation5 + $0xc0] sm:$0xff] %vm4179_vm7, %v7856_v56 }
 0xa12   : > { %7365 = vst.msk [vmem:[#allocation5 + $0xe0] sm:$0xff] %vm3599_vm4, %v7284_v3  ;;  %7879 = vrot.lane.b32.xlu1 %v7791_v12, %s9102_s21  ;;  %7117 = vrot.lane.b32.xlu0 %v7600_v62, %s9098_s9  ;;  %v14240_v62 = vld [vmem:[#allocation8_spill] sm:$0xff] }
 0xa14   : > { %v7858_v59 = vpop.permute.xlu1 %7857  ;;  %v7286_v1 = vpop.permute.xlu0 %7285 }
 0xa15   : > { %7940 = vst.msk [vmem:[#allocation5 + $0xd0] sm:$0xff] %vm4179_vm7, %v7858_v59  ;;  %v14241_v59 = vld [vmem:[#allocation9_spill] sm:$0xff] }
 0xa16   : > { %7366 = vst.msk [vmem:[#allocation5 + $0xf0] sm:$0xff] %vm3599_vm4, %v7286_v1  ;;  %7307 = vrot.lane.b32.xlu1 %v7791_v12, %s9099_s12  ;;  %7881 = vrot.lane.b32.xlu0 %v7792_v18, %s9102_s21  ;;  %v14242_v1 = vld [vmem:[#allocation10_spill] sm:$0xff] }
 0xa18   : > { %v7476_v31 = vpop.permute.xlu1 %7475  ;;  %v7478_v54 = vpop.permute.xlu0 %7477  ;;  %v7971_v25 = vld [vmem:[#allocation5 + $0xc0] sm:$0xff] }
 0xa19   : > { %7557 = vst.msk [vmem:[#allocation5 + $0xe0] sm:$0xff] %vm3793_vm5, %v7476_v31  ;;  %7558 = vst.msk [vmem:[#allocation5 + $0xf0] sm:$0xff] %vm3793_vm5, %v7478_v54  ;;  %8972 = vmatprep.mubr.msk.f32.mxu0 %vm8007_vm0, %v7971_v25  ;;  %v14243_v54 = vld [vmem:[#allocation11_spill] sm:$0xff]  ;;  %v14244_v25 = vld [vmem:[#allocation12_spill] sm:$0xff] }
 0xa1a   : > { %7309 = vrot.lane.b32.xlu1 %v7792_v18, %s9099_s12  ;;  %7499 = vrot.lane.b32.xlu0 %v7409_v42, %s9100_s14 }
 0xa1c   : > { %v7668_v41 = vpop.permute.xlu1 %7667  ;;  %v7670_v60 = vpop.permute.xlu0 %7669  ;;  %v7972_v10 = vld [vmem:[#allocation5 + $0xd0] sm:$0xff] }
 0xa1d   : > { %7749 = vst.msk [vmem:[#allocation5 + $0xe0] sm:$0xff] %vm3986_vm6, %v7668_v41  ;;  %7750 = vst.msk [vmem:[#allocation5 + $0xf0] sm:$0xff] %vm3986_vm6, %v7670_v60  ;;  %8973 = vmatmul.mubr.msk.f32.gmra.mrb[44].mxu0 %vm8007_vm0, %v7972_v10  ;;  %v14245_v60 = vld [vmem:[#allocation13_spill] sm:$0xff]  ;;  %v14246_v10 = vld [vmem:[#allocation14_spill] sm:$0xff] }
 0xa1e   : > { %7501 = vrot.lane.b32.xlu1 %v7410_v20, %s9100_s14  ;;  %7691 = vrot.lane.b32.xlu0 %v7601_v13, %s9101_s20 }
 0xa20   : > { %v7860_v5 = vpop.permute.xlu1 %7859  ;;  %v7098_v36 = vpop.permute.xlu0 %7097 }
 0xa21   : > { %7941 = vst.msk [vmem:[#allocation5 + $0xe0] sm:$0xff] %vm4179_vm7, %v7860_v5  ;;  %v14247_v5 = vld [vmem:[#allocation15_spill] sm:$0xff] }
 0xa22   : > { %7176 = vst.msk [vmem:[#allocation5 + $0x110] sm:$0xff] %vm3406_vm3, %v7098_v36  ;;  %7119 = vrot.lane.b32.xlu1 %v7601_v13, %s9098_s9  ;;  %7693 = vrot.lane.b32.xlu0 %v7602_v63, %s9101_s20  ;;  %v14248_v36 = vld [vmem:[#allocation16_spill] sm:$0xff] }
 0xa24   : > { %v7288_v15 = vpop.permute.xlu1 %7287  ;;  %v7862_v30 = vpop.permute.xlu0 %7861 }
 0xa25   : > { %7367 = vst.msk [vmem:[#allocation5 + $0x100] sm:$0xff] %vm3599_vm4, %v7288_v15 }
 0xa26   : > { %7942 = vst.msk [vmem:[#allocation5 + $0xf0] sm:$0xff] %vm4179_vm7, %v7862_v30  ;;  %7883 = vrot.lane.b32.xlu1 %v7793_v45, %s9102_s21  ;;  %7121 = vrot.lane.b32.xlu0 %v7602_v63, %s9098_s9 }
 0xa28   : > { %v7290_v35 = vpop.permute.xlu1 %7289  ;;  %v7480_v9 = vpop.permute.xlu0 %7479  ;;  %v7973_v23 = vld [vmem:[#allocation5 + $0xe0] sm:$0xff] }
 0xa29   : > { %7368 = vst.msk [vmem:[#allocation5 + $0x110] sm:$0xff] %vm3599_vm4, %v7290_v35  ;;  %8975 = vmatprep.mubr.msk.f32.mxu0 %vm8007_vm0, %v7973_v23  ;;  %v14250_v35 = vld [vmem:[#allocation18_spill] sm:$0xff] }
 0xa2a   : > { %7559 = vst.msk [vmem:[#allocation5 + $0x100] sm:$0xff] %vm3793_vm5, %v7480_v9  ;;  %7311 = vrot.lane.b32.xlu1 %v7793_v45, %s9099_s12  ;;  %7885 = vrot.lane.b32.xlu0 %v7794_v2, %s9102_s21  ;;  %v14249_v45 = vld [vmem:[#allocation17_spill] sm:$0xff] }
 0xa2c   : > { %v7482_v55 = vpop.permute.xlu1 %7481  ;;  %v7672_v7 = vpop.permute.xlu0 %7671 }
 0xa2d   : > { %v7974_v14 = vld [vmem:[#allocation5 + $0xf0] sm:$0xff]  ;;  %7560 = vst.msk [vmem:[#allocation5 + $0x110] sm:$0xff] %vm3793_vm5, %v7482_v55  ;;  %v14251_v55 = vld [vmem:[#allocation19_spill] sm:$0xff] }
 0xa2e   : > { %7751 = vst.msk [vmem:[#allocation5 + $0x100] sm:$0xff] %vm3986_vm6, %v7672_v7  ;;  %8976 = vmatmul.mubr.msk.f32.gmra.mrb[46].mxu0 %vm8007_vm0, %v7974_v14  ;;  %7313 = vrot.lane.b32.xlu1 %v7794_v2, %s9099_s12  ;;  %v14252_v7 = vld [vmem:[#allocation20_spill] sm:$0xff] }
 0xa2f   : > { %7503 = vrot.lane.b32.xlu0 %v7411_v57, %s9100_s14 }
 0xa30   : > { %v7100_v40 = vpop.permute.xlu1 %7099  ;;  %v7674_v29 = vpop.permute.xlu0 %7673 }
 0xa31   : > { %7177 = vst.msk [vmem:[#allocation5 + $0x120] sm:$0xff] %vm3406_vm3, %v7100_v40  ;;  %v14253_v40 = vld [vmem:[#allocation21_spill] sm:$0xff] }
 0xa32   : > { %7752 = vst.msk [vmem:[#allocation5 + $0x110] sm:$0xff] %vm3986_vm6, %v7674_v29  ;;  %7505 = vrot.lane.b32.xlu1 %v7412_v53, %s9100_s14  ;;  %v14254_v29 = vld [vmem:[#allocation22_spill] sm:$0xff] }
 0xa33   : > { %7695 = vrot.lane.b32.xlu0 %v7603_v8, %s9101_s20 }
 0xa34   : > { %v7864_v22 = vpop.permute.xlu1 %7863  ;;  %v7102_v46 = vpop.permute.xlu0 %7101 }
 0xa35   : > { %7943 = vst.msk [vmem:[#allocation5 + $0x100] sm:$0xff] %vm4179_vm7, %v7864_v22  ;;  %v14255_v22 = vld [vmem:[#allocation23_spill] sm:$0xff] }
 0xa36   : > { %7178 = vst.msk [vmem:[#allocation5 + $0x130] sm:$0xff] %vm3406_vm3, %v7102_v46  ;;  %7123 = vrot.lane.b32.xlu1 %v7603_v8, %s9098_s9  ;;  %v14256_v46 = vld [vmem:[#allocation24_spill] sm:$0xff] }
 0xa37   : > { %7697 = vrot.lane.b32.xlu0 %v7604_v33, %s9101_s20 }
 0xa38   : > { %v7292_v11 = vpop.permute.xlu1 %7291  ;;  %v7866_v58 = vpop.permute.xlu0 %7865 }
 0xa39   : > { %7369 = vst.msk [vmem:[#allocation5 + $0x120] sm:$0xff] %vm3599_vm4, %v7292_v11 }
 0xa3a   : > { %7944 = vst.msk [vmem:[#allocation5 + $0x110] sm:$0xff] %vm4179_vm7, %v7866_v58  ;;  %7887 = vrot.lane.b32.xlu1 %v7795_v43, %s9102_s21  ;;  %v14257_v58 = vld [vmem:[#allocation25_spill] sm:$0xff] }
 0xa3b   : > { %7125 = vrot.lane.b32.xlu0 %v7604_v33, %s9098_s9 }
 0xa3c   : > { %v7294_v27 = vpop.permute.xlu1 %7293  ;;  %v7484_v48 = vpop.permute.xlu0 %7483  ;;  %v7975_v34 = vld [vmem:[#allocation5 + $0x100] sm:$0xff] }
 0xa3d   : > { %7370 = vst.msk [vmem:[#allocation5 + $0x130] sm:$0xff] %vm3599_vm4, %v7294_v27  ;;  %8978 = vmatprep.mubr.msk.f32.mxu0 %vm8007_vm0, %v7975_v34 }
 0xa3e   : > { %7561 = vst.msk [vmem:[#allocation5 + $0x120] sm:$0xff] %vm3793_vm5, %v7484_v48  ;;  %7315 = vrot.lane.b32.xlu1 %v7795_v43, %s9099_s12  ;;  %v14258_v43 = vld [vmem:[#allocation26_spill] sm:$0xff] }
 0xa3f   : > { %7889 = vrot.lane.b32.xlu0 %v7796_v32, %s9102_s21 }
 0xa40   : > { %v7486_v0 = vpop.permute.xlu1 %7485  ;;  %v7676_v38 = vpop.permute.xlu0 %7675 }
 0xa41   : > { %v7976_v37 = vld [vmem:[#allocation5 + $0x110] sm:$0xff]  ;;  %7562 = vst.msk [vmem:[#allocation5 + $0x130] sm:$0xff] %vm3793_vm5, %v7486_v0 }
 0xa42   : > { %7753 = vst.msk [vmem:[#allocation5 + $0x120] sm:$0xff] %vm3986_vm6, %v7676_v38  ;;  %8979 = vmatmul.mubr.msk.f32.gmra.mrb[48].mxu0 %vm8007_vm0, %v7976_v37  ;;  %7317 = vrot.lane.b32.xlu1 %v7796_v32, %s9099_s12  ;;  %v14259_v32 = vld [vmem:[#allocation27_spill] sm:$0xff] }
 0xa43   : > { %7507 = vrot.lane.b32.xlu0 %v7413_v44, %s9100_s14  ;;  %v14260_v44 = vld [vmem:[#allocation28_spill] sm:$0xff] }
 0xa44   : > { %v7104_v16 = vpop.permute.xlu1 %7103  ;;  %v7678_v21 = vpop.permute.xlu0 %7677 }
 0xa45   : > { %7179 = vst.msk [vmem:[#allocation5 + $0x140] sm:$0xff] %vm3406_vm3, %v7104_v16 }
 0xa46   : > { %7754 = vst.msk [vmem:[#allocation5 + $0x130] sm:$0xff] %vm3986_vm6, %v7678_v21  ;;  %7509 = vrot.lane.b32.xlu1 %v7414_v61, %s9100_s14  ;;  %v14261_v61 = vld [vmem:[#allocation29_spill] sm:$0xff] }
 0xa47   : > { %7699 = vrot.lane.b32.xlu0 %v7605_v49, %s9101_s20  ;;  %v14262_v49 = vld [vmem:[#allocation30_spill] sm:$0xff] }
 0xa48   : > { %v7868_v51 = vpop.permute.xlu1 %7867  ;;  %v7106_v19 = vpop.permute.xlu0 %7105 }
 0xa49   : > { %7945 = vst.msk [vmem:[#allocation5 + $0x120] sm:$0xff] %vm4179_vm7, %v7868_v51 }
 0xa4a   : > { %7180 = vst.msk [vmem:[#allocation5 + $0x150] sm:$0xff] %vm3406_vm3, %v7106_v19  ;;  %7701 = vrot.lane.b32.xlu1 %v7606_v17, %s9101_s20  ;;  %v14263_v17 = vld [vmem:[#allocation31_spill] sm:$0xff] }
 0xa4b   : > { %7891 = vrot.lane.b32.xlu0 %v7797_v4, %s9102_s21  ;;  %v14264_v4 = vld [vmem:[#allocation32_spill] sm:$0xff] }
 0xa4c   : > { %v7296_v24 = vpop.permute.xlu1 %7295  ;;  %v7870_v39 = vpop.permute.xlu0 %7869 }
 0xa4d   : > { %7371 = vst.msk [vmem:[#allocation5 + $0x140] sm:$0xff] %vm3599_vm4, %v7296_v24  ;;  %v14266_v24 = vld [vmem:[#allocation34_spill] sm:$0xff] }
 0xa4e   : > { %7946 = vst.msk [vmem:[#allocation5 + $0x130] sm:$0xff] %vm4179_vm7, %v7870_v39  ;;  %7893 = vrot.lane.b32.xlu1 %v7798_v6, %s9102_s21  ;;  %v14265_v6 = vld [vmem:[#allocation33_spill] sm:$0xff]  ;;  %s13778_s21 = scalar_lea.vmem %s13884_s8, %s9258_s30 }
 0xa4f   : > { %8457 = vrot.lane.b32.xlu0 %v14238_v52, %s9110_s16 }
 0xa50   : > { %v7298_v50 = vpop.permute.xlu1 %7297  ;;  %v7488_v47 = vpop.permute.xlu0 %7487  ;;  %v7977_v28 = vld [vmem:[#allocation5 + $0x120] sm:$0xff] }
 0xa51   : > { %7372 = vst.msk [vmem:[#allocation5 + $0x150] sm:$0xff] %vm3599_vm4, %v7298_v50  ;;  %8981 = vmatprep.mubr.msk.f32.mxu0 %vm8007_vm0, %v7977_v28  ;;  %v14267_v50 = vld [vmem:[#allocation35_spill] sm:$0xff] }
 0xa52   : > { %7563 = vst.msk [vmem:[#allocation5 + $0x140] sm:$0xff] %vm3793_vm5, %v7488_v47  ;;  %8459 = vrot.lane.b32.xlu1 %v14239_v26, %s9110_s16  ;;  %v14268_v47 = vld [vmem:[#allocation36_spill] sm:$0xff] }
 0xa53   : > { %8461 = vrot.lane.b32.xlu0 %v14240_v62, %s9110_s16 }
 0xa54   : > { %v7490_v56 = vpop.permute.xlu1 %7489  ;;  %v7680_v3 = vpop.permute.xlu0 %7679 }
 0xa55   : > { %v7978_v12 = vld [vmem:[#allocation5 + $0x130] sm:$0xff]  ;;  %7564 = vst.msk [vmem:[#allocation5 + $0x150] sm:$0xff] %vm3793_vm5, %v7490_v56  ;;  %v14269_v56 = vld [vmem:[#allocation37_spill] sm:$0xff] }
 0xa56   : > { %7755 = vst.msk [vmem:[#allocation5 + $0x140] sm:$0xff] %vm3986_vm6, %v7680_v3  ;;  %8982 = vmatmul.mubr.msk.f32.gmra.mrb[50].mxu0 %vm8007_vm0, %v7978_v12  ;;  %8463 = vrot.lane.b32.xlu1 %v14241_v59, %s9110_s16 }
 0xa57   : > { %8465 = vrot.lane.b32.xlu0 %v14242_v1, %s9110_s16 }
 0xa58   : > { %v7108_v18 = vpop.permute.xlu1 %7107  ;;  %v7682_v31 = vpop.permute.xlu0 %7681 }
 0xa59   : > { %7181 = vst.msk [vmem:[#allocation5 + $0x160] sm:$0xff] %vm3406_vm3, %v7108_v18 }
 0xa5a   : > { %7756 = vst.msk [vmem:[#allocation5 + $0x150] sm:$0xff] %vm3986_vm6, %v7682_v31  ;;  %8467 = vrot.lane.b32.xlu1 %v14243_v54, %s9110_s16 }
 0xa5b   : > { %8469 = vrot.lane.b32.xlu0 %v14244_v25, %s9110_s16 }
 0xa5c   : > { %v7872_v42 = vpop.permute.xlu1 %7871  ;;  %v7110_v41 = vpop.permute.xlu0 %7109 }
 0xa5d   : > { %7947 = vst.msk [vmem:[#allocation5 + $0x140] sm:$0xff] %vm4179_vm7, %v7872_v42 }
 0xa5e   : > { %7182 = vst.msk [vmem:[#allocation5 + $0x170] sm:$0xff] %vm3406_vm3, %v7110_v41  ;;  %8471 = vrot.lane.b32.xlu1 %v14245_v60, %s9110_s16 }
 0xa5f   : > { %8473 = vrot.lane.b32.xlu0 %v14246_v10, %s9110_s16 }
 0xa60   : > { %v7300_v20 = vpop.permute.xlu1 %7299  ;;  %v7874_v13 = vpop.permute.xlu0 %7873 }
 0xa61   : > { %7373 = vst.msk [vmem:[#allocation5 + $0x160] sm:$0xff] %vm3599_vm4, %v7300_v20 }
 0xa62   : > { %7948 = vst.msk [vmem:[#allocation5 + $0x150] sm:$0xff] %vm4179_vm7, %v7874_v13  ;;  %8475 = vrot.lane.b32.xlu1 %v14247_v5, %s9110_s16 }
 0xa63   : > { %8477 = vrot.lane.b32.xlu0 %v14248_v36, %s9110_s16 }
 0xa64   : > { %v7302_v63 = vpop.permute.xlu1 %7301  ;;  %v7492_v15 = vpop.permute.xlu0 %7491  ;;  %v7979_v30 = vld [vmem:[#allocation5 + $0x140] sm:$0xff] }
 0xa65   : > { %7374 = vst.msk [vmem:[#allocation5 + $0x170] sm:$0xff] %vm3599_vm4, %v7302_v63  ;;  %8984 = vmatprep.mubr.msk.f32.mxu0 %vm8007_vm0, %v7979_v30 }
 0xa66   : > { %7565 = vst.msk [vmem:[#allocation5 + $0x160] sm:$0xff] %vm3793_vm5, %v7492_v15  ;;  %8479 = vrot.lane.b32.xlu1 %v14249_v45, %s9110_s16 }
 0xa67   : > { %8481 = vrot.lane.b32.xlu0 %v14250_v35, %s9110_s16 }
 0xa68   : > { %v7494_v9 = vpop.permute.xlu1 %7493  ;;  %v7684_v23 = vpop.permute.xlu0 %7683 }
 0xa69   : > { %v7980_v2 = vld [vmem:[#allocation5 + $0x150] sm:$0xff]  ;;  %7566 = vst.msk [vmem:[#allocation5 + $0x170] sm:$0xff] %vm3793_vm5, %v7494_v9 }
 0xa6a   : > { %7757 = vst.msk [vmem:[#allocation5 + $0x160] sm:$0xff] %vm3986_vm6, %v7684_v23  ;;  %8985 = vmatmul.mubr.msk.f32.gmra.mrb[52].mxu0 %vm8007_vm0, %v7980_v2  ;;  %8483 = vrot.lane.b32.xlu1 %v14251_v55, %s9110_s16 }
 0xa6b   : > { %8485 = vrot.lane.b32.xlu0 %v14252_v7, %s9110_s16 }
 0xa6c   : > { %v7112_v14 = vpop.permute.xlu1 %7111  ;;  %v7686_v57 = vpop.permute.xlu0 %7685 }
 0xa6d   : > { %7183 = vst.msk [vmem:[#allocation5 + $0x180] sm:$0xff] %vm3406_vm3, %v7112_v14 }
 0xa6e   : > { %7758 = vst.msk [vmem:[#allocation5 + $0x170] sm:$0xff] %vm3986_vm6, %v7686_v57  ;;  %8487 = vrot.lane.b32.xlu1 %v14253_v40, %s9110_s16 }
 0xa6f   : > { %8489 = vrot.lane.b32.xlu0 %v14254_v29, %s9110_s16 }
 0xa70   : > { %v7876_v53 = vpop.permute.xlu1 %7875  ;;  %v7114_v8 = vpop.permute.xlu0 %7113 }
 0xa71   : > { %7949 = vst.msk [vmem:[#allocation5 + $0x160] sm:$0xff] %vm4179_vm7, %v7876_v53  ;;  %v13760_v53 = vld [vmem:[%s13883_s7] ss:$0 sm:$0xff] }
 0xa72   : > { %7184 = vst.msk [vmem:[#allocation5 + $0x190] sm:$0xff] %vm3406_vm3, %v7114_v8  ;;  %8491 = vrot.lane.b32.xlu1 %v14255_v22, %s9110_s16 }
 0xa73   : > { %8493 = vrot.lane.b32.xlu0 %v14256_v46, %s9110_s16 }
 0xa74   : > { %v7304_v33 = vpop.permute.xlu1 %7303  ;;  %v7878_v11 = vpop.permute.xlu0 %7877 }
 0xa75   : > { %7375 = vst.msk [vmem:[#allocation5 + $0x180] sm:$0xff] %vm3599_vm4, %v7304_v33 }
 0xa76   : > { %7950 = vst.msk [vmem:[#allocation5 + $0x170] sm:$0xff] %vm4179_vm7, %v7878_v11  ;;  %8495 = vrot.lane.b32.xlu1 %v14257_v58, %s9110_s16 }
 0xa77   : > { %8497 = vrot.lane.b32.xlu0 %v14258_v43, %s9110_s16 }
 0xa78   : > { %v7306_v27 = vpop.permute.xlu1 %7305  ;;  %v7496_v48 = vpop.permute.xlu0 %7495  ;;  %v7981_v34 = vld [vmem:[#allocation5 + $0x160] sm:$0xff] }
 0xa79   : > { %7376 = vst.msk [vmem:[#allocation5 + $0x190] sm:$0xff] %vm3599_vm4, %v7306_v27  ;;  %8987 = vmatprep.mubr.msk.f32.mxu0 %vm8007_vm0, %v7981_v34 }
 0xa7a   : > { %7567 = vst.msk [vmem:[#allocation5 + $0x180] sm:$0xff] %vm3793_vm5, %v7496_v48  ;;  %8499 = vrot.lane.b32.xlu1 %v14259_v32, %s9110_s16 }
 0xa7b   : > { %8501 = vrot.lane.b32.xlu0 %v14260_v44, %s9110_s16 }
 0xa7c   : > { %v7498_v0 = vpop.permute.xlu1 %7497  ;;  %v7688_v38 = vpop.permute.xlu0 %7687 }
 0xa7d   : > { %v7982_v37 = vld [vmem:[#allocation5 + $0x170] sm:$0xff]  ;;  %7568 = vst.msk [vmem:[#allocation5 + $0x190] sm:$0xff] %vm3793_vm5, %v7498_v0 }
 0xa7e   : > { %7759 = vst.msk [vmem:[#allocation5 + $0x180] sm:$0xff] %vm3986_vm6, %v7688_v38  ;;  %8988 = vmatmul.mubr.msk.f32.gmra.mrb[54].mxu0 %vm8007_vm0, %v7982_v37  ;;  %8503 = vrot.lane.b32.xlu1 %v14261_v61, %s9110_s16 }
 0xa7f   : > { %8505 = vrot.lane.b32.xlu0 %v14262_v49, %s9110_s16 }
 0xa80   : > { %v7116_v16 = vpop.permute.xlu1 %7115  ;;  %v7690_v21 = vpop.permute.xlu0 %7689 }
 0xa81   : > { %7185 = vst.msk [vmem:[#allocation5 + $0x1a0] sm:$0xff] %vm3406_vm3, %v7116_v16 }
 0xa82   : > { %7760 = vst.msk [vmem:[#allocation5 + $0x190] sm:$0xff] %vm3986_vm6, %v7690_v21  ;;  %8507 = vrot.lane.b32.xlu1 %v14263_v17, %s9110_s16 }
 0xa83   : > { %8509 = vrot.lane.b32.xlu0 %v14264_v4, %s9110_s16 }
 0xa84   : > { %v7880_v51 = vpop.permute.xlu1 %7879  ;;  %v7118_v19 = vpop.permute.xlu0 %7117 }
 0xa85   : > { %7951 = vst.msk [vmem:[#allocation5 + $0x180] sm:$0xff] %vm4179_vm7, %v7880_v51 }
 0xa86   : > { %7186 = vst.msk [vmem:[#allocation5 + $0x1b0] sm:$0xff] %vm3406_vm3, %v7118_v19  ;;  %8511 = vrot.lane.b32.xlu1 %v14265_v6, %s9110_s16 }
 0xa87   : > { %8513 = vrot.lane.b32.xlu0 %v14266_v24, %s9110_s16 }
 0xa88   : > { %v7308_v39 = vpop.permute.xlu1 %7307  ;;  %v7882_v52 = vpop.permute.xlu0 %7881 }
 0xa89   : > { %7377 = vst.msk [vmem:[#allocation5 + $0x1a0] sm:$0xff] %vm3599_vm4, %v7308_v39 }
 0xa8a   : > { %7952 = vst.msk [vmem:[#allocation5 + $0x190] sm:$0xff] %vm4179_vm7, %v7882_v52  ;;  %8515 = vrot.lane.b32.xlu1 %v14267_v50, %s9110_s16 }
 0xa8b   : > { %8517 = vrot.lane.b32.xlu0 %v14268_v47, %s9110_s16 }
 0xa8c   : > { %v7310_v28 = vpop.permute.xlu1 %7309  ;;  %v7500_v26 = vpop.permute.xlu0 %7499  ;;  %v7983_v62 = vld [vmem:[#allocation5 + $0x180] sm:$0xff] }
 0xa8d   : > { %7378 = vst.msk [vmem:[#allocation5 + $0x1b0] sm:$0xff] %vm3599_vm4, %v7310_v28  ;;  %8990 = vmatprep.mubr.msk.f32.mxu0 %vm8007_vm0, %v7983_v62 }
 0xa8e   : > { %7569 = vst.msk [vmem:[#allocation5 + $0x1a0] sm:$0xff] %vm3793_vm5, %v7500_v26  ;;  %8519 = vrot.lane.b32.xlu1 %v14269_v56, %s9110_s16 }
 0xa90   : > { %v7502_v3 = vpop.permute.xlu1 %7501  ;;  %v8956_v12 = vpop.f32.mrb[32].mxu0 }
 0xa91   : > { %v7984_v59 = vld [vmem:[#allocation5 + $0x190] sm:$0xff]  ;;  %7570 = vst.msk [vmem:[#allocation5 + $0x1b0] sm:$0xff] %vm3793_vm5, %v7502_v3  ;;  %v7692_v1 = vpop.permute.xlu0 %7691  ;;  %v8170_v18 = vpop.f32.mrb[33].mxu0  ;;  %v8176_v11 = vadd.f32 %v8956_v12, %v13760_v53 }
 0xa92   : > { %8991 = vmatmul.mubr.msk.f32.gmra.mrb[56].mxu0 %vm8007_vm0, %v7984_v59  ;;  %7761 = vst.msk [vmem:[#allocation5 + $0x1a0] sm:$0xff] %vm3986_vm6, %v7692_v1  ;;  %v8171_v22 = vadd.f32 %v13760_v53, %v8170_v18 }
 0xa93   : > { %v8362_v34 = vmul.f32 0.2, %v8176_v11  ;;  %vm8330_vm2 = vcmp.ge.f32.partialorder %v8176_v11, 0.0 }
 0xa94   : > { %v7120_v31 = vpop.permute.xlu1 %7119  ;;  %v8361_v43 = vmul.f32 0.2, %v8171_v22  ;;  %vm8329_vm1 = vcmp.ge.f32.partialorder %v8171_v22, 0.0 }
 0xa95   : > { %7187 = vst.msk [vmem:[#allocation5 + $0x1c0] sm:$0xff] %vm3406_vm3, %v7120_v31  ;;  %v7694_v54 = vpop.permute.xlu0 %7693  ;;  %v8394_v19 = vsel %vm8330_vm2, %v8176_v11, %v8362_v34 }
 0xa96   : > { %7762 = vst.msk [vmem:[#allocation5 + $0x1b0] sm:$0xff] %vm3986_vm6, %v7694_v54  ;;  %v8393_v61 = vsel %vm8329_vm1, %v8171_v22, %v8361_v43 }
 0xa98   : > { %v7884_v25 = vpop.permute.xlu1 %7883 }
 0xa99   : > { %7953 = vst.msk [vmem:[#allocation5 + $0x1a0] sm:$0xff] %vm4179_vm7, %v7884_v25  ;;  %v7122_v42 = vpop.permute.xlu0 %7121 }
 0xa9a   : > { %7188 = vst.msk [vmem:[#allocation5 + $0x1d0] sm:$0xff] %vm3406_vm3, %v7122_v42 }
 0xa9c   : > { %v7312_v41 = vpop.permute.xlu1 %7311 }
 0xa9d   : > { %7379 = vst.msk [vmem:[#allocation5 + $0x1c0] sm:$0xff] %vm3599_vm4, %v7312_v41  ;;  %v7886_v60 = vpop.permute.xlu0 %7885 }
 0xa9e   : > { %7954 = vst.msk [vmem:[#allocation5 + $0x1b0] sm:$0xff] %vm4179_vm7, %v7886_v60 }
 0xaa0   : > { %v7314_v10 = vpop.permute.xlu1 %7313  ;;  %v8959_v20 = vpop.f32.mrb[34].mxu0  ;;  %v7985_v13 = vld [vmem:[#allocation5 + $0x1a0] sm:$0xff] }
 0xaa1   : > { %7380 = vst.msk [vmem:[#allocation5 + $0x1d0] sm:$0xff] %vm3599_vm4, %v7314_v10  ;;  %v7504_v5 = vpop.permute.xlu0 %7503  ;;  %v8180_v36 = vpop.f32.mrb[35].mxu0  ;;  %8993 = vmatprep.mubr.msk.f32.mxu0 %vm8007_vm0, %v7985_v13  ;;  %v8186_v32 = vadd.f32 %v8959_v20, %v13760_v53 }
 0xaa2   : > { %7571 = vst.msk [vmem:[#allocation5 + $0x1c0] sm:$0xff] %vm3793_vm5, %v7504_v5  ;;  %v8181_v27 = vadd.f32 %v13760_v53, %v8180_v36 }
 0xaa3   : > { %v8364_v17 = vmul.f32 0.2, %v8186_v32 }
 0xaa4   : > { %v7506_v63 = vpop.permute.xlu1 %7505  ;;  %v8363_v38 = vmul.f32 0.2, %v8181_v27 }
 0xaa5   : > { %7572 = vst.msk [vmem:[#allocation5 + $0x1d0] sm:$0xff] %vm3793_vm5, %v7506_v63  ;;  %v7696_v15 = vpop.permute.xlu0 %7695  ;;  %v7986_v30 = vld [vmem:[#allocation5 + $0x1b0] sm:$0xff] }
 0xaa6   : > { %7763 = vst.msk [vmem:[#allocation5 + $0x1c0] sm:$0xff] %vm3986_vm6, %v7696_v15  ;;  %8994 = vmatmul.mubr.msk.f32.gmra.mrb[58].mxu0 %vm8007_vm0, %v7986_v30 }
 0xaa8   : > { %v7124_v45 = vpop.permute.xlu1 %7123 }
 0xaa9   : > { %7189 = vst.msk [vmem:[#allocation5 + $0x1e0] sm:$0xff] %vm3406_vm3, %v7124_v45  ;;  %v7698_v35 = vpop.permute.xlu0 %7697 }
 0xaaa   : > { %7764 = vst.msk [vmem:[#allocation5 + $0x1d0] sm:$0xff] %vm3986_vm6, %v7698_v35 }
 0xaac   : > { %v7888_v9 = vpop.permute.xlu1 %7887 }
 0xaad   : > { %7955 = vst.msk [vmem:[#allocation5 + $0x1c0] sm:$0xff] %vm4179_vm7, %v7888_v9  ;;  %v7126_v23 = vpop.permute.xlu0 %7125 }
 0xaae   : > { %7190 = vst.msk [vmem:[#allocation5 + $0x1f0] sm:$0xff] %vm3406_vm3, %v7126_v23  ;;  %vm8331_vm3 = vcmp.ge.f32.partialorder %v8181_v27, 0.0 }
 0xaaf   : > { %v8395_v52 = vsel %vm8331_vm3, %v8181_v27, %v8363_v38 }
 0xab0   : > { %v7316_v2 = vpop.permute.xlu1 %7315  ;;  %v8962_v55 = vpop.f32.mrb[36].mxu0 }
 0xab1   : > { %7381 = vst.msk [vmem:[#allocation5 + $0x1e0] sm:$0xff] %vm3599_vm4, %v7316_v2  ;;  %v7890_v7 = vpop.permute.xlu0 %7889  ;;  %v8190_v14 = vpop.f32.mrb[37].mxu0  ;;  %v8196_v4 = vadd.f32 %v8962_v55, %v13760_v53 }
 0xab2   : > { %7956 = vst.msk [vmem:[#allocation5 + $0x1d0] sm:$0xff] %vm4179_vm7, %v7890_v7  ;;  %v8191_v37 = vadd.f32 %v13760_v53, %v8190_v14 }
 0xab3   : > { %v8366_v26 = vmul.f32 0.2, %v8196_v4 }
 0xab4   : > { %v7318_v57 = vpop.permute.xlu1 %7317  ;;  %v7987_v40 = vld [vmem:[#allocation5 + $0x1c0] sm:$0xff]  ;;  %v8365_v6 = vmul.f32 0.2, %v8191_v37 }
 0xab5   : > { %7382 = vst.msk [vmem:[#allocation5 + $0x1f0] sm:$0xff] %vm3599_vm4, %v7318_v57  ;;  %v7508_v29 = vpop.permute.xlu0 %7507  ;;  %8996 = vmatprep.mubr.msk.f32.mxu0 %vm8007_vm0, %v7987_v40  ;;  %vm8332_vm4 = vcmp.ge.f32.partialorder %v8186_v32, 0.0 }
 0xab6   : > { %7573 = vst.msk [vmem:[#allocation5 + $0x1e0] sm:$0xff] %vm3793_vm5, %v7508_v29  ;;  %v8396_v3 = vsel %vm8332_vm4, %v8186_v32, %v8364_v17 }
 0xab8   : > { %v7510_v8 = vpop.permute.xlu1 %7509 }
 0xab9   : > { %7574 = vst.msk [vmem:[#allocation5 + $0x1f0] sm:$0xff] %vm3793_vm5, %v7510_v8  ;;  %v7700_v46 = vpop.permute.xlu0 %7699  ;;  %v7988_v33 = vld [vmem:[#allocation5 + $0x1d0] sm:$0xff]  ;;  %vm8333_vm5 = vcmp.ge.f32.partialorder %v8191_v37, 0.0 }
 0xaba   : > { %7765 = vst.msk [vmem:[#allocation5 + $0x1e0] sm:$0xff] %vm3986_vm6, %v7700_v46  ;;  %8997 = vmatmul.mubr.msk.f32.gmra.mrb[60].mxu0 %vm8007_vm0, %v7988_v33  ;;  %v8397_v18 = vsel %vm8333_vm5, %v8191_v37, %v8365_v6 }
 0xabc   : > { %v7702_v58 = vpop.permute.xlu1 %7701 }
 0xabd   : > { %7766 = vst.msk [vmem:[#allocation5 + $0x1f0] sm:$0xff] %vm3986_vm6, %v7702_v58  ;;  %v7892_v48 = vpop.permute.xlu0 %7891  ;;  %vm8334_vm6 = vcmp.ge.f32.partialorder %v8196_v4, 0.0 }
 0xabe   : > { %7957 = vst.msk [vmem:[#allocation5 + $0x1e0] sm:$0xff] %vm4179_vm7, %v7892_v48  ;;  %v8398_v41 = vsel %vm8334_vm6, %v8196_v4, %v8366_v26 }
 0xac0   : > { %v7894_v44 = vpop.permute.xlu1 %7893  ;;  %v8965_v0 = vpop.f32.mrb[38].mxu0 }
 0xac1   : > { %7958 = vst.msk [vmem:[#allocation5 + $0x1f0] sm:$0xff] %vm4179_vm7, %v7894_v44  ;;  %v8458_v49 = vpop.permute.xlu0 %8457  ;;  %v8200_v16 = vpop.f32.mrb[39].mxu0  ;;  %v8206_v62 = vadd.f32 %v8965_v0, %v13760_v53 }
 0xac2   : > { %v8553_v21 = vadd.f32 %v8458_v49, %v8393_v61  ;;  %v8201_v24 = vadd.f32 %v13760_v53, %v8200_v16 }
 0xac3   : > { %v8368_v25 = vmul.f32 0.2, %v8206_v62  ;;  %vm8336_vm14 = vcmp.ge.f32.partialorder %v8206_v62, 0.0 }
 0xac4   : > { %8585 = vst.msk [vmem:[%s13778_s21] sm:$0xff] %vm372_vm11, %v8553_v21  ;;  %v8460_v51 = vpop.permute.xlu1 %8459  ;;  %v8367_v59 = vmul.f32 0.2, %v8201_v24  ;;  %vm8335_vm7 = vcmp.ge.f32.partialorder %v8201_v24, 0.0 }
 0xac5   : > { %v8554_v39 = vadd.f32 %v8460_v51, %v8394_v19  ;;  %v8462_v50 = vpop.permute.xlu0 %8461  ;;  %v7989_v47 = vld [vmem:[#allocation5 + $0x1e0] sm:$0xff]  ;;  %v8400_v36 = vsel %vm8336_vm14, %v8206_v62, %v8368_v25 }
 0xac6   : > { %v8555_v28 = vadd.f32 %v8462_v50, %v8395_v52  ;;  %8999 = vmatprep.mubr.msk.f32.mxu0 %vm8007_vm0, %v7989_v47  ;;  %v8399_v20 = vsel %vm8335_vm7, %v8201_v24, %v8367_v59 }
 0xac7   : > { %8586 = vst.msk [vmem:[%s13778_s21 + $0x8] sm:$0xff] %vm372_vm11, %v8554_v39 }
 0xac8   : > { %8587 = vst.msk [vmem:[%s13778_s21 + $0x10] sm:$0xff] %vm372_vm11, %v8555_v28  ;;  %v8464_v56 = vpop.permute.xlu1 %8463  ;;  %v7990_v12 = vld [vmem:[#allocation5 + $0x1f0] sm:$0xff] }
 0xac9   : > { %v8556_v1 = vadd.f32 %v8464_v56, %v8396_v3  ;;  %v8466_v31 = vpop.permute.xlu0 %8465  ;;  %9000 = vmatmul.mubr.msk.f32.gmra.mrb[62].mxu0 %vm8007_vm0, %v7990_v12 }
 0xaca   : > { %v8557_v54 = vadd.f32 %v8466_v31, %v8397_v18 }
 0xacb   : > { %8588 = vst.msk [vmem:[%s13778_s21 + $0x18] sm:$0xff] %vm372_vm11, %v8556_v1 }
 0xacc   : > { %8589 = vst.msk [vmem:[%s13778_s21 + $0x20] sm:$0xff] %vm372_vm11, %v8557_v54  ;;  %v8468_v42 = vpop.permute.xlu1 %8467 }
 0xacd   : > { %v8558_v60 = vadd.f32 %v8468_v42, %v8398_v41  ;;  %v8470_v10 = vpop.permute.xlu0 %8469 }
 0xace   : > { %v8559_v13 = vadd.f32 %v8470_v10, %v8399_v20 }
 0xacf   : > { %8590 = vst.msk [vmem:[%s13778_s21 + $0x28] sm:$0xff] %vm372_vm11, %v8558_v60 }
 0xad0   : > { %8591 = vst.msk [vmem:[%s13778_s21 + $0x30] sm:$0xff] %vm372_vm11, %v8559_v13  ;;  %v8472_v5 = vpop.permute.xlu1 %8471  ;;  %v8968_v63 = vpop.f32.mrb[40].mxu0 }
 0xad1   : > { %v8560_v15 = vadd.f32 %v8472_v5, %v8400_v36  ;;  %v8216_v30 = vadd.f32 %v8968_v63, %v13760_v53  ;;  %v8210_v45 = vpop.f32.mrb[41].mxu0  ;;  %v8474_v7 = vpop.permute.xlu0 %8473 }
 0xad2   : > { %v8211_v35 = vadd.f32 %v13760_v53, %v8210_v45 }
 0xad3   : > { %8592 = vst.msk [vmem:[%s13778_s21 + $0x38] sm:$0xff] %vm372_vm11, %v8560_v15  ;;  %v8370_v9 = vmul.f32 0.2, %v8216_v30  ;;  %vm8338_vm15 = vcmp.ge.f32.partialorder %v8216_v30, 0.0 }
 0xad4   : > { %vm8337_vm8 = vcmp.ge.f32.partialorder %v8211_v35, 0.0  ;;  %v8369_v23 = vmul.f32 0.2, %v8211_v35  ;;  %v8476_v2 = vpop.permute.xlu1 %8475 }
 0xad5   : > { %v8402_v55 = vsel %vm8338_vm15, %v8216_v30, %v8370_v9  ;;  %v8478_v27 = vpop.permute.xlu0 %8477 }
 0xad6   : > { %v8401_v14 = vsel %vm8337_vm8, %v8211_v35, %v8369_v23  ;;  %v8562_v57 = vadd.f32 %v8476_v2, %v8402_v55 }
 0xad7   : > { %v8561_v40 = vadd.f32 %v8474_v7, %v8401_v14 }
 0xad8   : > { %8594 = vst.msk [vmem:[%s13778_s21 + $0x48] sm:$0xff] %vm372_vm11, %v8562_v57  ;;  %v8480_v58 = vpop.permute.xlu1 %8479 }
 0xad9   : > { %8593 = vst.msk [vmem:[%s13778_s21 + $0x40] sm:$0xff] %vm372_vm11, %v8561_v40  ;;  %v8482_v17 = vpop.permute.xlu0 %8481 }
 0xadc   : > { %v8484_v16 = vpop.permute.xlu1 %8483 }
 0xadd   : > { %v8486_v62 = vpop.permute.xlu0 %8485 }
 0xae0   : > { %v8971_v29 = vpop.f32.mrb[42].mxu0  ;;  %v8488_v28 = vpop.permute.xlu1 %8487 }
 0xae1   : > { %v8226_v8 = vadd.f32 %v8971_v29, %v13760_v53  ;;  %v8220_v22 = vpop.f32.mrb[43].mxu0  ;;  %v8490_v60 = vpop.permute.xlu0 %8489 }
 0xae2   : > { %v8221_v46 = vadd.f32 %v13760_v53, %v8220_v22 }
 0xae3   : > { %vm8340_vm9 = vcmp.ge.f32.partialorder %v8226_v8, 0.0  ;;  %v8372_v33 = vmul.f32 0.2, %v8226_v8 }
 0xae4   : > { %vm8339_vm10 = vcmp.ge.f32.partialorder %v8221_v46, 0.0  ;;  %v8371_v11 = vmul.f32 0.2, %v8221_v46  ;;  %v8492_v42 = vpop.permute.xlu1 %8491 }
 0xae5   : > { %v8404_v43 = vsel %vm8340_vm9, %v8226_v8, %v8372_v33  ;;  %v8494_v23 = vpop.permute.xlu0 %8493 }
 0xae6   : > { %v8564_v48 = vadd.f32 %v8480_v58, %v8404_v43  ;;  %v8403_v34 = vsel %vm8339_vm10, %v8221_v46, %v8371_v11 }
 0xae7   : > { %v8563_v32 = vadd.f32 %v8478_v27, %v8403_v34 }
 0xae8   : > { %8596 = vst.msk [vmem:[%s13778_s21 + $0x58] sm:$0xff] %vm372_vm11, %v8564_v48  ;;  %v8496_v35 = vpop.permute.xlu1 %8495 }
 0xae9   : > { %8595 = vst.msk [vmem:[%s13778_s21 + $0x50] sm:$0xff] %vm372_vm11, %v8563_v32  ;;  %v8498_v11 = vpop.permute.xlu0 %8497 }
 0xaec   : > { %v8500_v46 = vpop.permute.xlu1 %8499 }
 0xaf0   : > { %v8974_v44 = vpop.f32.mrb[44].mxu0 }
 0xaf1   : > { %v8236_v0 = vadd.f32 %v8974_v44, %v13760_v53  ;;  %v8230_v38 = vpop.f32.mrb[45].mxu0 }
 0xaf2   : > { %v8231_v37 = vadd.f32 %v13760_v53, %v8230_v38 }
 0xaf3   : > { %vm8342_vm12 = vcmp.ge.f32.partialorder %v8236_v0, 0.0  ;;  %v8374_v61 = vmul.f32 0.2, %v8236_v0 }
 0xaf4   : > { %vm8341_vm13 = vcmp.ge.f32.partialorder %v8231_v37, 0.0  ;;  %v8373_v49 = vmul.f32 0.2, %v8231_v37 }
 0xaf5   : > { %v8406_v21 = vsel %vm8342_vm12, %v8236_v0, %v8374_v61 }
 0xaf6   : > { %v8566_v4 = vadd.f32 %v8484_v16, %v8406_v21  ;;  %v8405_v51 = vsel %vm8341_vm13, %v8231_v37, %v8373_v49  ;;  %v8504_v37 = vpop.permute.xlu1 %8503  ;;  %v8502_v49 = vpop.permute.xlu0 %8501 }
 0xaf7   : > { %v8565_v19 = vadd.f32 %v8482_v17, %v8405_v51 }
 0xaf8   : > { %8598 = vst.msk [vmem:[%s13778_s21 + $0x68] sm:$0xff] %vm372_vm11, %v8566_v4 }
 0xaf9   : > { %8597 = vst.msk [vmem:[%s13778_s21 + $0x60] sm:$0xff] %vm372_vm11, %v8565_v19 }
 0xb01   : > { %v8977_v6 = vpop.f32.mrb[46].mxu0 }
 0xb02   : > { %v8246_v24 = vadd.f32 %v8977_v6, %v13760_v53  ;;  %v8240_v39 = vpop.f32.mrb[47].mxu0 }
 0xb03   : > { %v8241_v52 = vadd.f32 %v13760_v53, %v8240_v39 }
 0xb04   : > { %vm8344_vm0 = vcmp.ge.f32.partialorder %v8246_v24, 0.0  ;;  %v8376_v50 = vmul.f32 0.2, %v8246_v24 }
 0xb05   : > { %vm8343_vm1 = vcmp.ge.f32.partialorder %v8241_v52, 0.0  ;;  %v8375_v47 = vmul.f32 0.2, %v8241_v52 }
 0xb06   : > { %v8408_v26 = vsel %vm8344_vm0, %v8246_v24, %v8376_v50 }
 0xb07   : > { %v8568_v56 = vadd.f32 %v8488_v28, %v8408_v26  ;;  %v8407_v3 = vsel %vm8343_vm1, %v8241_v52, %v8375_v47  ;;  %v8508_v52 = vpop.permute.xlu1 %8507  ;;  %v8506_v47 = vpop.permute.xlu0 %8505 }
 0xb08   : > { %v8567_v12 = vadd.f32 %v8486_v62, %v8407_v3 }
 0xb09   : > { %8600 = vst.msk [vmem:[%s13778_s21 + $0x78] sm:$0xff] %vm372_vm11, %v8568_v56 }
 0xb0a   : > { %8599 = vst.msk [vmem:[%s13778_s21 + $0x70] sm:$0xff] %vm372_vm11, %v8567_v12 }
 0xb15   : > { %v8980_v59 = vpop.f32.mrb[48].mxu0 }
 0xb16   : > { %v8256_v1 = vadd.f32 %v8980_v59, %v13760_v53  ;;  %v8250_v18 = vpop.f32.mrb[49].mxu0 }
 0xb17   : > { %v8251_v31 = vadd.f32 %v13760_v53, %v8250_v18 }
 0xb18   : > { %vm8346_vm2 = vcmp.ge.f32.partialorder %v8256_v1, 0.0  ;;  %v8378_v54 = vmul.f32 0.2, %v8256_v1 }
 0xb19   : > { %vm8345_vm3 = vcmp.ge.f32.partialorder %v8251_v31, 0.0  ;;  %v8377_v25 = vmul.f32 0.2, %v8251_v31 }
 0xb1a   : > { %v8410_v41 = vsel %vm8346_vm2, %v8256_v1, %v8378_v54 }
 0xb1b   : > { %v8570_v10 = vadd.f32 %v8492_v42, %v8410_v41  ;;  %v8409_v20 = vsel %vm8345_vm3, %v8251_v31, %v8377_v25  ;;  %v8512_v31 = vpop.permute.xlu1 %8511  ;;  %v8510_v25 = vpop.permute.xlu0 %8509 }
 0xb1c   : > { %v8569_v13 = vadd.f32 %v8490_v60, %v8409_v20 }
 0xb1d   : > { %8602 = vst.msk [vmem:[%s13778_s21 + $0x88] sm:$0xff] %vm372_vm11, %v8570_v10 }
 0xb1e   : > { %8601 = vst.msk [vmem:[%s13778_s21 + $0x80] sm:$0xff] %vm372_vm11, %v8569_v13 }
 0xb29   : > { %v8983_v5 = vpop.f32.mrb[50].mxu0 }
 0xb2a   : > { %v8266_v36 = vadd.f32 %v8983_v5, %v13760_v53  ;;  %v8260_v63 = vpop.f32.mrb[51].mxu0 }
 0xb2b   : > { %v8261_v15 = vadd.f32 %v13760_v53, %v8260_v63 }
 0xb2c   : > { %vm8348_vm4 = vcmp.ge.f32.partialorder %v8266_v36, 0.0  ;;  %v8380_v30 = vmul.f32 0.2, %v8266_v36 }
 0xb2d   : > { %vm8347_vm5 = vcmp.ge.f32.partialorder %v8261_v15, 0.0  ;;  %v8379_v45 = vmul.f32 0.2, %v8261_v15 }
 0xb2e   : > { %v8412_v9 = vsel %vm8348_vm4, %v8266_v36, %v8380_v30 }
 0xb2f   : > { %v8572_v2 = vadd.f32 %v8496_v35, %v8412_v9  ;;  %v8411_v55 = vsel %vm8347_vm5, %v8261_v15, %v8379_v45  ;;  %v8516_v15 = vpop.permute.xlu1 %8515  ;;  %v8514_v45 = vpop.permute.xlu0 %8513 }
 0xb30   : > { %v8571_v7 = vadd.f32 %v8494_v23, %v8411_v55 }
 0xb31   : > { %8604 = vst.msk [vmem:[%s13778_s21 + $0x98] sm:$0xff] %vm372_vm11, %v8572_v2 }
 0xb32   : > { %8603 = vst.msk [vmem:[%s13778_s21 + $0x90] sm:$0xff] %vm372_vm11, %v8571_v7 }
 0xb3d   : > { %v8986_v14 = vpop.f32.mrb[52].mxu0 }
 0xb3e   : > { %v8276_v57 = vadd.f32 %v8986_v14, %v13760_v53  ;;  %v8270_v40 = vpop.f32.mrb[53].mxu0 }
 0xb3f   : > { %v8271_v29 = vadd.f32 %v13760_v53, %v8270_v40 }
 0xb40   : > { %vm8350_vm6 = vcmp.ge.f32.partialorder %v8276_v57, 0.0  ;;  %v8382_v8 = vmul.f32 0.2, %v8276_v57 }
 0xb41   : > { %vm8349_vm7 = vcmp.ge.f32.partialorder %v8271_v29, 0.0  ;;  %v8381_v22 = vmul.f32 0.2, %v8271_v29 }
 0xb42   : > { %v8414_v33 = vsel %vm8350_vm6, %v8276_v57, %v8382_v8 }
 0xb43   : > { %v8574_v58 = vadd.f32 %v8500_v46, %v8414_v33  ;;  %v8413_v43 = vsel %vm8349_vm7, %v8271_v29, %v8381_v22  ;;  %v8520_v29 = vpop.permute.xlu1 %8519  ;;  %v8518_v22 = vpop.permute.xlu0 %8517 }
 0xb44   : > { %v8573_v27 = vadd.f32 %v8498_v11, %v8413_v43 }
 0xb45   : > { %8606 = vst.msk [vmem:[%s13778_s21 + $0xa8] sm:$0xff] %vm372_vm11, %v8574_v58 }
 0xb46   : > { %8605 = vst.msk [vmem:[%s13778_s21 + $0xa0] sm:$0xff] %vm372_vm11, %v8573_v27 }
 0xb51   : > { %v8989_v48 = vpop.f32.mrb[54].mxu0 }
 0xb52   : > { %v8286_v34 = vadd.f32 %v8989_v48, %v13760_v53  ;;  %v8280_v32 = vpop.f32.mrb[55].mxu0 }
 0xb53   : > { %v8281_v44 = vadd.f32 %v13760_v53, %v8280_v32 }
 0xb54   : > { %vm8352_vm14 = vcmp.ge.f32.partialorder %v8286_v34, 0.0  ;;  %v8384_v0 = vmul.f32 0.2, %v8286_v34 }
 0xb55   : > { %vm8351_vm15 = vcmp.ge.f32.partialorder %v8281_v44, 0.0  ;;  %v8383_v38 = vmul.f32 0.2, %v8281_v44 }
 0xb56   : > { %v8416_v61 = vsel %vm8352_vm14, %v8286_v34, %v8384_v0 }
 0xb57   : > { %v8576_v16 = vadd.f32 %v8504_v37, %v8416_v61  ;;  %v8415_v21 = vsel %vm8351_vm15, %v8281_v44, %v8383_v38 }
 0xb58   : > { %v8575_v17 = vadd.f32 %v8502_v49, %v8415_v21 }
 0xb59   : > { %8608 = vst.msk [vmem:[%s13778_s21 + $0xb8] sm:$0xff] %vm372_vm11, %v8576_v16 }
 0xb5a   : > { %8607 = vst.msk [vmem:[%s13778_s21 + $0xb0] sm:$0xff] %vm372_vm11, %v8575_v17 }
 0xb65   : > { %v8992_v4 = vpop.f32.mrb[56].mxu0 }
 0xb66   : > { %v8296_v51 = vadd.f32 %v8992_v4, %v13760_v53  ;;  %v8290_v19 = vpop.f32.mrb[57].mxu0 }
 0xb67   : > { %v8291_v6 = vadd.f32 %v13760_v53, %v8290_v19 }
 0xb68   : > { %vm8354_vm8 = vcmp.ge.f32.partialorder %v8296_v51, 0.0  ;;  %v8386_v24 = vmul.f32 0.2, %v8296_v51 }
 0xb69   : > { %vm8353_vm9 = vcmp.ge.f32.partialorder %v8291_v6, 0.0  ;;  %v8385_v39 = vmul.f32 0.2, %v8291_v6 }
 0xb6a   : > { %v8418_v50 = vsel %vm8354_vm8, %v8296_v51, %v8386_v24 }
 0xb6b   : > { %v8578_v28 = vadd.f32 %v8508_v52, %v8418_v50  ;;  %v8417_v26 = vsel %vm8353_vm9, %v8291_v6, %v8385_v39 }
 0xb6c   : > { %v8577_v62 = vadd.f32 %v8506_v47, %v8417_v26 }
 0xb6d   : > { %8610 = vst.msk [vmem:[%s13778_s21 + $0xc8] sm:$0xff] %vm372_vm11, %v8578_v28 }
 0xb6e   : > { %8609 = vst.msk [vmem:[%s13778_s21 + $0xc0] sm:$0xff] %vm372_vm11, %v8577_v62 }
 0xb79   : > { %v8995_v56 = vpop.f32.mrb[58].mxu0 }
 0xb7a   : > { %v8306_v3 = vadd.f32 %v8995_v56, %v13760_v53  ;;  %v8300_v12 = vpop.f32.mrb[59].mxu0 }
 0xb7b   : > { %v8301_v59 = vadd.f32 %v13760_v53, %v8300_v12 }
 0xb7c   : > { %vm8356_vm10 = vcmp.ge.f32.partialorder %v8306_v3, 0.0  ;;  %v8388_v1 = vmul.f32 0.2, %v8306_v3 }
 0xb7d   : > { %vm8355_vm12 = vcmp.ge.f32.partialorder %v8301_v59, 0.0  ;;  %v8387_v18 = vmul.f32 0.2, %v8301_v59 }
 0xb7e   : > { %v8420_v54 = vsel %vm8356_vm10, %v8306_v3, %v8388_v1 }
 0xb7f   : > { %v8580_v42 = vadd.f32 %v8512_v31, %v8420_v54  ;;  %v8419_v41 = vsel %vm8355_vm12, %v8301_v59, %v8387_v18 }
 0xb80   : > { %v8579_v60 = vadd.f32 %v8510_v25, %v8419_v41 }
 0xb81   : > { %8612 = vst.msk [vmem:[%s13778_s21 + $0xd8] sm:$0xff] %vm372_vm11, %v8580_v42 }
 0xb82   : > { %8611 = vst.msk [vmem:[%s13778_s21 + $0xd0] sm:$0xff] %vm372_vm11, %v8579_v60 }
 0xb8d   : > { %v8998_v10 = vpop.f32.mrb[60].mxu0 }
 0xb8e   : > { %v8316_v20 = vadd.f32 %v8998_v10, %v13760_v53  ;;  %v8310_v13 = vpop.f32.mrb[61].mxu0 }
 0xb8f   : > { %v8311_v5 = vadd.f32 %v13760_v53, %v8310_v13 }
 0xb90   : > { %vm8358_vm13 = vcmp.ge.f32.partialorder %v8316_v20, 0.0  ;;  %v8390_v36 = vmul.f32 0.2, %v8316_v20 }
 0xb91   : > { %vm8357_vm0 = vcmp.ge.f32.partialorder %v8311_v5, 0.0  ;;  %v8389_v63 = vmul.f32 0.2, %v8311_v5 }
 0xb92   : > { %v8422_v30 = vsel %vm8358_vm13, %v8316_v20, %v8390_v36 }
 0xb93   : > { %v8582_v35 = vadd.f32 %v8516_v15, %v8422_v30  ;;  %v8421_v9 = vsel %vm8357_vm0, %v8311_v5, %v8389_v63 }
 0xb94   : > { %v8581_v23 = vadd.f32 %v8514_v45, %v8421_v9 }
 0xb95   : > { %8614 = vst.msk [vmem:[%s13778_s21 + $0xe8] sm:$0xff] %vm372_vm11, %v8582_v35 }
 0xb96   : > { %8613 = vst.msk [vmem:[%s13778_s21 + $0xe0] sm:$0xff] %vm372_vm11, %v8581_v23 }
 0xb9c   : > { %v9001_v2 = vpop.f32.mrb[62].mxu0 }
 0xb9d   : > { %v8326_v55 = vadd.f32 %v9001_v2, %v13760_v53  ;;  %v8320_v7 = vpop.f32.mrb[63].mxu0 }
 0xb9e   : > { %v8321_v14 = vadd.f32 %v13760_v53, %v8320_v7 }
 0xb9f   : > { %vm8360_vm1 = vcmp.ge.f32.partialorder %v8326_v55, 0.0  ;;  %v8392_v57 = vmul.f32 0.2, %v8326_v55 }
 0xba0   : > { %vm8359_vm2 = vcmp.ge.f32.partialorder %v8321_v14, 0.0  ;;  %v8391_v40 = vmul.f32 0.2, %v8321_v14 }
 0xba1   : > { %v8424_v8 = vsel %vm8360_vm1, %v8326_v55, %v8392_v57 }
 0xba2   : > { %v8584_v46 = vadd.f32 %v8520_v29, %v8424_v8  ;;  %v8423_v33 = vsel %vm8359_vm2, %v8321_v14, %v8391_v40 }
 0xba3   : > { %v8583_v11 = vadd.f32 %v8518_v22, %v8423_v33 }
 0xba4   : > { %8616 = vst.msk [vmem:[%s13778_s21 + $0xf8] sm:$0xff] %vm372_vm11, %v8584_v46 }
 0xba5   : > { %8615 = vst.msk [vmem:[%s13778_s21 + $0xf0] sm:$0xff] %vm372_vm11, %v8583_v11 }
 0xba6 PF: > { %s18_s27 = sadd.s32 1, %s9088_s27  }
 0xba7   : > { %p15_p4 = scmp.ge.s32.totalorder %s18_s27, 4  }
 0xba9   :  { %17 = sbr.rel (!%p15_p4) target bundleno = 1 (0x1), region = 94 }

</bundles_post_ra>
